<compile_context>
chip_gen: v7x
topology: tpu7x:2x2x1
jax: 0.10.0
libtpu: 0.0.40
codegen_flags: <defaults>
</compile_context>

<pallas_src>
import functools
import math

import jax
import jax.numpy as jnp
import numpy as np
from jax import lax
from jax.experimental import pallas as pl
from jax.experimental.pallas import tpu as pltpu

_GROUPS = 4  # nn.GroupNorm(4, channels) everywhere in the module


# --------------------------------------------------------------------------------------
# in-kernel helpers
# --------------------------------------------------------------------------------------
def _silu(y):
    # SiLU via the EUP tanh: sigmoid(y) = 0.5*(1 + tanh(y/2))  -> no full-size VPU divide.
    return 0.5 * y * (jnp.tanh(0.5 * y) + 1.0)


def _gn_silu(t, ones_row, oh_mean, oht, gamma, beta, eps):
    """GroupNorm + SiLU on a (H, W, BtC) tile.

    Group membership (and 1/N) is encoded in `oh_mean` (BtC, G) / `oht` (G, BtC); the
    spatial reductions run on the otherwise-idle MXU.  Two-pass variance; gamma is folded
    into the per-lane scale before the single full-size FMA."""
    H, W, BtC = t.shape
    t2d = t.reshape(H * W, BtC)
    s = jnp.dot(ones_row, t2d, preferred_element_type=jnp.float32)              # (1, BtC)
    g_mean = jnp.dot(s, oh_mean, preferred_element_type=jnp.float32)            # (1, G)
    mean_c = jnp.dot(g_mean, oht, preferred_element_type=jnp.float32)           # (1, BtC)
    c = t - mean_c
    s2 = jnp.dot(ones_row, (c * c).reshape(H * W, BtC),
                 preferred_element_type=jnp.float32)                            # (1, BtC)
    g_var = jnp.dot(s2, oh_mean, preferred_element_type=jnp.float32)            # (1, G)
    rstd = lax.rsqrt(g_var + eps)
    scale_c = jnp.dot(rstd, oht, preferred_element_type=jnp.float32) * gamma    # (1, BtC)
    return _silu(c * scale_c + beta)


def _dw_conv_strips(pad_ref, dst_ref, w_ref, bias, taps, H, W, strip):
    """Depthwise conv: read from the zero-haloed `pad_ref`, write (H, W, BtC) to `dst_ref`.

    `taps` is a static tuple of (row_off, col_off, weight_row).  Runs in H-strips under
    lax.fori_loop(unroll=True) so the strip accumulator stays in vregs across all taps."""
    n_strips = H // strip

    def body(s, carry):
        h0 = pl.multiple_of(s * strip, strip)
        acc = bias                              # (1, BtC), broadcasts over (strip, W, BtC)
        for (oy, ox, wi) in taps:
            acc = acc + pad_ref[pl.ds(h0 + oy, strip), pl.ds(ox, W), :] * w_ref[wi]
        dst_ref[pl.ds(h0, strip), :, :] = acc
        return carry

    lax.fori_loop(0, n_strips, body, 0, unroll=True)


# --------------------------------------------------------------------------------------
# kernel
# --------------------------------------------------------------------------------------
def dpw_kernel(x_ref,
               w0_ref, b0_ref,
               gn1w_ref, gn1b_ref, oh1m_ref, oh1t_ref,
               w12_ref, b12_ref,
               gnpw_ref, gnpb_ref, ohpm_ref, ohpt_ref,
               wblk_ref, bp_ref,
               out_ref,
               pad_ref, t0_ref,
               *, taps0, taps12, strip, pad_h, pad_w, eps):
    _, H, W, BtC = x_ref.shape
    Hp, Wp, _ = pad_ref.shape

    # --- zero only the halo ring of the shared padded scratch; the interior is always
    #     rewritten below.  (Re-zeroed every step: on multi-TC parts each core owns its
    #     own scratch instance, so a program_id==0 guard would be unsafe.) ---
    pad_ref[pl.ds(0, pad_h), :, :] = jnp.zeros((pad_h, Wp, BtC), jnp.float32)
    pad_ref[pl.ds(pad_h + H, pad_h), :, :] = jnp.zeros((pad_h, Wp, BtC), jnp.float32)
    pad_ref[:, pl.ds(0, pad_w), :] = jnp.zeros((Hp, pad_w, BtC), jnp.float32)
    pad_ref[:, pl.ds(pad_w + W, pad_w), :] = jnp.zeros((Hp, pad_w, BtC), jnp.float32)

    # --- DW_conv0: depthwise 3x3 (dilation d0) over all channels ---
    pad_ref[pl.ds(pad_h, H), pl.ds(pad_w, W), :] = x_ref[0]
    _dw_conv_strips(pad_ref, t0_ref, w0_ref, b0_ref[...], taps0, H, W, strip)

    # --- GN(4,C0) ++ GN(4,C1) (merged as Bt*8 groups) + SiLU; refill the pad interior ---
    ones_row = jnp.ones((1, H * W), jnp.float32)
    a = _gn_silu(t0_ref[...], ones_row, oh1m_ref[...], oh1t_ref[...],
                 gn1w_ref[...], gn1b_ref[...], eps)
    pad_ref[pl.ds(pad_h, H), pl.ds(pad_w, W), :] = a

    # --- branch convs: 3x3 on the first C0 lanes + dilated 5x5 on the last C1 lanes,
    #     realized as one 34-tap depthwise conv with channel-masked weights (this IS
    #     concat([x1, x2]) because the weight supports are disjoint) ---
    _dw_conv_strips(pad_ref, t0_ref, w12_ref, b12_ref[...], taps12, H, W, strip)

    # --- final GN(4,C) + SiLU, then the 1x1 conv as a bf16 block-diagonal MXU matmul ---
    y = _gn_silu(t0_ref[...], ones_row, ohpm_ref[...], ohpt_ref[...],
                 gnpw_ref[...], gnpb_ref[...], eps)
    yb = y.astype(jnp.bfloat16).reshape(H * W, BtC)
    out = jnp.dot(yb, wblk_ref[...], preferred_element_type=jnp.float32) + bp_ref[...]
    out_ref[0] = out.reshape(H, W, BtC).astype(out_ref.dtype)


# --------------------------------------------------------------------------------------
# wrapper
# --------------------------------------------------------------------------------------
def dpw_pallas(x_nchw, params, dw_dilation=(1, 2, 3), channel_split=(1, 3), eps=1e-5):
    B, C, H, W = x_nchw.shape
    # exact integer split (avoids float-rounding mis-splits for some C)
    C0 = C * channel_split[0] // sum(channel_split)
    C1 = C - C0
    assert C0 % _GROUPS == 0 and C1 % _GROUPS == 0 and C % _GROUPS == 0
    d0, d2 = int(dw_dilation[0]), int(dw_dilation[1])

    # fold Bt batch elements into the lane axis next to C so lanes are (close to) full.
    # Note: maximizing Bt trades away grid extent (v7x 2-TC parallelism); lane density is
    # the bigger lever on all generations.
    if C >= 128:
        Bt = 1
    else:
        Bt = max(1, min(B, 128 // C))
        while B % Bt:
            Bt -= 1
    Bg = B // Bt
    BtC = Bt * C

    p_max = max(d0, 1, 2 * d2)
    pad_h = p_max
    pad_w = ((p_max + 7) // 8) * 8          # round W halo up so interior stores are aligned
    strip = math.gcd(H, 8)

    # static tap tables: (row_offset, col_offset, weight_row) into the shared padded buffer
    taps0 = tuple((pad_h - d0 + ky * d0, pad_w - d0 + kx * d0, ky * 3 + kx)
                  for ky in range(3) for kx in range(3))
    p2 = 2 * d2
    taps12 = tuple((pad_h - 1 + ky, pad_w - 1 + kx, ky * 3 + kx)
                   for ky in range(3) for kx in range(3))
    taps12 += tuple((pad_h - p2 + ky * d2, pad_w - p2 + kx * d2, 9 + ky * 5 + kx)
                    for ky in range(5) for kx in range(5))

    # ---- parameter re-layout (host side) ----
    f32 = jnp.float32
    tile_lane = lambda v: jnp.tile(v.astype(f32), (Bt,))[None, :]          # (C,) -> (1, BtC)

    def dw_taps(w):                                                        # (c,1,k,k) -> (k*k, c)
        c, _, k, _ = w.shape
        return jnp.transpose(w[:, 0], (1, 2, 0)).reshape(k * k, c).astype(f32)

    w0_k = jnp.tile(dw_taps(params["w0"]), (1, Bt))[:, None, :]            # (9, 1, BtC)
    b0_k = tile_lane(params["b0"])

    w1e = jnp.concatenate([dw_taps(params["w1"]), jnp.zeros((9, C1), f32)], axis=1)
    w2e = jnp.concatenate([jnp.zeros((25, C0), f32), dw_taps(params["w2"])], axis=1)
    w12_k = jnp.tile(jnp.concatenate([w1e, w2e], axis=0), (1, Bt))[:, None, :]  # (34, 1, BtC)
    b12_k = tile_lane(jnp.concatenate([params["b1"], params["b2"]]))

    gn1w_k = tile_lane(jnp.concatenate([params["gn1_w"], params["gn2_w"]]))
    gn1b_k = tile_lane(jnp.concatenate([params["gn1_b"], params["gn2_b"]]))
    gnpw_k = tile_lane(params["gnp_w"])
    gnpb_k = tile_lane(params["gnp_b"])

    # group one-hot projectors (static numpy); 1/N folded into the "mean" projector
    ch = np.arange(C)
    g1 = np.where(ch < C0, ch // (C0 // _GROUPS),
                  _GROUPS + (ch - C0) // (C1 // _GROUPS))                  # 2*_GROUPS groups/tile
    n1 = np.where(np.arange(2 * _GROUPS) < _GROUPS,
                  H * W * (C0 // _GROUPS), H * W * (C1 // _GROUPS)).astype(np.float32)
    gp = ch // (C // _GROUPS)
    n_p = np.full(_GROUPS, float(H * W * (C // _GROUPS)), np.float32)

    def onehots(g_of_ch, n_of_g, n_groups):
        lane_g = np.tile(g_of_ch, Bt) + np.repeat(np.arange(Bt), C) * n_groups
        oh = (lane_g[:, None] == np.arange(Bt * n_groups)[None, :]).astype(np.float32)
        oh_mean = oh / np.tile(n_of_g, Bt)[None, :]
        return jnp.asarray(oh_mean), jnp.asarray(oh.T)

    oh1m, oh1t = onehots(g1, n1, 2 * _GROUPS)
    ohpm, ohpt = onehots(gp, n_p, _GROUPS)

    # 1x1 conv: block-diagonal (BtC, BtC) bf16 weight = kron(I_Bt, Wp^T); bias kept in f32
    wpT = params["wp"].reshape(C, C).T.astype(f32)
    wblk = jnp.kron(jnp.eye(Bt, dtype=f32), wpT).astype(jnp.bfloat16)
    bp_k = tile_lane(params["bp"])

    # ---- input: (B,C,H,W) -> (Bg, H, W, Bt*C), batch folded next to C on the lane axis ----
    x_k = jnp.transpose(x_nchw.reshape(Bg, Bt, C, H, W), (0, 3, 4, 1, 2)).reshape(Bg, H, W, BtC)
    # TODO(synk): these NCHW<->lane-packed relayouts are an extra HBM round trip that would
    # vanish if the surrounding model carried channels-last activations end-to-end.

    rep2 = lambda b: (0, 0)
    rep3 = lambda b: (0, 0, 0)
    batch4 = lambda b: (b, 0, 0, 0)
    row_spec = pl.BlockSpec((1, BtC), rep2)
    in_specs = [
        pl.BlockSpec((1, H, W, BtC), batch4),                              # x
        pl.BlockSpec((9, 1, BtC), rep3), row_spec,                         # w0, b0
        row_spec, row_spec,                                                # gn1 gamma/beta
        pl.BlockSpec((BtC, Bt * 2 * _GROUPS), rep2),                       # oh1_mean
        pl.BlockSpec((Bt * 2 * _GROUPS, BtC), rep2),                       # oh1^T
        pl.BlockSpec((34, 1, BtC), rep3), row_spec,                        # w12, b12
        row_spec, row_spec,                                                # gnp gamma/beta
        pl.BlockSpec((BtC, Bt * _GROUPS), rep2),                           # ohp_mean
        pl.BlockSpec((Bt * _GROUPS, BtC), rep2),                           # ohp^T
        pl.BlockSpec((BtC, BtC), rep2),                                    # wblk (bf16)
        row_spec,                                                          # bp
    ]

    flops = Bg * H * W * BtC * (110 + 2 * BtC)
    cost = pl.CostEstimate(flops=int(flops),
                           transcendentals=int(2 * B * H * W * C),
                           bytes_accessed=int(8 * B * H * W * C + 2 * BtC * BtC + 280 * BtC))

    kernel = functools.partial(dpw_kernel, taps0=taps0, taps12=taps12, strip=strip,
                               pad_h=pad_h, pad_w=pad_w, eps=eps)
    out_k = pl.pallas_call(
        kernel,
        out_shape=jax.ShapeDtypeStruct((Bg, H, W, BtC), x_nchw.dtype),
        grid_spec=pltpu.PrefetchScalarGridSpec(
            num_scalar_prefetch=0,
            grid=(Bg,),
            in_specs=in_specs,
            out_specs=pl.BlockSpec((1, H, W, BtC), batch4),
            scratch_shapes=[
                pltpu.VMEM((H + 2 * pad_h, W + 2 * pad_w, BtC), jnp.float32),  # shared halo buf
                pltpu.VMEM((H, W, BtC), jnp.float32),                          # x0 / xc slab
            ],
        ),
        compiler_params=pltpu.CompilerParams(
            dimension_semantics=("parallel",),
            vmem_limit_bytes=32 * 1024 * 1024),
        cost_estimate=cost,
    )(x_k, w0_k, b0_k, gn1w_k, gn1b_k, oh1m, oh1t, w12_k, b12_k,
      gnpw_k, gnpb_k, ohpm, ohpt, wblk, bp_k)

    # back to NCHW
    return jnp.transpose(out_k.reshape(Bg, H, W, Bt, C), (0, 3, 4, 1, 2)).reshape(B, C, H, W)


# --------------------------------------------------------------------------------------
# pure-JAX reference (mirrors the PyTorch forward) + params + test
# --------------------------------------------------------------------------------------
def _gn_ref(x, gamma, beta, eps):
    B, C, H, W = x.shape
    xg = x.reshape(B, _GROUPS, C // _GROUPS, H, W)
    mean = xg.mean(axis=(2, 3, 4), keepdims=True)
    var = xg.var(axis=(2, 3, 4), keepdims=True)
    xn = ((xg - mean) / jnp.sqrt(var + eps)).reshape(B, C, H, W)
    return xn * gamma.reshape(1, C, 1, 1) + beta.reshape(1, C, 1, 1)


def _dw_conv_ref(x, w, b, dilation, padding):
    C = x.shape[1]
    out = lax.conv_general_dilated(
        x, w, window_strides=(1, 1),
        padding=[(padding, padding), (padding, padding)],
        rhs_dilation=(dilation, dilation),
        dimension_numbers=("NCHW", "OIHW", "NCHW"),
        feature_group_count=C)
    return out + b.reshape(1, C, 1, 1)


def dpw_reference(x, params, dw_dilation=(1, 2, 3), channel_split=(1, 3), eps=1e-5):
    B, C, H, W = x.shape
    C0 = C * channel_split[0] // sum(channel_split)
    d0, d2 = dw_dilation[0], dw_dilation[1]
    silu = lambda t: t * jax.nn.sigmoid(t)

    x0 = _dw_conv_ref(x, params["w0"], params["b0"], d0, (1 + 2 * d0) // 2)
    a1 = silu(_gn_ref(x0[:, :C0], params["gn1_w"], params["gn1_b"], eps))
    x1 = _dw_conv_ref(a1, params["w1"], params["b1"], 1, 1)
    a2 = silu(_gn_ref(x0[:, C0:], params["gn2_w"], params["gn2_b"], eps))
    x2 = _dw_conv_ref(a2, params["w2"], params["b2"], d2, (1 + 4 * d2) // 2)
    xc = jnp.concatenate([x1, x2], axis=1)
    ap = silu(_gn_ref(xc, params["gnp_w"], params["gnp_b"], eps))
    wp = params["wp"].reshape(C, C)
    return jnp.einsum("oc,bchw->bohw", wp, ap) + params["bp"].reshape(1, C, 1, 1)


def init_params(key, C, channel_split=(1, 3)):
    C0 = C * channel_split[0] // sum(channel_split)
    C1 = C - C0
    ks = iter(jax.random.split(key, 14))
    rnd = lambda shape, s: s * jax.random.normal(next(ks), shape, jnp.float32)
    return {
        "w0": rnd((C, 1, 3, 3), 0.3), "b0": rnd((C,), 0.1),
        "gn1_w": 1.0 + rnd((C0,), 0.1), "gn1_b": rnd((C0,), 0.1),
        "w1": rnd((C0, 1, 3, 3), 0.3), "b1": rnd((C0,), 0.1),
        "gn2_w": 1.0 + rnd((C1,), 0.1), "gn2_b": rnd((C1,), 0.1),
        "w2": rnd((C1, 1, 5, 5), 0.3), "b2": rnd((C1,), 0.1),
        "gnp_w": 1.0 + rnd((C,), 0.1), "gnp_b": rnd((C,), 0.1),
        "wp": rnd((C, C, 1, 1), 0.2), "bp": rnd((C,), 0.1),
    }


if __name__ == "__main__":
    # C must be divisible by 16 (GroupNorm(4) on both splits); B*C = 256 -> Bt=4, full lanes,
    # grid=(2,) so both v7x TensorCores get work.
    B, C, H, W = 8, 32, 16, 16

    key = jax.random.PRNGKey(0)
    kx, kp = jax.random.split(key)
    x = jax.random.normal(kx, (B, C, H, W), jnp.float32)
    params = init_params(kp, C)

    out = jax.block_until_ready(dpw_pallas(x, params))
    ref = dpw_reference(x, params)
    assert out.shape == (B, C, H, W)
    # tolerance loosened vs pure-f32 because the 1x1 conv runs with bf16 MXU operands
    np.testing.assert_allclose(np.asarray(out), np.asarray(ref), rtol=3e-2, atol=3e-2)
    print("KERNEL_OK")
</pallas_src>

<mosaic_0001>
module attributes {stable_mosaic.version = 11 : i64} {
  func.func @dpw_kernel(%arg0: i32, %arg1: memref<1x16x16x128xf32, #tpu.memory_space<vmem>>, %arg2: memref<9x1x128xf32, #tpu.memory_space<vmem>>, %arg3: memref<1x128xf32, #tpu.memory_space<vmem>>, %arg4: memref<1x128xf32, #tpu.memory_space<vmem>>, %arg5: memref<1x128xf32, #tpu.memory_space<vmem>>, %arg6: memref<128x32xf32, #tpu.memory_space<vmem>>, %arg7: memref<32x128xf32, #tpu.memory_space<vmem>>, %arg8: memref<34x1x128xf32, #tpu.memory_space<vmem>>, %arg9: memref<1x128xf32, #tpu.memory_space<vmem>>, %arg10: memref<1x128xf32, #tpu.memory_space<vmem>>, %arg11: memref<1x128xf32, #tpu.memory_space<vmem>>, %arg12: memref<128x16xf32, #tpu.memory_space<vmem>>, %arg13: memref<16x128xf32, #tpu.memory_space<vmem>>, %arg14: memref<128x128xbf16, #tpu.memory_space<vmem>>, %arg15: memref<1x128xf32, #tpu.memory_space<vmem>>, %arg16: memref<1x16x16x128xf32, #tpu.memory_space<vmem>>, %arg17: memref<24x32x128xf32, #tpu.memory_space<vmem>>, %arg18: memref<16x16x128xf32, #tpu.memory_space<vmem>>) attributes {dimension_semantics = [#tpu.dimension_semantics<parallel>], iteration_bounds = array<i64: 2>, scalar_prefetch = 0 : i64, scratch_operands = 2 : i64, tpu.core_type = #tpu.core_type<tc>, window_params = [{transform_indices = @transform_0, window_bounds = array<i64: 1, 16, 16, 128>}, {pipeline_mode = #tpu.pipeline_mode<synchronous>, transform_indices = @transform_1, window_bounds = array<i64: 9, 1, 128>}, {pipeline_mode = #tpu.pipeline_mode<synchronous>, transform_indices = @transform_2, window_bounds = array<i64: 1, 128>}, {pipeline_mode = #tpu.pipeline_mode<synchronous>, transform_indices = @transform_3, window_bounds = array<i64: 1, 128>}, {pipeline_mode = #tpu.pipeline_mode<synchronous>, transform_indices = @transform_4, window_bounds = array<i64: 1, 128>}, {pipeline_mode = #tpu.pipeline_mode<synchronous>, transform_indices = @transform_5, window_bounds = array<i64: 128, 32>}, {pipeline_mode = #tpu.pipeline_mode<synchronous>, transform_indices = @transform_6, window_bounds = array<i64: 32, 128>}, {pipeline_mode = #tpu.pipeline_mode<synchronous>, transform_indices = @transform_7, window_bounds = array<i64: 34, 1, 128>}, {pipeline_mode = #tpu.pipeline_mode<synchronous>, transform_indices = @transform_8, window_bounds = array<i64: 1, 128>}, {pipeline_mode = #tpu.pipeline_mode<synchronous>, transform_indices = @transform_9, window_bounds = array<i64: 1, 128>}, {pipeline_mode = #tpu.pipeline_mode<synchronous>, transform_indices = @transform_10, window_bounds = array<i64: 1, 128>}, {pipeline_mode = #tpu.pipeline_mode<synchronous>, transform_indices = @transform_11, window_bounds = array<i64: 128, 16>}, {pipeline_mode = #tpu.pipeline_mode<synchronous>, transform_indices = @transform_12, window_bounds = array<i64: 16, 128>}, {pipeline_mode = #tpu.pipeline_mode<synchronous>, transform_indices = @transform_13, window_bounds = array<i64: 128, 128>}, {pipeline_mode = #tpu.pipeline_mode<synchronous>, transform_indices = @transform_14, window_bounds = array<i64: 1, 128>}, {transform_indices = @transform_15, window_bounds = array<i64: 1, 16, 16, 128>}]} {
    %cst = arith.constant 0.000000e+00 : f32
    %0 = vector.broadcast %cst : f32 to vector<4x32x128xf32>
    %c0 = arith.constant 0 : index
    %c0_0 = arith.constant 0 : index
    %c0_1 = arith.constant 0 : index
    %1 = vector.load %arg17[%c0, %c0_0, %c0_1] : memref<24x32x128xf32, #tpu.memory_space<vmem>>, vector<4x32x128xf32>
    tpu.vector_store %arg17[%c0, %c0_0, %c0_1], %0 {strides = array<i32>} : memref<24x32x128xf32, #tpu.memory_space<vmem>>, vector<4x32x128xf32>,
    %cst_2 = arith.constant 0.000000e+00 : f32
    %2 = vector.broadcast %cst_2 : f32 to vector<4x32x128xf32>
    %c20 = arith.constant 20 : index
    %c0_3 = arith.constant 0 : index
    %c0_4 = arith.constant 0 : index
    %3 = vector.load %arg17[%c20, %c0_3, %c0_4] : memref<24x32x128xf32, #tpu.memory_space<vmem>>, vector<4x32x128xf32>
    tpu.vector_store %arg17[%c20, %c0_3, %c0_4], %2 {strides = array<i32>} : memref<24x32x128xf32, #tpu.memory_space<vmem>>, vector<4x32x128xf32>,
    %cst_5 = arith.constant 0.000000e+00 : f32
    %4 = vector.broadcast %cst_5 : f32 to vector<24x8x128xf32>
    %c0_6 = arith.constant 0 : index
    %c0_7 = arith.constant 0 : index
    %c0_8 = arith.constant 0 : index
    %5 = vector.load %arg17[%c0_6, %c0_7, %c0_8] : memref<24x32x128xf32, #tpu.memory_space<vmem>>, vector<24x8x128xf32>
    tpu.vector_store %arg17[%c0_6, %c0_7, %c0_8], %4 {strides = array<i32>} : memref<24x32x128xf32, #tpu.memory_space<vmem>>, vector<24x8x128xf32>,
    %cst_9 = arith.constant 0.000000e+00 : f32
    %6 = vector.broadcast %cst_9 : f32 to vector<24x8x128xf32>
    %c0_10 = arith.constant 0 : index
    %c24 = arith.constant 24 : index
    %c0_11 = arith.constant 0 : index
    %7 = vector.load %arg17[%c0_10, %c24, %c0_11] : memref<24x32x128xf32, #tpu.memory_space<vmem>>, vector<24x8x128xf32>
    tpu.vector_store %arg17[%c0_10, %c24, %c0_11], %6 {strides = array<i32>} : memref<24x32x128xf32, #tpu.memory_space<vmem>>, vector<24x8x128xf32>,
    %c0_12 = arith.constant 0 : index
    %c0_13 = arith.constant 0 : index
    %c0_14 = arith.constant 0 : index
    %c0_15 = arith.constant 0 : index
    %8 = vector.load %arg1[%c0_12, %c0_13, %c0_14, %c0_15] : memref<1x16x16x128xf32, #tpu.memory_space<vmem>>, vector<1x16x16x128xf32>
    %9 = vector.shape_cast %8 : vector<1x16x16x128xf32> to vector<16x16x128xf32>
    %c4 = arith.constant 4 : index
    %c8 = arith.constant 8 : index
    %c0_16 = arith.constant 0 : index
    %10 = vector.load %arg17[%c4, %c8, %c0_16] : memref<24x32x128xf32, #tpu.memory_space<vmem>>, vector<16x16x128xf32>
    tpu.vector_store %arg17[%c4, %c8, %c0_16], %9 {strides = array<i32>} : memref<24x32x128xf32, #tpu.memory_space<vmem>>, vector<16x16x128xf32>,
    %c0_17 = arith.constant 0 : index
    %c0_18 = arith.constant 0 : index
    %11 = vector.load %arg3[%c0_17, %c0_18] : memref<1x128xf32, #tpu.memory_space<vmem>>, vector<1x128xf32>
    %c0_i32 = arith.constant 0 : i32
    %c8_i32 = arith.constant 8 : i32
    %12 = arith.muli %c0_i32, %c8_i32 : i32
    %13 = tpu.assume_multiple %12, 8 : i32
    %c3_i32 = arith.constant 3 : i32
    %14 = arith.addi %13, %c3_i32 : i32
    %15 = arith.index_cast %14 : i32 to index
    %c7 = arith.constant 7 : index
    %c0_19 = arith.constant 0 : index
    %16 = vector.load %arg17[%15, %c7, %c0_19] : memref<24x32x128xf32, #tpu.memory_space<vmem>>, vector<8x16x128xf32>
    %c0_20 = arith.constant 0 : index
    %c0_21 = arith.constant 0 : index
    %c0_22 = arith.constant 0 : index
    %17 = vector.load %arg2[%c0_20, %c0_21, %c0_22] : memref<9x1x128xf32, #tpu.memory_space<vmem>>, vector<1x1x128xf32>
    %18 = vector.shape_cast %17 : vector<1x1x128xf32> to vector<1x128xf32>
    %19 = vector.shape_cast %18 : vector<1x128xf32> to vector<1x1x128xf32>
    %20 = vector.broadcast %19 : vector<1x1x128xf32> to vector<8x16x128xf32>
    %21 = arith.mulf %16, %20 : vector<8x16x128xf32>
    %22 = vector.shape_cast %11 : vector<1x128xf32> to vector<1x1x128xf32>
    %23 = vector.broadcast %22 : vector<1x1x128xf32> to vector<8x16x128xf32>
    %24 = arith.addf %23, %21 : vector<8x16x128xf32>
    %c3_i32_23 = arith.constant 3 : i32
    %25 = arith.addi %13, %c3_i32_23 : i32
    %26 = arith.index_cast %25 : i32 to index
    %c8_24 = arith.constant 8 : index
    %c0_25 = arith.constant 0 : index
    %27 = vector.load %arg17[%26, %c8_24, %c0_25] : memref<24x32x128xf32, #tpu.memory_space<vmem>>, vector<8x16x128xf32>
    %c1 = arith.constant 1 : index
    %c0_26 = arith.constant 0 : index
    %c0_27 = arith.constant 0 : index
    %28 = vector.load %arg2[%c1, %c0_26, %c0_27] : memref<9x1x128xf32, #tpu.memory_space<vmem>>, vector<1x1x128xf32>
    %29 = vector.shape_cast %28 : vector<1x1x128xf32> to vector<1x128xf32>
    %30 = vector.shape_cast %29 : vector<1x128xf32> to vector<1x1x128xf32>
    %31 = vector.broadcast %30 : vector<1x1x128xf32> to vector<8x16x128xf32>
    %32 = arith.mulf %27, %31 : vector<8x16x128xf32>
    %33 = arith.addf %24, %32 : vector<8x16x128xf32>
    %c3_i32_28 = arith.constant 3 : i32
    %34 = arith.addi %13, %c3_i32_28 : i32
    %35 = arith.index_cast %34 : i32 to index
    %c9 = arith.constant 9 : index
    %c0_29 = arith.constant 0 : index
    %36 = vector.load %arg17[%35, %c9, %c0_29] : memref<24x32x128xf32, #tpu.memory_space<vmem>>, vector<8x16x128xf32>
    %c2 = arith.constant 2 : index
    %c0_30 = arith.constant 0 : index
    %c0_31 = arith.constant 0 : index
    %37 = vector.load %arg2[%c2, %c0_30, %c0_31] : memref<9x1x128xf32, #tpu.memory_space<vmem>>, vector<1x1x128xf32>
    %38 = vector.shape_cast %37 : vector<1x1x128xf32> to vector<1x128xf32>
    %39 = vector.shape_cast %38 : vector<1x128xf32> to vector<1x1x128xf32>
    %40 = vector.broadcast %39 : vector<1x1x128xf32> to vector<8x16x128xf32>
    %41 = arith.mulf %36, %40 : vector<8x16x128xf32>
    %42 = arith.addf %33, %41 : vector<8x16x128xf32>
    %c4_i32 = arith.constant 4 : i32
    %43 = arith.addi %13, %c4_i32 : i32
    %44 = arith.index_cast %43 : i32 to index
    %c7_32 = arith.constant 7 : index
    %c0_33 = arith.constant 0 : index
    %45 = vector.load %arg17[%44, %c7_32, %c0_33] : memref<24x32x128xf32, #tpu.memory_space<vmem>>, vector<8x16x128xf32>
    %c3 = arith.constant 3 : index
    %c0_34 = arith.constant 0 : index
    %c0_35 = arith.constant 0 : index
    %46 = vector.load %arg2[%c3, %c0_34, %c0_35] : memref<9x1x128xf32, #tpu.memory_space<vmem>>, vector<1x1x128xf32>
    %47 = vector.shape_cast %46 : vector<1x1x128xf32> to vector<1x128xf32>
    %48 = vector.shape_cast %47 : vector<1x128xf32> to vector<1x1x128xf32>
    %49 = vector.broadcast %48 : vector<1x1x128xf32> to vector<8x16x128xf32>
    %50 = arith.mulf %45, %49 : vector<8x16x128xf32>
    %51 = arith.addf %42, %50 : vector<8x16x128xf32>
    %c4_i32_36 = arith.constant 4 : i32
    %52 = arith.addi %13, %c4_i32_36 : i32
    %53 = arith.index_cast %52 : i32 to index
    %c8_37 = arith.constant 8 : index
    %c0_38 = arith.constant 0 : index
    %54 = vector.load %arg17[%53, %c8_37, %c0_38] : memref<24x32x128xf32, #tpu.memory_space<vmem>>, vector<8x16x128xf32>
    %c4_39 = arith.constant 4 : index
    %c0_40 = arith.constant 0 : index
    %c0_41 = arith.constant 0 : index
    %55 = vector.load %arg2[%c4_39, %c0_40, %c0_41] : memref<9x1x128xf32, #tpu.memory_space<vmem>>, vector<1x1x128xf32>
    %56 = vector.shape_cast %55 : vector<1x1x128xf32> to vector<1x128xf32>
    %57 = vector.shape_cast %56 : vector<1x128xf32> to vector<1x1x128xf32>
    %58 = vector.broadcast %57 : vector<1x1x128xf32> to vector<8x16x128xf32>
    %59 = arith.mulf %54, %58 : vector<8x16x128xf32>
    %60 = arith.addf %51, %59 : vector<8x16x128xf32>
    %c4_i32_42 = arith.constant 4 : i32
    %61 = arith.addi %13, %c4_i32_42 : i32
    %62 = arith.index_cast %61 : i32 to index
    %c9_43 = arith.constant 9 : index
    %c0_44 = arith.constant 0 : index
    %63 = vector.load %arg17[%62, %c9_43, %c0_44] : memref<24x32x128xf32, #tpu.memory_space<vmem>>, vector<8x16x128xf32>
    %c5 = arith.constant 5 : index
    %c0_45 = arith.constant 0 : index
    %c0_46 = arith.constant 0 : index
    %64 = vector.load %arg2[%c5, %c0_45, %c0_46] : memref<9x1x128xf32, #tpu.memory_space<vmem>>, vector<1x1x128xf32>
    %65 = vector.shape_cast %64 : vector<1x1x128xf32> to vector<1x128xf32>
    %66 = vector.shape_cast %65 : vector<1x128xf32> to vector<1x1x128xf32>
    %67 = vector.broadcast %66 : vector<1x1x128xf32> to vector<8x16x128xf32>
    %68 = arith.mulf %63, %67 : vector<8x16x128xf32>
    %69 = arith.addf %60, %68 : vector<8x16x128xf32>
    %c5_i32 = arith.constant 5 : i32
    %70 = arith.addi %13, %c5_i32 : i32
    %71 = arith.index_cast %70 : i32 to index
    %c7_47 = arith.constant 7 : index
    %c0_48 = arith.constant 0 : index
    %72 = vector.load %arg17[%71, %c7_47, %c0_48] : memref<24x32x128xf32, #tpu.memory_space<vmem>>, vector<8x16x128xf32>
    %c6 = arith.constant 6 : index
    %c0_49 = arith.constant 0 : index
    %c0_50 = arith.constant 0 : index
    %73 = vector.load %arg2[%c6, %c0_49, %c0_50] : memref<9x1x128xf32, #tpu.memory_space<vmem>>, vector<1x1x128xf32>
    %74 = vector.shape_cast %73 : vector<1x1x128xf32> to vector<1x128xf32>
    %75 = vector.shape_cast %74 : vector<1x128xf32> to vector<1x1x128xf32>
    %76 = vector.broadcast %75 : vector<1x1x128xf32> to vector<8x16x128xf32>
    %77 = arith.mulf %72, %76 : vector<8x16x128xf32>
    %78 = arith.addf %69, %77 : vector<8x16x128xf32>
    %c5_i32_51 = arith.constant 5 : i32
    %79 = arith.addi %13, %c5_i32_51 : i32
    %80 = arith.index_cast %79 : i32 to index
    %c8_52 = arith.constant 8 : index
    %c0_53 = arith.constant 0 : index
    %81 = vector.load %arg17[%80, %c8_52, %c0_53] : memref<24x32x128xf32, #tpu.memory_space<vmem>>, vector<8x16x128xf32>
    %c7_54 = arith.constant 7 : index
    %c0_55 = arith.constant 0 : index
    %c0_56 = arith.constant 0 : index
    %82 = vector.load %arg2[%c7_54, %c0_55, %c0_56] : memref<9x1x128xf32, #tpu.memory_space<vmem>>, vector<1x1x128xf32>
    %83 = vector.shape_cast %82 : vector<1x1x128xf32> to vector<1x128xf32>
    %84 = vector.shape_cast %83 : vector<1x128xf32> to vector<1x1x128xf32>
    %85 = vector.broadcast %84 : vector<1x1x128xf32> to vector<8x16x128xf32>
    %86 = arith.mulf %81, %85 : vector<8x16x128xf32>
    %87 = arith.addf %78, %86 : vector<8x16x128xf32>
    %c5_i32_57 = arith.constant 5 : i32
    %88 = arith.addi %13, %c5_i32_57 : i32
    %89 = arith.index_cast %88 : i32 to index
    %c9_58 = arith.constant 9 : index
    %c0_59 = arith.constant 0 : index
    %90 = vector.load %arg17[%89, %c9_58, %c0_59] : memref<24x32x128xf32, #tpu.memory_space<vmem>>, vector<8x16x128xf32>
    %c8_60 = arith.constant 8 : index
    %c0_61 = arith.constant 0 : index
    %c0_62 = arith.constant 0 : index
    %91 = vector.load %arg2[%c8_60, %c0_61, %c0_62] : memref<9x1x128xf32, #tpu.memory_space<vmem>>, vector<1x1x128xf32>
    %92 = vector.shape_cast %91 : vector<1x1x128xf32> to vector<1x128xf32>
    %93 = vector.shape_cast %92 : vector<1x128xf32> to vector<1x1x128xf32>
    %94 = vector.broadcast %93 : vector<1x1x128xf32> to vector<8x16x128xf32>
    %95 = arith.mulf %90, %94 : vector<8x16x128xf32>
    %96 = arith.addf %87, %95 : vector<8x16x128xf32>
    %97 = arith.index_cast %13 : i32 to index
    %c0_63 = arith.constant 0 : index
    %c0_64 = arith.constant 0 : index
    %98 = vector.load %arg18[%97, %c0_63, %c0_64] : memref<16x16x128xf32, #tpu.memory_space<vmem>>, vector<8x16x128xf32>
    tpu.vector_store %arg18[%97, %c0_63, %c0_64], %96 {strides = array<i32>} : memref<16x16x128xf32, #tpu.memory_space<vmem>>, vector<8x16x128xf32>,
    %c1_i32 = arith.constant 1 : i32
    %c8_i32_65 = arith.constant 8 : i32
    %99 = arith.muli %c1_i32, %c8_i32_65 : i32
    %100 = tpu.assume_multiple %99, 8 : i32
    %c3_i32_66 = arith.constant 3 : i32
    %101 = arith.addi %100, %c3_i32_66 : i32
    %102 = arith.index_cast %101 : i32 to index
    %c7_67 = arith.constant 7 : index
    %c0_68 = arith.constant 0 : index
    %103 = vector.load %arg17[%102, %c7_67, %c0_68] : memref<24x32x128xf32, #tpu.memory_space<vmem>>, vector<8x16x128xf32>
    %c0_69 = arith.constant 0 : index
    %c0_70 = arith.constant 0 : index
    %c0_71 = arith.constant 0 : index
    %104 = vector.load %arg2[%c0_69, %c0_70, %c0_71] : memref<9x1x128xf32, #tpu.memory_space<vmem>>, vector<1x1x128xf32>
    %105 = vector.shape_cast %104 : vector<1x1x128xf32> to vector<1x128xf32>
    %106 = vector.shape_cast %105 : vector<1x128xf32> to vector<1x1x128xf32>
    %107 = vector.broadcast %106 : vector<1x1x128xf32> to vector<8x16x128xf32>
    %108 = arith.mulf %103, %107 : vector<8x16x128xf32>
    %109 = vector.shape_cast %11 : vector<1x128xf32> to vector<1x1x128xf32>
    %110 = vector.broadcast %109 : vector<1x1x128xf32> to vector<8x16x128xf32>
    %111 = arith.addf %110, %108 : vector<8x16x128xf32>
    %c3_i32_72 = arith.constant 3 : i32
    %112 = arith.addi %100, %c3_i32_72 : i32
    %113 = arith.index_cast %112 : i32 to index
    %c8_73 = arith.constant 8 : index
    %c0_74 = arith.constant 0 : index
    %114 = vector.load %arg17[%113, %c8_73, %c0_74] : memref<24x32x128xf32, #tpu.memory_space<vmem>>, vector<8x16x128xf32>
    %c1_75 = arith.constant 1 : index
    %c0_76 = arith.constant 0 : index
    %c0_77 = arith.constant 0 : index
    %115 = vector.load %arg2[%c1_75, %c0_76, %c0_77] : memref<9x1x128xf32, #tpu.memory_space<vmem>>, vector<1x1x128xf32>
    %116 = vector.shape_cast %115 : vector<1x1x128xf32> to vector<1x128xf32>
    %117 = vector.shape_cast %116 : vector<1x128xf32> to vector<1x1x128xf32>
    %118 = vector.broadcast %117 : vector<1x1x128xf32> to vector<8x16x128xf32>
    %119 = arith.mulf %114, %118 : vector<8x16x128xf32>
    %120 = arith.addf %111, %119 : vector<8x16x128xf32>
    %c3_i32_78 = arith.constant 3 : i32
    %121 = arith.addi %100, %c3_i32_78 : i32
    %122 = arith.index_cast %121 : i32 to index
    %c9_79 = arith.constant 9 : index
    %c0_80 = arith.constant 0 : index
    %123 = vector.load %arg17[%122, %c9_79, %c0_80] : memref<24x32x128xf32, #tpu.memory_space<vmem>>, vector<8x16x128xf32>
    %c2_81 = arith.constant 2 : index
    %c0_82 = arith.constant 0 : index
    %c0_83 = arith.constant 0 : index
    %124 = vector.load %arg2[%c2_81, %c0_82, %c0_83] : memref<9x1x128xf32, #tpu.memory_space<vmem>>, vector<1x1x128xf32>
    %125 = vector.shape_cast %124 : vector<1x1x128xf32> to vector<1x128xf32>
    %126 = vector.shape_cast %125 : vector<1x128xf32> to vector<1x1x128xf32>
    %127 = vector.broadcast %126 : vector<1x1x128xf32> to vector<8x16x128xf32>
    %128 = arith.mulf %123, %127 : vector<8x16x128xf32>
    %129 = arith.addf %120, %128 : vector<8x16x128xf32>
    %c4_i32_84 = arith.constant 4 : i32
    %130 = arith.addi %100, %c4_i32_84 : i32
    %131 = arith.index_cast %130 : i32 to index
    %c7_85 = arith.constant 7 : index
    %c0_86 = arith.constant 0 : index
    %132 = vector.load %arg17[%131, %c7_85, %c0_86] : memref<24x32x128xf32, #tpu.memory_space<vmem>>, vector<8x16x128xf32>
    %c3_87 = arith.constant 3 : index
    %c0_88 = arith.constant 0 : index
    %c0_89 = arith.constant 0 : index
    %133 = vector.load %arg2[%c3_87, %c0_88, %c0_89] : memref<9x1x128xf32, #tpu.memory_space<vmem>>, vector<1x1x128xf32>
    %134 = vector.shape_cast %133 : vector<1x1x128xf32> to vector<1x128xf32>
    %135 = vector.shape_cast %134 : vector<1x128xf32> to vector<1x1x128xf32>
    %136 = vector.broadcast %135 : vector<1x1x128xf32> to vector<8x16x128xf32>
    %137 = arith.mulf %132, %136 : vector<8x16x128xf32>
    %138 = arith.addf %129, %137 : vector<8x16x128xf32>
    %c4_i32_90 = arith.constant 4 : i32
    %139 = arith.addi %100, %c4_i32_90 : i32
    %140 = arith.index_cast %139 : i32 to index
    %c8_91 = arith.constant 8 : index
    %c0_92 = arith.constant 0 : index
    %141 = vector.load %arg17[%140, %c8_91, %c0_92] : memref<24x32x128xf32, #tpu.memory_space<vmem>>, vector<8x16x128xf32>
    %c4_93 = arith.constant 4 : index
    %c0_94 = arith.constant 0 : index
    %c0_95 = arith.constant 0 : index
    %142 = vector.load %arg2[%c4_93, %c0_94, %c0_95] : memref<9x1x128xf32, #tpu.memory_space<vmem>>, vector<1x1x128xf32>
    %143 = vector.shape_cast %142 : vector<1x1x128xf32> to vector<1x128xf32>
    %144 = vector.shape_cast %143 : vector<1x128xf32> to vector<1x1x128xf32>
    %145 = vector.broadcast %144 : vector<1x1x128xf32> to vector<8x16x128xf32>
    %146 = arith.mulf %141, %145 : vector<8x16x128xf32>
    %147 = arith.addf %138, %146 : vector<8x16x128xf32>
    %c4_i32_96 = arith.constant 4 : i32
    %148 = arith.addi %100, %c4_i32_96 : i32
    %149 = arith.index_cast %148 : i32 to index
    %c9_97 = arith.constant 9 : index
    %c0_98 = arith.constant 0 : index
    %150 = vector.load %arg17[%149, %c9_97, %c0_98] : memref<24x32x128xf32, #tpu.memory_space<vmem>>, vector<8x16x128xf32>
    %c5_99 = arith.constant 5 : index
    %c0_100 = arith.constant 0 : index
    %c0_101 = arith.constant 0 : index
    %151 = vector.load %arg2[%c5_99, %c0_100, %c0_101] : memref<9x1x128xf32, #tpu.memory_space<vmem>>, vector<1x1x128xf32>
    %152 = vector.shape_cast %151 : vector<1x1x128xf32> to vector<1x128xf32>
    %153 = vector.shape_cast %152 : vector<1x128xf32> to vector<1x1x128xf32>
    %154 = vector.broadcast %153 : vector<1x1x128xf32> to vector<8x16x128xf32>
    %155 = arith.mulf %150, %154 : vector<8x16x128xf32>
    %156 = arith.addf %147, %155 : vector<8x16x128xf32>
    %c5_i32_102 = arith.constant 5 : i32
    %157 = arith.addi %100, %c5_i32_102 : i32
    %158 = arith.index_cast %157 : i32 to index
    %c7_103 = arith.constant 7 : index
    %c0_104 = arith.constant 0 : index
    %159 = vector.load %arg17[%158, %c7_103, %c0_104] : memref<24x32x128xf32, #tpu.memory_space<vmem>>, vector<8x16x128xf32>
    %c6_105 = arith.constant 6 : index
    %c0_106 = arith.constant 0 : index
    %c0_107 = arith.constant 0 : index
    %160 = vector.load %arg2[%c6_105, %c0_106, %c0_107] : memref<9x1x128xf32, #tpu.memory_space<vmem>>, vector<1x1x128xf32>
    %161 = vector.shape_cast %160 : vector<1x1x128xf32> to vector<1x128xf32>
    %162 = vector.shape_cast %161 : vector<1x128xf32> to vector<1x1x128xf32>
    %163 = vector.broadcast %162 : vector<1x1x128xf32> to vector<8x16x128xf32>
    %164 = arith.mulf %159, %163 : vector<8x16x128xf32>
    %165 = arith.addf %156, %164 : vector<8x16x128xf32>
    %c5_i32_108 = arith.constant 5 : i32
    %166 = arith.addi %100, %c5_i32_108 : i32
    %167 = arith.index_cast %166 : i32 to index
    %c8_109 = arith.constant 8 : index
    %c0_110 = arith.constant 0 : index
    %168 = vector.load %arg17[%167, %c8_109, %c0_110] : memref<24x32x128xf32, #tpu.memory_space<vmem>>, vector<8x16x128xf32>
    %c7_111 = arith.constant 7 : index
    %c0_112 = arith.constant 0 : index
    %c0_113 = arith.constant 0 : index
    %169 = vector.load %arg2[%c7_111, %c0_112, %c0_113] : memref<9x1x128xf32, #tpu.memory_space<vmem>>, vector<1x1x128xf32>
    %170 = vector.shape_cast %169 : vector<1x1x128xf32> to vector<1x128xf32>
    %171 = vector.shape_cast %170 : vector<1x128xf32> to vector<1x1x128xf32>
    %172 = vector.broadcast %171 : vector<1x1x128xf32> to vector<8x16x128xf32>
    %173 = arith.mulf %168, %172 : vector<8x16x128xf32>
    %174 = arith.addf %165, %173 : vector<8x16x128xf32>
    %c5_i32_114 = arith.constant 5 : i32
    %175 = arith.addi %100, %c5_i32_114 : i32
    %176 = arith.index_cast %175 : i32 to index
    %c9_115 = arith.constant 9 : index
    %c0_116 = arith.constant 0 : index
    %177 = vector.load %arg17[%176, %c9_115, %c0_116] : memref<24x32x128xf32, #tpu.memory_space<vmem>>, vector<8x16x128xf32>
    %c8_117 = arith.constant 8 : index
    %c0_118 = arith.constant 0 : index
    %c0_119 = arith.constant 0 : index
    %178 = vector.load %arg2[%c8_117, %c0_118, %c0_119] : memref<9x1x128xf32, #tpu.memory_space<vmem>>, vector<1x1x128xf32>
    %179 = vector.shape_cast %178 : vector<1x1x128xf32> to vector<1x128xf32>
    %180 = vector.shape_cast %179 : vector<1x128xf32> to vector<1x1x128xf32>
    %181 = vector.broadcast %180 : vector<1x1x128xf32> to vector<8x16x128xf32>
    %182 = arith.mulf %177, %181 : vector<8x16x128xf32>
    %183 = arith.addf %174, %182 : vector<8x16x128xf32>
    %184 = arith.index_cast %100 : i32 to index
    %c0_120 = arith.constant 0 : index
    %c0_121 = arith.constant 0 : index
    %185 = vector.load %arg18[%184, %c0_120, %c0_121] : memref<16x16x128xf32, #tpu.memory_space<vmem>>, vector<8x16x128xf32>
    tpu.vector_store %arg18[%184, %c0_120, %c0_121], %183 {strides = array<i32>} : memref<16x16x128xf32, #tpu.memory_space<vmem>>, vector<8x16x128xf32>,
    %c2_i32 = arith.constant 2 : i32
    %cst_122 = arith.constant 1.000000e+00 : f32
    %186 = vector.broadcast %cst_122 : f32 to vector<1x256xf32>
    %c0_123 = arith.constant 0 : index
    %c0_124 = arith.constant 0 : index
    %c0_125 = arith.constant 0 : index
    %187 = vector.load %arg18[%c0_123, %c0_124, %c0_125] : memref<16x16x128xf32, #tpu.memory_space<vmem>>, vector<16x16x128xf32>
    %c0_126 = arith.constant 0 : index
    %c0_127 = arith.constant 0 : index
    %188 = vector.load %arg6[%c0_126, %c0_127] : memref<128x32xf32, #tpu.memory_space<vmem>>, vector<128x32xf32>
    %c0_128 = arith.constant 0 : index
    %c0_129 = arith.constant 0 : index
    %189 = vector.load %arg7[%c0_128, %c0_129] : memref<32x128xf32, #tpu.memory_space<vmem>>, vector<32x128xf32>
    %c0_130 = arith.constant 0 : index
    %c0_131 = arith.constant 0 : index
    %190 = vector.load %arg4[%c0_130, %c0_131] : memref<1x128xf32, #tpu.memory_space<vmem>>, vector<1x128xf32>
    %c0_132 = arith.constant 0 : index
    %c0_133 = arith.constant 0 : index
    %191 = vector.load %arg5[%c0_132, %c0_133] : memref<1x128xf32, #tpu.memory_space<vmem>>, vector<1x128xf32>
    %192 = vector.shape_cast %187 : vector<16x16x128xf32> to vector<256x128xf32>
    %cst_134 = arith.constant dense<0.000000e+00> : vector<1x128xf32>
    %193 = tpu.matmul %186, %192, %cst_134 {dimension_numbers = #tpu.dot_dimension_numbers<[1], [0], [0], [1], [0, 0, 1, 1], [], []>} : vector<1x256xf32>, vector<256x128xf32>, vector<1x128xf32> -> vector<1x128xf32>
    %cst_135 = arith.constant dense<0.000000e+00> : vector<1x32xf32>
    %194 = tpu.matmul %193, %188, %cst_135 {dimension_numbers = #tpu.dot_dimension_numbers<[1], [0], [0], [1], [0, 0, 1, 1], [], []>} : vector<1x128xf32>, vector<128x32xf32>, vector<1x32xf32> -> vector<1x32xf32>
    %cst_136 = arith.constant dense<0.000000e+00> : vector<1x128xf32>
    %195 = tpu.matmul %194, %189, %cst_136 {dimension_numbers = #tpu.dot_dimension_numbers<[1], [0], [0], [1], [0, 0, 1, 1], [], []>} : vector<1x32xf32>, vector<32x128xf32>, vector<1x128xf32> -> vector<1x128xf32>
    %196 = vector.shape_cast %195 : vector<1x128xf32> to vector<1x1x128xf32>
    %197 = vector.broadcast %196 : vector<1x1x128xf32> to vector<16x16x128xf32>
    %198 = arith.subf %187, %197 : vector<16x16x128xf32>
    %199 = arith.mulf %198, %198 : vector<16x16x128xf32>
    %200 = vector.shape_cast %199 : vector<16x16x128xf32> to vector<256x128xf32>
    %cst_137 = arith.constant dense<0.000000e+00> : vector<1x128xf32>
    %201 = tpu.matmul %186, %200, %cst_137 {dimension_numbers = #tpu.dot_dimension_numbers<[1], [0], [0], [1], [0, 0, 1, 1], [], []>} : vector<1x256xf32>, vector<256x128xf32>, vector<1x128xf32> -> vector<1x128xf32>
    %cst_138 = arith.constant dense<0.000000e+00> : vector<1x32xf32>
    %202 = tpu.matmul %201, %188, %cst_138 {dimension_numbers = #tpu.dot_dimension_numbers<[1], [0], [0], [1], [0, 0, 1, 1], [], []>} : vector<1x128xf32>, vector<128x32xf32>, vector<1x32xf32> -> vector<1x32xf32>
    %cst_139 = arith.constant 9.99999974E-6 : f32
    %203 = vector.broadcast %cst_139 : f32 to vector<1x32xf32>
    %204 = arith.addf %202, %203 : vector<1x32xf32>
    %205 = math.rsqrt %204 : vector<1x32xf32>
    %cst_140 = arith.constant dense<0.000000e+00> : vector<1x128xf32>
    %206 = tpu.matmul %205, %189, %cst_140 {dimension_numbers = #tpu.dot_dimension_numbers<[1], [0], [0], [1], [0, 0, 1, 1], [], []>} : vector<1x32xf32>, vector<32x128xf32>, vector<1x128xf32> -> vector<1x128xf32>
    %207 = arith.mulf %206, %190 : vector<1x128xf32>
    %208 = vector.shape_cast %207 : vector<1x128xf32> to vector<1x1x128xf32>
    %209 = vector.broadcast %208 : vector<1x1x128xf32> to vector<16x16x128xf32>
    %210 = arith.mulf %198, %209 : vector<16x16x128xf32>
    %211 = vector.shape_cast %191 : vector<1x128xf32> to vector<1x1x128xf32>
    %212 = vector.broadcast %211 : vector<1x1x128xf32> to vector<16x16x128xf32>
    %213 = arith.addf %210, %212 : vector<16x16x128xf32>
    %cst_141 = arith.constant 5.000000e-01 : f32
    %214 = vector.broadcast %cst_141 : f32 to vector<16x16x128xf32>
    %215 = arith.mulf %214, %213 : vector<16x16x128xf32>
    %cst_142 = arith.constant 5.000000e-01 : f32
    %216 = vector.broadcast %cst_142 : f32 to vector<16x16x128xf32>
    %217 = arith.mulf %216, %213 : vector<16x16x128xf32>
    %218 = math.tanh %217 : vector<16x16x128xf32>
    %cst_143 = arith.constant 1.000000e+00 : f32
    %219 = vector.broadcast %cst_143 : f32 to vector<16x16x128xf32>
    %220 = arith.addf %218, %219 : vector<16x16x128xf32>
    %221 = arith.mulf %215, %220 : vector<16x16x128xf32>
    %c4_144 = arith.constant 4 : index
    %c8_145 = arith.constant 8 : index
    %c0_146 = arith.constant 0 : index
    %222 = vector.load %arg17[%c4_144, %c8_145, %c0_146] : memref<24x32x128xf32, #tpu.memory_space<vmem>>, vector<16x16x128xf32>
    tpu.vector_store %arg17[%c4_144, %c8_145, %c0_146], %221 {strides = array<i32>} : memref<24x32x128xf32, #tpu.memory_space<vmem>>, vector<16x16x128xf32>,
    %c0_147 = arith.constant 0 : index
    %c0_148 = arith.constant 0 : index
    %223 = vector.load %arg9[%c0_147, %c0_148] : memref<1x128xf32, #tpu.memory_space<vmem>>, vector<1x128xf32>
    %c0_i32_149 = arith.constant 0 : i32
    %c8_i32_150 = arith.constant 8 : i32
    %224 = arith.muli %c0_i32_149, %c8_i32_150 : i32
    %225 = tpu.assume_multiple %224, 8 : i32
    %c3_i32_151 = arith.constant 3 : i32
    %226 = arith.addi %225, %c3_i32_151 : i32
    %227 = arith.index_cast %226 : i32 to index
    %c7_152 = arith.constant 7 : index
    %c0_153 = arith.constant 0 : index
    %228 = vector.load %arg17[%227, %c7_152, %c0_153] : memref<24x32x128xf32, #tpu.memory_space<vmem>>, vector<8x16x128xf32>
    %c0_154 = arith.constant 0 : index
    %c0_155 = arith.constant 0 : index
    %c0_156 = arith.constant 0 : index
    %229 = vector.load %arg8[%c0_154, %c0_155, %c0_156] : memref<34x1x128xf32, #tpu.memory_space<vmem>>, vector<1x1x128xf32>
    %230 = vector.shape_cast %229 : vector<1x1x128xf32> to vector<1x128xf32>
    %231 = vector.shape_cast %230 : vector<1x128xf32> to vector<1x1x128xf32>
    %232 = vector.broadcast %231 : vector<1x1x128xf32> to vector<8x16x128xf32>
    %233 = arith.mulf %228, %232 : vector<8x16x128xf32>
    %234 = vector.shape_cast %223 : vector<1x128xf32> to vector<1x1x128xf32>
    %235 = vector.broadcast %234 : vector<1x1x128xf32> to vector<8x16x128xf32>
    %236 = arith.addf %235, %233 : vector<8x16x128xf32>
    %c3_i32_157 = arith.constant 3 : i32
    %237 = arith.addi %225, %c3_i32_157 : i32
    %238 = arith.index_cast %237 : i32 to index
    %c8_158 = arith.constant 8 : index
    %c0_159 = arith.constant 0 : index
    %239 = vector.load %arg17[%238, %c8_158, %c0_159] : memref<24x32x128xf32, #tpu.memory_space<vmem>>, vector<8x16x128xf32>
    %c1_160 = arith.constant 1 : index
    %c0_161 = arith.constant 0 : index
    %c0_162 = arith.constant 0 : index
    %240 = vector.load %arg8[%c1_160, %c0_161, %c0_162] : memref<34x1x128xf32, #tpu.memory_space<vmem>>, vector<1x1x128xf32>
    %241 = vector.shape_cast %240 : vector<1x1x128xf32> to vector<1x128xf32>
    %242 = vector.shape_cast %241 : vector<1x128xf32> to vector<1x1x128xf32>
    %243 = vector.broadcast %242 : vector<1x1x128xf32> to vector<8x16x128xf32>
    %244 = arith.mulf %239, %243 : vector<8x16x128xf32>
    %245 = arith.addf %236, %244 : vector<8x16x128xf32>
    %c3_i32_163 = arith.constant 3 : i32
    %246 = arith.addi %225, %c3_i32_163 : i32
    %247 = arith.index_cast %246 : i32 to index
    %c9_164 = arith.constant 9 : index
    %c0_165 = arith.constant 0 : index
    %248 = vector.load %arg17[%247, %c9_164, %c0_165] : memref<24x32x128xf32, #tpu.memory_space<vmem>>, vector<8x16x128xf32>
    %c2_166 = arith.constant 2 : index
    %c0_167 = arith.constant 0 : index
    %c0_168 = arith.constant 0 : index
    %249 = vector.load %arg8[%c2_166, %c0_167, %c0_168] : memref<34x1x128xf32, #tpu.memory_space<vmem>>, vector<1x1x128xf32>
    %250 = vector.shape_cast %249 : vector<1x1x128xf32> to vector<1x128xf32>
    %251 = vector.shape_cast %250 : vector<1x128xf32> to vector<1x1x128xf32>
    %252 = vector.broadcast %251 : vector<1x1x128xf32> to vector<8x16x128xf32>
    %253 = arith.mulf %248, %252 : vector<8x16x128xf32>
    %254 = arith.addf %245, %253 : vector<8x16x128xf32>
    %c4_i32_169 = arith.constant 4 : i32
    %255 = arith.addi %225, %c4_i32_169 : i32
    %256 = arith.index_cast %255 : i32 to index
    %c7_170 = arith.constant 7 : index
    %c0_171 = arith.constant 0 : index
    %257 = vector.load %arg17[%256, %c7_170, %c0_171] : memref<24x32x128xf32, #tpu.memory_space<vmem>>, vector<8x16x128xf32>
    %c3_172 = arith.constant 3 : index
    %c0_173 = arith.constant 0 : index
    %c0_174 = arith.constant 0 : index
    %258 = vector.load %arg8[%c3_172, %c0_173, %c0_174] : memref<34x1x128xf32, #tpu.memory_space<vmem>>, vector<1x1x128xf32>
    %259 = vector.shape_cast %258 : vector<1x1x128xf32> to vector<1x128xf32>
    %260 = vector.shape_cast %259 : vector<1x128xf32> to vector<1x1x128xf32>
    %261 = vector.broadcast %260 : vector<1x1x128xf32> to vector<8x16x128xf32>
    %262 = arith.mulf %257, %261 : vector<8x16x128xf32>
    %263 = arith.addf %254, %262 : vector<8x16x128xf32>
    %c4_i32_175 = arith.constant 4 : i32
    %264 = arith.addi %225, %c4_i32_175 : i32
    %265 = arith.index_cast %264 : i32 to index
    %c8_176 = arith.constant 8 : index
    %c0_177 = arith.constant 0 : index
    %266 = vector.load %arg17[%265, %c8_176, %c0_177] : memref<24x32x128xf32, #tpu.memory_space<vmem>>, vector<8x16x128xf32>
    %c4_178 = arith.constant 4 : index
    %c0_179 = arith.constant 0 : index
    %c0_180 = arith.constant 0 : index
    %267 = vector.load %arg8[%c4_178, %c0_179, %c0_180] : memref<34x1x128xf32, #tpu.memory_space<vmem>>, vector<1x1x128xf32>
    %268 = vector.shape_cast %267 : vector<1x1x128xf32> to vector<1x128xf32>
    %269 = vector.shape_cast %268 : vector<1x128xf32> to vector<1x1x128xf32>
    %270 = vector.broadcast %269 : vector<1x1x128xf32> to vector<8x16x128xf32>
    %271 = arith.mulf %266, %270 : vector<8x16x128xf32>
    %272 = arith.addf %263, %271 : vector<8x16x128xf32>
    %c4_i32_181 = arith.constant 4 : i32
    %273 = arith.addi %225, %c4_i32_181 : i32
    %274 = arith.index_cast %273 : i32 to index
    %c9_182 = arith.constant 9 : index
    %c0_183 = arith.constant 0 : index
    %275 = vector.load %arg17[%274, %c9_182, %c0_183] : memref<24x32x128xf32, #tpu.memory_space<vmem>>, vector<8x16x128xf32>
    %c5_184 = arith.constant 5 : index
    %c0_185 = arith.constant 0 : index
    %c0_186 = arith.constant 0 : index
    %276 = vector.load %arg8[%c5_184, %c0_185, %c0_186] : memref<34x1x128xf32, #tpu.memory_space<vmem>>, vector<1x1x128xf32>
    %277 = vector.shape_cast %276 : vector<1x1x128xf32> to vector<1x128xf32>
    %278 = vector.shape_cast %277 : vector<1x128xf32> to vector<1x1x128xf32>
    %279 = vector.broadcast %278 : vector<1x1x128xf32> to vector<8x16x128xf32>
    %280 = arith.mulf %275, %279 : vector<8x16x128xf32>
    %281 = arith.addf %272, %280 : vector<8x16x128xf32>
    %c5_i32_187 = arith.constant 5 : i32
    %282 = arith.addi %225, %c5_i32_187 : i32
    %283 = arith.index_cast %282 : i32 to index
    %c7_188 = arith.constant 7 : index
    %c0_189 = arith.constant 0 : index
    %284 = vector.load %arg17[%283, %c7_188, %c0_189] : memref<24x32x128xf32, #tpu.memory_space<vmem>>, vector<8x16x128xf32>
    %c6_190 = arith.constant 6 : index
    %c0_191 = arith.constant 0 : index
    %c0_192 = arith.constant 0 : index
    %285 = vector.load %arg8[%c6_190, %c0_191, %c0_192] : memref<34x1x128xf32, #tpu.memory_space<vmem>>, vector<1x1x128xf32>
    %286 = vector.shape_cast %285 : vector<1x1x128xf32> to vector<1x128xf32>
    %287 = vector.shape_cast %286 : vector<1x128xf32> to vector<1x1x128xf32>
    %288 = vector.broadcast %287 : vector<1x1x128xf32> to vector<8x16x128xf32>
    %289 = arith.mulf %284, %288 : vector<8x16x128xf32>
    %290 = arith.addf %281, %289 : vector<8x16x128xf32>
    %c5_i32_193 = arith.constant 5 : i32
    %291 = arith.addi %225, %c5_i32_193 : i32
    %292 = arith.index_cast %291 : i32 to index
    %c8_194 = arith.constant 8 : index
    %c0_195 = arith.constant 0 : index
    %293 = vector.load %arg17[%292, %c8_194, %c0_195] : memref<24x32x128xf32, #tpu.memory_space<vmem>>, vector<8x16x128xf32>
    %c7_196 = arith.constant 7 : index
    %c0_197 = arith.constant 0 : index
    %c0_198 = arith.constant 0 : index
    %294 = vector.load %arg8[%c7_196, %c0_197, %c0_198] : memref<34x1x128xf32, #tpu.memory_space<vmem>>, vector<1x1x128xf32>
    %295 = vector.shape_cast %294 : vector<1x1x128xf32> to vector<1x128xf32>
    %296 = vector.shape_cast %295 : vector<1x128xf32> to vector<1x1x128xf32>
    %297 = vector.broadcast %296 : vector<1x1x128xf32> to vector<8x16x128xf32>
    %298 = arith.mulf %293, %297 : vector<8x16x128xf32>
    %299 = arith.addf %290, %298 : vector<8x16x128xf32>
    %c5_i32_199 = arith.constant 5 : i32
    %300 = arith.addi %225, %c5_i32_199 : i32
    %301 = arith.index_cast %300 : i32 to index
    %c9_200 = arith.constant 9 : index
    %c0_201 = arith.constant 0 : index
    %302 = vector.load %arg17[%301, %c9_200, %c0_201] : memref<24x32x128xf32, #tpu.memory_space<vmem>>, vector<8x16x128xf32>
    %c8_202 = arith.constant 8 : index
    %c0_203 = arith.constant 0 : index
    %c0_204 = arith.constant 0 : index
    %303 = vector.load %arg8[%c8_202, %c0_203, %c0_204] : memref<34x1x128xf32, #tpu.memory_space<vmem>>, vector<1x1x128xf32>
    %304 = vector.shape_cast %303 : vector<1x1x128xf32> to vector<1x128xf32>
    %305 = vector.shape_cast %304 : vector<1x128xf32> to vector<1x1x128xf32>
    %306 = vector.broadcast %305 : vector<1x1x128xf32> to vector<8x16x128xf32>
    %307 = arith.mulf %302, %306 : vector<8x16x128xf32>
    %308 = arith.addf %299, %307 : vector<8x16x128xf32>
    %c0_i32_205 = arith.constant 0 : i32
    %309 = arith.addi %225, %c0_i32_205 : i32
    %310 = arith.index_cast %309 : i32 to index
    %c4_206 = arith.constant 4 : index
    %c0_207 = arith.constant 0 : index
    %311 = vector.load %arg17[%310, %c4_206, %c0_207] : memref<24x32x128xf32, #tpu.memory_space<vmem>>, vector<8x16x128xf32>
    %c9_208 = arith.constant 9 : index
    %c0_209 = arith.constant 0 : index
    %c0_210 = arith.constant 0 : index
    %312 = vector.load %arg8[%c9_208, %c0_209, %c0_210] : memref<34x1x128xf32, #tpu.memory_space<vmem>>, vector<1x1x128xf32>
    %313 = vector.shape_cast %312 : vector<1x1x128xf32> to vector<1x128xf32>
    %314 = vector.shape_cast %313 : vector<1x128xf32> to vector<1x1x128xf32>
    %315 = vector.broadcast %314 : vector<1x1x128xf32> to vector<8x16x128xf32>
    %316 = arith.mulf %311, %315 : vector<8x16x128xf32>
    %317 = arith.addf %308, %316 : vector<8x16x128xf32>
    %c0_i32_211 = arith.constant 0 : i32
    %318 = arith.addi %225, %c0_i32_211 : i32
    %319 = arith.index_cast %318 : i32 to index
    %c6_212 = arith.constant 6 : index
    %c0_213 = arith.constant 0 : index
    %320 = vector.load %arg17[%319, %c6_212, %c0_213] : memref<24x32x128xf32, #tpu.memory_space<vmem>>, vector<8x16x128xf32>
    %c10 = arith.constant 10 : index
    %c0_214 = arith.constant 0 : index
    %c0_215 = arith.constant 0 : index
    %321 = vector.load %arg8[%c10, %c0_214, %c0_215] : memref<34x1x128xf32, #tpu.memory_space<vmem>>, vector<1x1x128xf32>
    %322 = vector.shape_cast %321 : vector<1x1x128xf32> to vector<1x128xf32>
    %323 = vector.shape_cast %322 : vector<1x128xf32> to vector<1x1x128xf32>
    %324 = vector.broadcast %323 : vector<1x1x128xf32> to vector<8x16x128xf32>
    %325 = arith.mulf %320, %324 : vector<8x16x128xf32>
    %326 = arith.addf %317, %325 : vector<8x16x128xf32>
    %c0_i32_216 = arith.constant 0 : i32
    %327 = arith.addi %225, %c0_i32_216 : i32
    %328 = arith.index_cast %327 : i32 to index
    %c8_217 = arith.constant 8 : index
    %c0_218 = arith.constant 0 : index
    %329 = vector.load %arg17[%328, %c8_217, %c0_218] : memref<24x32x128xf32, #tpu.memory_space<vmem>>, vector<8x16x128xf32>
    %c11 = arith.constant 11 : index
    %c0_219 = arith.constant 0 : index
    %c0_220 = arith.constant 0 : index
    %330 = vector.load %arg8[%c11, %c0_219, %c0_220] : memref<34x1x128xf32, #tpu.memory_space<vmem>>, vector<1x1x128xf32>
    %331 = vector.shape_cast %330 : vector<1x1x128xf32> to vector<1x128xf32>
    %332 = vector.shape_cast %331 : vector<1x128xf32> to vector<1x1x128xf32>
    %333 = vector.broadcast %332 : vector<1x1x128xf32> to vector<8x16x128xf32>
    %334 = arith.mulf %329, %333 : vector<8x16x128xf32>
    %335 = arith.addf %326, %334 : vector<8x16x128xf32>
    %c0_i32_221 = arith.constant 0 : i32
    %336 = arith.addi %225, %c0_i32_221 : i32
    %337 = arith.index_cast %336 : i32 to index
    %c10_222 = arith.constant 10 : index
    %c0_223 = arith.constant 0 : index
    %338 = vector.load %arg17[%337, %c10_222, %c0_223] : memref<24x32x128xf32, #tpu.memory_space<vmem>>, vector<8x16x128xf32>
    %c12 = arith.constant 12 : index
    %c0_224 = arith.constant 0 : index
    %c0_225 = arith.constant 0 : index
    %339 = vector.load %arg8[%c12, %c0_224, %c0_225] : memref<34x1x128xf32, #tpu.memory_space<vmem>>, vector<1x1x128xf32>
    %340 = vector.shape_cast %339 : vector<1x1x128xf32> to vector<1x128xf32>
    %341 = vector.shape_cast %340 : vector<1x128xf32> to vector<1x1x128xf32>
    %342 = vector.broadcast %341 : vector<1x1x128xf32> to vector<8x16x128xf32>
    %343 = arith.mulf %338, %342 : vector<8x16x128xf32>
    %344 = arith.addf %335, %343 : vector<8x16x128xf32>
    %c0_i32_226 = arith.constant 0 : i32
    %345 = arith.addi %225, %c0_i32_226 : i32
    %346 = arith.index_cast %345 : i32 to index
    %c12_227 = arith.constant 12 : index
    %c0_228 = arith.constant 0 : index
    %347 = vector.load %arg17[%346, %c12_227, %c0_228] : memref<24x32x128xf32, #tpu.memory_space<vmem>>, vector<8x16x128xf32>
    %c13 = arith.constant 13 : index
    %c0_229 = arith.constant 0 : index
    %c0_230 = arith.constant 0 : index
    %348 = vector.load %arg8[%c13, %c0_229, %c0_230] : memref<34x1x128xf32, #tpu.memory_space<vmem>>, vector<1x1x128xf32>
    %349 = vector.shape_cast %348 : vector<1x1x128xf32> to vector<1x128xf32>
    %350 = vector.shape_cast %349 : vector<1x128xf32> to vector<1x1x128xf32>
    %351 = vector.broadcast %350 : vector<1x1x128xf32> to vector<8x16x128xf32>
    %352 = arith.mulf %347, %351 : vector<8x16x128xf32>
    %353 = arith.addf %344, %352 : vector<8x16x128xf32>
    %c2_i32_231 = arith.constant 2 : i32
    %354 = arith.addi %225, %c2_i32_231 : i32
    %355 = arith.index_cast %354 : i32 to index
    %c4_232 = arith.constant 4 : index
    %c0_233 = arith.constant 0 : index
    %356 = vector.load %arg17[%355, %c4_232, %c0_233] : memref<24x32x128xf32, #tpu.memory_space<vmem>>, vector<8x16x128xf32>
    %c14 = arith.constant 14 : index
    %c0_234 = arith.constant 0 : index
    %c0_235 = arith.constant 0 : index
    %357 = vector.load %arg8[%c14, %c0_234, %c0_235] : memref<34x1x128xf32, #tpu.memory_space<vmem>>, vector<1x1x128xf32>
    %358 = vector.shape_cast %357 : vector<1x1x128xf32> to vector<1x128xf32>
    %359 = vector.shape_cast %358 : vector<1x128xf32> to vector<1x1x128xf32>
    %360 = vector.broadcast %359 : vector<1x1x128xf32> to vector<8x16x128xf32>
    %361 = arith.mulf %356, %360 : vector<8x16x128xf32>
    %362 = arith.addf %353, %361 : vector<8x16x128xf32>
    %c2_i32_236 = arith.constant 2 : i32
    %363 = arith.addi %225, %c2_i32_236 : i32
    %364 = arith.index_cast %363 : i32 to index
    %c6_237 = arith.constant 6 : index
    %c0_238 = arith.constant 0 : index
    %365 = vector.load %arg17[%364, %c6_237, %c0_238] : memref<24x32x128xf32, #tpu.memory_space<vmem>>, vector<8x16x128xf32>
    %c15 = arith.constant 15 : index
    %c0_239 = arith.constant 0 : index
    %c0_240 = arith.constant 0 : index
    %366 = vector.load %arg8[%c15, %c0_239, %c0_240] : memref<34x1x128xf32, #tpu.memory_space<vmem>>, vector<1x1x128xf32>
    %367 = vector.shape_cast %366 : vector<1x1x128xf32> to vector<1x128xf32>
    %368 = vector.shape_cast %367 : vector<1x128xf32> to vector<1x1x128xf32>
    %369 = vector.broadcast %368 : vector<1x1x128xf32> to vector<8x16x128xf32>
    %370 = arith.mulf %365, %369 : vector<8x16x128xf32>
    %371 = arith.addf %362, %370 : vector<8x16x128xf32>
    %c2_i32_241 = arith.constant 2 : i32
    %372 = arith.addi %225, %c2_i32_241 : i32
    %373 = arith.index_cast %372 : i32 to index
    %c8_242 = arith.constant 8 : index
    %c0_243 = arith.constant 0 : index
    %374 = vector.load %arg17[%373, %c8_242, %c0_243] : memref<24x32x128xf32, #tpu.memory_space<vmem>>, vector<8x16x128xf32>
    %c16 = arith.constant 16 : index
    %c0_244 = arith.constant 0 : index
    %c0_245 = arith.constant 0 : index
    %375 = vector.load %arg8[%c16, %c0_244, %c0_245] : memref<34x1x128xf32, #tpu.memory_space<vmem>>, vector<1x1x128xf32>
    %376 = vector.shape_cast %375 : vector<1x1x128xf32> to vector<1x128xf32>
    %377 = vector.shape_cast %376 : vector<1x128xf32> to vector<1x1x128xf32>
    %378 = vector.broadcast %377 : vector<1x1x128xf32> to vector<8x16x128xf32>
    %379 = arith.mulf %374, %378 : vector<8x16x128xf32>
    %380 = arith.addf %371, %379 : vector<8x16x128xf32>
    %c2_i32_246 = arith.constant 2 : i32
    %381 = arith.addi %225, %c2_i32_246 : i32
    %382 = arith.index_cast %381 : i32 to index
    %c10_247 = arith.constant 10 : index
    %c0_248 = arith.constant 0 : index
    %383 = vector.load %arg17[%382, %c10_247, %c0_248] : memref<24x32x128xf32, #tpu.memory_space<vmem>>, vector<8x16x128xf32>
    %c17 = arith.constant 17 : index
    %c0_249 = arith.constant 0 : index
    %c0_250 = arith.constant 0 : index
    %384 = vector.load %arg8[%c17, %c0_249, %c0_250] : memref<34x1x128xf32, #tpu.memory_space<vmem>>, vector<1x1x128xf32>
    %385 = vector.shape_cast %384 : vector<1x1x128xf32> to vector<1x128xf32>
    %386 = vector.shape_cast %385 : vector<1x128xf32> to vector<1x1x128xf32>
    %387 = vector.broadcast %386 : vector<1x1x128xf32> to vector<8x16x128xf32>
    %388 = arith.mulf %383, %387 : vector<8x16x128xf32>
    %389 = arith.addf %380, %388 : vector<8x16x128xf32>
    %c2_i32_251 = arith.constant 2 : i32
    %390 = arith.addi %225, %c2_i32_251 : i32
    %391 = arith.index_cast %390 : i32 to index
    %c12_252 = arith.constant 12 : index
    %c0_253 = arith.constant 0 : index
    %392 = vector.load %arg17[%391, %c12_252, %c0_253] : memref<24x32x128xf32, #tpu.memory_space<vmem>>, vector<8x16x128xf32>
    %c18 = arith.constant 18 : index
    %c0_254 = arith.constant 0 : index
    %c0_255 = arith.constant 0 : index
    %393 = vector.load %arg8[%c18, %c0_254, %c0_255] : memref<34x1x128xf32, #tpu.memory_space<vmem>>, vector<1x1x128xf32>
    %394 = vector.shape_cast %393 : vector<1x1x128xf32> to vector<1x128xf32>
    %395 = vector.shape_cast %394 : vector<1x128xf32> to vector<1x1x128xf32>
    %396 = vector.broadcast %395 : vector<1x1x128xf32> to vector<8x16x128xf32>
    %397 = arith.mulf %392, %396 : vector<8x16x128xf32>
    %398 = arith.addf %389, %397 : vector<8x16x128xf32>
    %c4_i32_256 = arith.constant 4 : i32
    %399 = arith.addi %225, %c4_i32_256 : i32
    %400 = arith.index_cast %399 : i32 to index
    %c4_257 = arith.constant 4 : index
    %c0_258 = arith.constant 0 : index
    %401 = vector.load %arg17[%400, %c4_257, %c0_258] : memref<24x32x128xf32, #tpu.memory_space<vmem>>, vector<8x16x128xf32>
    %c19 = arith.constant 19 : index
    %c0_259 = arith.constant 0 : index
    %c0_260 = arith.constant 0 : index
    %402 = vector.load %arg8[%c19, %c0_259, %c0_260] : memref<34x1x128xf32, #tpu.memory_space<vmem>>, vector<1x1x128xf32>
    %403 = vector.shape_cast %402 : vector<1x1x128xf32> to vector<1x128xf32>
    %404 = vector.shape_cast %403 : vector<1x128xf32> to vector<1x1x128xf32>
    %405 = vector.broadcast %404 : vector<1x1x128xf32> to vector<8x16x128xf32>
    %406 = arith.mulf %401, %405 : vector<8x16x128xf32>
    %407 = arith.addf %398, %406 : vector<8x16x128xf32>
    %c4_i32_261 = arith.constant 4 : i32
    %408 = arith.addi %225, %c4_i32_261 : i32
    %409 = arith.index_cast %408 : i32 to index
    %c6_262 = arith.constant 6 : index
    %c0_263 = arith.constant 0 : index
    %410 = vector.load %arg17[%409, %c6_262, %c0_263] : memref<24x32x128xf32, #tpu.memory_space<vmem>>, vector<8x16x128xf32>
    %c20_264 = arith.constant 20 : index
    %c0_265 = arith.constant 0 : index
    %c0_266 = arith.constant 0 : index
    %411 = vector.load %arg8[%c20_264, %c0_265, %c0_266] : memref<34x1x128xf32, #tpu.memory_space<vmem>>, vector<1x1x128xf32>
    %412 = vector.shape_cast %411 : vector<1x1x128xf32> to vector<1x128xf32>
    %413 = vector.shape_cast %412 : vector<1x128xf32> to vector<1x1x128xf32>
    %414 = vector.broadcast %413 : vector<1x1x128xf32> to vector<8x16x128xf32>
    %415 = arith.mulf %410, %414 : vector<8x16x128xf32>
    %416 = arith.addf %407, %415 : vector<8x16x128xf32>
    %c4_i32_267 = arith.constant 4 : i32
    %417 = arith.addi %225, %c4_i32_267 : i32
    %418 = arith.index_cast %417 : i32 to index
    %c8_268 = arith.constant 8 : index
    %c0_269 = arith.constant 0 : index
    %419 = vector.load %arg17[%418, %c8_268, %c0_269] : memref<24x32x128xf32, #tpu.memory_space<vmem>>, vector<8x16x128xf32>
    %c21 = arith.constant 21 : index
    %c0_270 = arith.constant 0 : index
    %c0_271 = arith.constant 0 : index
    %420 = vector.load %arg8[%c21, %c0_270, %c0_271] : memref<34x1x128xf32, #tpu.memory_space<vmem>>, vector<1x1x128xf32>
    %421 = vector.shape_cast %420 : vector<1x1x128xf32> to vector<1x128xf32>
    %422 = vector.shape_cast %421 : vector<1x128xf32> to vector<1x1x128xf32>
    %423 = vector.broadcast %422 : vector<1x1x128xf32> to vector<8x16x128xf32>
    %424 = arith.mulf %419, %423 : vector<8x16x128xf32>
    %425 = arith.addf %416, %424 : vector<8x16x128xf32>
    %c4_i32_272 = arith.constant 4 : i32
    %426 = arith.addi %225, %c4_i32_272 : i32
    %427 = arith.index_cast %426 : i32 to index
    %c10_273 = arith.constant 10 : index
    %c0_274 = arith.constant 0 : index
    %428 = vector.load %arg17[%427, %c10_273, %c0_274] : memref<24x32x128xf32, #tpu.memory_space<vmem>>, vector<8x16x128xf32>
    %c22 = arith.constant 22 : index
    %c0_275 = arith.constant 0 : index
    %c0_276 = arith.constant 0 : index
    %429 = vector.load %arg8[%c22, %c0_275, %c0_276] : memref<34x1x128xf32, #tpu.memory_space<vmem>>, vector<1x1x128xf32>
    %430 = vector.shape_cast %429 : vector<1x1x128xf32> to vector<1x128xf32>
    %431 = vector.shape_cast %430 : vector<1x128xf32> to vector<1x1x128xf32>
    %432 = vector.broadcast %431 : vector<1x1x128xf32> to vector<8x16x128xf32>
    %433 = arith.mulf %428, %432 : vector<8x16x128xf32>
    %434 = arith.addf %425, %433 : vector<8x16x128xf32>
    %c4_i32_277 = arith.constant 4 : i32
    %435 = arith.addi %225, %c4_i32_277 : i32
    %436 = arith.index_cast %435 : i32 to index
    %c12_278 = arith.constant 12 : index
    %c0_279 = arith.constant 0 : index
    %437 = vector.load %arg17[%436, %c12_278, %c0_279] : memref<24x32x128xf32, #tpu.memory_space<vmem>>, vector<8x16x128xf32>
    %c23 = arith.constant 23 : index
    %c0_280 = arith.constant 0 : index
    %c0_281 = arith.constant 0 : index
    %438 = vector.load %arg8[%c23, %c0_280, %c0_281] : memref<34x1x128xf32, #tpu.memory_space<vmem>>, vector<1x1x128xf32>
    %439 = vector.shape_cast %438 : vector<1x1x128xf32> to vector<1x128xf32>
    %440 = vector.shape_cast %439 : vector<1x128xf32> to vector<1x1x128xf32>
    %441 = vector.broadcast %440 : vector<1x1x128xf32> to vector<8x16x128xf32>
    %442 = arith.mulf %437, %441 : vector<8x16x128xf32>
    %443 = arith.addf %434, %442 : vector<8x16x128xf32>
    %c6_i32 = arith.constant 6 : i32
    %444 = arith.addi %225, %c6_i32 : i32
    %445 = arith.index_cast %444 : i32 to index
    %c4_282 = arith.constant 4 : index
    %c0_283 = arith.constant 0 : index
    %446 = vector.load %arg17[%445, %c4_282, %c0_283] : memref<24x32x128xf32, #tpu.memory_space<vmem>>, vector<8x16x128xf32>
    %c24_284 = arith.constant 24 : index
    %c0_285 = arith.constant 0 : index
    %c0_286 = arith.constant 0 : index
    %447 = vector.load %arg8[%c24_284, %c0_285, %c0_286] : memref<34x1x128xf32, #tpu.memory_space<vmem>>, vector<1x1x128xf32>
    %448 = vector.shape_cast %447 : vector<1x1x128xf32> to vector<1x128xf32>
    %449 = vector.shape_cast %448 : vector<1x128xf32> to vector<1x1x128xf32>
    %450 = vector.broadcast %449 : vector<1x1x128xf32> to vector<8x16x128xf32>
    %451 = arith.mulf %446, %450 : vector<8x16x128xf32>
    %452 = arith.addf %443, %451 : vector<8x16x128xf32>
    %c6_i32_287 = arith.constant 6 : i32
    %453 = arith.addi %225, %c6_i32_287 : i32
    %454 = arith.index_cast %453 : i32 to index
    %c6_288 = arith.constant 6 : index
    %c0_289 = arith.constant 0 : index
    %455 = vector.load %arg17[%454, %c6_288, %c0_289] : memref<24x32x128xf32, #tpu.memory_space<vmem>>, vector<8x16x128xf32>
    %c25 = arith.constant 25 : index
    %c0_290 = arith.constant 0 : index
    %c0_291 = arith.constant 0 : index
    %456 = vector.load %arg8[%c25, %c0_290, %c0_291] : memref<34x1x128xf32, #tpu.memory_space<vmem>>, vector<1x1x128xf32>
    %457 = vector.shape_cast %456 : vector<1x1x128xf32> to vector<1x128xf32>
    %458 = vector.shape_cast %457 : vector<1x128xf32> to vector<1x1x128xf32>
    %459 = vector.broadcast %458 : vector<1x1x128xf32> to vector<8x16x128xf32>
    %460 = arith.mulf %455, %459 : vector<8x16x128xf32>
    %461 = arith.addf %452, %460 : vector<8x16x128xf32>
    %c6_i32_292 = arith.constant 6 : i32
    %462 = arith.addi %225, %c6_i32_292 : i32
    %463 = arith.index_cast %462 : i32 to index
    %c8_293 = arith.constant 8 : index
    %c0_294 = arith.constant 0 : index
    %464 = vector.load %arg17[%463, %c8_293, %c0_294] : memref<24x32x128xf32, #tpu.memory_space<vmem>>, vector<8x16x128xf32>
    %c26 = arith.constant 26 : index
    %c0_295 = arith.constant 0 : index
    %c0_296 = arith.constant 0 : index
    %465 = vector.load %arg8[%c26, %c0_295, %c0_296] : memref<34x1x128xf32, #tpu.memory_space<vmem>>, vector<1x1x128xf32>
    %466 = vector.shape_cast %465 : vector<1x1x128xf32> to vector<1x128xf32>
    %467 = vector.shape_cast %466 : vector<1x128xf32> to vector<1x1x128xf32>
    %468 = vector.broadcast %467 : vector<1x1x128xf32> to vector<8x16x128xf32>
    %469 = arith.mulf %464, %468 : vector<8x16x128xf32>
    %470 = arith.addf %461, %469 : vector<8x16x128xf32>
    %c6_i32_297 = arith.constant 6 : i32
    %471 = arith.addi %225, %c6_i32_297 : i32
    %472 = arith.index_cast %471 : i32 to index
    %c10_298 = arith.constant 10 : index
    %c0_299 = arith.constant 0 : index
    %473 = vector.load %arg17[%472, %c10_298, %c0_299] : memref<24x32x128xf32, #tpu.memory_space<vmem>>, vector<8x16x128xf32>
    %c27 = arith.constant 27 : index
    %c0_300 = arith.constant 0 : index
    %c0_301 = arith.constant 0 : index
    %474 = vector.load %arg8[%c27, %c0_300, %c0_301] : memref<34x1x128xf32, #tpu.memory_space<vmem>>, vector<1x1x128xf32>
    %475 = vector.shape_cast %474 : vector<1x1x128xf32> to vector<1x128xf32>
    %476 = vector.shape_cast %475 : vector<1x128xf32> to vector<1x1x128xf32>
    %477 = vector.broadcast %476 : vector<1x1x128xf32> to vector<8x16x128xf32>
    %478 = arith.mulf %473, %477 : vector<8x16x128xf32>
    %479 = arith.addf %470, %478 : vector<8x16x128xf32>
    %c6_i32_302 = arith.constant 6 : i32
    %480 = arith.addi %225, %c6_i32_302 : i32
    %481 = arith.index_cast %480 : i32 to index
    %c12_303 = arith.constant 12 : index
    %c0_304 = arith.constant 0 : index
    %482 = vector.load %arg17[%481, %c12_303, %c0_304] : memref<24x32x128xf32, #tpu.memory_space<vmem>>, vector<8x16x128xf32>
    %c28 = arith.constant 28 : index
    %c0_305 = arith.constant 0 : index
    %c0_306 = arith.constant 0 : index
    %483 = vector.load %arg8[%c28, %c0_305, %c0_306] : memref<34x1x128xf32, #tpu.memory_space<vmem>>, vector<1x1x128xf32>
    %484 = vector.shape_cast %483 : vector<1x1x128xf32> to vector<1x128xf32>
    %485 = vector.shape_cast %484 : vector<1x128xf32> to vector<1x1x128xf32>
    %486 = vector.broadcast %485 : vector<1x1x128xf32> to vector<8x16x128xf32>
    %487 = arith.mulf %482, %486 : vector<8x16x128xf32>
    %488 = arith.addf %479, %487 : vector<8x16x128xf32>
    %c8_i32_307 = arith.constant 8 : i32
    %489 = arith.addi %225, %c8_i32_307 : i32
    %490 = arith.index_cast %489 : i32 to index
    %c4_308 = arith.constant 4 : index
    %c0_309 = arith.constant 0 : index
    %491 = vector.load %arg17[%490, %c4_308, %c0_309] : memref<24x32x128xf32, #tpu.memory_space<vmem>>, vector<8x16x128xf32>
    %c29 = arith.constant 29 : index
    %c0_310 = arith.constant 0 : index
    %c0_311 = arith.constant 0 : index
    %492 = vector.load %arg8[%c29, %c0_310, %c0_311] : memref<34x1x128xf32, #tpu.memory_space<vmem>>, vector<1x1x128xf32>
    %493 = vector.shape_cast %492 : vector<1x1x128xf32> to vector<1x128xf32>
    %494 = vector.shape_cast %493 : vector<1x128xf32> to vector<1x1x128xf32>
    %495 = vector.broadcast %494 : vector<1x1x128xf32> to vector<8x16x128xf32>
    %496 = arith.mulf %491, %495 : vector<8x16x128xf32>
    %497 = arith.addf %488, %496 : vector<8x16x128xf32>
    %c8_i32_312 = arith.constant 8 : i32
    %498 = arith.addi %225, %c8_i32_312 : i32
    %499 = arith.index_cast %498 : i32 to index
    %c6_313 = arith.constant 6 : index
    %c0_314 = arith.constant 0 : index
    %500 = vector.load %arg17[%499, %c6_313, %c0_314] : memref<24x32x128xf32, #tpu.memory_space<vmem>>, vector<8x16x128xf32>
    %c30 = arith.constant 30 : index
    %c0_315 = arith.constant 0 : index
    %c0_316 = arith.constant 0 : index
    %501 = vector.load %arg8[%c30, %c0_315, %c0_316] : memref<34x1x128xf32, #tpu.memory_space<vmem>>, vector<1x1x128xf32>
    %502 = vector.shape_cast %501 : vector<1x1x128xf32> to vector<1x128xf32>
    %503 = vector.shape_cast %502 : vector<1x128xf32> to vector<1x1x128xf32>
    %504 = vector.broadcast %503 : vector<1x1x128xf32> to vector<8x16x128xf32>
    %505 = arith.mulf %500, %504 : vector<8x16x128xf32>
    %506 = arith.addf %497, %505 : vector<8x16x128xf32>
    %c8_i32_317 = arith.constant 8 : i32
    %507 = arith.addi %225, %c8_i32_317 : i32
    %508 = arith.index_cast %507 : i32 to index
    %c8_318 = arith.constant 8 : index
    %c0_319 = arith.constant 0 : index
    %509 = vector.load %arg17[%508, %c8_318, %c0_319] : memref<24x32x128xf32, #tpu.memory_space<vmem>>, vector<8x16x128xf32>
    %c31 = arith.constant 31 : index
    %c0_320 = arith.constant 0 : index
    %c0_321 = arith.constant 0 : index
    %510 = vector.load %arg8[%c31, %c0_320, %c0_321] : memref<34x1x128xf32, #tpu.memory_space<vmem>>, vector<1x1x128xf32>
    %511 = vector.shape_cast %510 : vector<1x1x128xf32> to vector<1x128xf32>
    %512 = vector.shape_cast %511 : vector<1x128xf32> to vector<1x1x128xf32>
    %513 = vector.broadcast %512 : vector<1x1x128xf32> to vector<8x16x128xf32>
    %514 = arith.mulf %509, %513 : vector<8x16x128xf32>
    %515 = arith.addf %506, %514 : vector<8x16x128xf32>
    %c8_i32_322 = arith.constant 8 : i32
    %516 = arith.addi %225, %c8_i32_322 : i32
    %517 = arith.index_cast %516 : i32 to index
    %c10_323 = arith.constant 10 : index
    %c0_324 = arith.constant 0 : index
    %518 = vector.load %arg17[%517, %c10_323, %c0_324] : memref<24x32x128xf32, #tpu.memory_space<vmem>>, vector<8x16x128xf32>
    %c32 = arith.constant 32 : index
    %c0_325 = arith.constant 0 : index
    %c0_326 = arith.constant 0 : index
    %519 = vector.load %arg8[%c32, %c0_325, %c0_326] : memref<34x1x128xf32, #tpu.memory_space<vmem>>, vector<1x1x128xf32>
    %520 = vector.shape_cast %519 : vector<1x1x128xf32> to vector<1x128xf32>
    %521 = vector.shape_cast %520 : vector<1x128xf32> to vector<1x1x128xf32>
    %522 = vector.broadcast %521 : vector<1x1x128xf32> to vector<8x16x128xf32>
    %523 = arith.mulf %518, %522 : vector<8x16x128xf32>
    %524 = arith.addf %515, %523 : vector<8x16x128xf32>
    %c8_i32_327 = arith.constant 8 : i32
    %525 = arith.addi %225, %c8_i32_327 : i32
    %526 = arith.index_cast %525 : i32 to index
    %c12_328 = arith.constant 12 : index
    %c0_329 = arith.constant 0 : index
    %527 = vector.load %arg17[%526, %c12_328, %c0_329] : memref<24x32x128xf32, #tpu.memory_space<vmem>>, vector<8x16x128xf32>
    %c33 = arith.constant 33 : index
    %c0_330 = arith.constant 0 : index
    %c0_331 = arith.constant 0 : index
    %528 = vector.load %arg8[%c33, %c0_330, %c0_331] : memref<34x1x128xf32, #tpu.memory_space<vmem>>, vector<1x1x128xf32>
    %529 = vector.shape_cast %528 : vector<1x1x128xf32> to vector<1x128xf32>
    %530 = vector.shape_cast %529 : vector<1x128xf32> to vector<1x1x128xf32>
    %531 = vector.broadcast %530 : vector<1x1x128xf32> to vector<8x16x128xf32>
    %532 = arith.mulf %527, %531 : vector<8x16x128xf32>
    %533 = arith.addf %524, %532 : vector<8x16x128xf32>
    %534 = arith.index_cast %225 : i32 to index
    %c0_332 = arith.constant 0 : index
    %c0_333 = arith.constant 0 : index
    %535 = vector.load %arg18[%534, %c0_332, %c0_333] : memref<16x16x128xf32, #tpu.memory_space<vmem>>, vector<8x16x128xf32>
    tpu.vector_store %arg18[%534, %c0_332, %c0_333], %533 {strides = array<i32>} : memref<16x16x128xf32, #tpu.memory_space<vmem>>, vector<8x16x128xf32>,
    %c1_i32_334 = arith.constant 1 : i32
    %c8_i32_335 = arith.constant 8 : i32
    %536 = arith.muli %c1_i32_334, %c8_i32_335 : i32
    %537 = tpu.assume_multiple %536, 8 : i32
    %c3_i32_336 = arith.constant 3 : i32
    %538 = arith.addi %537, %c3_i32_336 : i32
    %539 = arith.index_cast %538 : i32 to index
    %c7_337 = arith.constant 7 : index
    %c0_338 = arith.constant 0 : index
    %540 = vector.load %arg17[%539, %c7_337, %c0_338] : memref<24x32x128xf32, #tpu.memory_space<vmem>>, vector<8x16x128xf32>
    %c0_339 = arith.constant 0 : index
    %c0_340 = arith.constant 0 : index
    %c0_341 = arith.constant 0 : index
    %541 = vector.load %arg8[%c0_339, %c0_340, %c0_341] : memref<34x1x128xf32, #tpu.memory_space<vmem>>, vector<1x1x128xf32>
    %542 = vector.shape_cast %541 : vector<1x1x128xf32> to vector<1x128xf32>
    %543 = vector.shape_cast %542 : vector<1x128xf32> to vector<1x1x128xf32>
    %544 = vector.broadcast %543 : vector<1x1x128xf32> to vector<8x16x128xf32>
    %545 = arith.mulf %540, %544 : vector<8x16x128xf32>
    %546 = vector.shape_cast %223 : vector<1x128xf32> to vector<1x1x128xf32>
    %547 = vector.broadcast %546 : vector<1x1x128xf32> to vector<8x16x128xf32>
    %548 = arith.addf %547, %545 : vector<8x16x128xf32>
    %c3_i32_342 = arith.constant 3 : i32
    %549 = arith.addi %537, %c3_i32_342 : i32
    %550 = arith.index_cast %549 : i32 to index
    %c8_343 = arith.constant 8 : index
    %c0_344 = arith.constant 0 : index
    %551 = vector.load %arg17[%550, %c8_343, %c0_344] : memref<24x32x128xf32, #tpu.memory_space<vmem>>, vector<8x16x128xf32>
    %c1_345 = arith.constant 1 : index
    %c0_346 = arith.constant 0 : index
    %c0_347 = arith.constant 0 : index
    %552 = vector.load %arg8[%c1_345, %c0_346, %c0_347] : memref<34x1x128xf32, #tpu.memory_space<vmem>>, vector<1x1x128xf32>
    %553 = vector.shape_cast %552 : vector<1x1x128xf32> to vector<1x128xf32>
    %554 = vector.shape_cast %553 : vector<1x128xf32> to vector<1x1x128xf32>
    %555 = vector.broadcast %554 : vector<1x1x128xf32> to vector<8x16x128xf32>
    %556 = arith.mulf %551, %555 : vector<8x16x128xf32>
    %557 = arith.addf %548, %556 : vector<8x16x128xf32>
    %c3_i32_348 = arith.constant 3 : i32
    %558 = arith.addi %537, %c3_i32_348 : i32
    %559 = arith.index_cast %558 : i32 to index
    %c9_349 = arith.constant 9 : index
    %c0_350 = arith.constant 0 : index
    %560 = vector.load %arg17[%559, %c9_349, %c0_350] : memref<24x32x128xf32, #tpu.memory_space<vmem>>, vector<8x16x128xf32>
    %c2_351 = arith.constant 2 : index
    %c0_352 = arith.constant 0 : index
    %c0_353 = arith.constant 0 : index
    %561 = vector.load %arg8[%c2_351, %c0_352, %c0_353] : memref<34x1x128xf32, #tpu.memory_space<vmem>>, vector<1x1x128xf32>
    %562 = vector.shape_cast %561 : vector<1x1x128xf32> to vector<1x128xf32>
    %563 = vector.shape_cast %562 : vector<1x128xf32> to vector<1x1x128xf32>
    %564 = vector.broadcast %563 : vector<1x1x128xf32> to vector<8x16x128xf32>
    %565 = arith.mulf %560, %564 : vector<8x16x128xf32>
    %566 = arith.addf %557, %565 : vector<8x16x128xf32>
    %c4_i32_354 = arith.constant 4 : i32
    %567 = arith.addi %537, %c4_i32_354 : i32
    %568 = arith.index_cast %567 : i32 to index
    %c7_355 = arith.constant 7 : index
    %c0_356 = arith.constant 0 : index
    %569 = vector.load %arg17[%568, %c7_355, %c0_356] : memref<24x32x128xf32, #tpu.memory_space<vmem>>, vector<8x16x128xf32>
    %c3_357 = arith.constant 3 : index
    %c0_358 = arith.constant 0 : index
    %c0_359 = arith.constant 0 : index
    %570 = vector.load %arg8[%c3_357, %c0_358, %c0_359] : memref<34x1x128xf32, #tpu.memory_space<vmem>>, vector<1x1x128xf32>
    %571 = vector.shape_cast %570 : vector<1x1x128xf32> to vector<1x128xf32>
    %572 = vector.shape_cast %571 : vector<1x128xf32> to vector<1x1x128xf32>
    %573 = vector.broadcast %572 : vector<1x1x128xf32> to vector<8x16x128xf32>
    %574 = arith.mulf %569, %573 : vector<8x16x128xf32>
    %575 = arith.addf %566, %574 : vector<8x16x128xf32>
    %c4_i32_360 = arith.constant 4 : i32
    %576 = arith.addi %537, %c4_i32_360 : i32
    %577 = arith.index_cast %576 : i32 to index
    %c8_361 = arith.constant 8 : index
    %c0_362 = arith.constant 0 : index
    %578 = vector.load %arg17[%577, %c8_361, %c0_362] : memref<24x32x128xf32, #tpu.memory_space<vmem>>, vector<8x16x128xf32>
    %c4_363 = arith.constant 4 : index
    %c0_364 = arith.constant 0 : index
    %c0_365 = arith.constant 0 : index
    %579 = vector.load %arg8[%c4_363, %c0_364, %c0_365] : memref<34x1x128xf32, #tpu.memory_space<vmem>>, vector<1x1x128xf32>
    %580 = vector.shape_cast %579 : vector<1x1x128xf32> to vector<1x128xf32>
    %581 = vector.shape_cast %580 : vector<1x128xf32> to vector<1x1x128xf32>
    %582 = vector.broadcast %581 : vector<1x1x128xf32> to vector<8x16x128xf32>
    %583 = arith.mulf %578, %582 : vector<8x16x128xf32>
    %584 = arith.addf %575, %583 : vector<8x16x128xf32>
    %c4_i32_366 = arith.constant 4 : i32
    %585 = arith.addi %537, %c4_i32_366 : i32
    %586 = arith.index_cast %585 : i32 to index
    %c9_367 = arith.constant 9 : index
    %c0_368 = arith.constant 0 : index
    %587 = vector.load %arg17[%586, %c9_367, %c0_368] : memref<24x32x128xf32, #tpu.memory_space<vmem>>, vector<8x16x128xf32>
    %c5_369 = arith.constant 5 : index
    %c0_370 = arith.constant 0 : index
    %c0_371 = arith.constant 0 : index
    %588 = vector.load %arg8[%c5_369, %c0_370, %c0_371] : memref<34x1x128xf32, #tpu.memory_space<vmem>>, vector<1x1x128xf32>
    %589 = vector.shape_cast %588 : vector<1x1x128xf32> to vector<1x128xf32>
    %590 = vector.shape_cast %589 : vector<1x128xf32> to vector<1x1x128xf32>
    %591 = vector.broadcast %590 : vector<1x1x128xf32> to vector<8x16x128xf32>
    %592 = arith.mulf %587, %591 : vector<8x16x128xf32>
    %593 = arith.addf %584, %592 : vector<8x16x128xf32>
    %c5_i32_372 = arith.constant 5 : i32
    %594 = arith.addi %537, %c5_i32_372 : i32
    %595 = arith.index_cast %594 : i32 to index
    %c7_373 = arith.constant 7 : index
    %c0_374 = arith.constant 0 : index
    %596 = vector.load %arg17[%595, %c7_373, %c0_374] : memref<24x32x128xf32, #tpu.memory_space<vmem>>, vector<8x16x128xf32>
    %c6_375 = arith.constant 6 : index
    %c0_376 = arith.constant 0 : index
    %c0_377 = arith.constant 0 : index
    %597 = vector.load %arg8[%c6_375, %c0_376, %c0_377] : memref<34x1x128xf32, #tpu.memory_space<vmem>>, vector<1x1x128xf32>
    %598 = vector.shape_cast %597 : vector<1x1x128xf32> to vector<1x128xf32>
    %599 = vector.shape_cast %598 : vector<1x128xf32> to vector<1x1x128xf32>
    %600 = vector.broadcast %599 : vector<1x1x128xf32> to vector<8x16x128xf32>
    %601 = arith.mulf %596, %600 : vector<8x16x128xf32>
    %602 = arith.addf %593, %601 : vector<8x16x128xf32>
    %c5_i32_378 = arith.constant 5 : i32
    %603 = arith.addi %537, %c5_i32_378 : i32
    %604 = arith.index_cast %603 : i32 to index
    %c8_379 = arith.constant 8 : index
    %c0_380 = arith.constant 0 : index
    %605 = vector.load %arg17[%604, %c8_379, %c0_380] : memref<24x32x128xf32, #tpu.memory_space<vmem>>, vector<8x16x128xf32>
    %c7_381 = arith.constant 7 : index
    %c0_382 = arith.constant 0 : index
    %c0_383 = arith.constant 0 : index
    %606 = vector.load %arg8[%c7_381, %c0_382, %c0_383] : memref<34x1x128xf32, #tpu.memory_space<vmem>>, vector<1x1x128xf32>
    %607 = vector.shape_cast %606 : vector<1x1x128xf32> to vector<1x128xf32>
    %608 = vector.shape_cast %607 : vector<1x128xf32> to vector<1x1x128xf32>
    %609 = vector.broadcast %608 : vector<1x1x128xf32> to vector<8x16x128xf32>
    %610 = arith.mulf %605, %609 : vector<8x16x128xf32>
    %611 = arith.addf %602, %610 : vector<8x16x128xf32>
    %c5_i32_384 = arith.constant 5 : i32
    %612 = arith.addi %537, %c5_i32_384 : i32
    %613 = arith.index_cast %612 : i32 to index
    %c9_385 = arith.constant 9 : index
    %c0_386 = arith.constant 0 : index
    %614 = vector.load %arg17[%613, %c9_385, %c0_386] : memref<24x32x128xf32, #tpu.memory_space<vmem>>, vector<8x16x128xf32>
    %c8_387 = arith.constant 8 : index
    %c0_388 = arith.constant 0 : index
    %c0_389 = arith.constant 0 : index
    %615 = vector.load %arg8[%c8_387, %c0_388, %c0_389] : memref<34x1x128xf32, #tpu.memory_space<vmem>>, vector<1x1x128xf32>
    %616 = vector.shape_cast %615 : vector<1x1x128xf32> to vector<1x128xf32>
    %617 = vector.shape_cast %616 : vector<1x128xf32> to vector<1x1x128xf32>
    %618 = vector.broadcast %617 : vector<1x1x128xf32> to vector<8x16x128xf32>
    %619 = arith.mulf %614, %618 : vector<8x16x128xf32>
    %620 = arith.addf %611, %619 : vector<8x16x128xf32>
    %c0_i32_390 = arith.constant 0 : i32
    %621 = arith.addi %537, %c0_i32_390 : i32
    %622 = arith.index_cast %621 : i32 to index
    %c4_391 = arith.constant 4 : index
    %c0_392 = arith.constant 0 : index
    %623 = vector.load %arg17[%622, %c4_391, %c0_392] : memref<24x32x128xf32, #tpu.memory_space<vmem>>, vector<8x16x128xf32>
    %c9_393 = arith.constant 9 : index
    %c0_394 = arith.constant 0 : index
    %c0_395 = arith.constant 0 : index
    %624 = vector.load %arg8[%c9_393, %c0_394, %c0_395] : memref<34x1x128xf32, #tpu.memory_space<vmem>>, vector<1x1x128xf32>
    %625 = vector.shape_cast %624 : vector<1x1x128xf32> to vector<1x128xf32>
    %626 = vector.shape_cast %625 : vector<1x128xf32> to vector<1x1x128xf32>
    %627 = vector.broadcast %626 : vector<1x1x128xf32> to vector<8x16x128xf32>
    %628 = arith.mulf %623, %627 : vector<8x16x128xf32>
    %629 = arith.addf %620, %628 : vector<8x16x128xf32>
    %c0_i32_396 = arith.constant 0 : i32
    %630 = arith.addi %537, %c0_i32_396 : i32
    %631 = arith.index_cast %630 : i32 to index
    %c6_397 = arith.constant 6 : index
    %c0_398 = arith.constant 0 : index
    %632 = vector.load %arg17[%631, %c6_397, %c0_398] : memref<24x32x128xf32, #tpu.memory_space<vmem>>, vector<8x16x128xf32>
    %c10_399 = arith.constant 10 : index
    %c0_400 = arith.constant 0 : index
    %c0_401 = arith.constant 0 : index
    %633 = vector.load %arg8[%c10_399, %c0_400, %c0_401] : memref<34x1x128xf32, #tpu.memory_space<vmem>>, vector<1x1x128xf32>
    %634 = vector.shape_cast %633 : vector<1x1x128xf32> to vector<1x128xf32>
    %635 = vector.shape_cast %634 : vector<1x128xf32> to vector<1x1x128xf32>
    %636 = vector.broadcast %635 : vector<1x1x128xf32> to vector<8x16x128xf32>
    %637 = arith.mulf %632, %636 : vector<8x16x128xf32>
    %638 = arith.addf %629, %637 : vector<8x16x128xf32>
    %c0_i32_402 = arith.constant 0 : i32
    %639 = arith.addi %537, %c0_i32_402 : i32
    %640 = arith.index_cast %639 : i32 to index
    %c8_403 = arith.constant 8 : index
    %c0_404 = arith.constant 0 : index
    %641 = vector.load %arg17[%640, %c8_403, %c0_404] : memref<24x32x128xf32, #tpu.memory_space<vmem>>, vector<8x16x128xf32>
    %c11_405 = arith.constant 11 : index
    %c0_406 = arith.constant 0 : index
    %c0_407 = arith.constant 0 : index
    %642 = vector.load %arg8[%c11_405, %c0_406, %c0_407] : memref<34x1x128xf32, #tpu.memory_space<vmem>>, vector<1x1x128xf32>
    %643 = vector.shape_cast %642 : vector<1x1x128xf32> to vector<1x128xf32>
    %644 = vector.shape_cast %643 : vector<1x128xf32> to vector<1x1x128xf32>
    %645 = vector.broadcast %644 : vector<1x1x128xf32> to vector<8x16x128xf32>
    %646 = arith.mulf %641, %645 : vector<8x16x128xf32>
    %647 = arith.addf %638, %646 : vector<8x16x128xf32>
    %c0_i32_408 = arith.constant 0 : i32
    %648 = arith.addi %537, %c0_i32_408 : i32
    %649 = arith.index_cast %648 : i32 to index
    %c10_409 = arith.constant 10 : index
    %c0_410 = arith.constant 0 : index
    %650 = vector.load %arg17[%649, %c10_409, %c0_410] : memref<24x32x128xf32, #tpu.memory_space<vmem>>, vector<8x16x128xf32>
    %c12_411 = arith.constant 12 : index
    %c0_412 = arith.constant 0 : index
    %c0_413 = arith.constant 0 : index
    %651 = vector.load %arg8[%c12_411, %c0_412, %c0_413] : memref<34x1x128xf32, #tpu.memory_space<vmem>>, vector<1x1x128xf32>
    %652 = vector.shape_cast %651 : vector<1x1x128xf32> to vector<1x128xf32>
    %653 = vector.shape_cast %652 : vector<1x128xf32> to vector<1x1x128xf32>
    %654 = vector.broadcast %653 : vector<1x1x128xf32> to vector<8x16x128xf32>
    %655 = arith.mulf %650, %654 : vector<8x16x128xf32>
    %656 = arith.addf %647, %655 : vector<8x16x128xf32>
    %c0_i32_414 = arith.constant 0 : i32
    %657 = arith.addi %537, %c0_i32_414 : i32
    %658 = arith.index_cast %657 : i32 to index
    %c12_415 = arith.constant 12 : index
    %c0_416 = arith.constant 0 : index
    %659 = vector.load %arg17[%658, %c12_415, %c0_416] : memref<24x32x128xf32, #tpu.memory_space<vmem>>, vector<8x16x128xf32>
    %c13_417 = arith.constant 13 : index
    %c0_418 = arith.constant 0 : index
    %c0_419 = arith.constant 0 : index
    %660 = vector.load %arg8[%c13_417, %c0_418, %c0_419] : memref<34x1x128xf32, #tpu.memory_space<vmem>>, vector<1x1x128xf32>
    %661 = vector.shape_cast %660 : vector<1x1x128xf32> to vector<1x128xf32>
    %662 = vector.shape_cast %661 : vector<1x128xf32> to vector<1x1x128xf32>
    %663 = vector.broadcast %662 : vector<1x1x128xf32> to vector<8x16x128xf32>
    %664 = arith.mulf %659, %663 : vector<8x16x128xf32>
    %665 = arith.addf %656, %664 : vector<8x16x128xf32>
    %c2_i32_420 = arith.constant 2 : i32
    %666 = arith.addi %537, %c2_i32_420 : i32
    %667 = arith.index_cast %666 : i32 to index
    %c4_421 = arith.constant 4 : index
    %c0_422 = arith.constant 0 : index
    %668 = vector.load %arg17[%667, %c4_421, %c0_422] : memref<24x32x128xf32, #tpu.memory_space<vmem>>, vector<8x16x128xf32>
    %c14_423 = arith.constant 14 : index
    %c0_424 = arith.constant 0 : index
    %c0_425 = arith.constant 0 : index
    %669 = vector.load %arg8[%c14_423, %c0_424, %c0_425] : memref<34x1x128xf32, #tpu.memory_space<vmem>>, vector<1x1x128xf32>
    %670 = vector.shape_cast %669 : vector<1x1x128xf32> to vector<1x128xf32>
    %671 = vector.shape_cast %670 : vector<1x128xf32> to vector<1x1x128xf32>
    %672 = vector.broadcast %671 : vector<1x1x128xf32> to vector<8x16x128xf32>
    %673 = arith.mulf %668, %672 : vector<8x16x128xf32>
    %674 = arith.addf %665, %673 : vector<8x16x128xf32>
    %c2_i32_426 = arith.constant 2 : i32
    %675 = arith.addi %537, %c2_i32_426 : i32
    %676 = arith.index_cast %675 : i32 to index
    %c6_427 = arith.constant 6 : index
    %c0_428 = arith.constant 0 : index
    %677 = vector.load %arg17[%676, %c6_427, %c0_428] : memref<24x32x128xf32, #tpu.memory_space<vmem>>, vector<8x16x128xf32>
    %c15_429 = arith.constant 15 : index
    %c0_430 = arith.constant 0 : index
    %c0_431 = arith.constant 0 : index
    %678 = vector.load %arg8[%c15_429, %c0_430, %c0_431] : memref<34x1x128xf32, #tpu.memory_space<vmem>>, vector<1x1x128xf32>
    %679 = vector.shape_cast %678 : vector<1x1x128xf32> to vector<1x128xf32>
    %680 = vector.shape_cast %679 : vector<1x128xf32> to vector<1x1x128xf32>
    %681 = vector.broadcast %680 : vector<1x1x128xf32> to vector<8x16x128xf32>
    %682 = arith.mulf %677, %681 : vector<8x16x128xf32>
    %683 = arith.addf %674, %682 : vector<8x16x128xf32>
    %c2_i32_432 = arith.constant 2 : i32
    %684 = arith.addi %537, %c2_i32_432 : i32
    %685 = arith.index_cast %684 : i32 to index
    %c8_433 = arith.constant 8 : index
    %c0_434 = arith.constant 0 : index
    %686 = vector.load %arg17[%685, %c8_433, %c0_434] : memref<24x32x128xf32, #tpu.memory_space<vmem>>, vector<8x16x128xf32>
    %c16_435 = arith.constant 16 : index
    %c0_436 = arith.constant 0 : index
    %c0_437 = arith.constant 0 : index
    %687 = vector.load %arg8[%c16_435, %c0_436, %c0_437] : memref<34x1x128xf32, #tpu.memory_space<vmem>>, vector<1x1x128xf32>
    %688 = vector.shape_cast %687 : vector<1x1x128xf32> to vector<1x128xf32>
    %689 = vector.shape_cast %688 : vector<1x128xf32> to vector<1x1x128xf32>
    %690 = vector.broadcast %689 : vector<1x1x128xf32> to vector<8x16x128xf32>
    %691 = arith.mulf %686, %690 : vector<8x16x128xf32>
    %692 = arith.addf %683, %691 : vector<8x16x128xf32>
    %c2_i32_438 = arith.constant 2 : i32
    %693 = arith.addi %537, %c2_i32_438 : i32
    %694 = arith.index_cast %693 : i32 to index
    %c10_439 = arith.constant 10 : index
    %c0_440 = arith.constant 0 : index
    %695 = vector.load %arg17[%694, %c10_439, %c0_440] : memref<24x32x128xf32, #tpu.memory_space<vmem>>, vector<8x16x128xf32>
    %c17_441 = arith.constant 17 : index
    %c0_442 = arith.constant 0 : index
    %c0_443 = arith.constant 0 : index
    %696 = vector.load %arg8[%c17_441, %c0_442, %c0_443] : memref<34x1x128xf32, #tpu.memory_space<vmem>>, vector<1x1x128xf32>
    %697 = vector.shape_cast %696 : vector<1x1x128xf32> to vector<1x128xf32>
    %698 = vector.shape_cast %697 : vector<1x128xf32> to vector<1x1x128xf32>
    %699 = vector.broadcast %698 : vector<1x1x128xf32> to vector<8x16x128xf32>
    %700 = arith.mulf %695, %699 : vector<8x16x128xf32>
    %701 = arith.addf %692, %700 : vector<8x16x128xf32>
    %c2_i32_444 = arith.constant 2 : i32
    %702 = arith.addi %537, %c2_i32_444 : i32
    %703 = arith.index_cast %702 : i32 to index
    %c12_445 = arith.constant 12 : index
    %c0_446 = arith.constant 0 : index
    %704 = vector.load %arg17[%703, %c12_445, %c0_446] : memref<24x32x128xf32, #tpu.memory_space<vmem>>, vector<8x16x128xf32>
    %c18_447 = arith.constant 18 : index
    %c0_448 = arith.constant 0 : index
    %c0_449 = arith.constant 0 : index
    %705 = vector.load %arg8[%c18_447, %c0_448, %c0_449] : memref<34x1x128xf32, #tpu.memory_space<vmem>>, vector<1x1x128xf32>
    %706 = vector.shape_cast %705 : vector<1x1x128xf32> to vector<1x128xf32>
    %707 = vector.shape_cast %706 : vector<1x128xf32> to vector<1x1x128xf32>
    %708 = vector.broadcast %707 : vector<1x1x128xf32> to vector<8x16x128xf32>
    %709 = arith.mulf %704, %708 : vector<8x16x128xf32>
    %710 = arith.addf %701, %709 : vector<8x16x128xf32>
    %c4_i32_450 = arith.constant 4 : i32
    %711 = arith.addi %537, %c4_i32_450 : i32
    %712 = arith.index_cast %711 : i32 to index
    %c4_451 = arith.constant 4 : index
    %c0_452 = arith.constant 0 : index
    %713 = vector.load %arg17[%712, %c4_451, %c0_452] : memref<24x32x128xf32, #tpu.memory_space<vmem>>, vector<8x16x128xf32>
    %c19_453 = arith.constant 19 : index
    %c0_454 = arith.constant 0 : index
    %c0_455 = arith.constant 0 : index
    %714 = vector.load %arg8[%c19_453, %c0_454, %c0_455] : memref<34x1x128xf32, #tpu.memory_space<vmem>>, vector<1x1x128xf32>
    %715 = vector.shape_cast %714 : vector<1x1x128xf32> to vector<1x128xf32>
    %716 = vector.shape_cast %715 : vector<1x128xf32> to vector<1x1x128xf32>
    %717 = vector.broadcast %716 : vector<1x1x128xf32> to vector<8x16x128xf32>
    %718 = arith.mulf %713, %717 : vector<8x16x128xf32>
    %719 = arith.addf %710, %718 : vector<8x16x128xf32>
    %c4_i32_456 = arith.constant 4 : i32
    %720 = arith.addi %537, %c4_i32_456 : i32
    %721 = arith.index_cast %720 : i32 to index
    %c6_457 = arith.constant 6 : index
    %c0_458 = arith.constant 0 : index
    %722 = vector.load %arg17[%721, %c6_457, %c0_458] : memref<24x32x128xf32, #tpu.memory_space<vmem>>, vector<8x16x128xf32>
    %c20_459 = arith.constant 20 : index
    %c0_460 = arith.constant 0 : index
    %c0_461 = arith.constant 0 : index
    %723 = vector.load %arg8[%c20_459, %c0_460, %c0_461] : memref<34x1x128xf32, #tpu.memory_space<vmem>>, vector<1x1x128xf32>
    %724 = vector.shape_cast %723 : vector<1x1x128xf32> to vector<1x128xf32>
    %725 = vector.shape_cast %724 : vector<1x128xf32> to vector<1x1x128xf32>
    %726 = vector.broadcast %725 : vector<1x1x128xf32> to vector<8x16x128xf32>
    %727 = arith.mulf %722, %726 : vector<8x16x128xf32>
    %728 = arith.addf %719, %727 : vector<8x16x128xf32>
    %c4_i32_462 = arith.constant 4 : i32
    %729 = arith.addi %537, %c4_i32_462 : i32
    %730 = arith.index_cast %729 : i32 to index
    %c8_463 = arith.constant 8 : index
    %c0_464 = arith.constant 0 : index
    %731 = vector.load %arg17[%730, %c8_463, %c0_464] : memref<24x32x128xf32, #tpu.memory_space<vmem>>, vector<8x16x128xf32>
    %c21_465 = arith.constant 21 : index
    %c0_466 = arith.constant 0 : index
    %c0_467 = arith.constant 0 : index
    %732 = vector.load %arg8[%c21_465, %c0_466, %c0_467] : memref<34x1x128xf32, #tpu.memory_space<vmem>>, vector<1x1x128xf32>
    %733 = vector.shape_cast %732 : vector<1x1x128xf32> to vector<1x128xf32>
    %734 = vector.shape_cast %733 : vector<1x128xf32> to vector<1x1x128xf32>
    %735 = vector.broadcast %734 : vector<1x1x128xf32> to vector<8x16x128xf32>
    %736 = arith.mulf %731, %735 : vector<8x16x128xf32>
    %737 = arith.addf %728, %736 : vector<8x16x128xf32>
    %c4_i32_468 = arith.constant 4 : i32
    %738 = arith.addi %537, %c4_i32_468 : i32
    %739 = arith.index_cast %738 : i32 to index
    %c10_469 = arith.constant 10 : index
    %c0_470 = arith.constant 0 : index
    %740 = vector.load %arg17[%739, %c10_469, %c0_470] : memref<24x32x128xf32, #tpu.memory_space<vmem>>, vector<8x16x128xf32>
    %c22_471 = arith.constant 22 : index
    %c0_472 = arith.constant 0 : index
    %c0_473 = arith.constant 0 : index
    %741 = vector.load %arg8[%c22_471, %c0_472, %c0_473] : memref<34x1x128xf32, #tpu.memory_space<vmem>>, vector<1x1x128xf32>
    %742 = vector.shape_cast %741 : vector<1x1x128xf32> to vector<1x128xf32>
    %743 = vector.shape_cast %742 : vector<1x128xf32> to vector<1x1x128xf32>
    %744 = vector.broadcast %743 : vector<1x1x128xf32> to vector<8x16x128xf32>
    %745 = arith.mulf %740, %744 : vector<8x16x128xf32>
    %746 = arith.addf %737, %745 : vector<8x16x128xf32>
    %c4_i32_474 = arith.constant 4 : i32
    %747 = arith.addi %537, %c4_i32_474 : i32
    %748 = arith.index_cast %747 : i32 to index
    %c12_475 = arith.constant 12 : index
    %c0_476 = arith.constant 0 : index
    %749 = vector.load %arg17[%748, %c12_475, %c0_476] : memref<24x32x128xf32, #tpu.memory_space<vmem>>, vector<8x16x128xf32>
    %c23_477 = arith.constant 23 : index
    %c0_478 = arith.constant 0 : index
    %c0_479 = arith.constant 0 : index
    %750 = vector.load %arg8[%c23_477, %c0_478, %c0_479] : memref<34x1x128xf32, #tpu.memory_space<vmem>>, vector<1x1x128xf32>
    %751 = vector.shape_cast %750 : vector<1x1x128xf32> to vector<1x128xf32>
    %752 = vector.shape_cast %751 : vector<1x128xf32> to vector<1x1x128xf32>
    %753 = vector.broadcast %752 : vector<1x1x128xf32> to vector<8x16x128xf32>
    %754 = arith.mulf %749, %753 : vector<8x16x128xf32>
    %755 = arith.addf %746, %754 : vector<8x16x128xf32>
    %c6_i32_480 = arith.constant 6 : i32
    %756 = arith.addi %537, %c6_i32_480 : i32
    %757 = arith.index_cast %756 : i32 to index
    %c4_481 = arith.constant 4 : index
    %c0_482 = arith.constant 0 : index
    %758 = vector.load %arg17[%757, %c4_481, %c0_482] : memref<24x32x128xf32, #tpu.memory_space<vmem>>, vector<8x16x128xf32>
    %c24_483 = arith.constant 24 : index
    %c0_484 = arith.constant 0 : index
    %c0_485 = arith.constant 0 : index
    %759 = vector.load %arg8[%c24_483, %c0_484, %c0_485] : memref<34x1x128xf32, #tpu.memory_space<vmem>>, vector<1x1x128xf32>
    %760 = vector.shape_cast %759 : vector<1x1x128xf32> to vector<1x128xf32>
    %761 = vector.shape_cast %760 : vector<1x128xf32> to vector<1x1x128xf32>
    %762 = vector.broadcast %761 : vector<1x1x128xf32> to vector<8x16x128xf32>
    %763 = arith.mulf %758, %762 : vector<8x16x128xf32>
    %764 = arith.addf %755, %763 : vector<8x16x128xf32>
    %c6_i32_486 = arith.constant 6 : i32
    %765 = arith.addi %537, %c6_i32_486 : i32
    %766 = arith.index_cast %765 : i32 to index
    %c6_487 = arith.constant 6 : index
    %c0_488 = arith.constant 0 : index
    %767 = vector.load %arg17[%766, %c6_487, %c0_488] : memref<24x32x128xf32, #tpu.memory_space<vmem>>, vector<8x16x128xf32>
    %c25_489 = arith.constant 25 : index
    %c0_490 = arith.constant 0 : index
    %c0_491 = arith.constant 0 : index
    %768 = vector.load %arg8[%c25_489, %c0_490, %c0_491] : memref<34x1x128xf32, #tpu.memory_space<vmem>>, vector<1x1x128xf32>
    %769 = vector.shape_cast %768 : vector<1x1x128xf32> to vector<1x128xf32>
    %770 = vector.shape_cast %769 : vector<1x128xf32> to vector<1x1x128xf32>
    %771 = vector.broadcast %770 : vector<1x1x128xf32> to vector<8x16x128xf32>
    %772 = arith.mulf %767, %771 : vector<8x16x128xf32>
    %773 = arith.addf %764, %772 : vector<8x16x128xf32>
    %c6_i32_492 = arith.constant 6 : i32
    %774 = arith.addi %537, %c6_i32_492 : i32
    %775 = arith.index_cast %774 : i32 to index
    %c8_493 = arith.constant 8 : index
    %c0_494 = arith.constant 0 : index
    %776 = vector.load %arg17[%775, %c8_493, %c0_494] : memref<24x32x128xf32, #tpu.memory_space<vmem>>, vector<8x16x128xf32>
    %c26_495 = arith.constant 26 : index
    %c0_496 = arith.constant 0 : index
    %c0_497 = arith.constant 0 : index
    %777 = vector.load %arg8[%c26_495, %c0_496, %c0_497] : memref<34x1x128xf32, #tpu.memory_space<vmem>>, vector<1x1x128xf32>
    %778 = vector.shape_cast %777 : vector<1x1x128xf32> to vector<1x128xf32>
    %779 = vector.shape_cast %778 : vector<1x128xf32> to vector<1x1x128xf32>
    %780 = vector.broadcast %779 : vector<1x1x128xf32> to vector<8x16x128xf32>
    %781 = arith.mulf %776, %780 : vector<8x16x128xf32>
    %782 = arith.addf %773, %781 : vector<8x16x128xf32>
    %c6_i32_498 = arith.constant 6 : i32
    %783 = arith.addi %537, %c6_i32_498 : i32
    %784 = arith.index_cast %783 : i32 to index
    %c10_499 = arith.constant 10 : index
    %c0_500 = arith.constant 0 : index
    %785 = vector.load %arg17[%784, %c10_499, %c0_500] : memref<24x32x128xf32, #tpu.memory_space<vmem>>, vector<8x16x128xf32>
    %c27_501 = arith.constant 27 : index
    %c0_502 = arith.constant 0 : index
    %c0_503 = arith.constant 0 : index
    %786 = vector.load %arg8[%c27_501, %c0_502, %c0_503] : memref<34x1x128xf32, #tpu.memory_space<vmem>>, vector<1x1x128xf32>
    %787 = vector.shape_cast %786 : vector<1x1x128xf32> to vector<1x128xf32>
    %788 = vector.shape_cast %787 : vector<1x128xf32> to vector<1x1x128xf32>
    %789 = vector.broadcast %788 : vector<1x1x128xf32> to vector<8x16x128xf32>
    %790 = arith.mulf %785, %789 : vector<8x16x128xf32>
    %791 = arith.addf %782, %790 : vector<8x16x128xf32>
    %c6_i32_504 = arith.constant 6 : i32
    %792 = arith.addi %537, %c6_i32_504 : i32
    %793 = arith.index_cast %792 : i32 to index
    %c12_505 = arith.constant 12 : index
    %c0_506 = arith.constant 0 : index
    %794 = vector.load %arg17[%793, %c12_505, %c0_506] : memref<24x32x128xf32, #tpu.memory_space<vmem>>, vector<8x16x128xf32>
    %c28_507 = arith.constant 28 : index
    %c0_508 = arith.constant 0 : index
    %c0_509 = arith.constant 0 : index
    %795 = vector.load %arg8[%c28_507, %c0_508, %c0_509] : memref<34x1x128xf32, #tpu.memory_space<vmem>>, vector<1x1x128xf32>
    %796 = vector.shape_cast %795 : vector<1x1x128xf32> to vector<1x128xf32>
    %797 = vector.shape_cast %796 : vector<1x128xf32> to vector<1x1x128xf32>
    %798 = vector.broadcast %797 : vector<1x1x128xf32> to vector<8x16x128xf32>
    %799 = arith.mulf %794, %798 : vector<8x16x128xf32>
    %800 = arith.addf %791, %799 : vector<8x16x128xf32>
    %c8_i32_510 = arith.constant 8 : i32
    %801 = arith.addi %537, %c8_i32_510 : i32
    %802 = arith.index_cast %801 : i32 to index
    %c4_511 = arith.constant 4 : index
    %c0_512 = arith.constant 0 : index
    %803 = vector.load %arg17[%802, %c4_511, %c0_512] : memref<24x32x128xf32, #tpu.memory_space<vmem>>, vector<8x16x128xf32>
    %c29_513 = arith.constant 29 : index
    %c0_514 = arith.constant 0 : index
    %c0_515 = arith.constant 0 : index
    %804 = vector.load %arg8[%c29_513, %c0_514, %c0_515] : memref<34x1x128xf32, #tpu.memory_space<vmem>>, vector<1x1x128xf32>
    %805 = vector.shape_cast %804 : vector<1x1x128xf32> to vector<1x128xf32>
    %806 = vector.shape_cast %805 : vector<1x128xf32> to vector<1x1x128xf32>
    %807 = vector.broadcast %806 : vector<1x1x128xf32> to vector<8x16x128xf32>
    %808 = arith.mulf %803, %807 : vector<8x16x128xf32>
    %809 = arith.addf %800, %808 : vector<8x16x128xf32>
    %c8_i32_516 = arith.constant 8 : i32
    %810 = arith.addi %537, %c8_i32_516 : i32
    %811 = arith.index_cast %810 : i32 to index
    %c6_517 = arith.constant 6 : index
    %c0_518 = arith.constant 0 : index
    %812 = vector.load %arg17[%811, %c6_517, %c0_518] : memref<24x32x128xf32, #tpu.memory_space<vmem>>, vector<8x16x128xf32>
    %c30_519 = arith.constant 30 : index
    %c0_520 = arith.constant 0 : index
    %c0_521 = arith.constant 0 : index
    %813 = vector.load %arg8[%c30_519, %c0_520, %c0_521] : memref<34x1x128xf32, #tpu.memory_space<vmem>>, vector<1x1x128xf32>
    %814 = vector.shape_cast %813 : vector<1x1x128xf32> to vector<1x128xf32>
    %815 = vector.shape_cast %814 : vector<1x128xf32> to vector<1x1x128xf32>
    %816 = vector.broadcast %815 : vector<1x1x128xf32> to vector<8x16x128xf32>
    %817 = arith.mulf %812, %816 : vector<8x16x128xf32>
    %818 = arith.addf %809, %817 : vector<8x16x128xf32>
    %c8_i32_522 = arith.constant 8 : i32
    %819 = arith.addi %537, %c8_i32_522 : i32
    %820 = arith.index_cast %819 : i32 to index
    %c8_523 = arith.constant 8 : index
    %c0_524 = arith.constant 0 : index
    %821 = vector.load %arg17[%820, %c8_523, %c0_524] : memref<24x32x128xf32, #tpu.memory_space<vmem>>, vector<8x16x128xf32>
    %c31_525 = arith.constant 31 : index
    %c0_526 = arith.constant 0 : index
    %c0_527 = arith.constant 0 : index
    %822 = vector.load %arg8[%c31_525, %c0_526, %c0_527] : memref<34x1x128xf32, #tpu.memory_space<vmem>>, vector<1x1x128xf32>
    %823 = vector.shape_cast %822 : vector<1x1x128xf32> to vector<1x128xf32>
    %824 = vector.shape_cast %823 : vector<1x128xf32> to vector<1x1x128xf32>
    %825 = vector.broadcast %824 : vector<1x1x128xf32> to vector<8x16x128xf32>
    %826 = arith.mulf %821, %825 : vector<8x16x128xf32>
    %827 = arith.addf %818, %826 : vector<8x16x128xf32>
    %c8_i32_528 = arith.constant 8 : i32
    %828 = arith.addi %537, %c8_i32_528 : i32
    %829 = arith.index_cast %828 : i32 to index
    %c10_529 = arith.constant 10 : index
    %c0_530 = arith.constant 0 : index
    %830 = vector.load %arg17[%829, %c10_529, %c0_530] : memref<24x32x128xf32, #tpu.memory_space<vmem>>, vector<8x16x128xf32>
    %c32_531 = arith.constant 32 : index
    %c0_532 = arith.constant 0 : index
    %c0_533 = arith.constant 0 : index
    %831 = vector.load %arg8[%c32_531, %c0_532, %c0_533] : memref<34x1x128xf32, #tpu.memory_space<vmem>>, vector<1x1x128xf32>
    %832 = vector.shape_cast %831 : vector<1x1x128xf32> to vector<1x128xf32>
    %833 = vector.shape_cast %832 : vector<1x128xf32> to vector<1x1x128xf32>
    %834 = vector.broadcast %833 : vector<1x1x128xf32> to vector<8x16x128xf32>
    %835 = arith.mulf %830, %834 : vector<8x16x128xf32>
    %836 = arith.addf %827, %835 : vector<8x16x128xf32>
    %c8_i32_534 = arith.constant 8 : i32
    %837 = arith.addi %537, %c8_i32_534 : i32
    %838 = arith.index_cast %837 : i32 to index
    %c12_535 = arith.constant 12 : index
    %c0_536 = arith.constant 0 : index
    %839 = vector.load %arg17[%838, %c12_535, %c0_536] : memref<24x32x128xf32, #tpu.memory_space<vmem>>, vector<8x16x128xf32>
    %c33_537 = arith.constant 33 : index
    %c0_538 = arith.constant 0 : index
    %c0_539 = arith.constant 0 : index
    %840 = vector.load %arg8[%c33_537, %c0_538, %c0_539] : memref<34x1x128xf32, #tpu.memory_space<vmem>>, vector<1x1x128xf32>
    %841 = vector.shape_cast %840 : vector<1x1x128xf32> to vector<1x128xf32>
    %842 = vector.shape_cast %841 : vector<1x128xf32> to vector<1x1x128xf32>
    %843 = vector.broadcast %842 : vector<1x1x128xf32> to vector<8x16x128xf32>
    %844 = arith.mulf %839, %843 : vector<8x16x128xf32>
    %845 = arith.addf %836, %844 : vector<8x16x128xf32>
    %846 = arith.index_cast %537 : i32 to index
    %c0_540 = arith.constant 0 : index
    %c0_541 = arith.constant 0 : index
    %847 = vector.load %arg18[%846, %c0_540, %c0_541] : memref<16x16x128xf32, #tpu.memory_space<vmem>>, vector<8x16x128xf32>
    tpu.vector_store %arg18[%846, %c0_540, %c0_541], %845 {strides = array<i32>} : memref<16x16x128xf32, #tpu.memory_space<vmem>>, vector<8x16x128xf32>,
    %c2_i32_542 = arith.constant 2 : i32
    %c0_543 = arith.constant 0 : index
    %c0_544 = arith.constant 0 : index
    %c0_545 = arith.constant 0 : index
    %848 = vector.load %arg18[%c0_543, %c0_544, %c0_545] : memref<16x16x128xf32, #tpu.memory_space<vmem>>, vector<16x16x128xf32>
    %c0_546 = arith.constant 0 : index
    %c0_547 = arith.constant 0 : index
    %849 = vector.load %arg12[%c0_546, %c0_547] : memref<128x16xf32, #tpu.memory_space<vmem>>, vector<128x16xf32>
    %c0_548 = arith.constant 0 : index
    %c0_549 = arith.constant 0 : index
    %850 = vector.load %arg13[%c0_548, %c0_549] : memref<16x128xf32, #tpu.memory_space<vmem>>, vector<16x128xf32>
    %c0_550 = arith.constant 0 : index
    %c0_551 = arith.constant 0 : index
    %851 = vector.load %arg10[%c0_550, %c0_551] : memref<1x128xf32, #tpu.memory_space<vmem>>, vector<1x128xf32>
    %c0_552 = arith.constant 0 : index
    %c0_553 = arith.constant 0 : index
    %852 = vector.load %arg11[%c0_552, %c0_553] : memref<1x128xf32, #tpu.memory_space<vmem>>, vector<1x128xf32>
    %853 = vector.shape_cast %848 : vector<16x16x128xf32> to vector<256x128xf32>
    %cst_554 = arith.constant dense<0.000000e+00> : vector<1x128xf32>
    %854 = tpu.matmul %186, %853, %cst_554 {dimension_numbers = #tpu.dot_dimension_numbers<[1], [0], [0], [1], [0, 0, 1, 1], [], []>} : vector<1x256xf32>, vector<256x128xf32>, vector<1x128xf32> -> vector<1x128xf32>
    %cst_555 = arith.constant dense<0.000000e+00> : vector<1x16xf32>
    %855 = tpu.matmul %854, %849, %cst_555 {dimension_numbers = #tpu.dot_dimension_numbers<[1], [0], [0], [1], [0, 0, 1, 1], [], []>} : vector<1x128xf32>, vector<128x16xf32>, vector<1x16xf32> -> vector<1x16xf32>
    %cst_556 = arith.constant dense<0.000000e+00> : vector<1x128xf32>
    %856 = tpu.matmul %855, %850, %cst_556 {dimension_numbers = #tpu.dot_dimension_numbers<[1], [0], [0], [1], [0, 0, 1, 1], [], []>} : vector<1x16xf32>, vector<16x128xf32>, vector<1x128xf32> -> vector<1x128xf32>
    %857 = vector.shape_cast %856 : vector<1x128xf32> to vector<1x1x128xf32>
    %858 = vector.broadcast %857 : vector<1x1x128xf32> to vector<16x16x128xf32>
    %859 = arith.subf %848, %858 : vector<16x16x128xf32>
    %860 = arith.mulf %859, %859 : vector<16x16x128xf32>
    %861 = vector.shape_cast %860 : vector<16x16x128xf32> to vector<256x128xf32>
    %cst_557 = arith.constant dense<0.000000e+00> : vector<1x128xf32>
    %862 = tpu.matmul %186, %861, %cst_557 {dimension_numbers = #tpu.dot_dimension_numbers<[1], [0], [0], [1], [0, 0, 1, 1], [], []>} : vector<1x256xf32>, vector<256x128xf32>, vector<1x128xf32> -> vector<1x128xf32>
    %cst_558 = arith.constant dense<0.000000e+00> : vector<1x16xf32>
    %863 = tpu.matmul %862, %849, %cst_558 {dimension_numbers = #tpu.dot_dimension_numbers<[1], [0], [0], [1], [0, 0, 1, 1], [], []>} : vector<1x128xf32>, vector<128x16xf32>, vector<1x16xf32> -> vector<1x16xf32>
    %cst_559 = arith.constant 9.99999974E-6 : f32
    %864 = vector.broadcast %cst_559 : f32 to vector<1x16xf32>
    %865 = arith.addf %863, %864 : vector<1x16xf32>
    %866 = math.rsqrt %865 : vector<1x16xf32>
    %cst_560 = arith.constant dense<0.000000e+00> : vector<1x128xf32>
    %867 = tpu.matmul %866, %850, %cst_560 {dimension_numbers = #tpu.dot_dimension_numbers<[1], [0], [0], [1], [0, 0, 1, 1], [], []>} : vector<1x16xf32>, vector<16x128xf32>, vector<1x128xf32> -> vector<1x128xf32>
    %868 = arith.mulf %867, %851 : vector<1x128xf32>
    %869 = vector.shape_cast %868 : vector<1x128xf32> to vector<1x1x128xf32>
    %870 = vector.broadcast %869 : vector<1x1x128xf32> to vector<16x16x128xf32>
    %871 = arith.mulf %859, %870 : vector<16x16x128xf32>
    %872 = vector.shape_cast %852 : vector<1x128xf32> to vector<1x1x128xf32>
    %873 = vector.broadcast %872 : vector<1x1x128xf32> to vector<16x16x128xf32>
    %874 = arith.addf %871, %873 : vector<16x16x128xf32>
    %cst_561 = arith.constant 5.000000e-01 : f32
    %875 = vector.broadcast %cst_561 : f32 to vector<16x16x128xf32>
    %876 = arith.mulf %875, %874 : vector<16x16x128xf32>
    %cst_562 = arith.constant 5.000000e-01 : f32
    %877 = vector.broadcast %cst_562 : f32 to vector<16x16x128xf32>
    %878 = arith.mulf %877, %874 : vector<16x16x128xf32>
    %879 = math.tanh %878 : vector<16x16x128xf32>
    %cst_563 = arith.constant 1.000000e+00 : f32
    %880 = vector.broadcast %cst_563 : f32 to vector<16x16x128xf32>
    %881 = arith.addf %879, %880 : vector<16x16x128xf32>
    %882 = arith.mulf %876, %881 : vector<16x16x128xf32>
    %883 = arith.truncf %882 : vector<16x16x128xf32> to vector<16x16x128xbf16>
    %884 = vector.shape_cast %883 : vector<16x16x128xbf16> to vector<256x128xbf16>
    %c0_564 = arith.constant 0 : index
    %c0_565 = arith.constant 0 : index
    %885 = vector.load %arg14[%c0_564, %c0_565] : memref<128x128xbf16, #tpu.memory_space<vmem>>, vector<128x128xbf16>
    %cst_566 = arith.constant dense<0.000000e+00> : vector<256x128xf32>
    %886 = tpu.matmul %884, %885, %cst_566 {dimension_numbers = #tpu.dot_dimension_numbers<[1], [0], [0], [1], [0, 0, 1, 1], [], []>} : vector<256x128xbf16>, vector<128x128xbf16>, vector<256x128xf32> -> vector<256x128xf32>
    %c0_567 = arith.constant 0 : index
    %c0_568 = arith.constant 0 : index
    %887 = vector.load %arg15[%c0_567, %c0_568] : memref<1x128xf32, #tpu.memory_space<vmem>>, vector<1x128xf32>
    %888 = vector.broadcast %887 : vector<1x128xf32> to vector<256x128xf32>
    %889 = arith.addf %886, %888 : vector<256x128xf32>
    %890 = vector.shape_cast %889 : vector<256x128xf32> to vector<16x16x128xf32>
    %c0_569 = arith.constant 0 : index
    %c0_570 = arith.constant 0 : index
    %c0_571 = arith.constant 0 : index
    %c0_572 = arith.constant 0 : index
    %891 = vector.load %arg16[%c0_569, %c0_570, %c0_571, %c0_572] : memref<1x16x16x128xf32, #tpu.memory_space<vmem>>, vector<1x16x16x128xf32>
    %892 = vector.shape_cast %891 : vector<1x16x16x128xf32> to vector<16x16x128xf32>
    %893 = vector.shape_cast %890 : vector<16x16x128xf32> to vector<1x16x16x128xf32>
    tpu.vector_store %arg16[%c0_569, %c0_570, %c0_571, %c0_572], %893 {strides = array<i32>} : memref<1x16x16x128xf32, #tpu.memory_space<vmem>>, vector<1x16x16x128xf32>,
    return
  }
  func.func @transform_0(%arg0: i32) -> (i32, i32, i32, i32) {
    %c0_i32 = arith.constant 0 : i32
    %c0_i32_0 = arith.constant 0 : i32
    %c0_i32_1 = arith.constant 0 : i32
    %c0_i32_2 = arith.constant 0 : i32
    return %arg0, %c0_i32, %c0_i32_0, %c0_i32_1 : i32, i32, i32, i32
  }
  func.func @transform_1(%arg0: i32) -> (i32, i32, i32) {
    %c0_i32 = arith.constant 0 : i32
    %c0_i32_0 = arith.constant 0 : i32
    %c0_i32_1 = arith.constant 0 : i32
    %c0_i32_2 = arith.constant 0 : i32
    return %c0_i32, %c0_i32_0, %c0_i32_1 : i32, i32, i32
  }
  func.func @transform_2(%arg0: i32) -> (i32, i32) {
    %c0_i32 = arith.constant 0 : i32
    %c0_i32_0 = arith.constant 0 : i32
    %c0_i32_1 = arith.constant 0 : i32
    return %c0_i32, %c0_i32_0 : i32, i32
  }
  func.func @transform_3(%arg0: i32) -> (i32, i32) {
    %c0_i32 = arith.constant 0 : i32
    %c0_i32_0 = arith.constant 0 : i32
    %c0_i32_1 = arith.constant 0 : i32
    return %c0_i32, %c0_i32_0 : i32, i32
  }
  func.func @transform_4(%arg0: i32) -> (i32, i32) {
    %c0_i32 = arith.constant 0 : i32
    %c0_i32_0 = arith.constant 0 : i32
    %c0_i32_1 = arith.constant 0 : i32
    return %c0_i32, %c0_i32_0 : i32, i32
  }
  func.func @transform_5(%arg0: i32) -> (i32, i32) {
    %c0_i32 = arith.constant 0 : i32
    %c0_i32_0 = arith.constant 0 : i32
    %c0_i32_1 = arith.constant 0 : i32
    return %c0_i32, %c0_i32_0 : i32, i32
  }
  func.func @transform_6(%arg0: i32) -> (i32, i32) {
    %c0_i32 = arith.constant 0 : i32
    %c0_i32_0 = arith.constant 0 : i32
    %c0_i32_1 = arith.constant 0 : i32
    return %c0_i32, %c0_i32_0 : i32, i32
  }
  func.func @transform_7(%arg0: i32) -> (i32, i32, i32) {
    %c0_i32 = arith.constant 0 : i32
    %c0_i32_0 = arith.constant 0 : i32
    %c0_i32_1 = arith.constant 0 : i32
    %c0_i32_2 = arith.constant 0 : i32
    return %c0_i32, %c0_i32_0, %c0_i32_1 : i32, i32, i32
  }
  func.func @transform_8(%arg0: i32) -> (i32, i32) {
    %c0_i32 = arith.constant 0 : i32
    %c0_i32_0 = arith.constant 0 : i32
    %c0_i32_1 = arith.constant 0 : i32
    return %c0_i32, %c0_i32_0 : i32, i32
  }
  func.func @transform_9(%arg0: i32) -> (i32, i32) {
    %c0_i32 = arith.constant 0 : i32
    %c0_i32_0 = arith.constant 0 : i32
    %c0_i32_1 = arith.constant 0 : i32
    return %c0_i32, %c0_i32_0 : i32, i32
  }
  func.func @transform_10(%arg0: i32) -> (i32, i32) {
    %c0_i32 = arith.constant 0 : i32
    %c0_i32_0 = arith.constant 0 : i32
    %c0_i32_1 = arith.constant 0 : i32
    return %c0_i32, %c0_i32_0 : i32, i32
  }
  func.func @transform_11(%arg0: i32) -> (i32, i32) {
    %c0_i32 = arith.constant 0 : i32
    %c0_i32_0 = arith.constant 0 : i32
    %c0_i32_1 = arith.constant 0 : i32
    return %c0_i32, %c0_i32_0 : i32, i32
  }
  func.func @transform_12(%arg0: i32) -> (i32, i32) {
    %c0_i32 = arith.constant 0 : i32
    %c0_i32_0 = arith.constant 0 : i32
    %c0_i32_1 = arith.constant 0 : i32
    return %c0_i32, %c0_i32_0 : i32, i32
  }
  func.func @transform_13(%arg0: i32) -> (i32, i32) {
    %c0_i32 = arith.constant 0 : i32
    %c0_i32_0 = arith.constant 0 : i32
    %c0_i32_1 = arith.constant 0 : i32
    return %c0_i32, %c0_i32_0 : i32, i32
  }
  func.func @transform_14(%arg0: i32) -> (i32, i32) {
    %c0_i32 = arith.constant 0 : i32
    %c0_i32_0 = arith.constant 0 : i32
    %c0_i32_1 = arith.constant 0 : i32
    return %c0_i32, %c0_i32_0 : i32, i32
  }
  func.func @transform_15(%arg0: i32) -> (i32, i32, i32, i32) {
    %c0_i32 = arith.constant 0 : i32
    %c0_i32_0 = arith.constant 0 : i32
    %c0_i32_1 = arith.constant 0 : i32
    %c0_i32_2 = arith.constant 0 : i32
    return %arg0, %c0_i32, %c0_i32_0, %c0_i32_1 : i32, i32, i32, i32
  }
}

</mosaic_0001>

<bundles_post_ra>
// kernel: tpu_custom_call.1
= control target key start
LH: loop header
LB: loop body
LE: loop exit
PB: predicated region body
PF: predicated region fallthrough
CT: control target
= control target key end

     0   :  { %s14845_s0 = inlined_call_operand.hbm [shape: f32[2,16,16,128], index: 0, kind: input, shape index: {}]   ;;  %s14846_s1 = inlined_call_operand.vmem [shape: f32[9,1,128], index: 1, kind: input, shape index: {}]   ;;  %s14847_s2 = inlined_call_operand.vmem [shape: f32[1,128], index: 2, kind: input, shape index: {}]   ;;  %s14848_s3 = inlined_call_operand.vmem [shape: f32[1,128], index: 3, kind: input, shape index: {}]   ;;  %s14849_s4 = inlined_call_operand.vmem [shape: f32[1,128], index: 4, kind: input, shape index: {}]   ;;  %s14850_s5 = inlined_call_operand.vmem [shape: f32[128,32], index: 5, kind: input, shape index: {}]   ;;  %s14851_s6 = inlined_call_operand.vmem [shape: f32[32,128], index: 6, kind: input, shape index: {}]   ;;  %s14852_s7 = inlined_call_operand.vmem [shape: f32[34,1,128], index: 7, kind: input, shape index: {}]   ;;  %s14853_s8 = inlined_call_operand.vmem [shape: f32[1,128], index: 8, kind: input, shape index: {}]   ;;  %s14854_s9 = inlined_call_operand.vmem [shape: f32[1,128], index: 9, kind: input, shape index: {}]   ;;  %s14855_s10 = inlined_call_operand.vmem [shape: f32[1,128], index: 10, kind: input, shape index: {}]   ;;  %s14856_s11 = inlined_call_operand.vmem [shape: f32[128,16], index: 11, kind: input, shape index: {}]   ;;  %s14857_s12 = inlined_call_operand.vmem [shape: f32[16,128], index: 12, kind: input, shape index: {}]   ;;  %s14858_s13 = inlined_call_operand.vmem [shape: bf16[128,128], index: 13, kind: input, shape index: {}]   ;;  %s14859_s14 = inlined_call_operand.vmem [shape: f32[1,128], index: 14, kind: input, shape index: {}]   ;;  %s14860_s15 = inlined_call_operand.hbm [shape: f32[2,16,16,128], index: 15, kind: output, shape index: {}]  }
   0x1   :  { %15249 = sst [smem:[#allocation100_spill]] %s14845_s0 }
   0x2   :  { %15250 = sst [smem:[#allocation101_spill]] %s14860_s15 }
   0x3   :  { %20 = vsyncpa [#allocation5], 0 }
   0x4   :  { %22 = vsyncpa [#allocation5 + $0x1], 0 }
   0x5   :  { %23 = vsyncpa [#allocation6], 0 }
   0x6   :  { %25 = vsyncpa [#allocation6 + $0x1], 0  ;;  %s8856_s18 = smov 0   ;;  %s8858_s19 = smov 0  }
   0x7   :  { %s8860_s20 = smov 0   ;;  %s8862_s21 = smov 0  }
   0x8 LB: > { %15251 = sst [smem:[#allocation10_spill]] %s8752_s18  ;;  %s8877_s22 = sadd.s32 4294967295, %s8764_s21   ;;  %s8764_s21 = sphi %s8862_s21, %s15903_s21   ;;  %s8760_s20 = sphi %s8860_s20, %s15908_s20   ;;  %s8756_s19 = sphi %s8858_s19, %s15907_s19   ;;  %s8752_s18 = sphi %s8856_s18, %s15906_s18  }
   0x9   : > { %15252 = sst [smem:[#allocation11_spill]] %s8760_s20  ;;  %s7358_s23 = sadd.s32 4294967294, %s8764_s21  }
   0xa   : > { %s8881_s24 = sadd.s32 1, %s8764_s21   ;;  %s38_s25 = sadd.s32 1, %s8760_s20 }
   0xb   : > { %15253 = sst [smem:[#allocation12_spill]] %s8881_s24  ;;  %s35_s26 = ssub.s32 %s8764_s21, %s8881_s24 }
   0xc   : > { %p45_p0 = scmp.ne.s32.totalorder %s8760_s20, %s8756_s19  ;;  %p36_p1 = scmp.eq.s32.totalorder %s35_s26, 0 }
   0xd   : > { %p46_p2 = scmp.eq.s32.totalorder %s8764_s21, 0  ;;  %p51_p3 = scmp.ne.s32.totalorder %s8756_s19, %s8752_s18 }
   0xe   : > { %p52_p4 = scmp.eq.s32.totalorder %s8877_s22, 0  ;;  %p369_p7 = scmp.eq.s32.totalorder %s8877_s22, 1 }
   0xf   : > { %s8893_s27 = scalar_select %p36_p1, %s8760_s20, %s38_s25  }
  0x10   : > { %p8895_p5 = por %p46_p2, %p45_p0  ;;  %p8899_p6 = por %p52_p4, %p51_p3 }
  0x11   : > { %15254 = sst [smem:[#allocation13_spill]] %s8893_s27  ;;  %p375_p8 = scmp.eq.s32.totalorder %s7358_s23, 1 }
  0x12   : > { %p8285_p10 = scmp.lt.s32.totalorder %s8764_s21, 2  ;;  %p8906_p11 = por %p369_p7, %p45_p0 }
  0x13   : > { %p8910_p12 = por %p375_p8, %p51_p3  ;;  %s437_s17 = sand.u32 1, %s8760_s20  }
  0x14   : > { %s15257_s30 = scalar_select %p8906_p11, 1, 0 }
  0x15   : > { %s15259_s16 = scalar_select %p8910_p12, 1, 0 }
  0x16   : > { %15258 = sst [smem:[#allocation14_spill]] %s15257_s30  ;;  %s7557_s25 = sshll.u32 %s8764_s21, 12 }
  0x17   : > { %s7361_s26 = sshll.u32 %s437_s17, 8  ;;  %s15260_s0 = sld [smem:[#allocation100_spill]] }
  0x18   : > { %s441_s23 = scalar_lea.vmem [#allocation4], %s7361_s26  ;;  %p8923_p13 = pnand %p8285_p10, %p8895_p5 }
  0x19   : > { %s448_s15 = sshll.u32 %s441_s23, 4  ;;  %s8929_s20 = scalar_lea.sflag [#allocation5], %s437_s17  ;;  %s8927_s15 = int_to_ptr.vmem [resolvable:$true] %s448_s15 }
  0x1a   : > { %p8670_p1 = pneg %p8923_p13 }
  0x1d   : > { %s8919_s18 = scalar_lea.hbm %s15260_s0, %s7557_s25  ;;  %s8673_s25 = scalar_lea.hbm %s15260_s0, 8192 }
  0x1e   : > { %s8668_s24 = scalar_lea.hbm %s8919_s18, 4096  ;;  %p8674_p4 = scmp.lt.u32.totalorder %s8919_s18, %s15260_s0 }
  0x1f   : > { %p8669_p0 = scmp.ne.s32.totalorder %s8919_s18, %s8668_s24  ;;  %p8675_p5 = scmp.lt.u32.totalorder %s8673_s25, %s8668_s24 }
  0x20   : > { %p8677_p8 = scmp.lt.u32.totalorder %s8668_s24, %s8919_s18 }
  0x21   : > { %p8671_p2 = pnand %p8670_p1, %p8669_p0  ;;  %p8676_p7 = por %p8675_p5, %p8674_p4 }
  0x23   : > { %p8672_p3 = pneg %p8671_p2  ;;  %p8678_p10 = por %p8677_p8, %p8676_p7 }
  0x25   : > { %p8679_p9 = pnand %p8678_p10, %p8672_p3 }
  0x27   : > { %8682 = shalt.err (!%p8679_p9)
}
  0x28   : > { %s8683_s17 = scalar_lea.vmem %s8927_s15, 4096  ;;  %s8766_s27 = smov [#allocation4]  }
  0x29   : > { %p8684_p0 = scmp.ne.s32.totalorder %s8927_s15, %s8683_s17  ;;  %s8688_s28 = sshll.u32 %s8766_s27, 4  ;;  %s8689_s28 = int_to_ptr.vmem [resolvable:$false] %s8688_s28 }
  0x2a   : > { %s8690_s26 = scalar_lea.vmem %s8689_s28, 8192  ;;  %p8691_p11 = scmp.lt.s32.totalorder %s8927_s15, %s8689_s28 }
  0x2b   : > { %p8686_p2 = pnand %p8684_p0, %p8670_p1  ;;  %p8692_p4 = scmp.lt.s32.totalorder %s8690_s26, %s8683_s17 }
  0x2d   : > { %p8687_p12 = pneg %p8686_p2  ;;  %p8693_p5 = por %p8692_p4, %p8691_p11 }
  0x2f   : > { %p8694_p7 = pnand %p8693_p5, %p8687_p12 }
  0x31   : > { %8697 = shalt.err (!%p8694_p7)
}
  0x32   : > { %s8767_s24 = smov 128   ;;  %s8768_s25 = smov 8  }
  0x33   : > { %8280 = dma.hbm_to_vmem [thread:$0]  (!%p8923_p13), %s8919_s18, 4096, %s8927_s15, %s8929_s20, %s8767_s24, %s8767_s24, %s8768_s25  }
  0x34   : > { %p7364_p9 = scmp.ge.s32.totalorder %s8764_s21, 1  ;;  %p456_p1 = scmp.lt.s32.totalorder %s8764_s21, 3 }
  0x36   : > { %p457_p3 = pnand %p7364_p9, %p456_p1 }
  0x38   : > { %460 = sbr.rel (%p457_p3) target bundleno = 3886 (0xf2e), region = 80 }
  0x3f   : > { %s8960_s23 = sand.u32 1, %s8756_s19  }
  0x40   : > { %s7365_s17 = sshll.u32 %s8960_s23, 8  ;;  %s463_s27 = scalar_lea.sflag [#allocation5], %s8960_s23 }
  0x41   : > { %s8966_s28 = scalar_lea.vmem [#allocation4], %s7365_s17 }
  0x42   : > { %8743 = dma.done.wait (%p8899_p6), %s463_s27, 4096  }
  0x43   : > { %8745 = vsyncadd (%p8899_p6), %s463_s27, 4294963200  ;;  %v8769_v0 = vmov 0.0   ;;  %v609_v1 = vld [vmem:[%s8966_s28 + $0x70] sm:$0xff]  ;;  %v610_v2 = vld [vmem:[%s8966_s28 + $0x78] sm:$0xff]  ;;  %vm8772_vm0 = vmmov 0   ;;  %vm1913_vm1 = vcmask 261120  }
  0x44   : > { %558 = vst [vmem:[#allocation2 + $0x160] sm:$0xff] %v8769_v0  ;;  %559 = vst [vmem:[#allocation2 + $0x180] sm:$0xff] %v8769_v0  ;;  %v611_v3 = vld [vmem:[%s8966_s28 + $0x80] sm:$0xff]  ;;  %v612_v4 = vld [vmem:[%s8966_s28 + $0x88] sm:$0xff]  ;;  %vm6418_vm2 = vcmask 130048   ;;  %s14730_s25 = scalar_lea.vmem [#allocation7], %s7365_s17 }
  0x45   : > { %560 = vst [vmem:[#allocation2 + $0x1a0] sm:$0xff] %v8769_v0  ;;  %582 = vst [vmem:[#allocation2 + $0x178] sm:$0xff] %v8769_v0  ;;  %v613_v5 = vld [vmem:[%s8966_s28 + $0x90] sm:$0xff]  ;;  %v614_v6 = vld [vmem:[%s8966_s28 + $0x98] sm:$0xff]  ;;  %s7558_s17 = sshll.u32 %s8877_s22, 12  ;;  %s7271_s27 = sshll.u32 %s14730_s25, 4  ;;  %s14797_s27 = int_to_ptr.vmem [resolvable:$true] %s7271_s27 }
  0x46   : > { %583 = vst [vmem:[#allocation2 + $0x198] sm:$0xff] %v8769_v0  ;;  %584 = vst [vmem:[#allocation2 + $0x1b8] sm:$0xff] %v8769_v0  ;;  %v9045_v7 = vld [vmem:[%s14846_s1 + $0x1] ss:$0 sm:$0xff]  ;;  %v9056_v10 = vld [vmem:[%s14846_s1 + $0x4] ss:$0 sm:$0xff] }
  0x47   : > { %515 = vst [vmem:[#allocation2 + $0x8] sm:$0xff] %v8769_v0  ;;  %516 = vst [vmem:[#allocation2 + $0x10] sm:$0xff] %v8769_v0  ;;  %v9048_v8 = vmul.f32 %v9045_v7, %v609_v1  ;;  %v9051_v9 = vmul.f32 %v9045_v7, %v610_v2  ;;  %v9059_v11 = vmul.f32 0.0, %v9045_v7  ;;  %v9064_v12 = vld [vmem:[%s14846_s1] ss:$0 sm:$0xff]  ;;  %v9067_v13 = vmul.f32 %v9056_v10, %v611_v3  ;;  %v596_v27 = vld [vmem:[%s8966_s28 + $0x8] sm:$0xff] }
  0x48   : > { %519 = vst [vmem:[#allocation2 + $0x28] sm:$0xff] %v8769_v0  ;;  %520 = vst [vmem:[#allocation2 + $0x30] sm:$0xff] %v8769_v0  ;;  %v9070_v14 = vmul.f32 %v9056_v10, %v612_v4  ;;  %v9075_v15 = vld [vmem:[%s14846_s1 + $0x7] ss:$0 sm:$0xff]  ;;  %v9078_v16 = vmul.f32 %v9045_v7, %v611_v3  ;;  %v9081_v17 = vmul.f32 %v9045_v7, %v612_v4  ;;  %v9086_v18 = vld [vmem:[%s14847_s2] ss:$0 sm:$0xff] }
  0x49   : > { %523 = vst [vmem:[#allocation2 + $0x48] sm:$0xff] %v8769_v0  ;;  %524 = vst [vmem:[#allocation2 + $0x50] sm:$0xff] %v8769_v0  ;;  %v9091_v19 = vld [vmem:[%s14846_s1 + $0x2] ss:$0 sm:$0xff]  ;;  %v9096_v20 = vld [vmem:[%s14846_s1 + $0x3] ss:$0 sm:$0xff]  ;;  %v9099_v21 = vmul.f32 %v9075_v15, %v613_v5  ;;  %v9102_v22 = vmul.f32 %v9075_v15, %v614_v6  ;;  %v9106_v24 = vmul.f32 %v9056_v10, %v613_v5 }
  0x4a   : > { %527 = vst [vmem:[#allocation2 + $0x68] sm:$0xff] %v8769_v0  ;;  %528 = vst [vmem:[#allocation2 + $0x70] sm:$0xff] %v8769_v0  ;;  %v595_v23 = vld [vmem:[%s8966_s28] sm:$0xff]  ;;  %v9109_v25 = vmul.f32 %v9056_v10, %v614_v6  ;;  %v9118_v28 = vld [vmem:[%s8966_s28 + $0x10] sm:$0xff]  ;;  %v9130_v32 = vmul.f32 %v9045_v7, %v613_v5  ;;  %v9133_v33 = vmul.f32 %v9045_v7, %v614_v6  ;;  %s15895_s15 = sld [smem:[#allocation14_spill]]  ;;  %s15896_s20 = sld [smem:[#allocation101_spill]] }
  0x4b   : > { %532 = vst [vmem:[#allocation2 + $0x288] sm:$0xff] %v8769_v0  ;;  %533 = vst [vmem:[#allocation2 + $0x290] sm:$0xff] %v8769_v0  ;;  %v9114_v26 = vld [vmem:[%s14846_s1 + $0x5] ss:$0 sm:$0xff]  ;;  %v9121_v29 = vld [vmem:[%s8966_s28 + $0x18] sm:$0xff]  ;;  %v9124_v30 = vmul.f32 %v9056_v10, %v595_v23  ;;  %v9127_v31 = vmul.f32 %v9045_v7, %v595_v23  ;;  %v9148_v39 = vmul.f32 %v9056_v10, %v596_v27  ;;  %s8698_s26 = scalar_lea.vmem %s14797_s27, 4096 }
  0x4c   : > { %536 = vst [vmem:[#allocation2 + $0x2a8] sm:$0xff] %v8769_v0  ;;  %537 = vst [vmem:[#allocation2 + $0x2b0] sm:$0xff] %v8769_v0  ;;  %v9138_v34 = vld [vmem:[%s14846_s1 + $0x6] ss:$0 sm:$0xff]  ;;  %v9143_v35 = vld [vmem:[%s14846_s1 + $0x8] ss:$0 sm:$0xff]  ;;  %v9152_v40 = vmul.f32 %v9075_v15, %v9118_v28  ;;  %v9156_v41 = vmul.f32 %v9075_v15, %v9121_v29  ;;  %v9159_v42 = vmul.f32 %v9045_v7, %v596_v27  ;;  %p8699_p6 = scmp.ne.s32.totalorder %s14797_s27, %s8698_s26 }
  0x4d   : > { %540 = vst [vmem:[#allocation2 + $0x2c8] sm:$0xff] %v8769_v0  ;;  %541 = vst [vmem:[#allocation2 + $0x2d0] sm:$0xff] %v8769_v0  ;;  %v9166_v49 = vmul.f32 %v9056_v10, %v9118_v28  ;;  %v9173_v56 = vmul.f32 %v9056_v10, %v9121_v29  ;;  %s8773_s24 = smov [#allocation7]  }
  0x4e   : > { %544 = vst [vmem:[#allocation2 + $0x2e8] sm:$0xff] %v8769_v0  ;;  %545 = vst [vmem:[#allocation2 + $0x2f0] sm:$0xff] %v8769_v0  ;;  %s8702_s18 = sshll.u32 %s8773_s24, 4  ;;  %s8703_s18 = int_to_ptr.vmem [resolvable:$false] %s8702_s18 }
  0x4f   : > { %551 = vst [vmem:[#allocation2 + $0x80] sm:$0xff] %v8769_v0  ;;  %552 = vst [vmem:[#allocation2 + $0xa0] sm:$0xff] %v8769_v0  ;;  %p8705_p8 = scmp.lt.s32.totalorder %s14797_s27, %s8703_s18 }
  0x50   : > { %553 = vst [vmem:[#allocation2 + $0xc0] sm:$0xff] %v8769_v0  ;;  %554 = vst [vmem:[#allocation2 + $0xe0] sm:$0xff] %v8769_v0  ;;  %s15897_s29 = smov %s15896_s20  ;;  %s14795_s30 = scalar_lea.hbm %s15896_s20, %s7558_s17 }
  0x51   : > { %555 = vst [vmem:[#allocation2 + $0x100] sm:$0xff] %v8769_v0  ;;  %556 = vst [vmem:[#allocation2 + $0x120] sm:$0xff] %v8769_v0  ;;  %v665_v37 = vld [vmem:[#allocation2 + $0x6f] sm:$0xff]  ;;  %p15898_p11 = scmp.ne.s32.totalorder %s15895_s15, 0  ;;  %s8704_s17 = scalar_lea.vmem %s8703_s18, 8192 }
  0x52   : > { %557 = vst [vmem:[#allocation2 + $0x140] sm:$0xff] %v8769_v0  ;;  %561 = vst [vmem:[#allocation2 + $0x1c0] sm:$0xff] %v8769_v0  ;;  %v781_v38 = vld [vmem:[#allocation2 + $0x69] sm:$0xff]  ;;  %v688_v47 = vmul.f32 %v9064_v12, %v665_v37  ;;  %p8706_p10 = scmp.lt.s32.totalorder %s8704_s17, %s8698_s26 }
  0x53   : > { %562 = vst [vmem:[#allocation2 + $0x1e0] sm:$0xff] %v8769_v0  ;;  %563 = vst [vmem:[#allocation2 + $0x200] sm:$0xff] %v8769_v0  ;;  %v805_v48 = vmul.f32 %v9091_v19, %v781_v38  ;;  %p8700_p12 = pnand %p8699_p6, %p15898_p11 }
  0x54   : > { %564 = vst [vmem:[#allocation2 + $0x220] sm:$0xff] %v8769_v0  ;;  %565 = vst [vmem:[#allocation2 + $0x240] sm:$0xff] %v8769_v0  ;;  %p8707_p0 = por %p8706_p10, %p8705_p8 }
  0x55   : > { %566 = vst [vmem:[#allocation2 + $0x260] sm:$0xff] %v8769_v0  ;;  %575 = vst [vmem:[#allocation2 + $0x98] sm:$0xff] %v8769_v0  ;;  %p8701_p13 = pneg %p8700_p12 }
  0x56   : > { %576 = vst [vmem:[#allocation2 + $0xb8] sm:$0xff] %v8769_v0  ;;  %577 = vst [vmem:[#allocation2 + $0xd8] sm:$0xff] %v8769_v0 }
  0x57   : > { %578 = vst [vmem:[#allocation2 + $0xf8] sm:$0xff] %v8769_v0  ;;  %579 = vst [vmem:[#allocation2 + $0x118] sm:$0xff] %v8769_v0  ;;  %p8708_p2 = pnand %p8707_p0, %p8701_p13 }
  0x58   : > { %580 = vst [vmem:[#allocation2 + $0x138] sm:$0xff] %v8769_v0  ;;  %581 = vst [vmem:[#allocation2 + $0x158] sm:$0xff] %v8769_v0 }
  0x59   : > { %585 = vst [vmem:[#allocation2 + $0x1d8] sm:$0xff] %v8769_v0  ;;  %586 = vst [vmem:[#allocation2 + $0x1f8] sm:$0xff] %v8769_v0 }
  0x5a   : > { %587 = vst [vmem:[#allocation2 + $0x218] sm:$0xff] %v8769_v0  ;;  %588 = vst [vmem:[#allocation2 + $0x238] sm:$0xff] %v8769_v0 }
  0x5b   : > { %589 = vst [vmem:[#allocation2 + $0x258] sm:$0xff] %v8769_v0  ;;  %590 = vst [vmem:[#allocation2 + $0x278] sm:$0xff] %v8769_v0 }
  0x5c   : > { %550 = vst [vmem:[#allocation2 + $0x60] sm:$0xff] %v8769_v0  ;;  %574 = vst [vmem:[#allocation2 + $0x78] sm:$0xff] %v8769_v0 }
  0x5d   : > { %547 = vst [vmem:[#allocation2] sm:$0xff] %v8769_v0  ;;  %548 = vst [vmem:[#allocation2 + $0x20] sm:$0xff] %v8769_v0 }
  0x5e   : > { %549 = vst [vmem:[#allocation2 + $0x40] sm:$0xff] %v8769_v0  ;;  %567 = vst [vmem:[#allocation2 + $0x280] sm:$0xff] %v8769_v0 }
  0x5f   : > { %568 = vst [vmem:[#allocation2 + $0x2a0] sm:$0xff] %v8769_v0  ;;  %569 = vst [vmem:[#allocation2 + $0x2c0] sm:$0xff] %v8769_v0 }
  0x60   : > { %570 = vst [vmem:[#allocation2 + $0x2e0] sm:$0xff] %v8769_v0  ;;  %571 = vst [vmem:[#allocation2 + $0x18] sm:$0xff] %v8769_v0 }
  0x61   : > { %572 = vst [vmem:[#allocation2 + $0x38] sm:$0xff] %v8769_v0  ;;  %573 = vst [vmem:[#allocation2 + $0x58] sm:$0xff] %v8769_v0 }
  0x62   : > { %591 = vst [vmem:[#allocation2 + $0x298] sm:$0xff] %v8769_v0  ;;  %592 = vst [vmem:[#allocation2 + $0x2b8] sm:$0xff] %v8769_v0 }
  0x63   : > { %593 = vst [vmem:[#allocation2 + $0x2d8] sm:$0xff] %v8769_v0  ;;  %594 = vst [vmem:[#allocation2 + $0x2f8] sm:$0xff] %v8769_v0  ;;  %v664_v36 = vld [vmem:[#allocation2 + $0x67] sm:$0xff]  ;;  %v782_v38 = vld [vmem:[#allocation2 + $0x71] sm:$0xff] }
  0x64   : > { %642 = vst [vmem:[#allocation2 + $0x168] sm:$0xff] %v609_v1  ;;  %643 = vst [vmem:[#allocation2 + $0x170] sm:$0xff] %v610_v2  ;;  %v687_v46 = vmul.f32 %v9064_v12, %v664_v36 }
  0x65   : > { %644 = vst [vmem:[#allocation2 + $0x188] sm:$0xff] %v611_v3  ;;  %645 = vst [vmem:[#allocation2 + $0x190] sm:$0xff] %v612_v4 }
  0x66   : > { %646 = vst [vmem:[#allocation2 + $0x1a8] sm:$0xff] %v613_v5  ;;  %647 = vst [vmem:[#allocation2 + $0x1b0] sm:$0xff] %v614_v6  ;;  %v709_v63 = vadd.f32 %v9086_v18, %v687_v46 }
  0x67   : > { %15262 = vst [vmem:[#allocation15_spill] sm:$0xff] %v9045_v7  ;;  %15263 = vst [vmem:[#allocation16_spill] sm:$0xff] %v9056_v10  ;;  %v9235_v7 = vld [vmem:[%s8966_s28 + $0x28] sm:$0xff] }
  0x68   : > { %15264 = vst [vmem:[#allocation17_spill] sm:$0xff] %v9118_v28  ;;  %15265 = vst [vmem:[#allocation18_spill] sm:$0xff] %v9121_v29 }
  0x69   : > { %628 = vst [vmem:[#allocation2 + $0x88] sm:$0xff] %v595_v23  ;;  %15266 = vst [vmem:[#allocation19_spill] sm:$0xff] %v9127_v31  ;;  %v9279_v31 = vld [vmem:[%s8966_s28 + $0x38] sm:$0xff] }
  0x6a   : > { %15267 = vst [vmem:[#allocation20_spill] sm:$0xff] %v9130_v32  ;;  %15268 = vst [vmem:[#allocation21_spill] sm:$0xff] %v9133_v33 }
  0x6b   : > { %629 = vst [vmem:[#allocation2 + $0x90] sm:$0xff] %v596_v27  ;;  %630 = vst [vmem:[#allocation2 + $0xa8] sm:$0xff] %v9118_v28  ;;  %v1200_v43 = vld [vmem:[#allocation2 + $0x167] sm:$0xff]  ;;  %v1201_v44 = vld [vmem:[#allocation2 + $0x16f] sm:$0xff]  ;;  %v806_v28 = vmul.f32 %v9091_v19, %v782_v38 }
  0x6c   : > { %631 = vst [vmem:[#allocation2 + $0xb0] sm:$0xff] %v9121_v29  ;;  %15269 = vst [vmem:[#allocation22_spill] sm:$0xff] %v9159_v42  ;;  %v1310_v45 = vld [vmem:[#allocation2 + $0x169] sm:$0xff]  ;;  %v1223_v50 = vmul.f32 %v9064_v12, %v1200_v43  ;;  %v1224_v51 = vmul.f32 %v9064_v12, %v1201_v44  ;;  %v1311_v52 = vld [vmem:[#allocation2 + $0x171] sm:$0xff] }
  0x6d   : > { %15270 = vst [vmem:[#allocation23_spill] sm:$0xff] %v9166_v49  ;;  %v1333_v53 = vmul.f32 %v9091_v19, %v1310_v45  ;;  %v1368_v54 = vld [vmem:[#allocation2 + $0x187] sm:$0xff]  ;;  %v1369_v55 = vld [vmem:[#allocation2 + $0x18f] sm:$0xff]  ;;  %15271 = vst [vmem:[#allocation24_spill] sm:$0xff] %v9173_v56  ;;  %v1334_v57 = vmul.f32 %v9091_v19, %v1311_v52 }
  0x6e   : > { %v1391_v58 = vmul.f32 %v9096_v20, %v1368_v54  ;;  %v1392_v59 = vmul.f32 %v9096_v20, %v1369_v55  ;;  %v9178_v60 = vld [vmem:[#allocation2 + $0x189] sm:$0xff]  ;;  %v9180_v61 = vld [vmem:[#allocation2 + $0x191] sm:$0xff]  ;;  %v1239_v0 = vadd.f32 %v9086_v18, %v1223_v50  ;;  %v1240_v1 = vadd.f32 %v9086_v18, %v1224_v51  ;;  %v9218_v43 = vld [vmem:[%s8966_s28 + $0xa0] sm:$0xff]  ;;  %15273 = vst [vmem:[#allocation26_spill] sm:$0xff] %v9235_v7 }
  0x6f   : > { %v9182_v62 = vld [vmem:[#allocation2 + $0x1a7] sm:$0xff]  ;;  %v9189_v2 = vmul.f32 %v9114_v26, %v9178_v60  ;;  %v9193_v3 = vmul.f32 %v9114_v26, %v9180_v61  ;;  %v9195_v4 = vld [vmem:[#allocation2 + $0x1af] sm:$0xff]  ;;  %v710_v50 = vadd.f32 %v9086_v18, %v688_v47  ;;  %v765_v51 = vadd.f32 %v9059_v11, %v709_v63  ;;  %648 = vst [vmem:[#allocation2 + $0x1c8] sm:$0xff] %v9218_v43 }
  0x70   : > { %v9197_v5 = vld [vmem:[#allocation2 + $0x1a9] sm:$0xff]  ;;  %v9199_v6 = vld [vmem:[#allocation2 + $0x1b1] sm:$0xff]  ;;  %v9203_v23 = vmul.f32 %v9138_v34, %v9182_v62  ;;  %v9207_v27 = vmul.f32 %v9138_v34, %v9195_v4  ;;  %v1294_v45 = vadd.f32 %v9048_v8, %v1239_v0  ;;  %v1295_v46 = vadd.f32 %v9051_v9, %v1240_v1  ;;  %v9232_v29 = vld [vmem:[%s8966_s28 + $0x20] sm:$0xff]  ;;  %633 = vst [vmem:[#allocation2 + $0xd0] sm:$0xff] %v9235_v7 }
  0x71   : > { %v9211_v36 = vmul.f32 %v9143_v35, %v9197_v5  ;;  %v9215_v37 = vmul.f32 %v9143_v35, %v9199_v6  ;;  %v9221_v44 = vld [vmem:[%s8966_s28 + $0xa8] sm:$0xff]  ;;  %15272 = vst [vmem:[#allocation25_spill] sm:$0xff] %v9232_v29  ;;  %v1225_v63 = vmul.f32 %v9064_v12, %v1368_v54  ;;  %v1226_v0 = vmul.f32 %v9064_v12, %v1369_v55  ;;  %v9276_v42 = vld [vmem:[%s8966_s28 + $0x30] sm:$0xff] }
  0x72   : > { %v9227_v52 = vld [vmem:[#allocation2 + $0x87] sm:$0xff]  ;;  %649 = vst [vmem:[#allocation2 + $0x1d0] sm:$0xff] %v9221_v44  ;;  %v9238_v33 = vld [vmem:[#allocation2 + $0x8f] sm:$0xff]  ;;  %632 = vst [vmem:[#allocation2 + $0xc8] sm:$0xff] %v9232_v29  ;;  %v1349_v1 = vadd.f32 %v1333_v53, %v1294_v45  ;;  %v1350_v38 = vadd.f32 %v1334_v57, %v1295_v46  ;;  %v766_v32 = vadd.f32 %v9059_v11, %v710_v50 }
  0x73   : > { %v864_v8 = vmul.f32 %v9096_v20, %v9227_v52  ;;  %v9242_v9 = vld [vmem:[#allocation2 + $0x89] sm:$0xff]  ;;  %v9244_v47 = vld [vmem:[#allocation2 + $0x91] sm:$0xff]  ;;  %v821_v56 = vadd.f32 %v805_v48, %v765_v51  ;;  %v865_v55 = vmul.f32 %v9096_v20, %v9238_v33  ;;  %15277 = vst [vmem:[#allocation30_spill] sm:$0xff] %v9276_v42  ;;  %15278 = vst [vmem:[#allocation31_spill] sm:$0xff] %v9279_v31 }
  0x74   : > { %15274 = vst [vmem:[#allocation27_spill] sm:$0xff] %v9244_v47  ;;  %v9251_v49 = vld [vmem:[#allocation2 + $0xa7] sm:$0xff]  ;;  %v9253_v10 = vld [vmem:[#allocation2 + $0xaf] sm:$0xff]  ;;  %v976_v7 = vmul.f32 %v9114_v26, %v9242_v9  ;;  %v977_v53 = vmul.f32 %v9114_v26, %v9244_v47  ;;  %v9271_v45 = vld [vmem:[%s8966_s28 + $0xb8] sm:$0xff]  ;;  %v1407_v46 = vadd.f32 %v1391_v58, %v1349_v1  ;;  %v1408_v50 = vadd.f32 %v1392_v59, %v1350_v38 }
  0x75   : > { %15275 = vst [vmem:[#allocation28_spill] sm:$0xff] %v9251_v49  ;;  %v9255_v54 = vld [vmem:[#allocation2 + $0xa9] sm:$0xff]  ;;  %v1035_v11 = vmul.f32 %v9138_v34, %v9251_v49  ;;  %v9265_v48 = vld [vmem:[#allocation2 + $0xb1] sm:$0xff]  ;;  %15276 = vst [vmem:[#allocation29_spill] sm:$0xff] %v9271_v45  ;;  %v822_v51 = vadd.f32 %v806_v28, %v766_v32  ;;  %v880_v29 = vadd.f32 %v864_v8, %v821_v56 }
  0x76   : > { %v9268_v57 = vld [vmem:[%s8966_s28 + $0xb0] sm:$0xff]  ;;  %651 = vst [vmem:[#allocation2 + $0x1f0] sm:$0xff] %v9271_v45  ;;  %v9282_v49 = vld [vmem:[%s8966_s28 + $0xc0] sm:$0xff]  ;;  %v1036_v47 = vmul.f32 %v9138_v34, %v9253_v10  ;;  %v9288_v58 = vmul.f32 %v9143_v35, %v9255_v54  ;;  %v9292_v28 = vmul.f32 %v9143_v35, %v9265_v48  ;;  %v1241_v32 = vadd.f32 %v9086_v18, %v1225_v63  ;;  %v9298_v56 = vld [vmem:[%s8966_s28 + $0xc8] sm:$0xff] }
  0x77   : > { %650 = vst [vmem:[#allocation2 + $0x1e8] sm:$0xff] %v9268_v57  ;;  %15279 = vst [vmem:[#allocation32_spill] sm:$0xff] %v9282_v49  ;;  %v9302_v59 = vld [vmem:[%s8966_s28 + $0x40] sm:$0xff]  ;;  %v9305_v8 = vld [vmem:[%s8966_s28 + $0x48] sm:$0xff]  ;;  %v1462_v1 = vadd.f32 %v9067_v13, %v1407_v46  ;;  %v1463_v38 = vadd.f32 %v9070_v14, %v1408_v50  ;;  %v881_v45 = vadd.f32 %v865_v55, %v822_v51 }
  0x78   : > { %634 = vst [vmem:[#allocation2 + $0xe8] sm:$0xff] %v9276_v42  ;;  %635 = vst [vmem:[#allocation2 + $0xf0] sm:$0xff] %v9279_v31  ;;  %v936_v63 = vadd.f32 %v9124_v30, %v880_v29  ;;  %v9314_v31 = vld [vmem:[%s8966_s28 + $0xd0] sm:$0xff]  ;;  %v1242_v13 = vadd.f32 %v9086_v18, %v1226_v0  ;;  %v1296_v14 = vadd.f32 %v9078_v16, %v1241_v32  ;;  %v9340_v32 = vld [vmem:[%s8966_s28 + $0x58] sm:$0xff] }
  0x79   : > { %15280 = vst [vmem:[#allocation33_spill] sm:$0xff] %v9298_v56  ;;  %652 = vst [vmem:[#allocation2 + $0x208] sm:$0xff] %v9282_v49  ;;  %v9317_v49 = vld [vmem:[%s8966_s28 + $0xd8] sm:$0xff]  ;;  %v9320_v42 = vld [vmem:[%s8966_s28 + $0x50] sm:$0xff]  ;;  %v1335_v29 = vmul.f32 %v9091_v19, %v9178_v60  ;;  %v1336_v30 = vmul.f32 %v9091_v19, %v9180_v61  ;;  %v1517_v55 = vadd.f32 %v9189_v2, %v1462_v1 }
  0x7a   : > { %15281 = vst [vmem:[#allocation34_spill] sm:$0xff] %v9302_v59  ;;  %15282 = vst [vmem:[#allocation35_spill] sm:$0xff] %v9305_v8  ;;  %v1518_v0 = vadd.f32 %v9193_v3, %v1463_v38  ;;  %v937_v16 = vadd.f32 %v9148_v39, %v881_v45  ;;  %v992_v46 = vadd.f32 %v976_v7, %v936_v63  ;;  %v9346_v7 = vld [vmem:[%s8966_s28 + $0xe0] sm:$0xff] }
  0x7b   : > { %653 = vst [vmem:[#allocation2 + $0x210] sm:$0xff] %v9298_v56  ;;  %636 = vst [vmem:[#allocation2 + $0x108] sm:$0xff] %v9302_v59  ;;  %v1297_v60 = vadd.f32 %v9081_v17, %v1242_v13  ;;  %v1351_v50 = vadd.f32 %v1335_v29, %v1296_v14  ;;  %v1393_v61 = vmul.f32 %v9096_v20, %v9182_v62  ;;  %v9349_v17 = vld [vmem:[%s8966_s28 + $0xe8] sm:$0xff]  ;;  %v9352_v39 = vld [vmem:[%s8966_s28 + $0x60] sm:$0xff] }
  0x7c   : > { %637 = vst [vmem:[#allocation2 + $0x110] sm:$0xff] %v9305_v8  ;;  %15283 = vst [vmem:[#allocation36_spill] sm:$0xff] %v9314_v31  ;;  %v1394_v51 = vmul.f32 %v9096_v20, %v9195_v4  ;;  %v1576_v2 = vadd.f32 %v9207_v27, %v1518_v0  ;;  %v993_v1 = vadd.f32 %v977_v53, %v937_v16  ;;  %v9364_v14 = vld [vmem:[#allocation2 + $0x1c7] sm:$0xff]  ;;  %v9366_v29 = vld [vmem:[#allocation2 + $0x1cf] sm:$0xff] }
  0x7d   : > { %15284 = vst [vmem:[#allocation37_spill] sm:$0xff] %v9317_v49  ;;  %15285 = vst [vmem:[#allocation38_spill] sm:$0xff] %v9320_v42  ;;  %v1051_v3 = vadd.f32 %v1035_v11, %v992_v46  ;;  %v1352_v45 = vadd.f32 %v1336_v30, %v1297_v60  ;;  %v1409_v38 = vadd.f32 %v1393_v61, %v1351_v50  ;;  %v9388_v50 = vld [vmem:[#allocation2 + $0x1c9] sm:$0xff] }
  0x7e   : > { %654 = vst [vmem:[#allocation2 + $0x228] sm:$0xff] %v9314_v31  ;;  %655 = vst [vmem:[#allocation2 + $0x230] sm:$0xff] %v9317_v49  ;;  %v1503_v63 = vmul.f32 %v9114_v26, %v9197_v5  ;;  %v1631_v53 = vadd.f32 %v9102_v22, %v1576_v2  ;;  %v1052_v11 = vadd.f32 %v1036_v47, %v993_v1 }
  0x7f   : > { %638 = vst [vmem:[#allocation2 + $0x128] sm:$0xff] %v9320_v42  ;;  %15286 = vst [vmem:[#allocation39_spill] sm:$0xff] %v9340_v32  ;;  %v1575_v42 = vadd.f32 %v9203_v23, %v1517_v55  ;;  %v1504_v23 = vmul.f32 %v9114_v26, %v9199_v6  ;;  %v1107_v13 = vadd.f32 %v9152_v40, %v1051_v3 }
  0x80   : > { %639 = vst [vmem:[#allocation2 + $0x130] sm:$0xff] %v9340_v32  ;;  %15287 = vst [vmem:[#allocation40_spill] sm:$0xff] %v9346_v7  ;;  %v1410_v30 = vadd.f32 %v1394_v51, %v1352_v45  ;;  %v1464_v55 = vadd.f32 %v9106_v24, %v1409_v38  ;;  %v1561_v0 = vmul.f32 %v9138_v34, %v9364_v14  ;;  %v15294_v45 = vld [vmem:[#allocation27_spill] sm:$0xff]  ;;  %v9501_v32 = vld [vmem:[#allocation2 + $0x1f1] sm:$0xff] }
  0x81   : > { %15288 = vst [vmem:[#allocation41_spill] sm:$0xff] %v9349_v17  ;;  %15289 = vst [vmem:[#allocation42_spill] sm:$0xff] %v9352_v39  ;;  %v1630_v27 = vadd.f32 %v9099_v21, %v1575_v42  ;;  %v1562_v16 = vmul.f32 %v9138_v34, %v9366_v29  ;;  %v9377_v22 = vadd.f32 %v9215_v37, %v1631_v53 }
  0x82   : > { %656 = vst [vmem:[#allocation2 + $0x248] sm:$0xff] %v9346_v7  ;;  %657 = vst [vmem:[#allocation2 + $0x250] sm:$0xff] %v9349_v17  ;;  %v1108_v40 = vadd.f32 %v9156_v41, %v1052_v11  ;;  %v9381_v42 = vadd.f32 %v9288_v58, %v1107_v13  ;;  %v1465_v47 = vadd.f32 %v9109_v25, %v1410_v30  ;;  %v9415_v11 = vld [vmem:[#allocation2 + $0xc7] sm:$0xff] }
  0x83   : > { %640 = vst [vmem:[#allocation2 + $0x148] sm:$0xff] %v9352_v39  ;;  %v9374_v21 = vadd.f32 %v9211_v36, %v1630_v27  ;;  %15291 = vst [vmem:[#allocation44_spill] sm:$0xff] %v9377_v22  ;;  %v1519_v24 = vadd.f32 %v1503_v63, %v1464_v55  ;;  %v1616_v46 = vmul.f32 %v9075_v15, %v9218_v43  ;;  %v9390_v36 = vld [vmem:[#allocation2 + $0x1d1] sm:$0xff]  ;;  %v15295_v63 = vld [vmem:[#allocation28_spill] sm:$0xff] }
  0x84   : > { %15292 = vst [vmem:[#allocation45_spill] sm:$0xff] %v9381_v42  ;;  %v1617_v60 = vmul.f32 %v9075_v15, %v9221_v44  ;;  %v9395_v41 = vadd.f32 %v9292_v28, %v1108_v40  ;;  %v1671_v25 = vmul.f32 %v9143_v35, %v9388_v50  ;;  %v1672_v58 = vmul.f32 %v9143_v35, %v9390_v36  ;;  %v9423_v55 = vld [vmem:[#allocation2 + $0xcf] sm:$0xff] }
  0x85   : > { %15290 = vst [vmem:[#allocation43_spill] sm:$0xff] %v9374_v21  ;;  %v8031_v37 = vpack.c.bf16 %v9377_v22, %v9374_v21  ;;  %v1520_v61 = vadd.f32 %v1504_v23, %v1465_v47  ;;  %v1577_v51 = vadd.f32 %v1561_v0, %v1519_v24  ;;  %v689_v2 = vmul.f32 %v9064_v12, %v9227_v52  ;;  %v15298_v24 = vld [vmem:[#allocation19_spill] sm:$0xff]  ;;  %v9497_v7 = vld [vmem:[#allocation2 + $0x1e9] sm:$0xff] }
  0x86   : > { %15293 = vst [vmem:[#allocation46_spill] sm:$0xff] %v9395_v41  ;;  %v690_v1 = vmul.f32 %v9064_v12, %v9238_v33  ;;  %v8033_v28 = vpack.c.bf16 %v9395_v41, %v9381_v42  ;;  %v807_v3 = vmul.f32 %v9091_v19, %v9242_v9  ;;  %v808_v38 = vmul.f32 %v9091_v19, %v15294_v45  ;;  %v15302_v45 = vld [vmem:[#allocation25_spill] sm:$0xff] }
  0x87   : > { %8032 = vmatprep.subr.bf16.mxu1 %v8031_v37  ;;  %v866_v23 = vmul.f32 %v9096_v20, %v15295_v63  ;;  %v1578_v27 = vadd.f32 %v1562_v16, %v1520_v61  ;;  %v1632_v53 = vadd.f32 %v1616_v46, %v1577_v51  ;;  %v711_v52 = vadd.f32 %v9086_v18, %v689_v2  ;;  %v9428_v16 = vld [vmem:[%s8966_s28 + $0x68] sm:$0xff]  ;;  %v15299_v37 = vld [vmem:[#allocation22_spill] sm:$0xff]  ;;  %v9438_v2 = vld [vmem:[%s8966_s28 + $0xf0] sm:$0xff] }
  0x88   : > { %v712_v33 = vadd.f32 %v9086_v18, %v690_v1  ;;  %8034 = vmatpush3.bf16.msra.mxu1 %v8033_v28  ;;  %v867_v9 = vmul.f32 %v9096_v20, %v9253_v10  ;;  %v978_v13 = vmul.f32 %v9114_v26, %v9255_v54  ;;  %v979_v30 = vmul.f32 %v9114_v26, %v9265_v48  ;;  %v9434_v51 = vld [vmem:[#allocation2 + $0xc9] sm:$0xff]  ;;  %v9441_v1 = vld [vmem:[%s8966_s28 + $0xf8] sm:$0xff] }
  0x89   : > { %v1037_v0 = vmul.f32 %v9138_v34, %v9415_v11  ;;  %15296 = vst [vmem:[#allocation27_spill] sm:$0xff] %v9428_v16  ;;  %v1633_v40 = vadd.f32 %v1617_v60, %v1578_v27  ;;  %v9430_v47 = vadd.f32 %v1671_v25, %v1632_v53  ;;  %v767_v46 = vadd.f32 %v15298_v24, %v711_v52  ;;  %v15303_v25 = vld [vmem:[#allocation26_spill] sm:$0xff] }
  0x8a   : > { %v768_v61 = vadd.f32 %v15299_v37, %v712_v33  ;;  %641 = vst [vmem:[#allocation2 + $0x150] sm:$0xff] %v9428_v16  ;;  %15300 = vst [vmem:[#allocation19_spill] sm:$0xff] %v9438_v2  ;;  %v1038_v28 = vmul.f32 %v9138_v34, %v9423_v55  ;;  %v1093_v60 = vmul.f32 %v9075_v15, %v15302_v45  ;;  %v9449_v53 = vld [vmem:[#allocation2 + $0xd1] sm:$0xff]  ;;  %v15307_v16 = vld [vmem:[#allocation24_spill] sm:$0xff] }
  0x8b   : > { %15297 = vst [vmem:[#allocation28_spill] sm:$0xff] %v9430_v47  ;;  %15301 = vst [vmem:[#allocation22_spill] sm:$0xff] %v9441_v1  ;;  %v1094_v27 = vmul.f32 %v9075_v15, %v15303_v25  ;;  %v1149_v52 = vmul.f32 %v9143_v35, %v9434_v51  ;;  %v9455_v33 = vadd.f32 %v1672_v58, %v1633_v40 }
  0x8c   : > { %658 = vst [vmem:[#allocation2 + $0x268] sm:$0xff] %v9438_v2  ;;  %659 = vst [vmem:[#allocation2 + $0x270] sm:$0xff] %v9441_v1  ;;  %v823_v24 = vadd.f32 %v807_v3, %v767_v46  ;;  %v824_v37 = vadd.f32 %v808_v38, %v768_v61  ;;  %v1150_v22 = vmul.f32 %v9143_v35, %v9449_v53 }
  0x8d   : > { %15304 = vst [vmem:[#allocation25_spill] sm:$0xff] %v9455_v33  ;;  %v1227_v21 = vmul.f32 %v9064_v12, %v9182_v62  ;;  %v1228_v41 = vmul.f32 %v9064_v12, %v9195_v4  ;;  %v1337_v42 = vmul.f32 %v9091_v19, %v9197_v5  ;;  %v1338_v2 = vmul.f32 %v9091_v19, %v9199_v6  ;;  %v15305_v5 = vld [vmem:[#allocation16_spill] sm:$0xff]  ;;  %v15306_v6 = vld [vmem:[#allocation23_spill] sm:$0xff] }
  0x8e   : > { %v8035_v58 = vpack.c.bf16 %v9455_v33, %v9430_v47  ;;  %v882_v3 = vadd.f32 %v866_v23, %v823_v24  ;;  %v883_v38 = vadd.f32 %v867_v9, %v824_v37  ;;  %v1395_v40 = vmul.f32 %v9096_v20, %v9364_v14  ;;  %v15309_v37 = vld [vmem:[#allocation21_spill] sm:$0xff]  ;;  %15310 = vst [vmem:[#allocation26_spill] sm:$0xff] %v9497_v7 }
  0x8f   : > { %v1243_v46 = vadd.f32 %v9086_v18, %v1227_v21  ;;  %v1244_v62 = vadd.f32 %v9086_v18, %v1228_v41  ;;  %v1396_v4 = vmul.f32 %v9096_v20, %v9366_v29  ;;  %v1450_v61 = vmul.f32 %v15305_v5, %v9218_v43  ;;  %v9483_v21 = vld [vmem:[#allocation2 + $0x1e7] sm:$0xff]  ;;  %15312 = vst [vmem:[#allocation16_spill] sm:$0xff] %v9501_v32 }
  0x90   : > { %8036 = vmatprep.subr.bf16.mxu1 %v8035_v58  ;;  %v938_v1 = vadd.f32 %v15306_v6, %v882_v3  ;;  %v939_v33 = vadd.f32 %v15307_v16, %v883_v38  ;;  %v1451_v23 = vmul.f32 %v15305_v5, %v9221_v44  ;;  %v1505_v9 = vmul.f32 %v9114_v26, %v9388_v50  ;;  %v15308_v41 = vld [vmem:[#allocation20_spill] sm:$0xff] }
  0x91   : > { %v1298_v24 = vadd.f32 %v15308_v41, %v1243_v46  ;;  %v1299_v47 = vadd.f32 %v15309_v37, %v1244_v62  ;;  %v1506_v39 = vmul.f32 %v9114_v26, %v9390_v36  ;;  %v9489_v58 = vld [vmem:[#allocation2 + $0x1ef] sm:$0xff]  ;;  %v1563_v16 = vmul.f32 %v9138_v34, %v9483_v21 }
  0x92   : > { %v994_v3 = vadd.f32 %v978_v13, %v938_v1  ;;  %v995_v38 = vadd.f32 %v979_v30, %v939_v33  ;;  %v1564_v6 = vmul.f32 %v9138_v34, %v9489_v58  ;;  %v1618_v17 = vmul.f32 %v9075_v15, %v9268_v57  ;;  %v15311_v41 = vld [vmem:[#allocation29_spill] sm:$0xff] }
  0x93   : > { %v1353_v46 = vadd.f32 %v1337_v42, %v1298_v24  ;;  %v1354_v62 = vadd.f32 %v1338_v2, %v1299_v47  ;;  %v1619_v37 = vmul.f32 %v9075_v15, %v15311_v41  ;;  %v1673_v49 = vmul.f32 %v9143_v35, %v9497_v7  ;;  %v15313_v47 = vld [vmem:[#allocation17_spill] sm:$0xff]  ;;  %v15314_v2 = vld [vmem:[#allocation15_spill] sm:$0xff] }
  0x94   : > { %v1053_v13 = vadd.f32 %v1037_v0, %v994_v3  ;;  %v1054_v30 = vadd.f32 %v1038_v28, %v995_v38  ;;  %v1674_v1 = vmul.f32 %v9143_v35, %v9501_v32  ;;  %v691_v33 = vmul.f32 %v9064_v12, %v15295_v63  ;;  %v15315_v0 = vld [vmem:[#allocation18_spill] sm:$0xff] }
  0x95   : > { %v1411_v31 = vadd.f32 %v1395_v40, %v1353_v46  ;;  %v1412_v8 = vadd.f32 %v1396_v4, %v1354_v62  ;;  %v692_v42 = vmul.f32 %v9064_v12, %v9253_v10  ;;  %v753_v24 = vmul.f32 %v15314_v2, %v15313_v47  ;;  %v15316_v47 = vld [vmem:[#allocation30_spill] sm:$0xff] }
  0x96   : > { %v1109_v59 = vadd.f32 %v1093_v60, %v1053_v13  ;;  %v1110_v56 = vadd.f32 %v1094_v27, %v1054_v30  ;;  %v713_v7 = vadd.f32 %v9086_v18, %v691_v33  ;;  %v754_v28 = vmul.f32 %v15314_v2, %v15315_v0  ;;  %v9541_v33 = vld [vmem:[#allocation2 + $0xef] sm:$0xff]  ;;  %v15317_v0 = vld [vmem:[#allocation31_spill] sm:$0xff] }
  0x97   : > { %v1466_v3 = vadd.f32 %v1450_v61, %v1411_v31  ;;  %v1467_v38 = vadd.f32 %v1451_v23, %v1412_v8  ;;  %v714_v32 = vadd.f32 %v9086_v18, %v692_v42  ;;  %v809_v63 = vmul.f32 %v9091_v19, %v9255_v54  ;;  %v9539_v23 = vld [vmem:[#allocation2 + $0xe7] sm:$0xff] }
  0x98   : > { %v9519_v40 = vadd.f32 %v1149_v52, %v1109_v59  ;;  %v9521_v10 = vadd.f32 %v1150_v22, %v1110_v56  ;;  %v769_v4 = vadd.f32 %v753_v24, %v713_v7  ;;  %v810_v60 = vmul.f32 %v9091_v19, %v9265_v48 }
  0x99   : > { %v1521_v27 = vadd.f32 %v1505_v9, %v1466_v3  ;;  %v1522_v46 = vadd.f32 %v1506_v39, %v1467_v38  ;;  %v770_v62 = vadd.f32 %v754_v28, %v714_v32  ;;  %v868_v31 = vmul.f32 %v9096_v20, %v9415_v11  ;;  %v9551_v3 = vld [vmem:[#allocation2 + $0xe9] sm:$0xff] }
  0x9a   : > { %v8037_v8 = vpack.c.bf16 %v9521_v10, %v9519_v40  ;;  %v825_v61 = vadd.f32 %v809_v63, %v769_v4  ;;  %v869_v54 = vmul.f32 %v9096_v20, %v9423_v55  ;;  %v924_v56 = vmul.f32 %v15305_v5, %v15302_v45 }
  0x9b   : > { %v1579_v59 = vadd.f32 %v1563_v16, %v1521_v27  ;;  %v1580_v7 = vadd.f32 %v1564_v6, %v1522_v46  ;;  %v826_v22 = vadd.f32 %v810_v60, %v770_v62  ;;  %v925_v48 = vmul.f32 %v15305_v5, %v15303_v25 }
  0x9c   : > { %8038 = vmatpush3.bf16.msra.mxu1 %v8037_v8  ;;  %v884_v32 = vadd.f32 %v868_v31, %v825_v61  ;;  %v980_v39 = vmul.f32 %v9114_v26, %v9434_v51  ;;  %v981_v52 = vmul.f32 %v9114_v26, %v9449_v53  ;;  %v1039_v16 = vmul.f32 %v9138_v34, %v9539_v23  ;;  %v9571_v61 = vld [vmem:[#allocation2 + $0xf1] sm:$0xff] }
  0x9d   : > { %v1634_v9 = vadd.f32 %v1618_v17, %v1579_v59  ;;  %v1635_v13 = vadd.f32 %v1619_v37, %v1580_v7  ;;  %v885_v30 = vadd.f32 %v869_v54, %v826_v22  ;;  %v1040_v42 = vmul.f32 %v9138_v34, %v9541_v33 }
  0x9e   : > { %v940_v6 = vadd.f32 %v924_v56, %v884_v32  ;;  %v1095_v24 = vmul.f32 %v9075_v15, %v15316_v47  ;;  %v1096_v28 = vmul.f32 %v9075_v15, %v15317_v0  ;;  %v1151_v63 = vmul.f32 %v9143_v35, %v9551_v3 }
  0x9f   : > { %v9553_v17 = vadd.f32 %v1673_v49, %v1634_v9  ;;  %v9555_v37 = vadd.f32 %v1674_v1, %v1635_v13  ;;  %v941_v38 = vadd.f32 %v925_v48, %v885_v30  ;;  %v1229_v60 = vmul.f32 %v9064_v12, %v9364_v14  ;;  %v15319_v9 = vld [vmem:[#allocation16_spill] sm:$0xff] }
  0xa0   : > { %v996_v4 = vadd.f32 %v980_v39, %v940_v6  ;;  %v1230_v27 = vmul.f32 %v9064_v12, %v9366_v29  ;;  %v1284_v46 = vmul.f32 %v15314_v2, %v9218_v43  ;;  %v1285_v1 = vmul.f32 %v15314_v2, %v9221_v44  ;;  %v15318_v39 = vld [vmem:[#allocation26_spill] sm:$0xff]  ;;  %v9591_v30 = vld [vmem:[#allocation2 + $0x207] sm:$0xff] }
  0xa1   : > { %v8039_v49 = vpack.c.bf16 %v9555_v37, %v9553_v17  ;;  %v997_v62 = vadd.f32 %v981_v52, %v941_v38  ;;  %v1339_v31 = vmul.f32 %v9091_v19, %v9388_v50  ;;  %v1245_v14 = vadd.f32 %v9086_v18, %v1229_v60  ;;  %v15321_v60 = vld [vmem:[#allocation32_spill] sm:$0xff] }
  0xa2   : > { %v1055_v8 = vadd.f32 %v1039_v16, %v996_v4  ;;  %v1246_v29 = vadd.f32 %v9086_v18, %v1230_v27  ;;  %v1340_v43 = vmul.f32 %v9091_v19, %v9390_v36  ;;  %v1152_v56 = vmul.f32 %v9143_v35, %v9571_v61 }
  0xa3   : > { %8040 = vmatprep.subr.bf16.mxu1 %v8039_v49  ;;  %v1056_v54 = vadd.f32 %v1040_v42, %v997_v62  ;;  %v1397_v44 = vmul.f32 %v9096_v20, %v9483_v21  ;;  %v1398_v50 = vmul.f32 %v9096_v20, %v9489_v58  ;;  %v1300_v7 = vadd.f32 %v1284_v46, %v1245_v14  ;;  %v15322_v46 = vld [vmem:[#allocation33_spill] sm:$0xff] }
  0xa4   : > { %v1111_v59 = vadd.f32 %v1095_v24, %v1055_v8  ;;  %v1301_v22 = vadd.f32 %v1285_v1, %v1246_v29  ;;  %v1452_v48 = vmul.f32 %v15305_v5, %v9268_v57  ;;  %v1453_v36 = vmul.f32 %v15305_v5, %v15311_v41  ;;  %v9595_v24 = vld [vmem:[#allocation2 + $0x20f] sm:$0xff] }
  0xa5   : > { %v1112_v32 = vadd.f32 %v1096_v28, %v1056_v54  ;;  %v1507_v52 = vmul.f32 %v9114_v26, %v15318_v39  ;;  %v1508_v13 = vmul.f32 %v9114_v26, %v15319_v9  ;;  %v1355_v6 = vadd.f32 %v1339_v31, %v1300_v7 }
  0xa6   : > { %v9593_v16 = vadd.f32 %v1151_v63, %v1111_v59  ;;  %v1356_v42 = vadd.f32 %v1340_v43, %v1301_v22  ;;  %v1565_v28 = vmul.f32 %v9138_v34, %v9591_v30  ;;  %v1566_v4 = vmul.f32 %v9138_v34, %v9595_v24  ;;  %v9607_v63 = vld [vmem:[#allocation2 + $0x209] sm:$0xff] }
  0xa7   : > { %v9599_v38 = vadd.f32 %v1152_v56, %v1112_v32  ;;  %v1620_v27 = vmul.f32 %v9075_v15, %v15321_v60  ;;  %v1621_v49 = vmul.f32 %v9075_v15, %v15322_v46  ;;  %v1413_v62 = vadd.f32 %v1397_v44, %v1355_v6 }
  0xa8   : > { %v1414_v1 = vadd.f32 %v1398_v50, %v1356_v42  ;;  %v1675_v31 = vmul.f32 %v9143_v35, %v9607_v63  ;;  %v693_v8 = vmul.f32 %v9064_v12, %v9415_v11  ;;  %v694_v29 = vmul.f32 %v9064_v12, %v9423_v55  ;;  %v9621_v50 = vld [vmem:[#allocation2 + $0x211] sm:$0xff] }
  0xa9   : > { %15320 = vst [vmem:[#allocation23_spill] sm:$0xff] %v9599_v38  ;;  %v8041_v14 = vpack.c.bf16 %v9599_v38, %v9593_v16  ;;  %v755_v43 = vmul.f32 %v15314_v2, %v15302_v45  ;;  %v756_v54 = vmul.f32 %v15314_v2, %v15303_v25  ;;  %v1468_v56 = vadd.f32 %v1452_v48, %v1413_v62 }
  0xaa   : > { %v1469_v44 = vadd.f32 %v1453_v36, %v1414_v1  ;;  %v715_v59 = vadd.f32 %v9086_v18, %v693_v8  ;;  %v811_v11 = vmul.f32 %v9091_v19, %v9434_v51  ;;  %v1676_v7 = vmul.f32 %v9143_v35, %v9621_v50 }
  0xab   : > { %8042 = vmatpush3.bf16.msra.mxu1 %v8041_v14  ;;  %v716_v55 = vadd.f32 %v9086_v18, %v694_v29  ;;  %v812_v45 = vmul.f32 %v9091_v19, %v9449_v53  ;;  %v870_v25 = vmul.f32 %v9096_v20, %v9539_v23  ;;  %v1523_v22 = vadd.f32 %v1507_v52, %v1468_v56  ;;  %v9645_v14 = vld [vmem:[#allocation2 + $0x10f] sm:$0xff]  ;;  %v15323_v56 = vld [vmem:[#allocation34_spill] sm:$0xff] }
  0xac   : > { %v1524_v48 = vadd.f32 %v1508_v13, %v1469_v44  ;;  %v771_v32 = vadd.f32 %v755_v43, %v715_v59  ;;  %v871_v36 = vmul.f32 %v9096_v20, %v9541_v33  ;;  %v926_v51 = vmul.f32 %v15305_v5, %v15316_v47  ;;  %v9643_v13 = vld [vmem:[#allocation2 + $0x107] sm:$0xff] }
  0xad   : > { %v772_v6 = vadd.f32 %v756_v54, %v716_v55  ;;  %v927_v42 = vmul.f32 %v15305_v5, %v15317_v0  ;;  %v982_v62 = vmul.f32 %v9114_v26, %v9551_v3  ;;  %v1581_v53 = vadd.f32 %v1565_v28, %v1523_v22  ;;  %v9655_v22 = vld [vmem:[#allocation2 + $0x109] sm:$0xff] }
  0xae   : > { %v1582_v1 = vadd.f32 %v1566_v4, %v1524_v48  ;;  %v827_v8 = vadd.f32 %v811_v11, %v771_v32  ;;  %v983_v52 = vmul.f32 %v9114_v26, %v9571_v61  ;;  %v1041_v43 = vmul.f32 %v9138_v34, %v9643_v13  ;;  %v15324_v11 = vld [vmem:[#allocation35_spill] sm:$0xff] }
  0xaf   : > { %v828_v29 = vadd.f32 %v812_v45, %v772_v6  ;;  %v1042_v54 = vmul.f32 %v9138_v34, %v9645_v14  ;;  %v1097_v44 = vmul.f32 %v9075_v15, %v15323_v56  ;;  %v1636_v28 = vadd.f32 %v1620_v27, %v1581_v53 }
  0xb0   : > { %v1637_v4 = vadd.f32 %v1621_v49, %v1582_v1  ;;  %v886_v59 = vadd.f32 %v870_v25, %v827_v8  ;;  %v1098_v55 = vmul.f32 %v9075_v15, %v15324_v11  ;;  %v1153_v45 = vmul.f32 %v9143_v35, %v9655_v22 }
  0xb1   : > { %v887_v48 = vadd.f32 %v871_v36, %v828_v29  ;;  %v1231_v32 = vmul.f32 %v9064_v12, %v9483_v21  ;;  %v1232_v6 = vmul.f32 %v9064_v12, %v9489_v58  ;;  %v9663_v38 = vadd.f32 %v1675_v31, %v1636_v28 }
  0xb2   : > { %v9665_v27 = vadd.f32 %v1676_v7, %v1637_v4  ;;  %v942_v49 = vadd.f32 %v926_v51, %v886_v59  ;;  %v1286_v25 = vmul.f32 %v15314_v2, %v9268_v57  ;;  %v1287_v8 = vmul.f32 %v15314_v2, %v15311_v41  ;;  %v9679_v57 = vld [vmem:[#allocation2 + $0x111] sm:$0xff] }
  0xb3   : > { %v943_v53 = vadd.f32 %v927_v42, %v887_v48  ;;  %v1247_v36 = vadd.f32 %v9086_v18, %v1231_v32  ;;  %v1248_v1 = vadd.f32 %v9086_v18, %v1232_v6  ;;  %v1341_v31 = vmul.f32 %v9091_v19, %v15318_v39  ;;  %v9691_v32 = vld [vmem:[#allocation2 + $0x227] sm:$0xff] }
  0xb4   : > { %v8043_v21 = vpack.c.bf16 %v9665_v27, %v9663_v38  ;;  %v998_v58 = vadd.f32 %v982_v62, %v942_v49  ;;  %v1342_v7 = vmul.f32 %v9091_v19, %v15319_v9  ;;  %v1399_v28 = vmul.f32 %v9096_v20, %v9591_v30 }
  0xb5   : > { %v999_v51 = vadd.f32 %v983_v52, %v943_v53  ;;  %v1302_v42 = vadd.f32 %v1286_v25, %v1247_v36  ;;  %v1303_v29 = vadd.f32 %v1287_v8, %v1248_v1  ;;  %v1154_v4 = vmul.f32 %v9143_v35, %v9679_v57  ;;  %v9697_v25 = vld [vmem:[#allocation2 + $0x22f] sm:$0xff] }
  0xb6   : > { %8044 = vmatprep.subr.bf16.mxu1 %v8043_v21  ;;  %v1057_v41 = vadd.f32 %v1041_v43, %v998_v58  ;;  %v1400_v62 = vmul.f32 %v9096_v20, %v9595_v24  ;;  %v1454_v39 = vmul.f32 %v15305_v5, %v15321_v60  ;;  %v1455_v48 = vmul.f32 %v15305_v5, %v15322_v46  ;;  %v9703_v21 = vld [vmem:[#allocation2 + $0x229] sm:$0xff] }
  0xb7   : > { %v1058_v9 = vadd.f32 %v1042_v54, %v999_v51  ;;  %v1357_v52 = vadd.f32 %v1341_v31, %v1302_v42  ;;  %v1358_v59 = vadd.f32 %v1342_v7, %v1303_v29  ;;  %v1509_v43 = vmul.f32 %v9114_v26, %v9607_v63  ;;  %v15325_v58 = vld [vmem:[#allocation36_spill] sm:$0xff]  ;;  %v15326_v7 = vld [vmem:[#allocation37_spill] sm:$0xff] }
  0xb8   : > { %v1113_v6 = vadd.f32 %v1097_v44, %v1057_v41  ;;  %v1510_v49 = vmul.f32 %v9114_v26, %v9621_v50  ;;  %v1567_v53 = vmul.f32 %v9138_v34, %v9691_v32  ;;  %v1568_v8 = vmul.f32 %v9138_v34, %v9697_v25 }
  0xb9   : > { %v1114_v54 = vadd.f32 %v1098_v55, %v1058_v9  ;;  %v1415_v36 = vadd.f32 %v1399_v28, %v1357_v52  ;;  %v1416_v1 = vadd.f32 %v1400_v62, %v1358_v59  ;;  %v1622_v31 = vmul.f32 %v9075_v15, %v15325_v58 }
  0xba   : > { %v9705_v44 = vadd.f32 %v1153_v45, %v1113_v6  ;;  %v1623_v51 = vmul.f32 %v9075_v15, %v15326_v7  ;;  %v1677_v42 = vmul.f32 %v9143_v35, %v9703_v21  ;;  %v695_v41 = vmul.f32 %v9064_v12, %v9539_v23 }
  0xbb   : > { %v9713_v29 = vadd.f32 %v1154_v4, %v1114_v54  ;;  %v1470_v55 = vadd.f32 %v1454_v39, %v1415_v36  ;;  %v1471_v28 = vadd.f32 %v1455_v48, %v1416_v1  ;;  %v696_v45 = vmul.f32 %v9064_v12, %v9541_v33  ;;  %v9727_v48 = vld [vmem:[#allocation2 + $0x231] sm:$0xff] }
  0xbc   : > { %v757_v62 = vmul.f32 %v15314_v2, %v15316_v47  ;;  %v758_v9 = vmul.f32 %v15314_v2, %v15317_v0  ;;  %v813_v52 = vmul.f32 %v9091_v19, %v9551_v3  ;;  %v717_v23 = vadd.f32 %v9086_v18, %v695_v41 }
  0xbd   : > { %15327 = vst [vmem:[#allocation24_spill] sm:$0xff] %v9713_v29  ;;  %v8045_v4 = vpack.c.bf16 %v9713_v29, %v9705_v44  ;;  %v1525_v39 = vadd.f32 %v1509_v43, %v1470_v55  ;;  %v1526_v59 = vadd.f32 %v1510_v49, %v1471_v28  ;;  %v1678_v33 = vmul.f32 %v9143_v35, %v9727_v48  ;;  %v9951_v29 = vld [vmem:[#allocation2 + $0x26f] sm:$0xff] }
  0xbe   : > { %v718_v47 = vadd.f32 %v9086_v18, %v696_v45  ;;  %v814_v0 = vmul.f32 %v9091_v19, %v9571_v61  ;;  %v872_v3 = vmul.f32 %v9096_v20, %v9643_v13  ;;  %v773_v43 = vadd.f32 %v757_v62, %v717_v23  ;;  %v9749_v62 = vld [vmem:[#allocation2 + $0x12f] sm:$0xff]  ;;  %v15331_v23 = vld [vmem:[#allocation39_spill] sm:$0xff] }
  0xbf   : > { %8046 = vmatpush3.bf16.msra.mxu1 %v8045_v4  ;;  %v1583_v6 = vadd.f32 %v1567_v53, %v1525_v39  ;;  %v1584_v54 = vadd.f32 %v1568_v8, %v1526_v59  ;;  %v873_v49 = vmul.f32 %v9096_v20, %v9645_v14  ;;  %v928_v1 = vmul.f32 %v15305_v5, %v15323_v56  ;;  %v9747_v8 = vld [vmem:[#allocation2 + $0x127] sm:$0xff]  ;;  %v15328_v39 = vld [vmem:[#allocation38_spill] sm:$0xff] }
  0xc0   : > { %v774_v36 = vadd.f32 %v758_v9, %v718_v47  ;;  %v929_v55 = vmul.f32 %v15305_v5, %v15324_v11  ;;  %v984_v61 = vmul.f32 %v9114_v26, %v9655_v22  ;;  %v829_v45 = vadd.f32 %v813_v52, %v773_v43 }
  0xc1   : > { %v1638_v28 = vadd.f32 %v1622_v31, %v1583_v6  ;;  %v1639_v41 = vadd.f32 %v1623_v51, %v1584_v54  ;;  %v985_v53 = vmul.f32 %v9114_v26, %v9679_v57  ;;  %v1043_v4 = vmul.f32 %v9138_v34, %v9747_v8  ;;  %v9763_v6 = vld [vmem:[#allocation2 + $0x129] sm:$0xff] }
  0xc2   : > { %v830_v9 = vadd.f32 %v814_v0, %v774_v36  ;;  %v1044_v5 = vmul.f32 %v9138_v34, %v9749_v62  ;;  %v1099_v59 = vmul.f32 %v9075_v15, %v15328_v39  ;;  %v888_v52 = vadd.f32 %v872_v3, %v829_v45 }
  0xc3   : > { %v9757_v31 = vadd.f32 %v1677_v42, %v1638_v28  ;;  %v9759_v51 = vadd.f32 %v1678_v33, %v1639_v41  ;;  %v1100_v47 = vmul.f32 %v9075_v15, %v15331_v23  ;;  %v1155_v54 = vmul.f32 %v9143_v35, %v9763_v6  ;;  %v9777_v28 = vld [vmem:[#allocation2 + $0x131] sm:$0xff] }
  0xc4   : > { %v889_v0 = vadd.f32 %v873_v49, %v830_v9  ;;  %v1233_v43 = vmul.f32 %v9064_v12, %v9591_v30  ;;  %v1234_v36 = vmul.f32 %v9064_v12, %v9595_v24  ;;  %v944_v33 = vadd.f32 %v928_v1, %v888_v52 }
  0xc5   : > { %15329 = vst [vmem:[#allocation20_spill] sm:$0xff] %v9757_v31  ;;  %15330 = vst [vmem:[#allocation21_spill] sm:$0xff] %v9759_v51  ;;  %v8047_v42 = vpack.c.bf16 %v9759_v51, %v9757_v31  ;;  %v1288_v3 = vmul.f32 %v15314_v2, %v15321_v60  ;;  %v1289_v15 = vmul.f32 %v15314_v2, %v15322_v46  ;;  %v9949_v31 = vld [vmem:[#allocation2 + $0x267] sm:$0xff] }
  0xc6   : > { %v945_v49 = vadd.f32 %v929_v55, %v889_v0  ;;  %v1249_v41 = vadd.f32 %v9086_v18, %v1233_v43  ;;  %v1250_v30 = vadd.f32 %v9086_v18, %v1234_v36  ;;  %v1343_v12 = vmul.f32 %v9091_v19, %v9607_v63  ;;  %v9794_v63 = vld [vmem:[%s14846_s1 + $0x4] ss:$0 sm:$0xff]  ;;  %v9806_v43 = vld [vmem:[#allocation2 + $0x24f] sm:$0xff] }
  0xc7   : > { %8048 = vmatprep.subr.bf16.mxu1 %v8047_v42  ;;  %v1000_v24 = vadd.f32 %v984_v61, %v944_v33  ;;  %v1156_v1 = vmul.f32 %v9143_v35, %v9777_v28  ;;  %v1344_v60 = vmul.f32 %v9091_v19, %v9621_v50  ;;  %v1401_v2 = vmul.f32 %v9096_v20, %v9691_v32 }
  0xc8   : > { %v1001_v46 = vadd.f32 %v985_v53, %v945_v49  ;;  %v1304_v55 = vadd.f32 %v1288_v3, %v1249_v41  ;;  %v1305_v45 = vadd.f32 %v1289_v15, %v1250_v30  ;;  %v1402_v18 = vmul.f32 %v9096_v20, %v9697_v25  ;;  %v15332_v3 = vld [vmem:[#allocation40_spill] sm:$0xff]  ;;  %v15333_v30 = vld [vmem:[#allocation41_spill] sm:$0xff] }
  0xc9   : > { %v1059_v9 = vadd.f32 %v1043_v4, %v1000_v24  ;;  %v1456_v61 = vmul.f32 %v9794_v63, %v15325_v58  ;;  %v1457_v19 = vmul.f32 %v9794_v63, %v15326_v7  ;;  %v1511_v50 = vmul.f32 %v9114_v26, %v9703_v21  ;;  %v9804_v4 = vld [vmem:[#allocation2 + $0x247] sm:$0xff] }
  0xca   : > { %v1060_v53 = vadd.f32 %v1044_v5, %v1001_v46  ;;  %v1359_v52 = vadd.f32 %v1343_v12, %v1304_v55  ;;  %v1360_v0 = vadd.f32 %v1344_v60, %v1305_v45  ;;  %v1512_v20 = vmul.f32 %v9114_v26, %v9727_v48  ;;  %v9815_v5 = vld [vmem:[%s14846_s1 + $0x7] ss:$0 sm:$0xff]  ;;  %v9821_v12 = vld [vmem:[#allocation2 + $0x249] sm:$0xff]  ;;  %v9830_v60 = vld [vmem:[%s14846_s1] ss:$0 sm:$0xff] }
  0xcb   : > { %v1115_v36 = vadd.f32 %v1099_v59, %v1059_v9  ;;  %v1569_v42 = vmul.f32 %v9138_v34, %v9804_v4  ;;  %v1570_v33 = vmul.f32 %v9138_v34, %v9806_v43  ;;  %v1624_v15 = vmul.f32 %v9815_v5, %v15332_v3  ;;  %v9857_v9 = vld [vmem:[%s14846_s1 + $0x2] ss:$0 sm:$0xff] }
  0xcc   : > { %v1116_v26 = vadd.f32 %v1100_v47, %v1060_v53  ;;  %v1417_v49 = vadd.f32 %v1401_v2, %v1359_v52  ;;  %v1418_v41 = vadd.f32 %v1402_v18, %v1360_v0  ;;  %v1625_v59 = vmul.f32 %v9815_v5, %v15333_v30  ;;  %v9848_v18 = vld [vmem:[%s14847_s2] ss:$0 sm:$0xff]  ;;  %v9865_v0 = vld [vmem:[#allocation2 + $0x251] sm:$0xff] }
  0xcd   : > { %v9823_v24 = vadd.f32 %v1155_v54, %v1115_v36  ;;  %v1679_v34 = vmul.f32 %v9143_v35, %v9821_v12  ;;  %v697_v47 = vmul.f32 %v9830_v60, %v9643_v13  ;;  %v698_v2 = vmul.f32 %v9830_v60, %v9645_v14  ;;  %v9841_v54 = vld [vmem:[%s14846_s1 + $0x1] ss:$0 sm:$0xff] }
  0xce   : > { %v9836_v46 = vadd.f32 %v1156_v1, %v1116_v26  ;;  %v1472_v55 = vadd.f32 %v1456_v61, %v1417_v49  ;;  %v1473_v45 = vadd.f32 %v1457_v19, %v1418_v41  ;;  %v759_v35 = vmul.f32 %v9841_v54, %v15323_v56  ;;  %v9870_v26 = vld [vmem:[%s14846_s1 + $0x3] ss:$0 sm:$0xff] }
  0xcf   : > { %15334 = vst [vmem:[#allocation29_spill] sm:$0xff] %v9823_v24  ;;  %v719_v13 = vadd.f32 %v9848_v18, %v697_v47  ;;  %v720_v14 = vadd.f32 %v9848_v18, %v698_v2  ;;  %v760_v1 = vmul.f32 %v9841_v54, %v15324_v11  ;;  %v815_v56 = vmul.f32 %v9857_v9, %v9655_v22 }
  0xd0   : > { %15335 = vst [vmem:[#allocation17_spill] sm:$0xff] %v9836_v46  ;;  %v8049_v61 = vpack.c.bf16 %v9836_v46, %v9823_v24  ;;  %v1527_v19 = vadd.f32 %v1511_v50, %v1472_v55  ;;  %v1528_v53 = vadd.f32 %v1512_v20, %v1473_v45  ;;  %v816_v52 = vmul.f32 %v9857_v9, %v9679_v57  ;;  %v9879_v57 = vld [vmem:[%s14846_s1 + $0x8] ss:$0 sm:$0xff]  ;;  %v15339_v46 = vld [vmem:[#allocation27_spill] sm:$0xff] }
  0xd1   : > { %v775_v36 = vadd.f32 %v759_v35, %v719_v13  ;;  %v776_v11 = vadd.f32 %v760_v1, %v720_v14  ;;  %v874_v22 = vmul.f32 %v9870_v26, %v9747_v8  ;;  %v875_v49 = vmul.f32 %v9870_v26, %v9749_v62  ;;  %v9894_v35 = vld [vmem:[#allocation2 + $0x147] sm:$0xff] }
  0xd2   : > { %8050 = vmatpush3.bf16.msra.mxu1 %v8049_v61  ;;  %v1585_v50 = vadd.f32 %v1569_v42, %v1527_v19  ;;  %v1586_v20 = vadd.f32 %v1570_v33, %v1528_v53  ;;  %v1680_v41 = vmul.f32 %v9879_v57, %v9865_v0  ;;  %v930_v47 = vmul.f32 %v9794_v63, %v15328_v39  ;;  %v9890_v42 = vld [vmem:[%s14846_s1 + $0x5] ss:$0 sm:$0xff]  ;;  %v9903_v61 = vld [vmem:[%s14846_s1 + $0x6] ss:$0 sm:$0xff] }
  0xd3   : > { %v831_v2 = vadd.f32 %v815_v56, %v775_v36  ;;  %v832_v55 = vadd.f32 %v816_v52, %v776_v11  ;;  %v931_v45 = vmul.f32 %v9794_v63, %v15331_v23  ;;  %v986_v33 = vmul.f32 %v9890_v42, %v9763_v6  ;;  %v9898_v56 = vld [vmem:[#allocation2 + $0x14f] sm:$0xff] }
  0xd4   : > { %v1640_v13 = vadd.f32 %v1624_v15, %v1585_v50  ;;  %v1641_v14 = vadd.f32 %v1625_v59, %v1586_v20  ;;  %v987_v1 = vmul.f32 %v9890_v42, %v9777_v28  ;;  %v1045_v19 = vmul.f32 %v9903_v61, %v9894_v35  ;;  %v15336_v15 = vld [vmem:[#allocation42_spill] sm:$0xff]  ;;  %v9911_v11 = vld [vmem:[#allocation2 + $0x149] sm:$0xff] }
  0xd5   : > { %v890_v53 = vadd.f32 %v874_v22, %v831_v2  ;;  %v891_v52 = vadd.f32 %v875_v49, %v832_v55  ;;  %v1046_v36 = vmul.f32 %v9903_v61, %v9898_v56  ;;  %v1101_v59 = vmul.f32 %v9815_v5, %v15336_v15 }
  0xd6   : > { %v9913_v50 = vadd.f32 %v1679_v34, %v1640_v13  ;;  %v9915_v20 = vadd.f32 %v1680_v41, %v1641_v14  ;;  %v1102_v24 = vmul.f32 %v9815_v5, %v15339_v46  ;;  %v1157_v51 = vmul.f32 %v9879_v57, %v9911_v11 }
  0xd7   : > { %v946_v22 = vadd.f32 %v930_v47, %v890_v53  ;;  %v947_v49 = vadd.f32 %v931_v45, %v891_v52  ;;  %v1235_v2 = vmul.f32 %v9830_v60, %v9691_v32  ;;  %v1236_v55 = vmul.f32 %v9830_v60, %v9697_v25  ;;  %v9933_v53 = vld [vmem:[#allocation2 + $0x151] sm:$0xff] }
  0xd8   : > { %15337 = vst [vmem:[#allocation15_spill] sm:$0xff] %v9913_v50  ;;  %15338 = vst [vmem:[#allocation18_spill] sm:$0xff] %v9915_v20  ;;  %v8051_v34 = vpack.c.bf16 %v9915_v20, %v9913_v50  ;;  %v1290_v41 = vmul.f32 %v9841_v54, %v15325_v58  ;;  %v1291_v13 = vmul.f32 %v9841_v54, %v15326_v7 }
  0xd9   : > { %v1345_v14 = vmul.f32 %v9857_v9, %v9703_v21  ;;  %v1002_v47 = vadd.f32 %v986_v33, %v946_v22  ;;  %v1003_v45 = vadd.f32 %v987_v1, %v947_v49  ;;  %v1251_v32 = vadd.f32 %v9848_v18, %v1235_v2 }
  0xda   : > { %v1252_v25 = vadd.f32 %v9848_v18, %v1236_v55  ;;  %8052 = vmatprep.subr.bf16.mxu1 %v8051_v34  ;;  %v1158_v52 = vmul.f32 %v9879_v57, %v9933_v53  ;;  %v1346_v58 = vmul.f32 %v9857_v9, %v9727_v48  ;;  %v1403_v7 = vmul.f32 %v9870_v26, %v9804_v4 }
  0xdb   : > { %v1404_v21 = vmul.f32 %v9870_v26, %v9806_v43  ;;  %v1061_v33 = vadd.f32 %v1045_v19, %v1002_v47  ;;  %v1062_v1 = vadd.f32 %v1046_v36, %v1003_v45  ;;  %v1306_v22 = vadd.f32 %v1290_v41, %v1251_v32  ;;  %v15340_v45 = vld [vmem:[#allocation19_spill] sm:$0xff] }
  0xdc   : > { %v1307_v49 = vadd.f32 %v1291_v13, %v1252_v25  ;;  %v1458_v2 = vmul.f32 %v9794_v63, %v15332_v3  ;;  %v1459_v55 = vmul.f32 %v9794_v63, %v15333_v30  ;;  %v1513_v19 = vmul.f32 %v9890_v42, %v9821_v12 }
  0xdd   : > { %v1117_v34 = vadd.f32 %v1101_v59, %v1061_v33  ;;  %v1118_v20 = vadd.f32 %v1102_v24, %v1062_v1  ;;  %v1361_v50 = vadd.f32 %v1345_v14, %v1306_v22  ;;  %v1514_v36 = vmul.f32 %v9890_v42, %v9865_v0 }
  0xde   : > { %v1362_v48 = vadd.f32 %v1346_v58, %v1307_v49  ;;  %v1571_v41 = vmul.f32 %v9903_v61, %v9949_v31  ;;  %v1572_v13 = vmul.f32 %v9903_v61, %v9951_v29  ;;  %v1626_v32 = vmul.f32 %v9815_v5, %v15340_v45  ;;  %v15341_v49 = vld [vmem:[#allocation22_spill] sm:$0xff] }
  0xdf   : > { %v9961_v59 = vadd.f32 %v1157_v51, %v1117_v34  ;;  %v9963_v24 = vadd.f32 %v1158_v52, %v1118_v20  ;;  %v1419_v14 = vadd.f32 %v1403_v7, %v1361_v50  ;;  %v699_v25 = vmul.f32 %v9830_v60, %v9747_v8  ;;  %v9977_v52 = vld [vmem:[#allocation2 + $0x269] sm:$0xff] }
  0xe0   : > { %v1420_v47 = vadd.f32 %v1404_v21, %v1362_v48  ;;  %v700_v58 = vmul.f32 %v9830_v60, %v9749_v62  ;;  %v761_v33 = vmul.f32 %v9841_v54, %v15328_v39  ;;  %v762_v50 = vmul.f32 %v9841_v54, %v15331_v23 }
  0xe1   : > { %v8053_v51 = vpack.c.bf16 %v9963_v24, %v9961_v59  ;;  %v1474_v1 = vadd.f32 %v1458_v2, %v1419_v14  ;;  %v721_v7 = vadd.f32 %v9848_v18, %v699_v25  ;;  %v817_v62 = vmul.f32 %v9857_v9, %v9763_v6 }
  0xe2   : > { %v1475_v20 = vadd.f32 %v1459_v55, %v1420_v47  ;;  %v722_v8 = vadd.f32 %v9848_v18, %v700_v58  ;;  %v818_v39 = vmul.f32 %v9857_v9, %v9777_v28  ;;  %v1627_v2 = vmul.f32 %v9815_v5, %v15341_v49  ;;  %v1659_v55 = vld [vmem:[#allocation2 + $0x271] sm:$0xff] }
  0xe3   : > { %8054 = vmatpush3.bf16.msra.mxu1 %v8053_v51  ;;  %v1529_v21 = vadd.f32 %v1513_v19, %v1474_v1  ;;  %v1681_v23 = vmul.f32 %v9879_v57, %v9977_v52  ;;  %v777_v34 = vadd.f32 %v761_v33, %v721_v7  ;;  %v876_v14 = vmul.f32 %v9870_v26, %v9894_v35  ;;  %v10000_v1 = vld [vmem:[#allocation2 + $0x167] sm:$0xff] }
  0xe4   : > { %v1530_v22 = vadd.f32 %v1514_v36, %v1475_v20  ;;  %v778_v48 = vadd.f32 %v762_v50, %v722_v8  ;;  %v877_v6 = vmul.f32 %v9870_v26, %v9898_v56  ;;  %v1682_v19 = vmul.f32 %v9879_v57, %v1659_v55  ;;  %v10008_v7 = vld [vmem:[#allocation2 + $0x168] sm:$0xff] }
  0xe5   : > { %v1587_v47 = vadd.f32 %v1571_v41, %v1529_v21  ;;  %v932_v36 = vmul.f32 %v9794_v63, %v15336_v15  ;;  %v833_v25 = vadd.f32 %v817_v62, %v777_v34  ;;  %v933_v51 = vmul.f32 %v9794_v63, %v15339_v46 }
  0xe6   : > { %v1588_v28 = vadd.f32 %v1572_v13, %v1530_v22  ;;  %v834_v58 = vadd.f32 %v818_v39, %v778_v48  ;;  %v988_v33 = vmul.f32 %v9890_v42, %v9911_v11  ;;  %v989_v41 = vmul.f32 %v9890_v42, %v9933_v53  ;;  %v10004_v13 = vld [vmem:[#allocation2 + $0x16f] sm:$0xff] }
  0xe7   : > { %v1642_v20 = vadd.f32 %v1626_v32, %v1587_v47  ;;  %v1047_v15 = vmul.f32 %v9903_v61, %v10000_v1  ;;  %v892_v8 = vadd.f32 %v876_v14, %v833_v25  ;;  %v1048_v39 = vmul.f32 %v9903_v61, %v10004_v13 }
  0xe8   : > { %v1643_v50 = vadd.f32 %v1627_v2, %v1588_v28  ;;  %v893_v62 = vadd.f32 %v877_v6, %v834_v58  ;;  %v1103_v21 = vmul.f32 %v9815_v5, %v10008_v7  ;;  %v1237_v2 = vmul.f32 %v9830_v60, %v9804_v4  ;;  %v10028_v28 = vld [vmem:[#allocation2 + $0x170] sm:$0xff] }
  0xe9   : > { %v10014_v32 = vadd.f32 %v1681_v23, %v1642_v20  ;;  %v1238_v34 = vmul.f32 %v9830_v60, %v9806_v43  ;;  %v948_v48 = vadd.f32 %v932_v36, %v892_v8  ;;  %v1292_v14 = vmul.f32 %v9841_v54, %v15332_v3  ;;  %v1135_v58 = vld [vmem:[#allocation2 + $0x169] sm:$0xff] }
  0xea   : > { %v10016_v22 = vadd.f32 %v1682_v19, %v1643_v50  ;;  %v949_v47 = vadd.f32 %v933_v51, %v893_v62  ;;  %v1293_v6 = vmul.f32 %v9841_v54, %v15333_v30  ;;  %v1253_v19 = vadd.f32 %v9848_v18, %v1237_v2  ;;  %v10038_v51 = vld [vmem:[#allocation2 + $0x171] sm:$0xff] }
  0xeb   : > { %v1254_v4 = vadd.f32 %v9848_v18, %v1238_v34  ;;  %v1347_v43 = vmul.f32 %v9857_v9, %v9821_v12  ;;  %v1004_v36 = vadd.f32 %v988_v33, %v948_v48  ;;  %v1104_v3 = vmul.f32 %v9815_v5, %v10028_v28  ;;  %v1551_v34 = vld [vmem:[#allocation2 + $0x28f] sm:$0xff] }
  0xec   : > { %v8055_v23 = vpack.c.bf16 %v10016_v22, %v10014_v32  ;;  %v1005_v25 = vadd.f32 %v989_v41, %v949_v47  ;;  %v1348_v30 = vmul.f32 %v9857_v9, %v9865_v0  ;;  %v1308_v20 = vadd.f32 %v1292_v14, %v1253_v19  ;;  %v1550_v0 = vld [vmem:[#allocation2 + $0x287] sm:$0xff] }
  0xed   : > { %v1309_v50 = vadd.f32 %v1293_v6, %v1254_v4  ;;  %v1405_v8 = vmul.f32 %v9870_v26, %v9949_v31  ;;  %v1406_v12 = vmul.f32 %v9870_v26, %v9951_v29  ;;  %v1063_v33 = vadd.f32 %v1047_v15, %v1004_v36 }
  0xee   : > { %8056 = vmatprep.subr.bf16.mxu1 %v8055_v23  ;;  %v1064_v41 = vadd.f32 %v1048_v39, %v1005_v25  ;;  %v1159_v62 = vmul.f32 %v9879_v57, %v1135_v58  ;;  %v1160_v2 = vmul.f32 %v9879_v57, %v10038_v51  ;;  %v1363_v48 = vadd.f32 %v1347_v43, %v1308_v20 }
  0xef   : > { %v1364_v47 = vadd.f32 %v1348_v30, %v1309_v50  ;;  %v1460_v14 = vmul.f32 %v9794_v63, %v15340_v45  ;;  %v1461_v31 = vmul.f32 %v9794_v63, %v15341_v49  ;;  %v1119_v6 = vadd.f32 %v1103_v21, %v1063_v33  ;;  %v1660_v50 = vld [vmem:[#allocation2 + $0x289] sm:$0xff] }
  0xf0   : > { %v1120_v23 = vadd.f32 %v1104_v3, %v1064_v41  ;;  %v1515_v29 = vmul.f32 %v9890_v42, %v9977_v52  ;;  %v1516_v15 = vmul.f32 %v9890_v42, %v1659_v55  ;;  %v1421_v39 = vadd.f32 %v1405_v8, %v1363_v48  ;;  %v8477_v3 = vld [vmem:[#allocation2 + $0x148] sm:$0xff]  ;;  %v1661_v8 = vld [vmem:[#allocation2 + $0x291] sm:$0xff]  ;;  %v10073_v41 = vld [vmem:[#allocation2 + $0x160] sm:$0xff] }
  0xf1   : > { %v1422_v19 = vadd.f32 %v1406_v12, %v1364_v47  ;;  %v1573_v4 = vmul.f32 %v9903_v61, %v1550_v0  ;;  %v1574_v43 = vmul.f32 %v9903_v61, %v1551_v34  ;;  %v10056_v36 = vadd.f32 %v1159_v62, %v1119_v6  ;;  %7885 = vmatprep.mubr.msk.f32.mxu0 %vm8772_vm0, %v10073_v41 }
  0xf2   : > { %v10058_v25 = vadd.f32 %v1160_v2, %v1120_v23  ;;  %v701_v45 = vmul.f32 %v9830_v60, %v9894_v35  ;;  %v702_v49 = vmul.f32 %v9830_v60, %v9898_v56  ;;  %v1476_v21 = vadd.f32 %v1460_v14, %v1421_v39  ;;  %v1025_v14 = vld [vmem:[#allocation2 + $0x187] sm:$0xff]  ;;  %v1026_v23 = vld [vmem:[#allocation2 + $0x18f] sm:$0xff] }
  0xf3   : > { %v1477_v52 = vadd.f32 %v1461_v31, %v1422_v19  ;;  %v763_v55 = vmul.f32 %v8477_v3, %v9841_v54  ;;  %v764_v30 = vmul.f32 %v9841_v54, %v15339_v46  ;;  %v819_v60 = vmul.f32 %v9857_v9, %v9911_v11 }
  0xf4   : > { %v8057_v20 = vpack.c.bf16 %v10058_v25, %v10056_v36  ;;  %v723_v12 = vadd.f32 %v9848_v18, %v701_v45  ;;  %v724_v35 = vadd.f32 %v9848_v18, %v702_v49  ;;  %v1531_v56 = vadd.f32 %v1515_v29, %v1476_v21  ;;  %v1082_v45 = vld [vmem:[#allocation2 + $0x190] sm:$0xff] }
  0xf5   : > { %v1532_v33 = vadd.f32 %v1516_v15, %v1477_v52  ;;  %v1628_v62 = vmul.f32 %v10073_v41, %v9815_v5  ;;  %v820_v46 = vmul.f32 %v9857_v9, %v9933_v53  ;;  %v878_v0 = vmul.f32 %v9870_v26, %v10000_v1  ;;  %v1752_v15 = vld [vmem:[%s14850_s5 + $0x8] sm:$0xff] }
  0xf6   : > { %8058 = vmatpush3.bf16.msra.mxu1 %v8057_v20  ;;  %v779_v54 = vadd.f32 %v763_v55, %v723_v12  ;;  %v780_v2 = vadd.f32 %v764_v30, %v724_v35  ;;  %v879_v18 = vmul.f32 %v9870_v26, %v10004_v13  ;;  %v1589_v11 = vadd.f32 %v1573_v4, %v1531_v56  ;;  %v1751_v13 = vld [vmem:[%s14850_s5] sm:$0xff]  ;;  %v1137_v52 = vld [vmem:[#allocation2 + $0x189] sm:$0xff] }
  0xf7   : > { %v1590_v34 = vadd.f32 %v1574_v43, %v1532_v33  ;;  %v1683_v48 = vmul.f32 %v9879_v57, %v1660_v50  ;;  %v1684_v47 = vmul.f32 %v9879_v57, %v1661_v8  ;;  %v934_v9 = vmul.f32 %v9794_v63, %v10008_v7  ;;  %v1081_v43 = vld [vmem:[#allocation2 + $0x188] sm:$0xff]  ;;  %v1753_v30 = vld [vmem:[%s14850_s5 + $0x10] sm:$0xff] }
  0xf8   : > { %v835_v31 = vadd.f32 %v819_v60, %v779_v54  ;;  %v836_v6 = vadd.f32 %v820_v46, %v780_v2  ;;  %v935_v53 = vmul.f32 %v9794_v63, %v10028_v28  ;;  %v1644_v1 = vadd.f32 %v1628_v62, %v1589_v11  ;;  %v1755_v54 = vld [vmem:[%s14850_s5 + $0x20] sm:$0xff]  ;;  %v1756_v2 = vld [vmem:[%s14850_s5 + $0x28] sm:$0xff] }
  0xf9   : > { %v1645_v29 = vadd.f32 %v1628_v62, %v1590_v34  ;;  %v990_v26 = vmul.f32 %v9890_v42, %v1135_v58  ;;  %v991_v7 = vmul.f32 %v9890_v42, %v10038_v51  ;;  %v1049_v63 = vmul.f32 %v9903_v61, %v1025_v14  ;;  %v1138_v51 = vld [vmem:[#allocation2 + $0x191] sm:$0xff] }
  0xfa   : > { %v894_v39 = vadd.f32 %v878_v0, %v835_v31  ;;  %v895_v19 = vadd.f32 %v879_v18, %v836_v6  ;;  %v10099_v28 = vadd.f32 %v1683_v48, %v1644_v1  ;;  %v1050_v58 = vmul.f32 %v9903_v61, %v1026_v23  ;;  %v1754_v61 = vld [vmem:[%s14850_s5 + $0x18] sm:$0xff]  ;;  %v1759_v31 = vld [vmem:[%s14850_s5 + $0x40] sm:$0xff]  ;;  %v1760_v6 = vld [vmem:[%s14850_s5 + $0x48] sm:$0xff] }
  0xfb   : > { %v10101_v4 = vadd.f32 %v1684_v47, %v1645_v29  ;;  %v14934_v3 = vmov 1.0   ;;  %v8064_v55 = vpack.c.bf16 %v1752_v15, %v1751_v13  ;;  %v14936_v20 = vmov 0.0|0.0   ;;  %v1758_v48 = vld [vmem:[%s14850_s5 + $0x38] sm:$0xff]  ;;  %v1763_v29 = vld [vmem:[%s14850_s5 + $0x60] sm:$0xff]  ;;  %v1765_v15 = vld [vmem:[%s14850_s5 + $0x70] sm:$0xff] }
  0xfc   : > { %v950_v49 = vadd.f32 %v934_v9, %v894_v39  ;;  %v951_v21 = vadd.f32 %v935_v53, %v895_v19  ;;  %1837 = vmatprep.mubr.f32.mxu1 %v14934_v3  ;;  %8125 = vmatprep.subr.bf16.mxu0 %v14936_v20  ;;  %v1105_v12 = vmul.f32 %v9815_v5, %v1081_v43  ;;  %v1761_v53 = vld [vmem:[%s14850_s5 + $0x50] sm:$0xff]  ;;  %v1762_v23 = vld [vmem:[%s14850_s5 + $0x58] sm:$0xff] }
  0xfd   : > { %v8059_v42 = vpack.c.bf16 %v10101_v4, %v10099_v28  ;;  %v1106_v35 = vmul.f32 %v9815_v5, %v1082_v45  ;;  %8127 = vmatpush3.bf16.msra.mxu0 %v8064_v55  ;;  %v1161_v60 = vmul.f32 %v9879_v57, %v1137_v52  ;;  %v1162_v62 = vmul.f32 %v9879_v57, %v1138_v51  ;;  %v1757_v57 = vld [vmem:[%s14850_s5 + $0x30] sm:$0xff]  ;;  %v1766_v39 = vld [vmem:[%s14850_s5 + $0x78] sm:$0xff] }
  0xfe   : > { %v1006_v50 = vadd.f32 %v990_v26, %v950_v49  ;;  %v1007_v8 = vadd.f32 %v991_v7, %v951_v21  ;;  %8128 = vmatprep.subr.bf16.mxu0 %v14936_v20  ;;  %v8067_v46 = vpack.c.bf16 %v1754_v61, %v1753_v30  ;;  %v8070_v34 = vpack.c.bf16 %v1756_v2, %v1755_v54  ;;  %v1764_v26 = vld [vmem:[%s14850_s5 + $0x68] sm:$0xff]  ;;  %v1767_v7 = vld [vmem:[%s14851_s6] sm:$0xff]  ;;  %v1769_v21 = vld [vmem:[%s14851_s6 + $0x10] sm:$0xff] }
  0xff   : > { %8060 = vmatprep.subr.bf16.mxu1 %v8059_v42  ;;  %v8073_v14 = vpack.c.bf16 %v1758_v48, %v1757_v57  ;;  %v8076_v9 = vpack.c.bf16 %v1760_v6, %v1759_v31  ;;  %v8079_v1 = vpack.c.bf16 %v1762_v23, %v1761_v53  ;;  %v8082_v13 = vpack.c.bf16 %v1764_v26, %v1763_v29  ;;  %v1770_v52 = vld [vmem:[%s14851_s6 + $0x18] sm:$0xff]  ;;  %v15346_v2 = vld [vmem:[#allocation44_spill] sm:$0xff]  ;;  %v15348_v31 = vld [vmem:[#allocation25_spill] sm:$0xff] }
 0x100   : > { %v1065_v56 = vadd.f32 %v1049_v63, %v1006_v50  ;;  %v1066_v33 = vadd.f32 %v1050_v58, %v1007_v8  ;;  %v8085_v19 = vpack.c.bf16 %v1766_v39, %v1765_v15  ;;  %v1768_v63 = vld [vmem:[%s14851_s6 + $0x8] sm:$0xff]  ;;  %v1987_v30 = vlaneseq  ;;  %v15349_v15 = vld [vmem:[#allocation23_spill] sm:$0xff] }
 0x101   : > { %8130 = vmatpush3.bf16.msra.mxu0 %v8067_v46  ;;  %v10187_v45 = vpack.c.bf16 %v1768_v63, %v1767_v7 }
 0x102   : > { %v1121_v5 = vadd.f32 %v1105_v12, %v1065_v56  ;;  %v1122_v0 = vadd.f32 %v1106_v35, %v1066_v33  ;;  %8131 = vmatprep.subr.bf16.mxu0 %v14936_v20  ;;  %v1988_v61 = vshrl.u32 %v1987_v30, 7  ;;  %v15344_v33 = vld [vmem:[#allocation46_spill] sm:$0xff] }
 0x104   : > { %v10126_v18 = vadd.f32 %v1161_v60, %v1121_v5  ;;  %v10128_v11 = vadd.f32 %v1162_v62, %v1122_v0  ;;  %v10204_v50 = vsub.s32 0, %v1988_v61  ;;  %v15343_v60 = vld [vmem:[#allocation45_spill] sm:$0xff] }
 0x105   : > { %8133 = vmatpush3.bf16.msra.mxu0 %v8070_v34 }
 0x106   : > { %v8061_v47 = vpack.c.bf16 %v10128_v11, %v10126_v18  ;;  %8134 = vmatprep.subr.bf16.mxu0 %v14936_v20  ;;  %15342 = vst [vmem:[#allocation30_spill] sm:$0xff] %v10204_v50 }
 0x108   : > { %8062 = vmatpush3.bf16.msra.mxu1 %v8061_v47  ;;  %v15347_v47 = vld [vmem:[#allocation28_spill] sm:$0xff] }
 0x109   : > { %8063 = vmatprep.subr.bf16.mxu1 %v14936_v20  ;;  %8136 = vmatpush3.bf16.msra.mxu0 %v8073_v14 }
 0x10a   : > { %8137 = vmatprep.subr.bf16.mxu0 %v14936_v20 }
 0x10b   : > { %1838 = vmatmul.mubr.f32.vlgmr.msra.gmra.mrb[0].mxu1 %v14934_v3 }
 0x10c   : > { %8065 = vmatpush3.bf16.msra.mxu1 %v8064_v55  ;;  %7839 = vmatprep.mubr.msk.f32.mxu1 %vm8772_vm0, %v10073_v41  ;;  %v10196_v55 = vpack.c.bf16 %v1770_v52, %v1769_v21 }
 0x10d   : > { %8066 = vmatprep.subr.bf16.mxu1 %v14936_v20  ;;  %8139 = vmatpush3.bf16.msra.mxu0 %v8076_v9 }
 0x10e   : > { %8140 = vmatprep.subr.bf16.mxu0 %v14936_v20 }
 0x110   : > { %8068 = vmatpush3.bf16.msra.mxu1 %v8067_v46  ;;  %v15345_v46 = vld [vmem:[#allocation43_spill] sm:$0xff] }
 0x111   : > { %8069 = vmatprep.subr.bf16.mxu1 %v14936_v20  ;;  %8142 = vmatpush3.bf16.msra.mxu0 %v8079_v1 }
 0x112   : > { %8143 = vmatprep.subr.bf16.mxu0 %v14936_v20 }
 0x114   : > { %8071 = vmatpush3.bf16.msra.mxu1 %v8070_v34 }
 0x115   : > { %8072 = vmatprep.subr.bf16.mxu1 %v14936_v20  ;;  %8145 = vmatpush3.bf16.msra.mxu0 %v8082_v13 }
 0x116   : > { %8146 = vmatprep.subr.bf16.mxu0 %v14936_v20 }
 0x118   : > { %8074 = vmatpush3.bf16.msra.mxu1 %v8073_v14 }
 0x119   : > { %8075 = vmatprep.subr.bf16.mxu1 %v14936_v20  ;;  %8148 = vmatpush3.bf16.msra.mxu0 %v8085_v19 }
 0x11c   : > { %8077 = vmatpush3.bf16.msra.mxu1 %v8076_v9 }
 0x11d   : > { %8078 = vmatprep.subr.bf16.mxu1 %v14936_v20 }
 0x120   : > { %8080 = vmatpush3.bf16.msra.mxu1 %v8079_v1 }
 0x121   : > { %8081 = vmatprep.subr.bf16.mxu1 %v14936_v20 }
 0x124   : > { %8083 = vmatpush3.bf16.msra.mxu1 %v8082_v13 }
 0x125   : > { %8084 = vmatprep.subr.bf16.mxu1 %v14936_v20 }
 0x128   : > { %8086 = vmatpush3.bf16.msra.mxu1 %v8085_v19 }
 0x129   : > { %8087 = vmatprep.subr.bf16.mxu1 %v14936_v20 }
 0x1de   : > { %v7591_v58 = vpop.f32.mrb[0].mxu1 }
 0x1df   : > { %v7592_v43 = vpop.f32.mrb[1].mxu1 }
 0x1e0   : > { %v7593_v49 = vadd.f32 %v7592_v43, %v7591_v58 }
 0x1e2   : > { %7840 = vmatmul.mubr.f32.vlgmr.msra.gmra.mrb[2].mxu1 %v7593_v49  ;;  %v15350_v49 = vld [vmem:[#allocation24_spill] sm:$0xff] }
 0x1e3   : > { %8089 = vmatpush3.bf16.msra.mxu1 %v10187_v45  ;;  %7850 = vmatprep.mubr.msk.f32.mxu1 %vm8772_vm0, %v10073_v41 }
 0x1e4   : > { %8090 = vmatprep.subr.bf16.mxu1 %v14936_v20 }
 0x1e7   : > { %8092 = vmatpush3.bf16.msra.mxu1 %v10196_v55 }
 0x2b5   : > { %v1909_v42 = vpop.f32.mrb[2].mxu1 }
 0x2b6   : > { %v7841_v51 = vpop.f32.mrb[3].mxu1  ;;  %7851 = vmatmul.mubr.msk.f32.vlgmr.msra.gmra.mrb[4].mxu1 %vm1913_vm1, %v1909_v42 }
 0x2b7   : > { %2119 = vmatprep.mubr.f32.mxu1 %v14934_v3 }
 0x389   : > { %v1983_v8 = vpop.f32.mrb[4].mxu1 }
 0x38a   : > { %v10207_v12 = vrot.slane %v1983_v8, %v10204_v50  ;;  %v7852_v35 = vpop.f32.mrb[5].mxu1  ;;  %v15352_v8 = vld [vmem:[#allocation21_spill] sm:$0xff] }
 0x38c   : > { %v10211_v56 = vsub.f32 %v15343_v60, %v10207_v12  ;;  %v10215_v62 = vsub.f32 %v15344_v33, %v10207_v12  ;;  %v10219_v54 = vsub.f32 %v15345_v46, %v10207_v12  ;;  %v10223_v5 = vsub.f32 %v15346_v2, %v10207_v12  ;;  %v15353_v60 = vld [vmem:[#allocation29_spill] sm:$0xff] }
 0x38d   : > { %v10231_v57 = vsub.f32 %v9519_v40, %v10207_v12  ;;  %v10235_v48 = vsub.f32 %v9521_v10, %v10207_v12  ;;  %v10239_v14 = vsub.f32 %v15347_v47, %v10207_v12  ;;  %v10243_v6 = vsub.f32 %v15348_v31, %v10207_v12  ;;  %v15354_v46 = vld [vmem:[#allocation17_spill] sm:$0xff] }
 0x38e   : > { %v2023_v0 = vmul.f32 %v10211_v56, %v10211_v56  ;;  %v2024_v34 = vmul.f32 %v10215_v62, %v10215_v62  ;;  %v2039_v9 = vmul.f32 %v10219_v54, %v10219_v54  ;;  %v2040_v53 = vmul.f32 %v10223_v5, %v10223_v5 }
 0x38f   : > { %v10251_v40 = vsub.f32 %v9553_v17, %v10207_v12  ;;  %v2041_v23 = vmul.f32 %v10239_v14, %v10239_v14  ;;  %v2042_v1 = vmul.f32 %v10243_v6, %v10243_v6  ;;  %v10259_v29 = vsub.f32 %v9555_v37, %v10207_v12 }
 0x390   : > { %v8095_v10 = vpack.c.bf16 %v2024_v34, %v2023_v0  ;;  %v10263_v26 = vsub.f32 %v9593_v16, %v10207_v12  ;;  %v8093_v13 = vpack.c.bf16 %v2040_v53, %v2039_v9  ;;  %v10267_v17 = vsub.f32 %v15349_v15, %v10207_v12 }
 0x391   : > { %v2025_v39 = vmul.f32 %v10231_v57, %v10231_v57  ;;  %v2026_v19 = vmul.f32 %v10235_v48, %v10235_v48  ;;  %v2043_v7 = vmul.f32 %v10251_v40, %v10251_v40  ;;  %v8097_v37 = vpack.c.bf16 %v2042_v1, %v2041_v23  ;;  %v15356_v1 = vld [vmem:[#allocation18_spill] sm:$0xff] }
 0x392   : > { %8094 = vmatprep.subr.bf16.mxu1 %v8093_v13  ;;  %v2044_v16 = vmul.f32 %v10259_v29, %v10259_v29  ;;  %v10279_v63 = vsub.f32 %v9663_v38, %v10207_v12  ;;  %v10283_v58 = vsub.f32 %v9665_v27, %v10207_v12  ;;  %v10287_v43 = vsub.f32 %v9705_v44, %v10207_v12  ;;  %v15351_v27 = vld [vmem:[#allocation20_spill] sm:$0xff] }
 0x393   : > { %8096 = vmatpush3.bf16.msra.mxu1 %v8095_v10  ;;  %v10291_v21 = vsub.f32 %v15350_v49, %v10207_v12  ;;  %v8099_v52 = vpack.c.bf16 %v2026_v19, %v2025_v39  ;;  %v2027_v42 = vmul.f32 %v10263_v26, %v10263_v26  ;;  %v2028_v38 = vmul.f32 %v10267_v17, %v10267_v17  ;;  %v15355_v10 = vld [vmem:[#allocation15_spill] sm:$0xff] }
 0x394   : > { %8098 = vmatprep.subr.bf16.mxu1 %v8097_v37  ;;  %v10299_v51 = vsub.f32 %v15351_v27, %v10207_v12  ;;  %v8101_v30 = vpack.c.bf16 %v2044_v16, %v2043_v7  ;;  %v2045_v44 = vmul.f32 %v10279_v63, %v10279_v63  ;;  %v2046_v61 = vmul.f32 %v10283_v58, %v10283_v58 }
 0x395   : > { %v10307_v35 = vsub.f32 %v15352_v8, %v10207_v12  ;;  %v10311_v33 = vsub.f32 %v15353_v60, %v10207_v12  ;;  %v10315_v2 = vsub.f32 %v15354_v46, %v10207_v12  ;;  %v8103_v0 = vpack.c.bf16 %v2028_v38, %v2027_v42 }
 0x396   : > { %v2029_v34 = vmul.f32 %v10287_v43, %v10287_v43  ;;  %v2030_v47 = vmul.f32 %v10291_v21, %v10291_v21  ;;  %v2047_v31 = vmul.f32 %v10299_v51, %v10299_v51  ;;  %v8105_v9 = vpack.c.bf16 %v2046_v61, %v2045_v44 }
 0x397   : > { %8100 = vmatpush3.bf16.msra.mxu1 %v8099_v52  ;;  %v2048_v53 = vmul.f32 %v10307_v35, %v10307_v35  ;;  %v10327_v23 = vsub.f32 %v15355_v10, %v10207_v12  ;;  %v10331_v13 = vsub.f32 %v15356_v1, %v10207_v12  ;;  %v10335_v15 = vsub.f32 %v9961_v59, %v10207_v12 }
 0x398   : > { %8102 = vmatprep.subr.bf16.mxu1 %v8101_v30  ;;  %v10339_v39 = vsub.f32 %v9963_v24, %v10207_v12  ;;  %v8107_v19 = vpack.c.bf16 %v2030_v47, %v2029_v34  ;;  %v2031_v7 = vmul.f32 %v10311_v33, %v10311_v33  ;;  %v2032_v37 = vmul.f32 %v10315_v2, %v10315_v2 }
 0x399   : > { %v10347_v16 = vsub.f32 %v10014_v32, %v10207_v12  ;;  %v8109_v49 = vpack.c.bf16 %v2048_v53, %v2047_v31  ;;  %v2049_v59 = vmul.f32 %v10327_v23, %v10327_v23  ;;  %v2050_v24 = vmul.f32 %v10331_v13, %v10331_v13 }
 0x39a   : > { %v10355_v52 = vsub.f32 %v10016_v22, %v10207_v12  ;;  %v10359_v42 = vsub.f32 %v10056_v36, %v10207_v12  ;;  %v10363_v32 = vsub.f32 %v10058_v25, %v10207_v12  ;;  %v8111_v38 = vpack.c.bf16 %v2032_v37, %v2031_v7 }
 0x39b   : > { %8104 = vmatpush3.bf16.msra.mxu1 %v8103_v0  ;;  %v2033_v27 = vmul.f32 %v10335_v15, %v10335_v15  ;;  %v2034_v30 = vmul.f32 %v10339_v39, %v10339_v39  ;;  %v2051_v22 = vmul.f32 %v10347_v16, %v10347_v16  ;;  %v8113_v44 = vpack.c.bf16 %v2050_v24, %v2049_v59  ;;  %v2506_v59 = vld [vmem:[#allocation2 + $0x6f] sm:$0xff] }
 0x39c   : > { %8106 = vmatprep.subr.bf16.mxu1 %v8105_v9  ;;  %v2052_v36 = vmul.f32 %v10355_v52, %v10355_v52  ;;  %v10375_v61 = vsub.f32 %v10099_v28, %v10207_v12  ;;  %v10379_v25 = vsub.f32 %v10101_v4, %v10207_v12  ;;  %v10383_v8 = vsub.f32 %v10126_v18, %v10207_v12 }
 0x39d   : > { %v10387_v60 = vsub.f32 %v10128_v11, %v10207_v12  ;;  %v8115_v46 = vpack.c.bf16 %v2034_v30, %v2033_v27  ;;  %v2035_v0 = vmul.f32 %v10359_v42, %v10359_v42  ;;  %v2036_v28 = vmul.f32 %v10363_v32, %v10363_v32 }
 0x39e   : > { %v8117_v34 = vpack.c.bf16 %v2052_v36, %v2051_v22  ;;  %v2053_v4 = vmul.f32 %v10375_v61, %v10375_v61  ;;  %v2054_v18 = vmul.f32 %v10379_v25, %v10379_v25  ;;  %v2037_v11 = vmul.f32 %v10383_v8, %v10383_v8  ;;  %v10423_v22 = vld [vmem:[%s14853_s8] ss:$0 sm:$0xff] }
 0x39f   : > { %8108 = vmatpush3.bf16.msra.mxu1 %v8107_v19  ;;  %v8119_v47 = vpack.c.bf16 %v2036_v28, %v2035_v0  ;;  %v2038_v12 = vmul.f32 %v10387_v60, %v10387_v60  ;;  %v10437_v28 = vld [vmem:[%s14852_s7 + $0x2] ss:$0 sm:$0xff] }
 0x3a0   : > { %8110 = vmatprep.subr.bf16.mxu1 %v8109_v49  ;;  %v8121_v31 = vpack.c.bf16 %v2054_v18, %v2053_v4  ;;  %v2505_v49 = vld [vmem:[#allocation2 + $0x67] sm:$0xff]  ;;  %v2623_v4 = vld [vmem:[#allocation2 + $0x71] sm:$0xff]  ;;  %v1771_v18 = vld [vmem:[%s14848_s3] sm:$0x1] }
 0x3a1   : > { %v8123_v9 = vpack.c.bf16 %v2038_v12, %v2037_v11 }
 0x3a3   : > { %8112 = vmatpush3.bf16.msra.mxu1 %v8111_v38 }
 0x3a4   : > { %8114 = vmatprep.subr.bf16.mxu1 %v8113_v44  ;;  %v10428_v44 = vld [vmem:[%s14852_s7 + $0x1] ss:$0 sm:$0xff] }
 0x3a5   : > { %v2590_v0 = vmul.f32 %v10073_v41, %v10428_v44 }
 0x3a7   : > { %8116 = vmatpush3.bf16.msra.mxu1 %v8115_v46 }
 0x3a8   : > { %8118 = vmatprep.subr.bf16.mxu1 %v8117_v34  ;;  %v2622_v34 = vld [vmem:[#allocation2 + $0x69] sm:$0xff] }
 0x3a9   : > { %v2646_v12 = vmul.f32 %v10437_v28, %v2622_v34  ;;  %v3292_v34 = vld [vmem:[#allocation2 + $0x4c] sm:$0xff] }
 0x3ab   : > { %8120 = vmatpush3.bf16.msra.mxu1 %v8119_v47 }
 0x3ac   : > { %8122 = vmatprep.subr.bf16.mxu1 %v8121_v31  ;;  %v2647_v31 = vmul.f32 %v10437_v28, %v2623_v4  ;;  %v3347_v4 = vld [vmem:[#allocation2 + $0x46] sm:$0xff] }
 0x3af   : > { %8124 = vmatpush3.bf16.msra.mxu1 %v8123_v9 }
 0x3b0   : > { %8149 = vmatprep.subr.bf16.mxu1 %v14936_v20 }
 0x3b2   : > { %2120 = vmatmul.mubr.f32.vlgmr.msra.gmra.mrb[6].mxu1 %v14934_v3 }
 0x3b3   : > { %8151 = vmatpush3.bf16.msra.mxu1 %v10187_v45  ;;  %7896 = vmatprep.mubr.msk.f32.mxu1 %vm8772_vm0, %v10073_v41 }
 0x3b4   : > { %8152 = vmatprep.subr.bf16.mxu1 %v14936_v20 }
 0x3b7   : > { %8154 = vmatpush3.bf16.msra.mxu1 %v10196_v55  ;;  %v10416_v55 = vld [vmem:[%s14852_s7] ss:$0 sm:$0xff] }
 0x3b8   : > { %8187 = vmatprep.subr.bf16.mxu1 %v14936_v20  ;;  %v2528_v38 = vmul.f32 %v10416_v55, %v2505_v49  ;;  %v2529_v27 = vmul.f32 %v10416_v55, %v2506_v59  ;;  %v3184_v49 = vld [vmem:[#allocation2 + $0xa] sm:$0xff] }
 0x3b9   : > { %v10462_v59 = vld [vmem:[%s14852_s7 + $0xc] ss:$0 sm:$0xff]  ;;  %v10480_v20 = vld [vmem:[%s14852_s7 + $0xd] ss:$0 sm:$0xff] }
 0x3ba   : > { %v2550_v36 = vadd.f32 %v10423_v22, %v2528_v38  ;;  %v2551_v46 = vadd.f32 %v10423_v22, %v2529_v27  ;;  %v3240_v38 = vld [vmem:[#allocation2 + $0x14] sm:$0xff]  ;;  %v3291_v27 = vld [vmem:[#allocation2 + $0x44] sm:$0xff] }
 0x3bc   : > { %v2606_v47 = vadd.f32 %v2590_v0, %v2550_v36  ;;  %v2607_v11 = vadd.f32 %v2590_v0, %v2551_v46 }
 0x3be   : > { %v10466_v36 = vadd.f32 %v2647_v31, %v2607_v11  ;;  %v3459_v31 = vld [vmem:[#allocation2 + $0x4a] sm:$0xff] }
 0x485   : > { %v7648_v53 = vpop.f32.mrb[6].mxu1 }
 0x486   : > { %v7649_v10 = vpop.f32.mrb[7].mxu1 }
 0x487   : > { %v7650_v1 = vadd.f32 %v7649_v10, %v7648_v53  ;;  %v10447_v53 = vld [vmem:[%s14852_s7 + $0x9] ss:$0 sm:$0xff] }
 0x488   : > { %v3016_v10 = vld [vmem:[#allocation2 + $0x4] sm:$0xff] }
 0x489   : > { %7886 = vmatmul.mubr.f32.vlgmr.msra.gmra.mrb[0].mxu0 %v7650_v1  ;;  %v3017_v1 = vld [vmem:[#allocation2 + $0xc] sm:$0xff]  ;;  %v10469_v46 = vmul.f32 %v10447_v53, %v3016_v10 }
 0x48a   : > { %6342 = vmatprep.mubr.f32.mxu0 %v14934_v3  ;;  %v10472_v0 = vmul.f32 %v10447_v53, %v3017_v1  ;;  %v3460_v10 = vld [vmem:[#allocation2 + $0x52] sm:$0xff] }
 0x48b   : > { %15357 = vst [vmem:[#allocation31_spill] sm:$0xff] %v10469_v46 }
 0x48c   : > { %15358 = vst [vmem:[#allocation26_spill] sm:$0xff] %v10472_v0  ;;  %v10517_v0 = vld [vmem:[%s14852_s7 + $0x10] ss:$0 sm:$0xff] }
 0x55c   : > { %v2191_v19 = vpop.f32.mrb[0].mxu0 }
 0x55d   : > { %v2192_v7 = vadd.f32 1e-05, %v2191_v19  ;;  %v7887_v37 = vpop.f32.mrb[1].mxu0  ;;  %v10452_v19 = vld [vmem:[%s14852_s7 + $0xa] ss:$0 sm:$0xff] }
 0x55e   : > { %v3072_v37 = vld [vmem:[#allocation2 + $0x6] sm:$0xff] }
 0x55f   : > { %8335 = vrsqrt.f32 %v2192_v7  ;;  %v10457_v7 = vld [vmem:[%s14852_s7 + $0xb] ss:$0 sm:$0xff] }
 0x569   : > { %v8336_v45 = vpop.eup %8335 }
 0x56a   : > { %7897 = vmatmul.mubr.msk.f32.vlgmr.msra.gmra.mrb[8].mxu1 %vm1913_vm1, %v8336_v45  ;;  %v3073_v45 = vld [vmem:[#allocation2 + $0xe] sm:$0xff] }
 0x56b   : > { %7931 = vmatprep.mubr.msk.f32.mxu1 %vm8772_vm0, %v10073_v41  ;;  %v10486_v11 = vmul.f32 %v10452_v19, %v3073_v45 }
 0x56d   : > { %15360 = vst [vmem:[#allocation32_spill] sm:$0xff] %v10486_v11  ;;  %v10512_v11 = vmul.f32 %v10480_v20, %v3240_v38 }
 0x56f   : > { %15365 = vst [vmem:[#allocation37_spill] sm:$0xff] %v10512_v11 }
 0x63d   : > { %v2265_v24 = vpop.f32.mrb[8].mxu1 }
 0x63e   : > { %v7898_v30 = vpop.f32.mrb[9].mxu1  ;;  %v2269_v9 = vmul.f32 %v2265_v24, %v1771_v18  ;;  %v3185_v24 = vld [vmem:[#allocation2 + $0x12] sm:$0xff] }
 0x63f   : > { %v10464_v30 = vadd.f32 %v2646_v12, %v2606_v47  ;;  %v3348_v18 = vld [vmem:[#allocation2 + $0x4e] sm:$0xff]  ;;  %v10483_v47 = vmul.f32 %v10452_v19, %v3072_v37  ;;  %v10490_v12 = vmul.f32 %v10073_v41, %v10457_v7  ;;  %v10503_v37 = vmul.f32 %v10462_v59, %v3184_v49 }
 0x640   : > { %v10475_v3 = vrot.slane %v2269_v9, %v10204_v50  ;;  %v10495_v9 = vld [vmem:[%s14852_s7 + $0xe] ss:$0 sm:$0xff]  ;;  %v10500_v50 = vld [vmem:[%s14852_s7 + $0xf] ss:$0 sm:$0xff]  ;;  %v10506_v45 = vmul.f32 %v10462_v59, %v3185_v24  ;;  %v10522_v49 = vld [vmem:[%s14852_s7 + $0x11] ss:$0 sm:$0xff] }
 0x641   : > { %15359 = vst [vmem:[#allocation16_spill] sm:$0xff] %v10483_v47  ;;  %15361 = vst [vmem:[#allocation33_spill] sm:$0xff] %v10490_v12  ;;  %v10509_v12 = vmul.f32 %v10480_v20, %v3017_v1  ;;  %v3515_v47 = vld [vmem:[#allocation2 + $0x54] sm:$0xff]  ;;  %v10527_v24 = vld [vmem:[%s14852_s7 + $0x12] ss:$0 sm:$0xff]  ;;  %v10530_v1 = vmul.f32 %v10495_v9, %v3291_v27  ;;  %v10533_v38 = vmul.f32 %v10495_v9, %v3292_v34 }
 0x642   : > { %15362 = vst [vmem:[#allocation34_spill] sm:$0xff] %v10503_v37  ;;  %15363 = vst [vmem:[#allocation35_spill] sm:$0xff] %v10506_v45  ;;  %v10536_v11 = vmul.f32 %v10500_v50, %v3347_v4  ;;  %v10543_v45 = vmul.f32 %v10073_v41, %v10517_v0  ;;  %v10546_v37 = vmul.f32 %v10522_v49, %v3459_v31  ;;  %v10566_v31 = vld [vmem:[%s14849_s4] ss:$0 sm:$0xff] }
 0x643   : > { %15364 = vst [vmem:[#allocation36_spill] sm:$0xff] %v10509_v12  ;;  %15366 = vst [vmem:[#allocation38_spill] sm:$0xff] %v10530_v1  ;;  %v10539_v12 = vmul.f32 %v10500_v50, %v3348_v18  ;;  %v10549_v46 = vmul.f32 %v10522_v49, %v3460_v10  ;;  %v10552_v27 = vmul.f32 %v10527_v24, %v3292_v34 }
 0x644   : > { %15367 = vst [vmem:[#allocation39_spill] sm:$0xff] %v10533_v38  ;;  %15368 = vst [vmem:[#allocation40_spill] sm:$0xff] %v10536_v11  ;;  %v2274_v4 = vmul.f32 %v10475_v3, %v10211_v56  ;;  %v2275_v18 = vmul.f32 %v10475_v3, %v10215_v62  ;;  %v10561_v41 = vmul.f32 %v10527_v24, %v3515_v47 }
 0x645   : > { %15369 = vst [vmem:[#allocation41_spill] sm:$0xff] %v10539_v12  ;;  %15370 = vst [vmem:[#allocation42_spill] sm:$0xff] %v10543_v45  ;;  %v2276_v12 = vmul.f32 %v10475_v3, %v10231_v57  ;;  %v2277_v34 = vmul.f32 %v10475_v3, %v10235_v48  ;;  %v2278_v56 = vmul.f32 %v10475_v3, %v10263_v26 }
 0x646   : > { %15371 = vst [vmem:[#allocation27_spill] sm:$0xff] %v10546_v37  ;;  %15372 = vst [vmem:[#allocation19_spill] sm:$0xff] %v10549_v46  ;;  %v2279_v62 = vmul.f32 %v10475_v3, %v10267_v17  ;;  %v2280_v57 = vmul.f32 %v10475_v3, %v10287_v43  ;;  %v2281_v47 = vmul.f32 %v10475_v3, %v10291_v21 }
 0x647   : > { %15373 = vst [vmem:[#allocation22_spill] sm:$0xff] %v10552_v27  ;;  %15374 = vst [vmem:[#allocation45_spill] sm:$0xff] %v10561_v41  ;;  %v2282_v10 = vmul.f32 %v10475_v3, %v10311_v33  ;;  %v2283_v41 = vmul.f32 %v10475_v3, %v10315_v2  ;;  %v2284_v48 = vmul.f32 %v10475_v3, %v10335_v15 }
 0x648   : > { %v2285_v26 = vmul.f32 %v10475_v3, %v10339_v39  ;;  %v2286_v17 = vmul.f32 %v10475_v3, %v10359_v42  ;;  %v2287_v43 = vmul.f32 %v10475_v3, %v10363_v32  ;;  %v2288_v21 = vmul.f32 %v10475_v3, %v10383_v8 }
 0x649   : > { %v2289_v33 = vmul.f32 %v10475_v3, %v10387_v60  ;;  %v2290_v2 = vmul.f32 %v10475_v3, %v10219_v54  ;;  %v2291_v15 = vmul.f32 %v10475_v3, %v10223_v5  ;;  %v2312_v39 = vadd.f32 %v10566_v31, %v2274_v4 }
 0x64a   : > { %v2292_v42 = vmul.f32 %v10475_v3, %v10239_v14  ;;  %v2293_v32 = vmul.f32 %v10475_v3, %v10243_v6  ;;  %v2294_v8 = vmul.f32 %v10475_v3, %v10251_v40  ;;  %v2313_v27 = vadd.f32 %v10566_v31, %v2275_v18 }
 0x64b   : > { %v2295_v60 = vmul.f32 %v10475_v3, %v10259_v29  ;;  %v2296_v54 = vmul.f32 %v10475_v3, %v10279_v63  ;;  %v2297_v5 = vmul.f32 %v10475_v3, %v10283_v58  ;;  %v2314_v4 = vadd.f32 %v10566_v31, %v2276_v12 }
 0x64c   : > { %v2298_v14 = vmul.f32 %v10475_v3, %v10299_v51  ;;  %v2299_v6 = vmul.f32 %v10475_v3, %v10307_v35  ;;  %v2300_v40 = vmul.f32 %v10475_v3, %v10327_v23  ;;  %v2315_v18 = vadd.f32 %v10566_v31, %v2277_v34 }
 0x64d   : > { %v2301_v29 = vmul.f32 %v10475_v3, %v10331_v13  ;;  %v2302_v63 = vmul.f32 %v10475_v3, %v10347_v16  ;;  %v2316_v58 = vadd.f32 %v10566_v31, %v2278_v56  ;;  %v10625_v12 = vmul.f32 0.5, %v2312_v39 }
 0x64e   : > { %v2303_v51 = vmul.f32 %v10475_v3, %v10355_v52  ;;  %v2304_v35 = vmul.f32 %v10475_v3, %v10375_v61  ;;  %v2317_v23 = vadd.f32 %v10566_v31, %v2279_v62  ;;  %v10632_v46 = vmul.f32 0.5, %v2313_v27 }
 0x64f   : > { %v2305_v13 = vmul.f32 %v10475_v3, %v10379_v25  ;;  %v2318_v34 = vadd.f32 %v10566_v31, %v2280_v57  ;;  %v2319_v16 = vadd.f32 %v10566_v31, %v2281_v47  ;;  %v10638_v56 = vmul.f32 0.5, %v2314_v4 }
 0x650   : > { %v2320_v39 = vadd.f32 %v10566_v31, %v2282_v10  ;;  %v2321_v52 = vadd.f32 %v10566_v31, %v2283_v41  ;;  %v2322_v37 = vadd.f32 %v10566_v31, %v2284_v48  ;;  %v10643_v61 = vmul.f32 0.5, %v2315_v18 }
 0x651   : > { %v2323_v27 = vadd.f32 %v10566_v31, %v2285_v26  ;;  %v2324_v62 = vadd.f32 %v10566_v31, %v2286_v17  ;;  %v10647_v45 = vmul.f32 0.5, %v2316_v58  ;;  %8337 = vtanh.f32 %v10625_v12 }
 0x652   : > { %v2325_v3 = vadd.f32 %v10566_v31, %v2287_v43  ;;  %v2326_v25 = vadd.f32 %v10566_v31, %v2288_v21  ;;  %v10652_v57 = vmul.f32 0.5, %v2317_v23  ;;  %8339 = vtanh.f32 %v10632_v46 }
 0x653   : > { %v2327_v41 = vadd.f32 %v10566_v31, %v2289_v33  ;;  %v2328_v47 = vadd.f32 %v10566_v31, %v2290_v2  ;;  %v10657_v10 = vmul.f32 0.5, %v2318_v34  ;;  %8341 = vtanh.f32 %v10638_v56 }
 0x654   : > { %v2329_v48 = vadd.f32 %v10566_v31, %v2291_v15  ;;  %v2330_v26 = vadd.f32 %v10566_v31, %v2292_v42  ;;  %v10662_v17 = vmul.f32 0.5, %v2319_v16  ;;  %8343 = vtanh.f32 %v10643_v61 }
 0x655   : > { %v2331_v43 = vadd.f32 %v10566_v31, %v2293_v32  ;;  %v2332_v21 = vadd.f32 %v10566_v31, %v2294_v8  ;;  %v10667_v4 = vmul.f32 0.5, %v2320_v39  ;;  %8345 = vtanh.f32 %v10647_v45 }
 0x656   : > { %v2333_v33 = vadd.f32 %v10566_v31, %v2295_v60  ;;  %v2334_v2 = vadd.f32 %v10566_v31, %v2296_v54  ;;  %v10672_v18 = vmul.f32 0.5, %v2321_v52  ;;  %8347 = vtanh.f32 %v10652_v57 }
 0x657   : > { %v2335_v15 = vadd.f32 %v10566_v31, %v2297_v5  ;;  %v2336_v42 = vadd.f32 %v10566_v31, %v2298_v14  ;;  %v10677_v58 = vmul.f32 0.5, %v2322_v37  ;;  %8349 = vtanh.f32 %v10657_v10 }
 0x658   : > { %v2337_v32 = vadd.f32 %v10566_v31, %v2299_v6  ;;  %v2338_v8 = vadd.f32 %v10566_v31, %v2300_v40  ;;  %v10682_v23 = vmul.f32 0.5, %v2323_v27  ;;  %8351 = vtanh.f32 %v10662_v17 }
 0x659   : > { %v10686_v60 = vadd.f32 %v10566_v31, %v2301_v29  ;;  %v10689_v54 = vadd.f32 %v10566_v31, %v2302_v63  ;;  %v10691_v5 = vmul.f32 0.5, %v2324_v62  ;;  %8353 = vtanh.f32 %v10667_v4 }
 0x65a   : > { %v10695_v37 = vadd.f32 %v10566_v31, %v2303_v51  ;;  %v10698_v14 = vadd.f32 %v10566_v31, %v2304_v35  ;;  %v10700_v6 = vmul.f32 0.5, %v2325_v3  ;;  %8355 = vtanh.f32 %v10672_v18 }
 0x65b   : > { %v8338_v40 = vpop.eup %8337  ;;  %v10704_v29 = vadd.f32 %v10566_v31, %v2305_v13  ;;  %v10706_v63 = vmul.f32 0.5, %v2326_v25  ;;  %v10708_v34 = vmul.f32 0.5, %v2327_v41  ;;  %8357 = vtanh.f32 %v10677_v58 }
 0x65c   : > { %v8340_v16 = vpop.eup %8339  ;;  %v10711_v51 = vmul.f32 0.5, %v2328_v47  ;;  %v10713_v39 = vmul.f32 0.5, %v2329_v48  ;;  %8359 = vtanh.f32 %v10682_v23  ;;  %v2408_v35 = vadd.f32 1.0, %v8338_v40 }
 0x65d   : > { %v8342_v52 = vpop.eup %8341  ;;  %v10716_v27 = vmul.f32 0.5, %v2330_v26  ;;  %v10718_v62 = vmul.f32 0.5, %v2331_v43  ;;  %8361 = vtanh.f32 %v10691_v5  ;;  %v2409_v31 = vadd.f32 1.0, %v8340_v16 }
 0x65e   : > { %v8344_v13 = vpop.eup %8343  ;;  %v10721_v3 = vmul.f32 0.5, %v2332_v21  ;;  %8363 = vtanh.f32 %v10700_v6  ;;  %v2410_v25 = vadd.f32 1.0, %v8342_v52  ;;  %v10725_v41 = vmul.f32 %v2408_v35, %v10625_v12 }
 0x65f   : > { %v8346_v47 = vpop.eup %8345  ;;  %v10727_v48 = vmul.f32 0.5, %v2333_v33  ;;  %8365 = vtanh.f32 %v10706_v63  ;;  %v2411_v26 = vadd.f32 1.0, %v8344_v13  ;;  %v10731_v43 = vmul.f32 %v2409_v31, %v10632_v46 }
 0x660   : > { %v8348_v40 = vpop.eup %8347  ;;  %v10733_v16 = vmul.f32 0.5, %v2334_v2  ;;  %8367 = vtanh.f32 %v10708_v34  ;;  %v2412_v21 = vadd.f32 1.0, %v8346_v47  ;;  %v10737_v52 = vmul.f32 %v2410_v25, %v10638_v56  ;;  %2472 = vst [vmem:[#allocation2 + $0x88] sm:$0xff] %v10725_v41 }
 0x661   : > { %v8350_v12 = vpop.eup %8349  ;;  %v10740_v33 = vmul.f32 0.5, %v2335_v15  ;;  %8369 = vtanh.f32 %v10711_v51  ;;  %v2413_v35 = vadd.f32 1.0, %v8348_v40  ;;  %v10744_v46 = vmul.f32 %v2411_v26, %v10643_v61  ;;  %2473 = vst [vmem:[#allocation2 + $0x90] sm:$0xff] %v10731_v43 }
 0x662   : > { %v8352_v2 = vpop.eup %8351  ;;  %v10747_v31 = vmul.f32 0.5, %v2336_v42  ;;  %8371 = vtanh.f32 %v10713_v39  ;;  %v2414_v56 = vadd.f32 1.0, %v8350_v12  ;;  %v10751_v13 = vmul.f32 %v2412_v21, %v10647_v45  ;;  %2474 = vst [vmem:[#allocation2 + $0xa8] sm:$0xff] %v10737_v52 }
 0x663   : > { %v8354_v15 = vpop.eup %8353  ;;  %v10754_v25 = vmul.f32 0.5, %v2337_v32  ;;  %8373 = vtanh.f32 %v10716_v27  ;;  %v2415_v61 = vadd.f32 1.0, %v8352_v2  ;;  %v10758_v47 = vmul.f32 %v2413_v35, %v10652_v57  ;;  %2475 = vst [vmem:[#allocation2 + $0xb0] sm:$0xff] %v10744_v46 }
 0x664   : > { %v8356_v42 = vpop.eup %8355  ;;  %v10761_v26 = vmul.f32 0.5, %v2338_v8  ;;  %8375 = vtanh.f32 %v10718_v62  ;;  %v2416_v45 = vadd.f32 1.0, %v8354_v15  ;;  %v2446_v40 = vmul.f32 %v2414_v56, %v10657_v10  ;;  %2476 = vst [vmem:[#allocation2 + $0xc8] sm:$0xff] %v10751_v13 }
 0x665   : > { %v8358_v32 = vpop.eup %8357  ;;  %v10767_v21 = vmul.f32 0.5, %v10686_v60  ;;  %8377 = vtanh.f32 %v10721_v3  ;;  %v2417_v57 = vadd.f32 1.0, %v8356_v42  ;;  %v2447_v12 = vmul.f32 %v2415_v61, %v10662_v17  ;;  %2477 = vst [vmem:[#allocation2 + $0xd0] sm:$0xff] %v10758_v47 }
 0x666   : > { %v8360_v8 = vpop.eup %8359  ;;  %v10773_v35 = vmul.f32 0.5, %v10689_v54  ;;  %8379 = vtanh.f32 %v10727_v48  ;;  %v2418_v10 = vadd.f32 1.0, %v8358_v32  ;;  %v10777_v2 = vmul.f32 %v2416_v45, %v10667_v4  ;;  %2478 = vst [vmem:[#allocation2 + $0xe8] sm:$0xff] %v2446_v40  ;;  %v10789_v54 = vld [vmem:[%s14852_s7 + $0x4] ss:$0 sm:$0xff] }
 0x667   : > { %v8362_v60 = vpop.eup %8361  ;;  %v10780_v56 = vmul.f32 0.5, %v10695_v37  ;;  %8381 = vtanh.f32 %v10733_v16  ;;  %v2419_v17 = vadd.f32 1.0, %v8360_v8  ;;  %v10784_v15 = vmul.f32 %v2417_v57, %v10672_v18  ;;  %15377 = vst [vmem:[#allocation44_spill] sm:$0xff] %v10789_v54  ;;  %2479 = vst [vmem:[#allocation2 + $0xf0] sm:$0xff] %v2447_v12 }
 0x668   : > { %15375 = vst [vmem:[#allocation46_spill] sm:$0xff] %v10777_v2  ;;  %v8364_v61 = vpop.eup %8363  ;;  %v10792_v4 = vmul.f32 0.5, %v10698_v14  ;;  %8383 = vtanh.f32 %v10740_v33  ;;  %v2420_v37 = vadd.f32 1.0, %v8362_v60  ;;  %v2450_v42 = vmul.f32 %v2418_v10, %v10677_v58  ;;  %2480 = vst [vmem:[#allocation2 + $0x108] sm:$0xff] %v10777_v2  ;;  %v10806_v14 = vld [vmem:[%s14852_s7 + $0x7] ss:$0 sm:$0xff] }
 0x669   : > { %15376 = vst [vmem:[#allocation43_spill] sm:$0xff] %v10784_v15  ;;  %v8366_v45 = vpop.eup %8365  ;;  %v10798_v18 = vmul.f32 0.5, %v10704_v29  ;;  %8385 = vtanh.f32 %v10747_v31  ;;  %v2421_v40 = vadd.f32 1.0, %v8364_v61  ;;  %v2451_v32 = vmul.f32 %v2419_v17, %v10682_v23  ;;  %2481 = vst [vmem:[#allocation2 + $0x110] sm:$0xff] %v10784_v15  ;;  %v10819_v60 = vld [vmem:[%s14852_s7 + $0x15] ss:$0 sm:$0xff] }
 0x66a   : > { %15378 = vst [vmem:[#allocation28_spill] sm:$0xff] %v10806_v14  ;;  %v8368_v57 = vpop.eup %8367  ;;  %8387 = vtanh.f32 %v10754_v25  ;;  %v2422_v58 = vadd.f32 1.0, %v8366_v45  ;;  %v2452_v12 = vmul.f32 %v2420_v37, %v10691_v5  ;;  %2482 = vst [vmem:[#allocation2 + $0x128] sm:$0xff] %v2450_v42  ;;  %v10812_v29 = vmul.f32 %v10789_v54, %v10725_v41 }
 0x66b   : > { %v8370_v8 = vpop.eup %8369  ;;  %8389 = vtanh.f32 %v10761_v26  ;;  %v2423_v23 = vadd.f32 1.0, %v8368_v57  ;;  %v2453_v10 = vmul.f32 %v2421_v40, %v10700_v6  ;;  %2483 = vst [vmem:[#allocation2 + $0x130] sm:$0xff] %v2451_v32  ;;  %v10823_v5 = vmul.f32 %v10789_v54, %v10731_v43  ;;  %v10836_v32 = vld [vmem:[%s14852_s7 + $0x1a] ss:$0 sm:$0xff] }
 0x66c   : > { %v8372_v17 = vpop.eup %8371  ;;  %8391 = vtanh.f32 %v10767_v21  ;;  %v2424_v61 = vadd.f32 1.0, %v8370_v8  ;;  %v2454_v37 = vmul.f32 %v2422_v58, %v10706_v63  ;;  %2484 = vst [vmem:[#allocation2 + $0x148] sm:$0xff] %v2452_v12  ;;  %v10829_v6 = vmul.f32 %v10806_v14, %v10737_v52 }
 0x66d   : > { %v8374_v42 = vpop.eup %8373  ;;  %8393 = vtanh.f32 %v10773_v35  ;;  %v2425_v45 = vadd.f32 1.0, %v8372_v17  ;;  %v2455_v40 = vmul.f32 %v2423_v23, %v10708_v34  ;;  %2485 = vst [vmem:[#allocation2 + $0x150] sm:$0xff] %v2453_v10  ;;  %v10840_v63 = vmul.f32 %v10806_v14, %v10744_v46  ;;  %v10857_v46 = vld [vmem:[%s14852_s7 + $0x3] ss:$0 sm:$0xff] }
 0x66e   : > { %v8376_v57 = vpop.eup %8375  ;;  %8395 = vtanh.f32 %v10780_v56  ;;  %v2426_v52 = vadd.f32 1.0, %v8374_v42  ;;  %v10844_v58 = vmul.f32 %v2424_v61, %v10711_v51  ;;  %2486 = vst [vmem:[#allocation2 + $0x168] sm:$0xff] %v2454_v37  ;;  %v10848_v34 = vmul.f32 %v10819_v60, %v10725_v41  ;;  %15380 = vst [vmem:[#allocation23_spill] sm:$0xff] %v10857_v46  ;;  %v2678_v51 = vld [vmem:[#allocation2 + $0x87] sm:$0xff] }
 0x66f   : > { %v8378_v8 = vpop.eup %8377  ;;  %8397 = vtanh.f32 %v10792_v4  ;;  %v2427_v23 = vadd.f32 1.0, %v8376_v57  ;;  %v10852_v17 = vmul.f32 %v2425_v45, %v10713_v39  ;;  %2487 = vst [vmem:[#allocation2 + $0x170] sm:$0xff] %v2455_v40  ;;  %v10861_v61 = vmul.f32 %v10819_v60, %v10731_v43  ;;  %v10868_v39 = vld [vmem:[#allocation2 + $0x8f] sm:$0xff] }
 0x670   : > { %15379 = vst [vmem:[#allocation25_spill] sm:$0xff] %v10848_v34  ;;  %v8380_v41 = vpop.eup %8379  ;;  %8399 = vtanh.f32 %v10798_v18  ;;  %v2428_v42 = vadd.f32 1.0, %v8378_v8  ;;  %v10865_v57 = vmul.f32 %v2426_v52, %v10716_v27  ;;  %2488 = vst [vmem:[#allocation2 + $0x188] sm:$0xff] %v10844_v58  ;;  %v10872_v45 = vmul.f32 %v10836_v32, %v10751_v13 }
 0x671   : > { %15381 = vst [vmem:[#allocation24_spill] sm:$0xff] %v10861_v61  ;;  %15383 = vst [vmem:[#allocation21_spill] sm:$0xff] %v10868_v39  ;;  %v8382_v34 = vpop.eup %8381  ;;  %v2429_v11 = vadd.f32 1.0, %v8380_v41  ;;  %v10875_v43 = vmul.f32 %v2427_v23, %v10718_v62  ;;  %v10880_v8 = vmul.f32 %v10457_v7, %v10777_v2  ;;  %v10884_v27 = vmul.f32 %v10836_v32, %v10758_v47 }
 0x672   : > { %15382 = vst [vmem:[#allocation20_spill] sm:$0xff] %v10865_v57  ;;  %15384 = vst [vmem:[#allocation29_spill] sm:$0xff] %v10872_v45  ;;  %v8384_v52 = vpop.eup %8383  ;;  %v2430_v61 = vadd.f32 1.0, %v8382_v34  ;;  %v10887_v13 = vmul.f32 %v2428_v42, %v10721_v3  ;;  %v10892_v62 = vmul.f32 %v10457_v7, %v10784_v15  ;;  %v10895_v23 = vmul.f32 %v10857_v46, %v2678_v51 }
 0x673   : > { %15385 = vst [vmem:[#allocation17_spill] sm:$0xff] %v10875_v43  ;;  %2489 = vst [vmem:[#allocation2 + $0x190] sm:$0xff] %v10852_v17  ;;  %v8386_v41 = vpop.eup %8385  ;;  %v2431_v2 = vadd.f32 1.0, %v8384_v52  ;;  %v10898_v45 = vmul.f32 %v2429_v11, %v10727_v48  ;;  %v10902_v47 = vmul.f32 %v10517_v0, %v2452_v12  ;;  %v10906_v3 = vmul.f32 %v10857_v46, %v10868_v39  ;;  %v10913_v11 = vld [vmem:[#allocation2 + $0x104] sm:$0xff] }
 0x674   : > { %15386 = vst [vmem:[#allocation15_spill] sm:$0xff] %v10884_v27  ;;  %2490 = vst [vmem:[#allocation2 + $0x1a8] sm:$0xff] %v10865_v57  ;;  %v8388_v34 = vpop.eup %8387  ;;  %v2432_v7 = vadd.f32 1.0, %v8386_v41  ;;  %v10909_v42 = vmul.f32 %v2430_v61, %v10733_v16  ;;  %v4463_v51 = vmul.f32 %v10428_v44, %v2454_v37  ;;  %v10916_v48 = vmul.f32 %v10517_v0, %v2453_v10 }
 0x675   : > { %2491 = vst [vmem:[#allocation2 + $0x1b0] sm:$0xff] %v10875_v43  ;;  %15387 = vst [vmem:[#allocation18_spill] sm:$0xff] %v10902_v47  ;;  %v8390_v12 = vpop.eup %8389  ;;  %v2433_v52 = vadd.f32 1.0, %v8388_v34  ;;  %v10919_v15 = vmul.f32 %v2431_v2, %v10740_v33  ;;  %v4385_v41 = vld [vmem:[#allocation2 + $0x167] sm:$0xff]  ;;  %v4464_v16 = vmul.f32 %v10428_v44, %v2455_v40  ;;  %v10925_v61 = vmul.f32 %v10789_v54, %v10844_v58 }
 0x676   : > { %15388 = vst [vmem:[#allocation47_spill] sm:$0xff] %v10909_v42  ;;  %2492 = vst [vmem:[#allocation2 + $0x1c8] sm:$0xff] %v10887_v13  ;;  %v8392_v37 = vpop.eup %8391  ;;  %v2434_v39 = vadd.f32 1.0, %v8390_v12  ;;  %v10928_v27 = vmul.f32 %v2432_v7, %v10747_v31  ;;  %v4386_v0 = vld [vmem:[#allocation2 + $0x16f] sm:$0xff]  ;;  %v4408_v10 = vmul.f32 %v10416_v55, %v4385_v41  ;;  %v10933_v33 = vmul.f32 %v10789_v54, %v10852_v17 }
 0x677   : > { %15389 = vst [vmem:[#allocation48_spill] sm:$0xff] %v10913_v11  ;;  %15390 = vst [vmem:[#allocation49_spill] sm:$0xff] %v10916_v48  ;;  %v10935_v2 = vld [vmem:[#allocation2 + $0x10c] sm:$0xff]  ;;  %v8394_v44 = vpop.eup %8393  ;;  %v2435_v40 = vadd.f32 1.0, %v8392_v37  ;;  %v10939_v34 = vmul.f32 %v2433_v52, %v10754_v25  ;;  %v4409_v12 = vmul.f32 %v10416_v55, %v4386_v0  ;;  %v10944_v7 = vmul.f32 %v10447_v53, %v10913_v11 }
 0x678   : > { %15391 = vst [vmem:[#allocation50_spill] sm:$0xff] %v10919_v15  ;;  %2493 = vst [vmem:[#allocation2 + $0x1d0] sm:$0xff] %v10898_v45  ;;  %v4495_v31 = vld [vmem:[#allocation2 + $0x169] sm:$0xff]  ;;  %v8396_v41 = vpop.eup %8395  ;;  %v2436_v54 = vadd.f32 1.0, %v8394_v44  ;;  %v10948_v38 = vmul.f32 %v2434_v39, %v10761_v26  ;;  %v4424_v37 = vadd.f32 %v10423_v22, %v4408_v10  ;;  %v4496_v25 = vld [vmem:[#allocation2 + $0x171] sm:$0xff]  ;;  %v10954_v55 = vmul.f32 %v10806_v14, %v10865_v57 }
 0x679   : > { %15392 = vst [vmem:[#allocation51_spill] sm:$0xff] %v10935_v2  ;;  %2494 = vst [vmem:[#allocation2 + $0x1e8] sm:$0xff] %v10909_v42  ;;  %v8398_v52 = vpop.eup %8397  ;;  %v2437_v0 = vadd.f32 1.0, %v8396_v41  ;;  %v10957_v42 = vmul.f32 %v2435_v40, %v10767_v21  ;;  %v4425_v44 = vadd.f32 %v10423_v22, %v4409_v12  ;;  %v10961_v26 = vld [vmem:[#allocation2 + $0x187] sm:$0xff]  ;;  %v10965_v39 = vmul.f32 %v10447_v53, %v10935_v2  ;;  %v10974_v21 = vld [vmem:[%s14852_s7 + $0x5] ss:$0 sm:$0xff] }
 0x67a   : > { %2495 = vst [vmem:[#allocation2 + $0x1f0] sm:$0xff] %v10919_v15  ;;  %15393 = vst [vmem:[#allocation52_spill] sm:$0xff] %v10948_v38  ;;  %v8400_v10 = vpop.eup %8399  ;;  %v2438_v15 = vadd.f32 1.0, %v8398_v52  ;;  %v2468_v57 = vmul.f32 %v2436_v54, %v10773_v35  ;;  %v4479_v1 = vadd.f32 %v4463_v51, %v4424_v37  ;;  %v4518_v41 = vmul.f32 %v10437_v28, %v4495_v31  ;;  %v10969_v11 = vld [vmem:[#allocation2 + $0x18f] sm:$0xff]  ;;  %v10976_v22 = vld [vmem:[#allocation2 + $0x106] sm:$0xff] }
 0x67b   : > { %2496 = vst [vmem:[#allocation2 + $0x208] sm:$0xff] %v10928_v27  ;;  %15394 = vst [vmem:[#allocation53_spill] sm:$0xff] %v10957_v42  ;;  %v2439_v53 = vadd.f32 1.0, %v8400_v10  ;;  %v2469_v40 = vmul.f32 %v2437_v0, %v10780_v56  ;;  %v4480_v12 = vadd.f32 %v4464_v16, %v4425_v44  ;;  %v4519_v35 = vmul.f32 %v10437_v28, %v4496_v25  ;;  %v10984_v54 = vld [vmem:[%s14852_s7 + $0x6] ss:$0 sm:$0xff]  ;;  %v10986_v51 = vld [vmem:[#allocation2 + $0x10e] sm:$0xff] }
 0x67c   : > { %2497 = vst [vmem:[#allocation2 + $0x210] sm:$0xff] %v10939_v34  ;;  %15395 = vst [vmem:[#allocation54_spill] sm:$0xff] %v10961_v26  ;;  %v10988_v31 = vld [vmem:[#allocation2 + $0x10a] sm:$0xff]  ;;  %v10990_v37 = vld [vmem:[#allocation2 + $0x112] sm:$0xff]  ;;  %v2470_v52 = vmul.f32 %v2438_v15, %v10792_v4  ;;  %v4534_v10 = vadd.f32 %v4518_v41, %v4479_v1  ;;  %v4573_v56 = vmul.f32 %v10857_v46, %v10961_v26 }
 0x67d   : > { %15396 = vst [vmem:[#allocation55_spill] sm:$0xff] %v10969_v11  ;;  %15397 = vst [vmem:[#allocation56_spill] sm:$0xff] %v10976_v22  ;;  %v10996_v28 = vld [vmem:[#allocation2 + $0x189] sm:$0xff]  ;;  %v11000_v16 = vmul.f32 %v10806_v14, %v10875_v43  ;;  %v11005_v25 = vld [vmem:[%s14852_s7 + $0x8] ss:$0 sm:$0xff]  ;;  %v2471_v15 = vmul.f32 %v2439_v53, %v10798_v18  ;;  %v4535_v1 = vadd.f32 %v4519_v35, %v4480_v12 }
 0x67e   : > { %2498 = vst [vmem:[#allocation2 + $0x228] sm:$0xff] %v10948_v38  ;;  %15398 = vst [vmem:[#allocation57_spill] sm:$0xff] %v10986_v51  ;;  %v11007_v0 = vld [vmem:[#allocation2 + $0x114] sm:$0xff]  ;;  %v4574_v4 = vmul.f32 %v10857_v46, %v10969_v11  ;;  %v11014_v41 = vld [vmem:[#allocation2 + $0x1a7] sm:$0xff]  ;;  %v11020_v38 = vmul.f32 %v10452_v19, %v10976_v22  ;;  %v4589_v14 = vadd.f32 %v4573_v56, %v4534_v10 }
 0x67f   : > { %15399 = vst [vmem:[#allocation58_spill] sm:$0xff] %v10988_v31  ;;  %15400 = vst [vmem:[#allocation59_spill] sm:$0xff] %v10990_v37  ;;  %v11012_v44 = vld [vmem:[#allocation2 + $0x191] sm:$0xff]  ;;  %v11022_v43 = vld [vmem:[#allocation2 + $0x1a9] sm:$0xff]  ;;  %v11028_v18 = vmul.f32 %v10452_v19, %v10986_v51  ;;  %v11032_v53 = vmul.f32 %v10462_v59, %v10988_v31  ;;  %v11036_v12 = vmul.f32 %v10462_v59, %v10990_v37 }
 0x680   : > { %2499 = vst [vmem:[#allocation2 + $0x230] sm:$0xff] %v10957_v42  ;;  %15401 = vst [vmem:[#allocation60_spill] sm:$0xff] %v10996_v28  ;;  %v11016_v42 = vld [vmem:[#allocation2 + $0x1af] sm:$0xff]  ;;  %v5152_v35 = vld [vmem:[#allocation2 + $0x144] sm:$0xff]  ;;  %v4683_v10 = vmul.f32 %v10974_v21, %v10996_v28  ;;  %v11042_v56 = vmul.f32 %v10480_v20, %v10935_v2  ;;  %v11046_v19 = vmul.f32 %v10480_v20, %v11007_v0 }
 0x681   : > { %15402 = vst [vmem:[#allocation61_spill] sm:$0xff] %v11007_v0  ;;  %2500 = vst [vmem:[#allocation2 + $0x248] sm:$0xff] %v2468_v57  ;;  %v11024_v57 = vld [vmem:[#allocation2 + $0x1b1] sm:$0xff]  ;;  %v5207_v51 = vld [vmem:[#allocation2 + $0x146] sm:$0xff]  ;;  %v4739_v20 = vmul.f32 %v10984_v54, %v11016_v42  ;;  %v11071_v46 = vmul.f32 %v10495_v9, %v5152_v35 }
 0x682   : > { %15403 = vst [vmem:[#allocation62_spill] sm:$0xff] %v11012_v44  ;;  %15404 = vst [vmem:[#allocation63_spill] sm:$0xff] %v11014_v41  ;;  %v5153_v31 = vld [vmem:[#allocation2 + $0x14c] sm:$0xff]  ;;  %v11063_v2 = vld [vmem:[%s14852_s7 + $0x14] ss:$0 sm:$0xff] }
 0x683   : > { %15405 = vst [vmem:[#allocation64_spill] sm:$0xff] %v11016_v42  ;;  %2501 = vst [vmem:[#allocation2 + $0x250] sm:$0xff] %v2469_v40  ;;  %v4590_v40 = vadd.f32 %v4574_v4, %v4535_v1  ;;  %v5208_v22 = vld [vmem:[#allocation2 + $0x14e] sm:$0xff]  ;;  %v4684_v1 = vmul.f32 %v10974_v21, %v11012_v44  ;;  %v4738_v4 = vmul.f32 %v10984_v54, %v11014_v41  ;;  %v5419_v42 = vld [vmem:[#allocation2 + $0x184] sm:$0xff] }
 0x684   : > { %15406 = vst [vmem:[#allocation65_spill] sm:$0xff] %v11022_v43  ;;  %15407 = vst [vmem:[#allocation66_spill] sm:$0xff] %v11024_v57  ;;  %v11051_v59 = vld [vmem:[%s14852_s7 + $0x13] ss:$0 sm:$0xff]  ;;  %v5317_v0 = vld [vmem:[#allocation2 + $0x14a] sm:$0xff] }
 0x685   : > { %2502 = vst [vmem:[#allocation2 + $0x268] sm:$0xff] %v2470_v52  ;;  %15408 = vst [vmem:[#allocation67_spill] sm:$0xff] %v11051_v59  ;;  %v4644_v52 = vadd.f32 %v10925_v61, %v4589_v14  ;;  %v5318_v37 = vld [vmem:[#allocation2 + $0x152] sm:$0xff]  ;;  %v4848_v14 = vmul.f32 %v11005_v25, %v11022_v43  ;;  %v4849_v61 = vmul.f32 %v11005_v25, %v11024_v57  ;;  %v5474_v35 = vld [vmem:[#allocation2 + $0x186] sm:$0xff] }
 0x686   : > { %2503 = vst [vmem:[#allocation2 + $0x270] sm:$0xff] %v2471_v15  ;;  %15409 = vst [vmem:[#allocation68_spill] sm:$0xff] %v11063_v2  ;;  %v4645_v15 = vadd.f32 %v10933_v33, %v4590_v40  ;;  %v5372_v41 = vld [vmem:[#allocation2 + $0x154] sm:$0xff]  ;;  %v5420_v44 = vld [vmem:[#allocation2 + $0x18c] sm:$0xff]  ;;  %v11079_v33 = vmul.f32 %v10495_v9, %v5153_v31  ;;  %v11082_v40 = vmul.f32 %v10500_v50, %v5207_v51 }
 0x687   : > { %v11076_v28 = vld [vmem:[%s14852_s7 + $0x16] ss:$0 sm:$0xff]  ;;  %v4699_v11 = vadd.f32 %v4683_v10, %v4644_v52  ;;  %v11085_v57 = vmul.f32 %v10500_v50, %v5208_v22  ;;  %v5475_v43 = vld [vmem:[#allocation2 + $0x18e] sm:$0xff]  ;;  %v11090_v26 = vld [vmem:[%s14852_s7 + $0x17] ss:$0 sm:$0xff]  ;;  %v11093_v47 = vmul.f32 %v10522_v49, %v5317_v0  ;;  %v11096_v9 = vmul.f32 %v10522_v49, %v5318_v37 }
 0x688   : > { %15410 = vst [vmem:[#allocation69_spill] sm:$0xff] %v11076_v28  ;;  %15412 = vst [vmem:[#allocation71_spill] sm:$0xff] %v11090_v26  ;;  %v4700_v48 = vadd.f32 %v4684_v1, %v4645_v15  ;;  %v11099_v51 = vmul.f32 %v10527_v24, %v5153_v31  ;;  %v5568_v10 = vld [vmem:[#allocation2 + $0x18a] sm:$0xff]  ;;  %v5569_v50 = vld [vmem:[#allocation2 + $0x192] sm:$0xff]  ;;  %v11110_v0 = vmul.f32 %v11051_v59, %v5419_v42 }
 0x689   : > { %15411 = vst [vmem:[#allocation70_spill] sm:$0xff] %v11085_v57  ;;  %v11104_v22 = vld [vmem:[%s14852_s7 + $0x18] ss:$0 sm:$0xff]  ;;  %v4754_v52 = vadd.f32 %v4738_v4, %v4699_v11  ;;  %v11107_v57 = vmul.f32 %v10527_v24, %v5372_v41  ;;  %v11113_v49 = vmul.f32 %v11051_v59, %v5420_v44  ;;  %v5673_v31 = vld [vmem:[#allocation2 + $0x1c4] sm:$0xff]  ;;  %v11118_v1 = vld [vmem:[%s14852_s7 + $0x19] ss:$0 sm:$0xff]  ;;  %v11124_v24 = vmul.f32 %v11063_v2, %v5475_v43 }
 0x68a   : > { %15413 = vst [vmem:[#allocation72_spill] sm:$0xff] %v11099_v51  ;;  %15414 = vst [vmem:[#allocation73_spill] sm:$0xff] %v11104_v22  ;;  %v5623_v37 = vld [vmem:[#allocation2 + $0x194] sm:$0xff]  ;;  %v4755_v15 = vadd.f32 %v4739_v20, %v4700_v48  ;;  %v11121_v51 = vmul.f32 %v11063_v2, %v5474_v35  ;;  %v11128_v42 = vmul.f32 %v10819_v60, %v10844_v58  ;;  %v5674_v11 = vld [vmem:[#allocation2 + $0x1cc] sm:$0xff] }
 0x68b   : > { %15415 = vst [vmem:[#allocation74_spill] sm:$0xff] %v11110_v0  ;;  %15416 = vst [vmem:[#allocation75_spill] sm:$0xff] %v11113_v49  ;;  %v5728_v41 = vld [vmem:[#allocation2 + $0x1c6] sm:$0xff]  ;;  %v5729_v4 = vld [vmem:[#allocation2 + $0x1ce] sm:$0xff]  ;;  %v4809_v49 = vadd.f32 %v10954_v55, %v4754_v52  ;;  %v11133_v0 = vmul.f32 %v10819_v60, %v10852_v17  ;;  %v11136_v48 = vmul.f32 %v11076_v28, %v5568_v10 }
 0x68c   : > { %15417 = vst [vmem:[#allocation76_spill] sm:$0xff] %v11118_v1  ;;  %15418 = vst [vmem:[#allocation77_spill] sm:$0xff] %v11128_v42  ;;  %v11139_v20 = vmul.f32 %v11076_v28, %v5569_v50  ;;  %v5838_v43 = vld [vmem:[#allocation2 + $0x1ca] sm:$0xff]  ;;  %v11144_v35 = vld [vmem:[%s14852_s7 + $0x1b] ss:$0 sm:$0xff]  ;;  %v4810_v42 = vadd.f32 %v11000_v16, %v4755_v15  ;;  %v11148_v55 = vmul.f32 %v11090_v26, %v5420_v44 }
 0x68d   : > { %15419 = vst [vmem:[#allocation78_spill] sm:$0xff] %v11133_v0  ;;  %15420 = vst [vmem:[#allocation79_spill] sm:$0xff] %v11136_v48  ;;  %v11151_v60 = vmul.f32 %v11090_v26, %v5623_v37  ;;  %v11154_v10 = vmul.f32 %v11104_v22, %v5673_v31  ;;  %v5839_v52 = vld [vmem:[#allocation2 + $0x1d2] sm:$0xff]  ;;  %v4864_v48 = vadd.f32 %v4848_v14, %v4809_v49  ;;  %v5943_v37 = vld [vmem:[#allocation2 + $0x204] sm:$0xff] }
 0x68e   : > { %15421 = vst [vmem:[#allocation80_spill] sm:$0xff] %v11139_v20  ;;  %15422 = vst [vmem:[#allocation81_spill] sm:$0xff] %v11144_v35  ;;  %v5893_v50 = vld [vmem:[#allocation2 + $0x1d4] sm:$0xff]  ;;  %v11159_v20 = vld [vmem:[%s14852_s7 + $0x1c] ss:$0 sm:$0xff]  ;;  %v11162_v0 = vmul.f32 %v11104_v22, %v5674_v11  ;;  %v11165_v16 = vmul.f32 %v11118_v1, %v5728_v41  ;;  %v11168_v44 = vmul.f32 %v11118_v1, %v5729_v4 }
 0x68f   : > { %15423 = vst [vmem:[#allocation82_spill] sm:$0xff] %v11151_v60  ;;  %15424 = vst [vmem:[#allocation83_spill] sm:$0xff] %v11154_v10  ;;  %v11173_v31 = vld [vmem:[%s14852_s7 + $0x1d] ss:$0 sm:$0xff]  ;;  %v11178_v15 = vld [vmem:[%s14852_s7 + $0x1e] ss:$0 sm:$0xff]  ;;  %v4865_v14 = vadd.f32 %v4849_v61, %v4810_v42  ;;  %v11182_v49 = vmul.f32 %v10836_v32, %v10887_v13  ;;  %v11186_v41 = vmul.f32 %v10836_v32, %v10898_v45 }
 0x690   : > { %15425 = vst [vmem:[#allocation84_spill] sm:$0xff] %v11159_v20  ;;  %15426 = vst [vmem:[#allocation85_spill] sm:$0xff] %v11162_v0  ;;  %v11189_v4 = vmul.f32 %v11144_v35, %v5838_v43  ;;  %v11191_v0 = vld [vmem:[#allocation2 + $0x89] sm:$0xff]  ;;  %v4921_v10 = vadd.f32 %v10944_v7, %v4864_v48  ;;  %v11195_v60 = vmul.f32 %v11144_v35, %v5839_v52  ;;  %v11203_v32 = vld [vmem:[#allocation2 + $0x91] sm:$0xff] }
 0x691   : > { %15427 = vst [vmem:[#allocation86_spill] sm:$0xff] %v11165_v16  ;;  %15428 = vst [vmem:[#allocation87_spill] sm:$0xff] %v11168_v44  ;;  %v5944_v44 = vld [vmem:[#allocation2 + $0x20c] sm:$0xff]  ;;  %v11198_v61 = vmul.f32 %v11159_v20, %v5674_v11  ;;  %v11201_v13 = vmul.f32 %v11159_v20, %v5893_v50  ;;  %v4922_v45 = vadd.f32 %v10965_v39, %v4865_v14  ;;  %v11212_v7 = vld [vmem:[%s14852_s7 + $0x1f] ss:$0 sm:$0xff] }
 0x692   : > { %15429 = vst [vmem:[#allocation88_spill] sm:$0xff] %v11178_v15  ;;  %v5998_v16 = vld [vmem:[#allocation2 + $0x206] sm:$0xff]  ;;  %15430 = vst [vmem:[#allocation89_spill] sm:$0xff] %v11191_v0  ;;  %v11207_v42 = vmul.f32 %v11173_v31, %v5943_v37  ;;  %v5999_v43 = vld [vmem:[#allocation2 + $0x20e] sm:$0xff]  ;;  %v2718_v11 = vadd.f32 %v10895_v23, %v10464_v30  ;;  %v2719_v48 = vadd.f32 %v10906_v3, %v10466_v36 }
 0x693   : > { %15431 = vst [vmem:[#allocation90_spill] sm:$0xff] %v11201_v13  ;;  %15432 = vst [vmem:[#allocation91_spill] sm:$0xff] %v11203_v32  ;;  %v11218_v52 = vld [vmem:[#allocation2 + $0xa7] sm:$0xff]  ;;  %v4976_v50 = vadd.f32 %v11020_v38, %v4921_v10  ;;  %v11222_v39 = vmul.f32 %v11173_v31, %v5944_v44  ;;  %v11225_v37 = vmul.f32 %v11178_v15, %v5998_v16  ;;  %v6109_v13 = vld [vmem:[#allocation2 + $0x212] sm:$0xff] }
 0x694   : > { %15433 = vst [vmem:[#allocation92_spill] sm:$0xff] %v11207_v42  ;;  %15434 = vst [vmem:[#allocation93_spill] sm:$0xff] %v11212_v7  ;;  %v2814_v14 = vmul.f32 %v10974_v21, %v11191_v0  ;;  %v11229_v42 = vld [vmem:[#allocation2 + $0xaf] sm:$0xff]  ;;  %v4977_v30 = vadd.f32 %v11028_v18, %v4922_v45  ;;  %v11235_v36 = vld [vmem:[%s14852_s7 + $0x20] ss:$0 sm:$0xff]  ;;  %v2774_v38 = vadd.f32 %v10812_v29, %v2718_v11 }
 0x695   : > { %15435 = vst [vmem:[#allocation94_spill] sm:$0xff] %v11218_v52  ;;  %15436 = vst [vmem:[#allocation95_spill] sm:$0xff] %v11229_v42  ;;  %v6108_v23 = vld [vmem:[#allocation2 + $0x20a] sm:$0xff]  ;;  %v2775_v3 = vadd.f32 %v10823_v5, %v2719_v48  ;;  %v2815_v10 = vmul.f32 %v10974_v21, %v11203_v32  ;;  %v5031_v16 = vadd.f32 %v10880_v8, %v4976_v50  ;;  %v11252_v45 = vld [vmem:[%s14852_s7 + $0x21] ss:$0 sm:$0xff] }
 0x696   : > { %15437 = vst [vmem:[#allocation96_spill] sm:$0xff] %v11235_v36  ;;  %v11243_v0 = vmul.f32 %v11178_v15, %v5999_v43  ;;  %v11247_v18 = vmul.f32 %v11212_v7, %v10928_v27  ;;  %15438 = vst [vmem:[#allocation97_spill] sm:$0xff] %v11252_v45  ;;  %v2870_v29 = vmul.f32 %v10984_v54, %v11218_v52  ;;  %v6163_v11 = vld [vmem:[#allocation2 + $0x214] sm:$0xff]  ;;  %v11259_v50 = vld [vmem:[#allocation2 + $0xa9] sm:$0xff] }
 0x697   : > { %v5032_v5 = vadd.f32 %v10892_v62, %v4977_v30  ;;  %v2830_v48 = vadd.f32 %v2814_v14, %v2774_v38  ;;  %v2831_v8 = vadd.f32 %v2815_v10, %v2775_v3  ;;  %v2871_v43 = vmul.f32 %v10984_v54, %v11229_v42  ;;  %15439 = vst [vmem:[#allocation98_spill] sm:$0xff] %v11259_v50  ;;  %v11261_v27 = vld [vmem:[#allocation2 + $0xb1] sm:$0xff]  ;;  %v3563_v14 = vld [vmem:[#allocation2 + $0x84] sm:$0xff] }
 0x698   : > { %15440 = vst [vmem:[#allocation99_spill] sm:$0xff] %v11261_v27  ;;  %v5086_v32 = vadd.f32 %v11032_v53, %v5031_v16  ;;  %v11266_v15 = vmul.f32 %v11212_v7, %v10939_v34  ;;  %v11269_v52 = vmul.f32 %v11235_v36, %v6108_v23  ;;  %v11272_v62 = vmul.f32 %v11235_v36, %v6109_v13  ;;  %v3564_v42 = vld [vmem:[#allocation2 + $0x8c] sm:$0xff] }
 0x699   : > { %v5087_v30 = vadd.f32 %v11036_v12, %v5032_v5  ;;  %v11276_v38 = vmul.f32 %v11252_v45, %v5944_v44  ;;  %v2886_v3 = vadd.f32 %v2870_v29, %v2830_v48  ;;  %v2887_v10 = vadd.f32 %v2871_v43, %v2831_v8  ;;  %v3619_v53 = vld [vmem:[#allocation2 + $0x86] sm:$0xff]  ;;  %v3620_v16 = vld [vmem:[#allocation2 + $0x8e] sm:$0xff] }
 0x69a   : > { %v5133_v34 = vadd.f32 %v11042_v56, %v5086_v32  ;;  %v11280_v7 = vmul.f32 %v11252_v45, %v6163_v11  ;;  %v2982_v13 = vmul.f32 %v11005_v25, %v11259_v50  ;;  %v2983_v23 = vmul.f32 %v11005_v25, %v11261_v27  ;;  %v3715_v12 = vld [vmem:[#allocation2 + $0x8a] sm:$0xff]  ;;  %v3716_v56 = vld [vmem:[#allocation2 + $0x92] sm:$0xff] }
 0x69b   : > { %v5134_v44 = vadd.f32 %v11046_v19, %v5087_v30  ;;  %v2942_v29 = vadd.f32 %v10829_v6, %v2886_v3  ;;  %v2943_v5 = vadd.f32 %v10840_v63, %v2887_v10  ;;  %v11290_v48 = vmul.f32 %v11051_v59, %v3563_v14  ;;  %v3771_v32 = vld [vmem:[#allocation2 + $0x94] sm:$0xff]  ;;  %v3822_v19 = vld [vmem:[#allocation2 + $0xc4] sm:$0xff]  ;;  %v3823_v3 = vld [vmem:[#allocation2 + $0xcc] sm:$0xff] }
 0x69c   : > { %v5191_v11 = vadd.f32 %v11071_v46, %v5133_v34  ;;  %v11294_v8 = vmul.f32 %v11051_v59, %v3564_v42  ;;  %v11297_v43 = vmul.f32 %v11063_v2, %v3619_v53  ;;  %v11300_v27 = vmul.f32 %v11063_v2, %v3620_v16  ;;  %v3878_v10 = vld [vmem:[#allocation2 + $0xc6] sm:$0xff]  ;;  %v3879_v46 = vld [vmem:[#allocation2 + $0xce] sm:$0xff] }
 0x69d   : > { %v5192_v6 = vadd.f32 %v11079_v33, %v5134_v44  ;;  %v2998_v63 = vadd.f32 %v2982_v13, %v2942_v29  ;;  %v2999_v30 = vadd.f32 %v2983_v23, %v2943_v5  ;;  %v11304_v14 = vmul.f32 %v11076_v28, %v3715_v12  ;;  %v3990_v33 = vld [vmem:[#allocation2 + $0xca] sm:$0xff]  ;;  %v15441_v13 = vld [vmem:[#allocation70_spill] sm:$0xff]  ;;  %v15442_v44 = vld [vmem:[#allocation31_spill] sm:$0xff] }
 0x69e   : > { %v5246_v34 = vadd.f32 %v11082_v40, %v5191_v11  ;;  %v11308_v50 = vmul.f32 %v11076_v28, %v3716_v56  ;;  %v11311_v53 = vmul.f32 %v11090_v26, %v3564_v42  ;;  %v11314_v16 = vmul.f32 %v11090_v26, %v3771_v32  ;;  %v15443_v29 = vld [vmem:[#allocation26_spill] sm:$0xff]  ;;  %v15468_v2 = vld [vmem:[#allocation23_spill] sm:$0xff] }
 0x69f   : > { %v5247_v23 = vadd.f32 %v15441_v13, %v5192_v6  ;;  %v3056_v12 = vadd.f32 %v15442_v44, %v2998_v63  ;;  %v3057_v5 = vadd.f32 %v15443_v29, %v2999_v30  ;;  %v11320_v45 = vmul.f32 %v11104_v22, %v3822_v19  ;;  %v3991_v40 = vld [vmem:[#allocation2 + $0xd2] sm:$0xff]  ;;  %v15446_v13 = vld [vmem:[#allocation16_spill] sm:$0xff] }
 0x6a0   : > { %v4046_v11 = vld [vmem:[#allocation2 + $0xd4] sm:$0xff]  ;;  %v11324_v42 = vmul.f32 %v11104_v22, %v3823_v3  ;;  %v11327_v32 = vmul.f32 %v11118_v1, %v3878_v10  ;;  %v11330_v26 = vmul.f32 %v11118_v1, %v3879_v46  ;;  %v15447_v44 = vld [vmem:[#allocation32_spill] sm:$0xff]  ;;  %v11336_v29 = vmul.f32 %v11144_v35, %v3990_v33  ;;  %v11354_v33 = vld [vmem:[%s14852_s7] ss:$0 sm:$0xff] }
 0x6a1   : > { %v15444_v56 = vld [vmem:[#allocation18_spill] sm:$0xff]  ;;  %v15445_v6 = vld [vmem:[#allocation49_spill] sm:$0xff]  ;;  %v3112_v30 = vadd.f32 %v15446_v13, %v3056_v12  ;;  %v3113_v19 = vadd.f32 %v15447_v44, %v3057_v5  ;;  %v11343_v10 = vmul.f32 %v11159_v20, %v3823_v3  ;;  %v11346_v46 = vmul.f32 %v11159_v20, %v4046_v11  ;;  %15450 = vst [vmem:[#allocation31_spill] sm:$0xff] %v11354_v33  ;;  %v15453_v13 = vld [vmem:[#allocation48_spill] sm:$0xff] }
 0x6a2   : > { %v5301_v28 = vadd.f32 %v15444_v56, %v5246_v34  ;;  %v5302_v63 = vadd.f32 %v15445_v6, %v5247_v23  ;;  %v11340_v56 = vmul.f32 %v11144_v35, %v3991_v40  ;;  %v15449_v6 = vld [vmem:[#allocation33_spill] sm:$0xff]  ;;  %v15452_v40 = vld [vmem:[#allocation72_spill] sm:$0xff]  ;;  %v11361_v11 = vmul.f32 %v11173_v31, %v15453_v13  ;;  %v15455_v44 = vld [vmem:[#allocation55_spill] sm:$0xff] }
 0x6a3   : > { %15448 = vst [vmem:[#allocation70_spill] sm:$0xff] %v11346_v46  ;;  %v3168_v12 = vadd.f32 %v15449_v6, %v3112_v30  ;;  %v3169_v5 = vadd.f32 %v15449_v6, %v3113_v19  ;;  %v11378_v13 = vld [vmem:[%s14853_s8] ss:$0 sm:$0xff]  ;;  %v15460_v20 = vld [vmem:[#allocation74_spill] sm:$0xff] }
 0x6a4   : > { %v5356_v34 = vadd.f32 %v11093_v47, %v5301_v28  ;;  %v5357_v23 = vadd.f32 %v11096_v9, %v5302_v63  ;;  %v15451_v47 = vld [vmem:[#allocation54_spill] sm:$0xff]  ;;  %15454 = vst [vmem:[#allocation26_spill] sm:$0xff] %v11361_v11  ;;  %v4411_v9 = vmul.f32 %v11354_v33, %v15455_v44  ;;  %v11368_v63 = vld [vmem:[%s14852_s7 + $0x1] ss:$0 sm:$0xff]  ;;  %15459 = vst [vmem:[#allocation49_spill] sm:$0xff] %v11378_v13 }
 0x6a5   : > { %v4410_v28 = vmul.f32 %v11354_v33, %v15451_v47  ;;  %15456 = vst [vmem:[#allocation18_spill] sm:$0xff] %v11368_v63  ;;  %v4465_v30 = vmul.f32 %v11368_v63, %v10844_v58  ;;  %v15457_v47 = vld [vmem:[#allocation34_spill] sm:$0xff]  ;;  %v4466_v58 = vmul.f32 %v11368_v63, %v10852_v17  ;;  %v15467_v63 = vld [vmem:[#allocation63_spill] sm:$0xff] }
 0x6a6   : > { %v5403_v3 = vadd.f32 %v15452_v40, %v5356_v34  ;;  %v5404_v19 = vadd.f32 %v11107_v57, %v5357_v23  ;;  %v3224_v6 = vadd.f32 %v15457_v47, %v3168_v12  ;;  %v15458_v34 = vld [vmem:[#allocation35_spill] sm:$0xff]  ;;  %v4427_v33 = vadd.f32 %v11378_v13, %v4411_v9  ;;  %v15462_v23 = vld [vmem:[#allocation60_spill] sm:$0xff]  ;;  %v15469_v11 = vld [vmem:[#allocation38_spill] sm:$0xff] }
 0x6a7   : > { %v3225_v40 = vadd.f32 %v15458_v34, %v3169_v5  ;;  %v4426_v44 = vadd.f32 %v11378_v13, %v4410_v28  ;;  %v11388_v57 = vld [vmem:[%s14852_s7 + $0x2] ss:$0 sm:$0xff]  ;;  %v15464_v34 = vld [vmem:[#allocation36_spill] sm:$0xff]  ;;  %v15465_v28 = vld [vmem:[#allocation37_spill] sm:$0xff]  ;;  %v4575_v36 = vmul.f32 %v15468_v2, %v15467_v63 }
 0x6a8   : > { %v5458_v35 = vadd.f32 %v15460_v20, %v5403_v3  ;;  %15461 = vst [vmem:[#allocation16_spill] sm:$0xff] %v11388_v57  ;;  %v4520_v12 = vmul.f32 %v11388_v57, %v15462_v23  ;;  %v15463_v5 = vld [vmem:[#allocation75_spill] sm:$0xff]  ;;  %v3272_v1 = vadd.f32 %v15464_v34, %v3224_v6  ;;  %v4482_v9 = vadd.f32 %v4466_v58, %v4427_v33  ;;  %v15466_v13 = vld [vmem:[#allocation62_spill] sm:$0xff]  ;;  %v15471_v6 = vld [vmem:[#allocation77_spill] sm:$0xff] }
 0x6a9   : > { %v5459_v47 = vadd.f32 %v15463_v5, %v5404_v19  ;;  %v3273_v22 = vadd.f32 %v15465_v28, %v3225_v40  ;;  %v4481_v20 = vadd.f32 %v4465_v30, %v4426_v44  ;;  %v4521_v17 = vmul.f32 %v11388_v57, %v15466_v13  ;;  %v15470_v46 = vld [vmem:[#allocation39_spill] sm:$0xff]  ;;  %v15472_v30 = vld [vmem:[#allocation64_spill] sm:$0xff]  ;;  %v15475_v13 = vld [vmem:[#allocation78_spill] sm:$0xff] }
 0x6aa   : > { %v5513_v3 = vadd.f32 %v11121_v51, %v5458_v35  ;;  %v3331_v23 = vadd.f32 %v15469_v11, %v3272_v1  ;;  %v4576_v51 = vmul.f32 %v15468_v2, %v15472_v30  ;;  %v15473_v35 = vld [vmem:[#allocation20_spill] sm:$0xff]  ;;  %v15477_v57 = vld [vmem:[#allocation41_spill] sm:$0xff] }
 0x6ab   : > { %v5514_v59 = vadd.f32 %v11124_v24, %v5459_v47  ;;  %v3332_v19 = vadd.f32 %v15470_v46, %v3273_v22  ;;  %v4536_v5 = vadd.f32 %v4520_v12, %v4481_v20  ;;  %v4537_v40 = vadd.f32 %v4521_v17, %v4482_v9  ;;  %v15474_v33 = vld [vmem:[#allocation44_spill] sm:$0xff]  ;;  %v15478_v22 = vld [vmem:[#allocation79_spill] sm:$0xff]  ;;  %v15479_v12 = vld [vmem:[#allocation17_spill] sm:$0xff] }
 0x6ac   : > { %v5552_v34 = vadd.f32 %v15471_v6, %v5513_v3  ;;  %v4630_v44 = vmul.f32 %v15474_v33, %v15473_v35  ;;  %v15476_v28 = vld [vmem:[#allocation40_spill] sm:$0xff]  ;;  %v4631_v20 = vmul.f32 %v15474_v33, %v15479_v12  ;;  %v15480_v3 = vld [vmem:[#allocation65_spill] sm:$0xff]  ;;  %v15482_v6 = vld [vmem:[#allocation42_spill] sm:$0xff] }
 0x6ad   : > { %v5553_v58 = vadd.f32 %v15475_v13, %v5514_v59  ;;  %v3387_v63 = vadd.f32 %v15476_v28, %v3331_v23  ;;  %v3388_v24 = vadd.f32 %v15477_v57, %v3332_v19  ;;  %v4591_v47 = vadd.f32 %v4575_v36, %v4536_v5  ;;  %v11411_v1 = vld [vmem:[#allocation2 + $0x1c7] sm:$0xff]  ;;  %v11421_v57 = vld [vmem:[#allocation2 + $0x1cf] sm:$0xff]  ;;  %v15485_v33 = vld [vmem:[#allocation82_spill] sm:$0xff] }
 0x6ae   : > { %v5607_v46 = vadd.f32 %v15478_v22, %v5552_v34  ;;  %v4592_v11 = vadd.f32 %v4576_v51, %v4537_v40  ;;  %v4685_v2 = vmul.f32 %v10974_v21, %v15480_v3  ;;  %v15481_v9 = vld [vmem:[#allocation80_spill] sm:$0xff]  ;;  %v15484_v34 = vld [vmem:[#allocation66_spill] sm:$0xff]  ;;  %v4740_v51 = vmul.f32 %v10984_v54, %v11411_v1  ;;  %v15488_v3 = vld [vmem:[#allocation83_spill] sm:$0xff] }
 0x6af   : > { %v5608_v17 = vadd.f32 %v15481_v9, %v5553_v58  ;;  %v3443_v59 = vadd.f32 %v15482_v6, %v3387_v63  ;;  %v3444_v23 = vadd.f32 %v15482_v6, %v3388_v24  ;;  %v4646_v30 = vadd.f32 %v4630_v44, %v4591_v47  ;;  %v11423_v36 = vld [vmem:[#allocation2 + $0x1c8] sm:$0xff]  ;;  %v15486_v58 = vld [vmem:[#allocation27_spill] sm:$0xff]  ;;  %v11433_v47 = vld [vmem:[#allocation2 + $0x1d0] sm:$0xff] }
 0x6b0   : > { %15483 = vst [vmem:[#allocation32_spill] sm:$0xff] %v11423_v36  ;;  %v5654_v19 = vadd.f32 %v11148_v55, %v5607_v46  ;;  %v4647_v5 = vadd.f32 %v4631_v20, %v4592_v11  ;;  %v4686_v40 = vmul.f32 %v10974_v21, %v15484_v34  ;;  %v15487_v63 = vld [vmem:[#allocation19_spill] sm:$0xff]  ;;  %v11435_v22 = vld [vmem:[#allocation2 + $0x1c9] sm:$0xff]  ;;  %v4741_v11 = vmul.f32 %v10984_v54, %v11421_v57  ;;  %v15493_v6 = vld [vmem:[#allocation86_spill] sm:$0xff] }
 0x6b1   : > { %v5655_v13 = vadd.f32 %v15485_v33, %v5608_v17  ;;  %v3499_v28 = vadd.f32 %v15486_v58, %v3443_v59  ;;  %v3500_v24 = vadd.f32 %v15487_v63, %v3444_v23  ;;  %v4701_v44 = vadd.f32 %v4685_v2, %v4646_v30  ;;  %v15489_v20 = vld [vmem:[#allocation28_spill] sm:$0xff]  ;;  %v15490_v34 = vld [vmem:[#allocation85_spill] sm:$0xff]  ;;  %v15491_v33 = vld [vmem:[#allocation22_spill] sm:$0xff] }
 0x6b2   : > { %v5712_v55 = vadd.f32 %v15488_v3, %v5654_v19  ;;  %v4702_v46 = vadd.f32 %v4686_v40, %v4647_v5  ;;  %v4795_v9 = vmul.f32 %v15489_v20, %v11423_v36  ;;  %v15492_v58 = vld [vmem:[#allocation45_spill] sm:$0xff]  ;;  %v11447_v63 = vld [vmem:[#allocation2 + $0x124] sm:$0xff]  ;;  %v4796_v40 = vmul.f32 %v15489_v20, %v11433_v47 }
 0x6b3   : > { %v5713_v17 = vadd.f32 %v15490_v34, %v5655_v13  ;;  %v3547_v59 = vadd.f32 %v15491_v33, %v3499_v28  ;;  %v3548_v23 = vadd.f32 %v15492_v58, %v3500_v24  ;;  %v4756_v2 = vadd.f32 %v4740_v51, %v4701_v44  ;;  %v11445_v30 = vld [vmem:[#allocation2 + $0x1d1] sm:$0xff]  ;;  %v15494_v36 = vld [vmem:[#allocation87_spill] sm:$0xff] }
 0x6b4   : > { %v5767_v19 = vadd.f32 %v15493_v6, %v5712_v55  ;;  %v4757_v5 = vadd.f32 %v4741_v11, %v4702_v46  ;;  %v4850_v3 = vmul.f32 %v11005_v25, %v11435_v22  ;;  %v11457_v44 = vld [vmem:[#allocation2 + $0x12c] sm:$0xff]  ;;  %v4851_v46 = vmul.f32 %v11005_v25, %v11445_v30  ;;  %v11467_v11 = vld [vmem:[%s14852_s7 + $0x9] ss:$0 sm:$0xff] }
 0x6b5   : > { %v5768_v13 = vadd.f32 %v15494_v36, %v5713_v17  ;;  %v3603_v28 = vadd.f32 %v11290_v48, %v3547_v59  ;;  %v3604_v24 = vadd.f32 %v11294_v8, %v3548_v23  ;;  %v4811_v51 = vadd.f32 %v4795_v9, %v4756_v2  ;;  %v11459_v34 = vld [vmem:[#allocation2 + $0x126] sm:$0xff] }
 0x6b6   : > { %v5822_v6 = vadd.f32 %v11182_v49, %v5767_v19  ;;  %v4812_v55 = vadd.f32 %v4796_v40, %v4757_v5  ;;  %v4907_v48 = vmul.f32 %v11467_v11, %v11447_v63  ;;  %v11474_v49 = vld [vmem:[#allocation2 + $0x12e] sm:$0xff]  ;;  %v4908_v58 = vmul.f32 %v11467_v11, %v11457_v44  ;;  %v11484_v23 = vld [vmem:[%s14852_s7 + $0xa] ss:$0 sm:$0xff] }
 0x6b7   : > { %v5823_v8 = vadd.f32 %v11186_v41, %v5768_v13  ;;  %v3659_v36 = vadd.f32 %v11297_v43, %v3603_v28  ;;  %v3660_v20 = vadd.f32 %v11300_v27, %v3604_v24  ;;  %v4866_v9 = vadd.f32 %v4850_v3, %v4811_v51  ;;  %v11476_v17 = vld [vmem:[#allocation2 + $0x128] sm:$0xff]  ;;  %v15495_v43 = vld [vmem:[#allocation25_spill] sm:$0xff] }
 0x6b8   : > { %v5877_v33 = vadd.f32 %v11189_v4, %v5822_v6  ;;  %v4867_v59 = vadd.f32 %v4851_v46, %v4812_v55  ;;  %v4962_v41 = vmul.f32 %v11484_v23, %v11459_v34  ;;  %v15496_v19 = vld [vmem:[#allocation24_spill] sm:$0xff]  ;;  %v11491_v4 = vld [vmem:[#allocation2 + $0x130] sm:$0xff]  ;;  %v4963_v24 = vmul.f32 %v11484_v23, %v11474_v49  ;;  %v15500_v6 = vld [vmem:[#allocation90_spill] sm:$0xff] }
 0x6b9   : > { %v5878_v27 = vadd.f32 %v11195_v60, %v5823_v8  ;;  %v3699_v2 = vadd.f32 %v15495_v43, %v3659_v36  ;;  %v3700_v5 = vadd.f32 %v15496_v19, %v3660_v20  ;;  %v4923_v40 = vadd.f32 %v4907_v48, %v4866_v9  ;;  %15497 = vst [vmem:[#allocation54_spill] sm:$0xff] %v11491_v4  ;;  %v11493_v3 = vld [vmem:[#allocation2 + $0x12a] sm:$0xff]  ;;  %v11523_v43 = vld [vmem:[#allocation2 + $0x134] sm:$0xff] }
 0x6ba   : > { %15498 = vst [vmem:[#allocation72_spill] sm:$0xff] %v11493_v3  ;;  %v5924_v13 = vadd.f32 %v11198_v61, %v5877_v33  ;;  %v4924_v28 = vadd.f32 %v4908_v58, %v4867_v59  ;;  %v11501_v51 = vld [vmem:[%s14852_s7 + $0xb] ss:$0 sm:$0xff]  ;;  %v11508_v61 = vld [vmem:[#allocation2 + $0x132] sm:$0xff]  ;;  %v11516_v59 = vld [vmem:[%s14852_s7 + $0xc] ss:$0 sm:$0xff] }
 0x6bb   : > { %15499 = vst [vmem:[#allocation48_spill] sm:$0xff] %v11501_v51  ;;  %v5017_v60 = vmul.f32 %v11501_v51, %v11476_v17  ;;  %v5925_v55 = vadd.f32 %v15500_v6, %v5878_v27  ;;  %v3755_v46 = vadd.f32 %v11304_v14, %v3699_v2  ;;  %v3756_v48 = vadd.f32 %v11308_v50, %v3700_v5  ;;  %v15502_v36 = vld [vmem:[#allocation92_spill] sm:$0xff] }
 0x6bc   : > { %v4978_v8 = vadd.f32 %v4962_v41, %v4923_v40  ;;  %15501 = vst [vmem:[#allocation55_spill] sm:$0xff] %v11508_v61  ;;  %v5982_v20 = vadd.f32 %v15502_v36, %v5924_v13  ;;  %v4979_v9 = vadd.f32 %v4963_v24, %v4924_v28  ;;  %v5018_v33 = vmul.f32 %v11501_v51, %v11491_v4  ;;  %v5154_v2 = vld [vmem:[#allocation2 + $0x164] sm:$0xff]  ;;  %v11531_v13 = vld [vmem:[%s14852_s7 + $0xd] ss:$0 sm:$0xff] }
 0x6bd   : > { %v5072_v58 = vmul.f32 %v11516_v59, %v11493_v3  ;;  %v5983_v14 = vadd.f32 %v11222_v39, %v5925_v55  ;;  %v3803_v50 = vadd.f32 %v11311_v53, %v3755_v46  ;;  %v3804_v41 = vadd.f32 %v11314_v16, %v3756_v48  ;;  %15503 = vst [vmem:[#allocation34_spill] sm:$0xff] %v11523_v43  ;;  %v11544_v48 = vld [vmem:[%s14852_s7 + $0xe] ss:$0 sm:$0xff] }
 0x6be   : > { %v5033_v27 = vadd.f32 %v5017_v60, %v4978_v8  ;;  %v6037_v19 = vadd.f32 %v11225_v37, %v5982_v20  ;;  %v5034_v5 = vadd.f32 %v5018_v33, %v4979_v9  ;;  %v5073_v40 = vmul.f32 %v11516_v59, %v11508_v61  ;;  %v5155_v37 = vld [vmem:[#allocation2 + $0x16c] sm:$0xff] }
 0x6bf   : > { %v5119_v39 = vmul.f32 %v11531_v13, %v11457_v44  ;;  %v6038_v53 = vadd.f32 %v11243_v0, %v5983_v14  ;;  %v3862_v16 = vadd.f32 %v11320_v45, %v3803_v50  ;;  %v3863_v28 = vadd.f32 %v11324_v42, %v3804_v41  ;;  %v5209_v60 = vld [vmem:[#allocation2 + $0x166] sm:$0xff]  ;;  %v5210_v20 = vld [vmem:[#allocation2 + $0x16e] sm:$0xff] }
 0x6c0   : > { %v5088_v24 = vadd.f32 %v5072_v58, %v5033_v27  ;;  %v6092_v6 = vadd.f32 %v11247_v18, %v6037_v19  ;;  %v5089_v55 = vadd.f32 %v5073_v40, %v5034_v5  ;;  %v5120_v46 = vmul.f32 %v11531_v13, %v11523_v43  ;;  %v5264_v18 = vld [vmem:[#allocation2 + $0x168] sm:$0xff]  ;;  %v5265_v19 = vld [vmem:[#allocation2 + $0x170] sm:$0xff] }
 0x6c1   : > { %v5177_v0 = vmul.f32 %v11544_v48, %v5154_v2  ;;  %v6093_v45 = vadd.f32 %v11266_v15, %v6038_v53  ;;  %v3918_v42 = vadd.f32 %v11327_v32, %v3862_v16  ;;  %v3919_v8 = vadd.f32 %v11330_v26, %v3863_v28  ;;  %v11555_v14 = vld [vmem:[%s14852_s7 + $0xf] ss:$0 sm:$0xff]  ;;  %v15504_v32 = vld [vmem:[#allocation29_spill] sm:$0xff]  ;;  %v15505_v26 = vld [vmem:[#allocation15_spill] sm:$0xff] }
 0x6c2   : > { %v5135_v36 = vadd.f32 %v5119_v39, %v5088_v24  ;;  %v6147_v9 = vadd.f32 %v11269_v52, %v6092_v6  ;;  %v5136_v33 = vadd.f32 %v5120_v46, %v5089_v55  ;;  %v5178_v58 = vmul.f32 %v11544_v48, %v5155_v37  ;;  %v5319_v5 = vld [vmem:[#allocation2 + $0x16a] sm:$0xff]  ;;  %v15509_v6 = vld [vmem:[#allocation51_spill] sm:$0xff] }
 0x6c3   : > { %v5232_v50 = vmul.f32 %v11555_v14, %v5209_v60  ;;  %v6148_v15 = vadd.f32 %v11272_v62, %v6093_v45  ;;  %v3974_v41 = vadd.f32 %v15504_v32, %v3918_v42  ;;  %v3975_v27 = vadd.f32 %v15505_v26, %v3919_v8  ;;  %v11568_v53 = vld [vmem:[%s14852_s7 + $0x10] ss:$0 sm:$0xff]  ;;  %v11582_v45 = vld [vmem:[%s14852_s7 + $0x11] ss:$0 sm:$0xff]  ;;  %v15510_v42 = vld [vmem:[#allocation70_spill] sm:$0xff] }
 0x6c4   : > { %v5193_v2 = vadd.f32 %v5177_v0, %v5135_v36  ;;  %v11562_v52 = vadd.f32 %v11276_v38, %v6147_v9  ;;  %v5194_v40 = vadd.f32 %v5178_v58, %v5136_v33  ;;  %v5233_v39 = vmul.f32 %v11555_v14, %v5210_v20  ;;  %15507 = vst [vmem:[#allocation74_spill] sm:$0xff] %v11568_v53  ;;  %v5320_v38 = vld [vmem:[#allocation2 + $0x172] sm:$0xff]  ;;  %v15512_v9 = vld [vmem:[#allocation88_spill] sm:$0xff] }
 0x6c5   : > { %v5287_v62 = vmul.f32 %v11568_v53, %v5264_v18  ;;  %v11572_v16 = vadd.f32 %v11280_v7, %v6148_v15  ;;  %v4030_v28 = vadd.f32 %v11336_v29, %v3974_v41  ;;  %v4031_v24 = vadd.f32 %v11340_v56, %v3975_v27  ;;  %v5373_v20 = vld [vmem:[#allocation2 + $0x174] sm:$0xff]  ;;  %v15511_v18 = vld [vmem:[#allocation56_spill] sm:$0xff] }
 0x6c6   : > { %15506 = vst [vmem:[#allocation35_spill] sm:$0xff] %v11562_v52  ;;  %v5248_v60 = vadd.f32 %v5232_v50, %v5193_v2  ;;  %v4122_v55 = vmul.f32 %v11173_v31, %v15509_v6  ;;  %v5249_v46 = vadd.f32 %v5233_v39, %v5194_v40  ;;  %v5288_v0 = vmul.f32 %v11568_v53, %v5265_v19  ;;  %v15513_v58 = vld [vmem:[#allocation57_spill] sm:$0xff]  ;;  %v5421_v41 = vld [vmem:[#allocation2 + $0x1a4] sm:$0xff]  ;;  %v15514_v26 = vld [vmem:[#allocation26_spill] sm:$0xff] }
 0x6c7   : > { %15508 = vst [vmem:[#allocation60_spill] sm:$0xff] %v11572_v16  ;;  %v5342_v7 = vmul.f32 %v11582_v45, %v5319_v5  ;;  %v8155_v29 = vpack.c.bf16 %v11572_v16, %v11562_v52  ;;  %v4078_v56 = vadd.f32 %v11343_v10, %v4030_v28  ;;  %v4079_v8 = vadd.f32 %v15510_v42, %v4031_v24  ;;  %v11598_v10 = vld [vmem:[%s14852_s7 + $0x12] ss:$0 sm:$0xff]  ;;  %v15515_v39 = vld [vmem:[#allocation46_spill] sm:$0xff]  ;;  %v15517_v24 = vld [vmem:[#allocation43_spill] sm:$0xff] }
 0x6c8   : > { %v5303_v36 = vadd.f32 %v5287_v62, %v5248_v60  ;;  %v4177_v33 = vmul.f32 %v15512_v9, %v15511_v18  ;;  %v4178_v50 = vmul.f32 %v15512_v9, %v15513_v58  ;;  %v5304_v15 = vadd.f32 %v5288_v0, %v5249_v46  ;;  %v5422_v40 = vld [vmem:[#allocation2 + $0x1ac] sm:$0xff]  ;;  %v15521_v58 = vld [vmem:[#allocation59_spill] sm:$0xff] }
 0x6c9   : > { %v5343_v32 = vmul.f32 %v11582_v45, %v5320_v38  ;;  %8156 = vmatprep.subr.bf16.mxu0 %v8155_v29  ;;  %v4137_v27 = vadd.f32 %v15514_v26, %v4078_v56  ;;  %v4138_v2 = vadd.f32 %v4122_v55, %v4079_v8  ;;  %v5389_v5 = vmul.f32 %v11598_v10, %v5155_v37  ;;  %v15516_v62 = vld [vmem:[#allocation93_spill] sm:$0xff]  ;;  %v5476_v0 = vld [vmem:[#allocation2 + $0x1a6] sm:$0xff] }
 0x6ca   : > { %v5358_v19 = vadd.f32 %v5342_v7, %v5303_v36  ;;  %v4233_v28 = vmul.f32 %v15516_v62, %v15515_v39  ;;  %v4234_v60 = vmul.f32 %v15516_v62, %v15517_v24  ;;  %v5390_v46 = vmul.f32 %v11598_v10, %v5373_v20  ;;  %v15518_v56 = vld [vmem:[#allocation67_spill] sm:$0xff]  ;;  %v5477_v8 = vld [vmem:[#allocation2 + $0x1ae] sm:$0xff]  ;;  %v15519_v36 = vld [vmem:[#allocation58_spill] sm:$0xff] }
 0x6cb   : > { %v5359_v38 = vadd.f32 %v5343_v32, %v5304_v15  ;;  %v4193_v55 = vadd.f32 %v4177_v33, %v4137_v27  ;;  %v4194_v7 = vadd.f32 %v4178_v50, %v4138_v2  ;;  %v5444_v42 = vmul.f32 %v15518_v56, %v5421_v41  ;;  %v15520_v18 = vld [vmem:[#allocation96_spill] sm:$0xff]  ;;  %v15523_v33 = vld [vmem:[#allocation97_spill] sm:$0xff] }
 0x6cc   : > { %v5405_v29 = vadd.f32 %v5389_v5, %v5358_v19  ;;  %v4289_v37 = vmul.f32 %v15520_v18, %v15519_v36  ;;  %v4290_v26 = vmul.f32 %v15520_v18, %v15521_v58  ;;  %v5445_v16 = vmul.f32 %v15518_v56, %v5422_v40  ;;  %v15522_v20 = vld [vmem:[#allocation68_spill] sm:$0xff]  ;;  %v15524_v27 = vld [vmem:[#allocation61_spill] sm:$0xff] }
 0x6cd   : > { %v5406_v39 = vadd.f32 %v5390_v46, %v5359_v38  ;;  %v4249_v24 = vadd.f32 %v4233_v28, %v4193_v55  ;;  %v4250_v15 = vadd.f32 %v4234_v60, %v4194_v7  ;;  %v5499_v52 = vmul.f32 %v15522_v20, %v5476_v0  ;;  %v5570_v5 = vld [vmem:[#allocation2 + $0x1aa] sm:$0xff]  ;;  %v11621_v28 = vld [vmem:[%s14852_s7 + $0x15] ss:$0 sm:$0xff] }
 0x6ce   : > { %v5460_v32 = vadd.f32 %v5444_v42, %v5405_v29  ;;  %v4337_v50 = vmul.f32 %v15523_v33, %v15509_v6  ;;  %v4338_v41 = vmul.f32 %v15523_v33, %v15524_v27  ;;  %v5500_v19 = vmul.f32 %v15522_v20, %v5477_v8  ;;  %15525 = vst [vmem:[#allocation75_spill] sm:$0xff] %v11621_v28  ;;  %v5571_v46 = vld [vmem:[#allocation2 + $0x1b2] sm:$0xff]  ;;  %v11637_v27 = vld [vmem:[#allocation2 + $0x88] sm:$0xff] }
 0x6cf   : > { %v5461_v2 = vadd.f32 %v5445_v16, %v5406_v39  ;;  %v4305_v36 = vadd.f32 %v4289_v37, %v4249_v24  ;;  %v4306_v58 = vadd.f32 %v4290_v26, %v4250_v15  ;;  %v5538_v60 = vmul.f32 %v11621_v28, %v15473_v35  ;;  %v15528_v29 = vld [vmem:[#allocation69_spill] sm:$0xff]  ;;  %v5675_v37 = vld [vmem:[#allocation2 + $0x1e4] sm:$0xff]  ;;  %15530 = vst [vmem:[#allocation62_spill] sm:$0xff] %v11637_v27 }
 0x6d0   : > { %v5515_v38 = vadd.f32 %v5499_v52, %v5460_v32  ;;  %v5539_v0 = vmul.f32 %v11621_v28, %v15479_v12  ;;  %v5593_v52 = vmul.f32 %v15528_v29, %v5570_v5  ;;  %v5624_v56 = vld [vmem:[#allocation2 + $0x1b4] sm:$0xff]  ;;  %v5594_v8 = vmul.f32 %v15528_v29, %v5571_v46  ;;  %v5676_v26 = vld [vmem:[#allocation2 + $0x1ec] sm:$0xff]  ;;  %v15529_v15 = vld [vmem:[#allocation71_spill] sm:$0xff] }
 0x6d1   : > { %v5516_v6 = vadd.f32 %v5500_v19, %v5461_v2  ;;  %v11627_v16 = vadd.f32 %v4337_v50, %v4305_v36  ;;  %v11629_v55 = vadd.f32 %v4338_v41, %v4306_v58  ;;  %v5730_v39 = vld [vmem:[#allocation2 + $0x1e6] sm:$0xff]  ;;  %v5640_v12 = vmul.f32 %v15529_v15, %v5422_v40  ;;  %v5731_v32 = vld [vmem:[#allocation2 + $0x1ee] sm:$0xff] }
 0x6d2   : > { %v5554_v7 = vadd.f32 %v5538_v60, %v5515_v38  ;;  %v5641_v50 = vmul.f32 %v15529_v15, %v5624_v56  ;;  %v15531_v2 = vld [vmem:[#allocation73_spill] sm:$0xff]  ;;  %v15532_v36 = vld [vmem:[#allocation76_spill] sm:$0xff]  ;;  %v15539_v15 = vld [vmem:[#allocation18_spill] sm:$0xff] }
 0x6d3   : > { %15526 = vst [vmem:[#allocation36_spill] sm:$0xff] %v11627_v16  ;;  %15527 = vst [vmem:[#allocation37_spill] sm:$0xff] %v11629_v55  ;;  %v5555_v42 = vadd.f32 %v5539_v0, %v5516_v6  ;;  %v8157_v35 = vpack.c.bf16 %v11629_v55, %v11627_v16  ;;  %v5698_v19 = vmul.f32 %v15531_v2, %v5675_v37  ;;  %v11642_v38 = vld [vmem:[#allocation2 + $0x90] sm:$0xff]  ;;  %v8494_v0 = vld [vmem:[#allocation2 + $0x87] sm:$0xff] }
 0x6d4   : > { %v5609_v24 = vadd.f32 %v5593_v52, %v5554_v7  ;;  %v5699_v5 = vmul.f32 %v15531_v2, %v5676_v26  ;;  %v5753_v58 = vmul.f32 %v15532_v36, %v5730_v39  ;;  %15533 = vst [vmem:[#allocation63_spill] sm:$0xff] %v11642_v38  ;;  %v5754_v46 = vmul.f32 %v15532_v36, %v5731_v32  ;;  %v5840_v40 = vld [vmem:[#allocation2 + $0x1ea] sm:$0xff]  ;;  %v5841_v6 = vld [vmem:[#allocation2 + $0x1f2] sm:$0xff]  ;;  %v15534_v7 = vld [vmem:[#allocation31_spill] sm:$0xff] }
 0x6d5   : > { %v5610_v20 = vadd.f32 %v5594_v8, %v5555_v42  ;;  %8158 = vmatpush3.bf16.msra.mxu0 %v8157_v35  ;;  %v2530_v29 = vmul.f32 %v8494_v0, %v15534_v7  ;;  %v15535_v52 = vld [vmem:[#allocation21_spill] sm:$0xff]  ;;  %v11651_v8 = vld [vmem:[%s14852_s7 + $0x1a] ss:$0 sm:$0xff]  ;;  %v15537_v37 = vld [vmem:[#allocation47_spill] sm:$0xff] }
 0x6d6   : > { %v5656_v41 = vadd.f32 %v5640_v12, %v5609_v24  ;;  %v2531_v56 = vmul.f32 %v15534_v7, %v15535_v52  ;;  %15536 = vst [vmem:[#allocation23_spill] sm:$0xff] %v11651_v8  ;;  %v5808_v39 = vmul.f32 %v11651_v8, %v15537_v37  ;;  %v15538_v35 = vld [vmem:[#allocation50_spill] sm:$0xff]  ;;  %v2592_v12 = vmul.f32 %v15539_v15, %v11637_v27  ;;  %v15541_v0 = vld [vmem:[#allocation81_spill] sm:$0xff]  ;;  %v15543_v16 = vld [vmem:[#allocation16_spill] sm:$0xff] }
 0x6d7   : > { %v5657_v60 = vadd.f32 %v5641_v50, %v5610_v20  ;;  %v5809_v24 = vmul.f32 %v11651_v8, %v15538_v35  ;;  %v5894_v20 = vld [vmem:[#allocation2 + $0x1f4] sm:$0xff]  ;;  %v5863_v52 = vmul.f32 %v15541_v0, %v5840_v40  ;;  %v5864_v37 = vmul.f32 %v15541_v0, %v5841_v6  ;;  %v5945_v43 = vld [vmem:[#allocation2 + $0x224] sm:$0xff]  ;;  %v11667_v27 = vld [vmem:[#allocation2 + $0x22c] sm:$0xff] }
 0x6d8   : > { %v5714_v42 = vadd.f32 %v5698_v19, %v5656_v41  ;;  %v15540_v50 = vld [vmem:[#allocation49_spill] sm:$0xff]  ;;  %v2593_v19 = vmul.f32 %v15539_v15, %v11642_v38  ;;  %v15545_v61 = vld [vmem:[#allocation84_spill] sm:$0xff]  ;;  %v11676_v40 = vld [vmem:[%s14852_s7 + $0x3] ss:$0 sm:$0xff] }
 0x6d9   : > { %v5715_v32 = vadd.f32 %v5699_v5, %v5657_v60  ;;  %v2552_v2 = vadd.f32 %v15540_v50, %v2530_v29  ;;  %v2553_v41 = vadd.f32 %v15540_v50, %v2531_v56  ;;  %v15542_v55 = vld [vmem:[#allocation89_spill] sm:$0xff]  ;;  %v15544_v29 = vld [vmem:[#allocation91_spill] sm:$0xff]  ;;  %v5910_v38 = vmul.f32 %v15545_v61, %v5676_v26  ;;  %v15552_v4 = vld [vmem:[#allocation52_spill] sm:$0xff] }
 0x6da   : > { %v5769_v36 = vadd.f32 %v5753_v58, %v5714_v42  ;;  %v2648_v35 = vmul.f32 %v15543_v16, %v15542_v55  ;;  %v2649_v56 = vmul.f32 %v15543_v16, %v15544_v29  ;;  %v5911_v58 = vmul.f32 %v15545_v61, %v5894_v20  ;;  %v15546_v55 = vld [vmem:[#allocation94_spill] sm:$0xff]  ;;  %v6000_v42 = vld [vmem:[#allocation2 + $0x226] sm:$0xff] }
 0x6db   : > { %v5770_v53 = vadd.f32 %v5754_v46, %v5715_v32  ;;  %v2608_v5 = vadd.f32 %v2592_v12, %v2552_v2  ;;  %v2609_v60 = vadd.f32 %v2593_v19, %v2553_v41  ;;  %v2704_v46 = vmul.f32 %v11676_v40, %v15546_v55  ;;  %v6001_v12 = vld [vmem:[#allocation2 + $0x22e] sm:$0xff]  ;;  %v15547_v41 = vld [vmem:[#allocation95_spill] sm:$0xff]  ;;  %v15549_v29 = vld [vmem:[#allocation98_spill] sm:$0xff] }
 0x6dc   : > { %v5824_v51 = vadd.f32 %v5808_v39, %v5769_v36  ;;  %v2705_v39 = vmul.f32 %v11676_v40, %v15547_v41  ;;  %v5968_v26 = vmul.f32 %v11173_v31, %v5945_v43  ;;  %v5969_v61 = vmul.f32 %v11173_v31, %v11667_v27  ;;  %v11685_v20 = vld [vmem:[#allocation2 + $0xa8] sm:$0xff]  ;;  %v11690_v36 = vld [vmem:[%s14852_s7 + $0x4] ss:$0 sm:$0xff] }
 0x6dd   : > { %v5825_v6 = vadd.f32 %v5809_v24, %v5770_v53  ;;  %v2664_v32 = vadd.f32 %v2648_v35, %v2608_v5  ;;  %v2665_v2 = vadd.f32 %v2649_v56, %v2609_v60  ;;  %v2760_v53 = vmul.f32 %v11690_v36, %v11685_v20  ;;  %v11694_v5 = vld [vmem:[#allocation2 + $0xb0] sm:$0xff]  ;;  %v11698_v43 = vld [vmem:[#allocation2 + $0xc7] sm:$0xff] }
 0x6de   : > { %v5879_v19 = vadd.f32 %v5863_v52, %v5824_v51  ;;  %v2761_v51 = vmul.f32 %v11694_v5, %v11690_v36  ;;  %15548 = vst [vmem:[#allocation38_spill] sm:$0xff] %v11698_v43  ;;  %v6023_v52 = vmul.f32 %v15512_v9, %v6000_v42  ;;  %v6024_v60 = vmul.f32 %v15512_v9, %v6001_v12  ;;  %v11704_v55 = vld [vmem:[#allocation2 + $0xcf] sm:$0xff]  ;;  %v15551_v41 = vld [vmem:[#allocation99_spill] sm:$0xff] }
 0x6df   : > { %v5880_v24 = vadd.f32 %v5864_v37, %v5825_v6  ;;  %v2720_v0 = vadd.f32 %v2704_v46, %v2664_v32  ;;  %v2721_v35 = vadd.f32 %v2705_v39, %v2665_v2  ;;  %v2816_v56 = vmul.f32 %v10974_v21, %v15549_v29  ;;  %15550 = vst [vmem:[#allocation39_spill] sm:$0xff] %v11704_v55  ;;  %v6110_v46 = vld [vmem:[#allocation2 + $0x22a] sm:$0xff]  ;;  %v6111_v6 = vld [vmem:[#allocation2 + $0x232] sm:$0xff] }
 0x6e0   : > { %v5926_v31 = vadd.f32 %v5910_v38, %v5879_v19  ;;  %v2817_v39 = vmul.f32 %v10974_v21, %v15551_v41  ;;  %v6078_v38 = vmul.f32 %v15516_v62, %v15552_v4  ;;  %v15553_v42 = vld [vmem:[#allocation53_spill] sm:$0xff]  ;;  %v2872_v12 = vmul.f32 %v10984_v54, %v11698_v43  ;;  %v3018_v21 = vld [vmem:[#allocation2 + $0x24] sm:$0xff] }
 0x6e1   : > { %v5927_v37 = vadd.f32 %v5911_v58, %v5880_v24  ;;  %v2776_v32 = vadd.f32 %v2760_v53, %v2720_v0  ;;  %v2777_v2 = vadd.f32 %v2761_v51, %v2721_v35  ;;  %v6079_v9 = vmul.f32 %v15516_v62, %v15553_v42  ;;  %v11716_v24 = vld [vmem:[#allocation2 + $0xc9] sm:$0xff]  ;;  %v11718_v0 = vld [vmem:[#allocation2 + $0xd1] sm:$0xff] }
 0x6e2   : > { %v5984_v3 = vadd.f32 %v5968_v26, %v5926_v31  ;;  %v2873_v53 = vmul.f32 %v10984_v54, %v11704_v55  ;;  %15554 = vst [vmem:[#allocation77_spill] sm:$0xff] %v11716_v24  ;;  %15555 = vst [vmem:[#allocation64_spill] sm:$0xff] %v11718_v0  ;;  %v6133_v4 = vmul.f32 %v15520_v18, %v6110_v46  ;;  %v8500_v62 = vld [vmem:[#allocation2 + $0xc8] sm:$0xff] }
 0x6e3   : > { %v5985_v19 = vadd.f32 %v5969_v61, %v5927_v37  ;;  %v2832_v29 = vadd.f32 %v2816_v56, %v2776_v32  ;;  %v2833_v58 = vadd.f32 %v2817_v39, %v2777_v2  ;;  %v6134_v35 = vmul.f32 %v15520_v18, %v6111_v6  ;;  %v11725_v61 = vld [vmem:[%s14852_s7 + $0x7] ss:$0 sm:$0xff]  ;;  %v3019_v31 = vld [vmem:[#allocation2 + $0x2c] sm:$0xff]  ;;  %v6164_v56 = vld [vmem:[#allocation2 + $0x234] sm:$0xff] }
 0x6e4   : > { %v6039_v26 = vadd.f32 %v6023_v52, %v5984_v3  ;;  %v2928_v51 = vmul.f32 %v11725_v61, %v8500_v62  ;;  %v8502_v2 = vld [vmem:[#allocation2 + $0xd0] sm:$0xff]  ;;  %v3074_v52 = vld [vmem:[#allocation2 + $0x26] sm:$0xff]  ;;  %v2984_v18 = vmul.f32 %v11005_v25, %v11716_v24  ;;  %v2985_v6 = vmul.f32 %v11005_v25, %v11718_v0 }
 0x6e5   : > { %v6040_v54 = vadd.f32 %v6024_v60, %v5985_v19  ;;  %v2888_v37 = vadd.f32 %v2872_v12, %v2832_v29  ;;  %v2889_v32 = vadd.f32 %v2873_v53, %v2833_v58  ;;  %v2929_v3 = vmul.f32 %v8502_v2, %v11725_v61  ;;  %v3075_v39 = vld [vmem:[#allocation2 + $0x2e] sm:$0xff]  ;;  %v3824_v24 = vld [vmem:[#allocation2 + $0xe4] sm:$0xff] }
 0x6e6   : > { %v6094_v46 = vadd.f32 %v6078_v38, %v6039_v26  ;;  %v3042_v41 = vmul.f32 %v11467_v11, %v3018_v21  ;;  %v3043_v12 = vmul.f32 %v11467_v11, %v3019_v31  ;;  %v6180_v29 = vmul.f32 %v15523_v33, %v11667_v27  ;;  %v3186_v21 = vld [vmem:[#allocation2 + $0x2a] sm:$0xff]  ;;  %v3187_v0 = vld [vmem:[#allocation2 + $0x32] sm:$0xff] }
 0x6e7   : > { %v6095_v42 = vadd.f32 %v6079_v9, %v6040_v54  ;;  %v2944_v62 = vadd.f32 %v2928_v51, %v2888_v37  ;;  %v2945_v60 = vadd.f32 %v2929_v3, %v2889_v32  ;;  %v6181_v38 = vmul.f32 %v15523_v33, %v6164_v56  ;;  %v3241_v51 = vld [vmem:[#allocation2 + $0x34] sm:$0xff]  ;;  %v3293_v32 = vld [vmem:[#allocation2 + $0x64] sm:$0xff]  ;;  %v3294_v27 = vld [vmem:[#allocation2 + $0x6c] sm:$0xff] }
 0x6e8   : > { %v6149_v19 = vadd.f32 %v6133_v4, %v6094_v46  ;;  %v3098_v58 = vmul.f32 %v11484_v23, %v3074_v52  ;;  %v3099_v25 = vmul.f32 %v11484_v23, %v3075_v39  ;;  %v3349_v3 = vld [vmem:[#allocation2 + $0x66] sm:$0xff]  ;;  %v3210_v33 = vmul.f32 %v11516_v59, %v3186_v21  ;;  %v3350_v56 = vld [vmem:[#allocation2 + $0x6e] sm:$0xff] }
 0x6e9   : > { %v6150_v53 = vadd.f32 %v6134_v35, %v6095_v42  ;;  %v3000_v26 = vadd.f32 %v2984_v18, %v2944_v62  ;;  %v3001_v2 = vadd.f32 %v2985_v6, %v2945_v60  ;;  %v3211_v35 = vmul.f32 %v11516_v59, %v3187_v0  ;;  %v3461_v52 = vld [vmem:[#allocation2 + $0x6a] sm:$0xff]  ;;  %v3462_v42 = vld [vmem:[#allocation2 + $0x72] sm:$0xff] }
 0x6ea   : > { %v11740_v9 = vadd.f32 %v6180_v29, %v6149_v19  ;;  %v3258_v39 = vmul.f32 %v11531_v13, %v3019_v31  ;;  %v3516_v62 = vld [vmem:[#allocation2 + $0x74] sm:$0xff]  ;;  %v3259_v60 = vmul.f32 %v11531_v13, %v3241_v51  ;;  %v3318_v19 = vmul.f32 %v11544_v48, %v3294_v27  ;;  %v3566_v29 = vld [vmem:[#allocation2 + $0xac] sm:$0xff] }
 0x6eb   : > { %v11742_v54 = vadd.f32 %v6181_v38, %v6150_v53  ;;  %v3058_v4 = vadd.f32 %v3042_v41, %v3000_v26  ;;  %v3059_v37 = vadd.f32 %v3043_v12, %v3001_v2  ;;  %v3565_v41 = vld [vmem:[#allocation2 + $0xa4] sm:$0xff]  ;;  %v3317_v12 = vmul.f32 %v11544_v48, %v3293_v32  ;;  %v15558_v53 = vld [vmem:[#allocation33_spill] sm:$0xff] }
 0x6ec   : > { %15556 = vst [vmem:[#allocation20_spill] sm:$0xff] %v11740_v9  ;;  %v3373_v0 = vmul.f32 %v11555_v14, %v3349_v3  ;;  %v3621_v38 = vld [vmem:[#allocation2 + $0xa6] sm:$0xff]  ;;  %v3374_v31 = vmul.f32 %v11555_v14, %v3350_v56  ;;  %v11757_v2 = vmul.f32 %v11582_v45, %v3461_v52  ;;  %v11760_v51 = vmul.f32 %v11582_v45, %v3462_v42  ;;  %v11771_v32 = vld [vmem:[%s14852_s7 + $0x13] ss:$0 sm:$0xff] }
 0x6ed   : > { %15557 = vst [vmem:[#allocation44_spill] sm:$0xff] %v11742_v54  ;;  %v8159_v46 = vpack.c.bf16 %v11742_v54, %v11740_v9  ;;  %v3114_v18 = vadd.f32 %v3098_v58, %v3058_v4  ;;  %v3115_v6 = vadd.f32 %v3099_v25, %v3059_v37  ;;  %v3622_v25 = vld [vmem:[#allocation2 + $0xae] sm:$0xff]  ;;  %v11763_v4 = vmul.f32 %v11598_v10, %v3294_v27 }
 0x6ee   : > { %v3717_v21 = vld [vmem:[#allocation2 + $0xaa] sm:$0xff]  ;;  %v11766_v37 = vmul.f32 %v11598_v10, %v3516_v62  ;;  %v11774_v3 = vmul.f32 %v11771_v32, %v3565_v41  ;;  %v11782_v27 = vld [vmem:[%s14852_s7 + $0x14] ss:$0 sm:$0xff] }
 0x6ef   : > { %8160 = vmatprep.subr.bf16.mxu0 %v8159_v46  ;;  %v3170_v26 = vadd.f32 %v15558_v53, %v3114_v18  ;;  %v3171_v58 = vadd.f32 %v15558_v53, %v3115_v6  ;;  %v4389_v56 = vld [vmem:[#allocation2 + $0x1a7] sm:$0xff]  ;;  %v4390_v52 = vld [vmem:[#allocation2 + $0x1af] sm:$0xff]  ;;  %v11777_v6 = vmul.f32 %v11771_v32, %v3566_v29  ;;  %15559 = vst [vmem:[#allocation78_spill] sm:$0xff] %v11782_v27 }
 0x6f0   : > { %v11785_v42 = vmul.f32 %v11782_v27, %v3621_v38  ;;  %v3718_v62 = vld [vmem:[#allocation2 + $0xb2] sm:$0xff]  ;;  %v4444_v53 = vld [vmem:[#allocation2 + $0x1a8] sm:$0xff]  ;;  %v11788_v41 = vmul.f32 %v11782_v27, %v3622_v25  ;;  %v4412_v55 = vmul.f32 %v15534_v7, %v4389_v56 }
 0x6f1   : > { %v3226_v46 = vadd.f32 %v3210_v33, %v3170_v26  ;;  %v3227_v18 = vadd.f32 %v3211_v35, %v3171_v58  ;;  %v4445_v54 = vld [vmem:[#allocation2 + $0x1b0] sm:$0xff]  ;;  %v11792_v33 = vmul.f32 %v11685_v20, %v11621_v28  ;;  %v11796_v35 = vmul.f32 %v11694_v5, %v11621_v28 }
 0x6f2   : > { %v11801_v26 = vld [vmem:[%s14852_s7 + $0x16] ss:$0 sm:$0xff]  ;;  %v4413_v20 = vmul.f32 %v15534_v7, %v4390_v52  ;;  %v4499_v43 = vld [vmem:[#allocation2 + $0x1a9] sm:$0xff]  ;;  %v11814_v28 = vld [vmem:[%s14852_s7 + $0x17] ss:$0 sm:$0xff] }
 0x6f3   : > { %15560 = vst [vmem:[#allocation40_spill] sm:$0xff] %v11801_v26  ;;  %v11804_v38 = vmul.f32 %v11801_v26, %v3717_v21  ;;  %v3772_v58 = vld [vmem:[#allocation2 + $0xb4] sm:$0xff]  ;;  %v3274_v9 = vadd.f32 %v3258_v39, %v3226_v46  ;;  %v3275_v25 = vadd.f32 %v3259_v60, %v3227_v18  ;;  %v11809_v5 = vmul.f32 %v11801_v26, %v3718_v62  ;;  %v3825_v7 = vld [vmem:[#allocation2 + $0xec] sm:$0xff] }
 0x6f4   : > { %v4500_v27 = vld [vmem:[#allocation2 + $0x1b1] sm:$0xff]  ;;  %v11817_v21 = vmul.f32 %v11814_v28, %v3566_v29  ;;  %v4467_v39 = vmul.f32 %v15539_v15, %v4444_v53  ;;  %v4468_v60 = vmul.f32 %v15539_v15, %v4445_v54  ;;  %v3880_v52 = vld [vmem:[#allocation2 + $0xe6] sm:$0xff]  ;;  %v4428_v18 = vadd.f32 %v15540_v50, %v4412_v55 }
 0x6f5   : > { %v3333_v56 = vadd.f32 %v3317_v12, %v3274_v9  ;;  %v3334_v46 = vadd.f32 %v3318_v19, %v3275_v25  ;;  %v4429_v62 = vadd.f32 %v15540_v50, %v4413_v20  ;;  %v11824_v26 = vmul.f32 %v11814_v28, %v3772_v58  ;;  %v11829_v29 = vld [vmem:[%s14852_s7 + $0x18] ss:$0 sm:$0xff]  ;;  %v3881_v55 = vld [vmem:[#allocation2 + $0xee] sm:$0xff]  ;;  %v11844_v20 = vld [vmem:[%s14852_s7 + $0x19] ss:$0 sm:$0xff] }
 0x6f6   : > { %v11832_v53 = vmul.f32 %v11829_v29, %v3824_v24  ;;  %v4522_v15 = vmul.f32 %v15543_v16, %v4499_v43  ;;  %v4523_v9 = vmul.f32 %v15543_v16, %v4500_v27  ;;  %v11836_v19 = vld [vmem:[#allocation2 + $0xe8] sm:$0xff]  ;;  %v4483_v50 = vadd.f32 %v4467_v39, %v4428_v18  ;;  %15562 = vst [vmem:[#allocation79_spill] sm:$0xff] %v11844_v20  ;;  %v11855_v39 = vld [vmem:[#allocation2 + $0xf0] sm:$0xff] }
 0x6f7   : > { %v3389_v54 = vadd.f32 %v3373_v0, %v3333_v56  ;;  %v3390_v12 = vadd.f32 %v3374_v31, %v3334_v46  ;;  %15561 = vst [vmem:[#allocation41_spill] sm:$0xff] %v11836_v19  ;;  %v4484_v58 = vadd.f32 %v4468_v60, %v4429_v62  ;;  %v11839_v25 = vmul.f32 %v11829_v29, %v3825_v7  ;;  %v15563_v0 = vld [vmem:[#allocation42_spill] sm:$0xff]  ;;  %v3992_v60 = vld [vmem:[#allocation2 + $0xea] sm:$0xff] }
 0x6f8   : > { %v11847_v24 = vmul.f32 %v11844_v20, %v3880_v52  ;;  %v4577_v16 = vmul.f32 %v11676_v40, %v11411_v1  ;;  %v4578_v43 = vmul.f32 %v11676_v40, %v11421_v57  ;;  %15564 = vst [vmem:[#allocation17_spill] sm:$0xff] %v11855_v39  ;;  %v4538_v56 = vadd.f32 %v4522_v15, %v4483_v50  ;;  %v15565_v1 = vld [vmem:[#allocation32_spill] sm:$0xff] }
 0x6f9   : > { %v3445_v31 = vadd.f32 %v15563_v0, %v3389_v54  ;;  %v3446_v27 = vadd.f32 %v15563_v0, %v3390_v12  ;;  %v4539_v46 = vadd.f32 %v4523_v9, %v4484_v58  ;;  %v11858_v18 = vmul.f32 %v11844_v20, %v3881_v55  ;;  %v3993_v0 = vld [vmem:[#allocation2 + $0xf2] sm:$0xff]  ;;  %v11870_v50 = vld [vmem:[#allocation2 + $0x1e7] sm:$0xff]  ;;  %v11881_v20 = vld [vmem:[%s14852_s7 + $0x1b] ss:$0 sm:$0xff] }
 0x6fa   : > { %v11862_v52 = vmul.f32 %v11651_v8, %v11836_v19  ;;  %v4632_v62 = vmul.f32 %v11690_v36, %v15565_v1  ;;  %v4633_v57 = vmul.f32 %v11690_v36, %v11433_v47  ;;  %v4593_v15 = vadd.f32 %v4577_v16, %v4538_v56  ;;  %15566 = vst [vmem:[#allocation65_spill] sm:$0xff] %v11870_v50  ;;  %v11872_v55 = vld [vmem:[#allocation2 + $0x1ef] sm:$0xff] }
 0x6fb   : > { %v3501_v54 = vadd.f32 %v11757_v2, %v3445_v31  ;;  %v3502_v12 = vadd.f32 %v11760_v51, %v3446_v27  ;;  %v4594_v9 = vadd.f32 %v4578_v43, %v4539_v46  ;;  %15567 = vst [vmem:[#allocation80_spill] sm:$0xff] %v11872_v55  ;;  %v11876_v58 = vmul.f32 %v11651_v8, %v11855_v39  ;;  %v11889_v51 = vld [vmem:[%s14852_s7 + $0x5] ss:$0 sm:$0xff]  ;;  %v4047_v56 = vld [vmem:[#allocation2 + $0xf4] sm:$0xff] }
 0x6fc   : > { %v11884_v2 = vmul.f32 %v11881_v20, %v3992_v60  ;;  %v4687_v16 = vmul.f32 %v11889_v51, %v11435_v22  ;;  %v4688_v43 = vmul.f32 %v11889_v51, %v11445_v30  ;;  %v4648_v46 = vadd.f32 %v4632_v62, %v4593_v15  ;;  %v11897_v60 = vld [vmem:[#allocation2 + $0x1e8] sm:$0xff]  ;;  %v11899_v39 = vld [vmem:[#allocation2 + $0x1f0] sm:$0xff]  ;;  %v11907_v22 = vld [vmem:[%s14852_s7 + $0x1c] ss:$0 sm:$0xff] }
 0x6fd   : > { %v3549_v31 = vadd.f32 %v11763_v4, %v3501_v54  ;;  %v3550_v27 = vadd.f32 %v11766_v37, %v3502_v12  ;;  %v4649_v8 = vadd.f32 %v4633_v57, %v4594_v9  ;;  %15568 = vst [vmem:[#allocation66_spill] sm:$0xff] %v11897_v60  ;;  %15569 = vst [vmem:[#allocation82_spill] sm:$0xff] %v11899_v39  ;;  %v11915_v4 = vld [vmem:[%s14852_s7 + $0x6] ss:$0 sm:$0xff]  ;;  %v11923_v15 = vld [vmem:[#allocation2 + $0x1e9] sm:$0xff] }
 0x6fe   : > { %v11902_v19 = vmul.f32 %v11881_v20, %v3993_v0  ;;  %v11910_v30 = vmul.f32 %v11907_v22, %v3825_v7  ;;  %v4742_v37 = vmul.f32 %v11915_v4, %v11870_v50  ;;  %v4743_v62 = vmul.f32 %v11915_v4, %v11872_v55  ;;  %15570 = vst [vmem:[#allocation27_spill] sm:$0xff] %v11923_v15  ;;  %v11925_v7 = vld [vmem:[#allocation2 + $0x1f1] sm:$0xff]  ;;  %v11933_v50 = vld [vmem:[%s14852_s7 + $0x1d] ss:$0 sm:$0xff] }
 0x6ff   : > { %v3605_v57 = vadd.f32 %v11774_v3, %v3549_v31  ;;  %v3606_v54 = vadd.f32 %v11777_v6, %v3550_v27  ;;  %v4703_v12 = vadd.f32 %v4687_v16, %v4648_v46  ;;  %v4704_v0 = vadd.f32 %v4688_v43, %v4649_v8  ;;  %15571 = vst [vmem:[#allocation19_spill] sm:$0xff] %v11925_v7  ;;  %v11945_v27 = vld [vmem:[#allocation2 + $0x144] sm:$0xff]  ;;  %v11956_v46 = vld [vmem:[%s14852_s7 + $0x1e] ss:$0 sm:$0xff] }
 0x700   : > { %v11928_v9 = vmul.f32 %v11907_v22, %v4047_v56  ;;  %v11937_v55 = vmul.f32 %v11933_v50, %v11447_v63  ;;  %v4797_v3 = vmul.f32 %v11725_v61, %v11897_v60  ;;  %v4798_v8 = vmul.f32 %v11725_v61, %v11899_v39  ;;  %15572 = vst [vmem:[#allocation83_spill] sm:$0xff] %v11945_v27  ;;  %v11947_v56 = vld [vmem:[#allocation2 + $0x14c] sm:$0xff] }
 0x701   : > { %v3661_v6 = vadd.f32 %v11785_v42, %v3605_v57  ;;  %v3662_v16 = vadd.f32 %v11788_v41, %v3606_v54  ;;  %v4758_v43 = vadd.f32 %v4742_v37, %v4703_v12  ;;  %v4759_v31 = vadd.f32 %v4743_v62, %v4704_v0  ;;  %15573 = vst [vmem:[#allocation28_spill] sm:$0xff] %v11947_v56  ;;  %v11965_v41 = vld [vmem:[%s14852_s7 + $0x8] ss:$0 sm:$0xff] }
 0x702   : > { %v11951_v63 = vmul.f32 %v11933_v50, %v11457_v44  ;;  %15574 = vst [vmem:[#allocation85_spill] sm:$0xff] %v11956_v46  ;;  %v11960_v42 = vmul.f32 %v11956_v46, %v11459_v34  ;;  %v4852_v37 = vmul.f32 %v11965_v41, %v11923_v15  ;;  %v4853_v62 = vmul.f32 %v11965_v41, %v11925_v7  ;;  %v11973_v39 = vld [vmem:[#allocation2 + $0x146] sm:$0xff]  ;;  %v11975_v34 = vld [vmem:[#allocation2 + $0x14e] sm:$0xff]  ;;  %v11984_v15 = vld [vmem:[%s14852_s7 + $0x1f] ss:$0 sm:$0xff] }
 0x703   : > { %v3701_v57 = vadd.f32 %v11792_v33, %v3661_v6  ;;  %v3702_v54 = vadd.f32 %v11796_v35, %v3662_v16  ;;  %v4813_v12 = vadd.f32 %v4797_v3, %v4758_v43  ;;  %v4814_v0 = vadd.f32 %v4798_v8, %v4759_v31  ;;  %15575 = vst [vmem:[#allocation22_spill] sm:$0xff] %v11973_v39  ;;  %v11996_v43 = vld [vmem:[#allocation2 + $0x148] sm:$0xff]  ;;  %v11998_v31 = vld [vmem:[#allocation2 + $0x150] sm:$0xff]  ;;  %v15580_v7 = vld [vmem:[#allocation54_spill] sm:$0xff] }
 0x704   : > { %15576 = vst [vmem:[#allocation45_spill] sm:$0xff] %v11975_v34  ;;  %v11979_v60 = vmul.f32 %v11956_v46, %v11474_v49  ;;  %15577 = vst [vmem:[#allocation86_spill] sm:$0xff] %v11984_v15  ;;  %v11988_v33 = vmul.f32 %v11984_v15, %v11476_v17  ;;  %v4909_v35 = vmul.f32 %v11467_v11, %v11945_v27  ;;  %v12007_v27 = vld [vmem:[%s14852_s7 + $0x20] ss:$0 sm:$0xff]  ;;  %v15588_v46 = vld [vmem:[#allocation34_spill] sm:$0xff] }
 0x705   : > { %v4910_v3 = vmul.f32 %v11467_v11, %v11947_v56  ;;  %v3757_v8 = vadd.f32 %v11804_v38, %v3701_v57  ;;  %v3758_v49 = vadd.f32 %v11809_v5, %v3702_v54  ;;  %v4868_v6 = vadd.f32 %v4852_v37, %v4813_v12  ;;  %15578 = vst [vmem:[#allocation87_spill] sm:$0xff] %v11996_v43  ;;  %v15582_v11 = vld [vmem:[#allocation72_spill] sm:$0xff] }
 0x706   : > { %v4869_v16 = vadd.f32 %v4853_v62, %v4814_v0  ;;  %15579 = vst [vmem:[#allocation25_spill] sm:$0xff] %v11998_v31  ;;  %v12002_v17 = vmul.f32 %v11984_v15, %v15580_v7  ;;  %15581 = vst [vmem:[#allocation24_spill] sm:$0xff] %v12007_v27  ;;  %v12011_v38 = vmul.f32 %v12007_v27, %v15582_v11  ;;  %v12019_v12 = vld [vmem:[#allocation2 + $0x14a] sm:$0xff]  ;;  %v12021_v0 = vld [vmem:[#allocation2 + $0x152] sm:$0xff] }
 0x707   : > { %v4964_v5 = vmul.f32 %v11484_v23, %v11973_v39  ;;  %v4965_v37 = vmul.f32 %v11484_v23, %v11975_v34  ;;  %v3805_v62 = vadd.f32 %v11817_v21, %v3757_v8  ;;  %v3806_v7 = vadd.f32 %v11824_v26, %v3758_v49  ;;  %15583 = vst [vmem:[#allocation90_spill] sm:$0xff] %v12019_v12  ;;  %v15585_v15 = vld [vmem:[#allocation55_spill] sm:$0xff]  ;;  %v15587_v26 = vld [vmem:[#allocation48_spill] sm:$0xff] }
 0x708   : > { %v4925_v57 = vadd.f32 %v4909_v35, %v4868_v6  ;;  %v4926_v54 = vadd.f32 %v4910_v3, %v4869_v16  ;;  %15584 = vst [vmem:[#allocation92_spill] sm:$0xff] %v12021_v0  ;;  %v12025_v11 = vmul.f32 %v12007_v27, %v15585_v15  ;;  %v12030_v39 = vld [vmem:[%s14852_s7 + $0x21] ss:$0 sm:$0xff]  ;;  %v5019_v21 = vmul.f32 %v15587_v26, %v11996_v43  ;;  %v12040_v3 = vld [vmem:[#allocation2 + $0x154] sm:$0xff]  ;;  %v5156_v16 = vld [vmem:[#allocation2 + $0x184] sm:$0xff] }
 0x709   : > { %15586 = vst [vmem:[#allocation29_spill] sm:$0xff] %v12030_v39  ;;  %v12034_v23 = vmul.f32 %v12030_v39, %v11457_v44  ;;  %v5020_v35 = vmul.f32 %v15587_v26, %v11998_v31  ;;  %v3864_v15 = vadd.f32 %v11832_v53, %v3805_v62  ;;  %v3865_v8 = vadd.f32 %v11839_v25, %v3806_v7  ;;  %v5157_v34 = vld [vmem:[#allocation2 + $0x18c] sm:$0xff] }
 0x70a   : > { %v4980_v49 = vadd.f32 %v4964_v5, %v4925_v57  ;;  %v4981_v6 = vadd.f32 %v4965_v37, %v4926_v54  ;;  %v5211_v27 = vld [vmem:[#allocation2 + $0x186] sm:$0xff]  ;;  %v12046_v44 = vmul.f32 %v12030_v39, %v15588_v46  ;;  %v5074_v43 = vmul.f32 %v11516_v59, %v12019_v12  ;;  %v5212_v62 = vld [vmem:[#allocation2 + $0x18e] sm:$0xff] }
 0x70b   : > { %v5075_v26 = vmul.f32 %v11516_v59, %v12021_v0  ;;  %v5121_v53 = vmul.f32 %v11531_v13, %v11947_v56  ;;  %v3920_v25 = vadd.f32 %v11847_v24, %v3864_v15  ;;  %v3921_v5 = vadd.f32 %v11858_v18, %v3865_v8  ;;  %v5266_v57 = vld [vmem:[#allocation2 + $0x188] sm:$0xff]  ;;  %v5267_v54 = vld [vmem:[#allocation2 + $0x190] sm:$0xff] }
 0x70c   : > { %v5035_v37 = vadd.f32 %v5019_v21, %v4980_v49  ;;  %v5036_v7 = vadd.f32 %v5020_v35, %v4981_v6  ;;  %v5321_v46 = vld [vmem:[#allocation2 + $0x18a] sm:$0xff]  ;;  %v5122_v31 = vmul.f32 %v11531_v13, %v12040_v3  ;;  %v5179_v12 = vmul.f32 %v11544_v48, %v5156_v16  ;;  %v5322_v21 = vld [vmem:[#allocation2 + $0x192] sm:$0xff] }
 0x70d   : > { %v5180_v59 = vmul.f32 %v11544_v48, %v5157_v34  ;;  %v5234_v0 = vmul.f32 %v11555_v14, %v5211_v27  ;;  %v3976_v56 = vadd.f32 %v11862_v52, %v3920_v25  ;;  %v3977_v24 = vadd.f32 %v11876_v58, %v3921_v5  ;;  %v5374_v35 = vld [vmem:[#allocation2 + $0x194] sm:$0xff]  ;;  %v5423_v8 = vld [vmem:[#allocation2 + $0x1c4] sm:$0xff]  ;;  %v12069_v58 = vld [vmem:[#allocation2 + $0x1cc] sm:$0xff] }
 0x70e   : > { %v5090_v15 = vadd.f32 %v5074_v43, %v5035_v37  ;;  %v5091_v18 = vadd.f32 %v5075_v26, %v5036_v7  ;;  %v5235_v49 = vmul.f32 %v11555_v14, %v5212_v62  ;;  %v15589_v6 = vld [vmem:[#allocation74_spill] sm:$0xff]  ;;  %v5344_v16 = vmul.f32 %v11582_v45, %v5321_v46  ;;  %v5478_v43 = vld [vmem:[#allocation2 + $0x1c6] sm:$0xff]  ;;  %v5479_v26 = vld [vmem:[#allocation2 + $0x1ce] sm:$0xff] }
 0x70f   : > { %v5289_v39 = vmul.f32 %v15589_v6, %v5266_v57  ;;  %v5290_v13 = vmul.f32 %v15589_v6, %v5267_v54  ;;  %v4032_v48 = vadd.f32 %v11884_v2, %v3976_v56  ;;  %v4033_v27 = vadd.f32 %v11902_v19, %v3977_v24  ;;  %v2510_v57 = vld [vmem:[#allocation2 + $0xaf] sm:$0xff]  ;;  %v15590_v46 = vld [vmem:[#allocation78_spill] sm:$0xff]  ;;  %v12095_v6 = vld [vmem:[%s14852_s7] ss:$0 sm:$0xff] }
 0x710   : > { %v5137_v52 = vadd.f32 %v5121_v53, %v5090_v15  ;;  %v5138_v25 = vadd.f32 %v5122_v31, %v5091_v18  ;;  %v5345_v5 = vmul.f32 %v11582_v45, %v5322_v21  ;;  %v5391_v14 = vmul.f32 %v11598_v10, %v5157_v34  ;;  %v5572_v53 = vld [vmem:[#allocation2 + $0x1ca] sm:$0xff] }
 0x711   : > { %v5392_v62 = vmul.f32 %v11598_v10, %v5374_v35  ;;  %v5446_v37 = vmul.f32 %v11771_v32, %v5423_v8  ;;  %v4080_v7 = vadd.f32 %v11910_v30, %v4032_v48  ;;  %v4081_v2 = vadd.f32 %v11928_v9, %v4033_v27  ;;  %v2509_v31 = vld [vmem:[#allocation2 + $0xa7] sm:$0xff]  ;;  %v2571_v18 = vld [vmem:[#allocation2 + $0xb0] sm:$0xff] }
 0x712   : > { %v5195_v56 = vadd.f32 %v5179_v12, %v5137_v52  ;;  %v5196_v19 = vadd.f32 %v5180_v59, %v5138_v25  ;;  %v5447_v54 = vmul.f32 %v11771_v32, %v12069_v58  ;;  %v5501_v45 = vmul.f32 %v15590_v46, %v5478_v43  ;;  %v15591_v10 = vld [vmem:[#allocation75_spill] sm:$0xff]  ;;  %v2570_v15 = vld [vmem:[#allocation2 + $0xa8] sm:$0xff] }
 0x713   : > { %v5502_v34 = vmul.f32 %v15590_v46, %v5479_v26  ;;  %v12083_v24 = vmul.f32 %v15591_v10, %v15565_v1  ;;  %v4139_v30 = vadd.f32 %v11937_v55, %v4080_v7  ;;  %v4140_v9 = vadd.f32 %v11951_v63, %v4081_v2  ;;  %v15592_v35 = vld [vmem:[#allocation40_spill] sm:$0xff]  ;;  %v12104_v52 = vld [vmem:[%s14853_s8] ss:$0 sm:$0xff]  ;;  %v12111_v26 = vld [vmem:[%s14852_s7 + $0x1] ss:$0 sm:$0xff] }
 0x714   : > { %v5250_v12 = vadd.f32 %v5234_v0, %v5195_v56  ;;  %v5251_v59 = vadd.f32 %v5235_v49, %v5196_v19  ;;  %v5541_v21 = vmul.f32 %v15591_v10, %v11433_v47  ;;  %v12090_v8 = vmul.f32 %v15592_v35, %v5572_v53  ;;  %v2626_v27 = vld [vmem:[#allocation2 + $0xa9] sm:$0xff]  ;;  %v2627_v47 = vld [vmem:[#allocation2 + $0xb1] sm:$0xff]  ;;  %v12120_v53 = vld [vmem:[%s14852_s7 + $0x2] ss:$0 sm:$0xff] }
 0x715   : > { %v2532_v1 = vmul.f32 %v12095_v6, %v2509_v31  ;;  %v2533_v55 = vmul.f32 %v12095_v6, %v2510_v57  ;;  %v4195_v63 = vadd.f32 %v11960_v42, %v4139_v30  ;;  %v4196_v0 = vadd.f32 %v11979_v60, %v4140_v9 }
 0x716   : > { %v5305_v49 = vadd.f32 %v5289_v39, %v5250_v12  ;;  %v5306_v48 = vadd.f32 %v5290_v13, %v5251_v59  ;;  %v2594_v60 = vmul.f32 %v12111_v26, %v2570_v15  ;;  %v2595_v39 = vmul.f32 %v12111_v26, %v2571_v18  ;;  %v15595_v15 = vld [vmem:[#allocation38_spill] sm:$0xff] }
 0x717   : > { %v2554_v25 = vadd.f32 %v12104_v52, %v2532_v1  ;;  %v2555_v43 = vadd.f32 %v12104_v52, %v2533_v55  ;;  %v4251_v42 = vadd.f32 %v11988_v33, %v4195_v63  ;;  %v4252_v13 = vadd.f32 %v12002_v17, %v4196_v0  ;;  %v12126_v17 = vld [vmem:[#allocation2 + $0xc8] sm:$0xff]  ;;  %v15596_v1 = vld [vmem:[#allocation39_spill] sm:$0xff] }
 0x718   : > { %v5360_v7 = vadd.f32 %v5344_v16, %v5305_v49  ;;  %v5361_v2 = vadd.f32 %v5345_v5, %v5306_v48  ;;  %v2650_v31 = vmul.f32 %v12120_v53, %v2626_v27  ;;  %v2651_v57 = vmul.f32 %v12120_v53, %v2627_v47  ;;  %15593 = vst [vmem:[#allocation15_spill] sm:$0xff] %v12126_v17  ;;  %v12128_v16 = vld [vmem:[#allocation2 + $0xd0] sm:$0xff] }
 0x719   : > { %v2610_v56 = vadd.f32 %v2594_v60, %v2554_v25  ;;  %v2611_v19 = vadd.f32 %v2595_v39, %v2555_v43  ;;  %v4307_v10 = vadd.f32 %v12011_v38, %v4251_v42  ;;  %v4308_v30 = vadd.f32 %v12025_v11, %v4252_v13  ;;  %15594 = vst [vmem:[#allocation51_spill] sm:$0xff] %v12128_v16  ;;  %v5573_v5 = vld [vmem:[#allocation2 + $0x1d2] sm:$0xff] }
 0x71a   : > { %v5407_v33 = vadd.f32 %v5391_v14, %v5360_v7  ;;  %v5408_v9 = vadd.f32 %v5392_v62, %v5361_v2  ;;  %v2706_v18 = vmul.f32 %v11676_v40, %v15595_v15  ;;  %v2707_v55 = vmul.f32 %v11676_v40, %v15596_v1  ;;  %v5625_v62 = vld [vmem:[#allocation2 + $0x1d4] sm:$0xff]  ;;  %v12151_v43 = vld [vmem:[#allocation2 + $0x20c] sm:$0xff] }
 0x71b   : > { %v2666_v12 = vadd.f32 %v2650_v31, %v2610_v56  ;;  %v2667_v59 = vadd.f32 %v2651_v57, %v2611_v19  ;;  %v12135_v63 = vadd.f32 %v12034_v23, %v4307_v10  ;;  %v12138_v38 = vadd.f32 %v12046_v44, %v4308_v30  ;;  %v12147_v44 = vld [vmem:[#allocation2 + $0xe7] sm:$0xff]  ;;  %v15601_v42 = vld [vmem:[#allocation77_spill] sm:$0xff] }
 0x71c   : > { %v5462_v11 = vadd.f32 %v5446_v37, %v5407_v33  ;;  %v5463_v14 = vadd.f32 %v5447_v54, %v5408_v9  ;;  %v2762_v48 = vmul.f32 %v11690_v36, %v12126_v17  ;;  %v2763_v27 = vmul.f32 %v11690_v36, %v12128_v16  ;;  %15599 = vst [vmem:[#allocation88_spill] sm:$0xff] %v12147_v44  ;;  %v12149_v37 = vld [vmem:[#allocation2 + $0xef] sm:$0xff]  ;;  %v5677_v54 = vld [vmem:[#allocation2 + $0x204] sm:$0xff] }
 0x71d   : > { %15597 = vst [vmem:[#allocation70_spill] sm:$0xff] %v12135_v63  ;;  %15598 = vst [vmem:[#allocation56_spill] sm:$0xff] %v12138_v38  ;;  %v2722_v0 = vadd.f32 %v2706_v18, %v2666_v12  ;;  %v2723_v49 = vadd.f32 %v2707_v55, %v2667_v59  ;;  %v8161_v40 = vpack.c.bf16 %v12138_v38, %v12135_v63  ;;  %v15602_v36 = vld [vmem:[#allocation64_spill] sm:$0xff]  ;;  %v12167_v33 = vld [vmem:[#allocation2 + $0xf1] sm:$0xff] }
 0x71e   : > { %v5517_v47 = vadd.f32 %v5501_v45, %v5462_v11  ;;  %v5518_v23 = vadd.f32 %v5502_v34, %v5463_v14  ;;  %v5596_v25 = vmul.f32 %v15592_v35, %v5573_v5  ;;  %15600 = vst [vmem:[#allocation57_spill] sm:$0xff] %v12149_v37  ;;  %v2818_v13 = vmul.f32 %v11889_v51, %v15601_v42  ;;  %v12165_v30 = vld [vmem:[#allocation2 + $0xe9] sm:$0xff]  ;;  %v12278_v38 = vld [vmem:[%s14852_s7 + $0x11] ss:$0 sm:$0xff] }
 0x71f   : > { %v2778_v60 = vadd.f32 %v2762_v48, %v2722_v0  ;;  %v2779_v39 = vadd.f32 %v2763_v27, %v2723_v49  ;;  %v2819_v7 = vmul.f32 %v11889_v51, %v15602_v36  ;;  %8162 = vmatpush3.bf16.msra.mxu0 %v8161_v40  ;;  %v5642_v2 = vmul.f32 %v11814_v28, %v12069_v58  ;;  %v3020_v5 = vld [vmem:[#allocation2 + $0x44] sm:$0xff]  ;;  %v12173_v12 = vld [vmem:[#allocation2 + $0x4c] sm:$0xff] }
 0x720   : > { %v5556_v45 = vadd.f32 %v12083_v24, %v5517_v47  ;;  %v5557_v34 = vadd.f32 %v5541_v21, %v5518_v23  ;;  %v5643_v56 = vmul.f32 %v11814_v28, %v5625_v62  ;;  %v2874_v57 = vmul.f32 %v11915_v4, %v12147_v44  ;;  %15603 = vst [vmem:[#allocation26_spill] sm:$0xff] %v12165_v30  ;;  %v5732_v59 = vld [vmem:[#allocation2 + $0x206] sm:$0xff]  ;;  %v5733_v15 = vld [vmem:[#allocation2 + $0x20e] sm:$0xff] }
 0x721   : > { %v2834_v19 = vadd.f32 %v2818_v13, %v2778_v60  ;;  %v2835_v31 = vadd.f32 %v2819_v7, %v2779_v39  ;;  %v2875_v10 = vmul.f32 %v11915_v4, %v12149_v37  ;;  %15604 = vst [vmem:[#allocation46_spill] sm:$0xff] %v12167_v33  ;;  %v5700_v9 = vmul.f32 %v11829_v29, %v5677_v54  ;;  %v15605_v55 = vld [vmem:[#allocation41_spill] sm:$0xff]  ;;  %v3076_v27 = vld [vmem:[#allocation2 + $0x46] sm:$0xff] }
 0x722   : > { %v5611_v24 = vadd.f32 %v12090_v8, %v5556_v45  ;;  %v5612_v21 = vadd.f32 %v5596_v25, %v5557_v34  ;;  %v5701_v58 = vmul.f32 %v11829_v29, %v12151_v43  ;;  %v2930_v11 = vmul.f32 %v11725_v61, %v15605_v55  ;;  %v15606_v14 = vld [vmem:[#allocation17_spill] sm:$0xff]  ;;  %v12183_v47 = vld [vmem:[#allocation2 + $0x208] sm:$0xff]  ;;  %v15607_v36 = vld [vmem:[#allocation79_spill] sm:$0xff] }
 0x723   : > { %v2890_v18 = vadd.f32 %v2874_v57, %v2834_v19  ;;  %v2891_v1 = vadd.f32 %v2875_v10, %v2835_v31  ;;  %v2931_v62 = vmul.f32 %v11725_v61, %v15606_v14  ;;  %v2986_v49 = vmul.f32 %v11965_v41, %v12165_v30  ;;  %v3077_v40 = vld [vmem:[#allocation2 + $0x4e] sm:$0xff]  ;;  %v12190_v61 = vld [vmem:[%s14852_s7 + $0x9] ss:$0 sm:$0xff]  ;;  %v12200_v31 = vld [vmem:[%s14852_s7 + $0xa] ss:$0 sm:$0xff] }
 0x724   : > { %v5658_v8 = vadd.f32 %v5642_v2, %v5611_v24  ;;  %v5659_v0 = vadd.f32 %v5643_v56, %v5612_v21  ;;  %v2987_v48 = vmul.f32 %v11965_v41, %v12167_v33  ;;  %v12185_v23 = vld [vmem:[#allocation2 + $0x210] sm:$0xff]  ;;  %v3044_v60 = vmul.f32 %v12190_v61, %v3020_v5  ;;  %v12211_v14 = vld [vmem:[%s14852_s7 + $0xb] ss:$0 sm:$0xff] }
 0x725   : > { %v2946_v25 = vadd.f32 %v2930_v11, %v2890_v18  ;;  %v2947_v54 = vadd.f32 %v2931_v62, %v2891_v1  ;;  %v3045_v39 = vmul.f32 %v12190_v61, %v12173_v12  ;;  %v5755_v7 = vmul.f32 %v15607_v36, %v5732_v59  ;;  %v5842_v34 = vld [vmem:[#allocation2 + $0x20a] sm:$0xff]  ;;  %v5843_v2 = vld [vmem:[#allocation2 + $0x212] sm:$0xff]  ;;  %v8525_v11 = vld [vmem:[#allocation2 + $0x160] sm:$0xff] }
 0x726   : > { %v5716_v42 = vadd.f32 %v5700_v9, %v5658_v8  ;;  %v5717_v13 = vadd.f32 %v5701_v58, %v5659_v0  ;;  %v5756_v45 = vmul.f32 %v15607_v36, %v5733_v15  ;;  %v3100_v57 = vmul.f32 %v12200_v31, %v3076_v27  ;;  %v15608_v9 = vld [vmem:[#allocation23_spill] sm:$0xff]  ;;  %v3188_v59 = vld [vmem:[#allocation2 + $0x4a] sm:$0xff]  ;;  %v3189_v15 = vld [vmem:[#allocation2 + $0x52] sm:$0xff] }
 0x727   : > { %v3002_v56 = vadd.f32 %v2986_v49, %v2946_v25  ;;  %v3003_v19 = vadd.f32 %v2987_v48, %v2947_v54  ;;  %v3101_v10 = vmul.f32 %v12200_v31, %v3077_v40  ;;  %v5810_v58 = vmul.f32 %v15608_v9, %v12183_v47  ;;  %v5895_v18 = vld [vmem:[#allocation2 + $0x214] sm:$0xff]  ;;  %v5947_v40 = vld [vmem:[#allocation2 + $0x244] sm:$0xff]  ;;  %v12218_v25 = vld [vmem:[#allocation2 + $0x24c] sm:$0xff] }
 0x728   : > { %v5771_v24 = vadd.f32 %v5755_v7, %v5716_v42  ;;  %v5772_v21 = vadd.f32 %v5756_v45, %v5717_v13  ;;  %v5811_v5 = vmul.f32 %v15608_v9, %v12185_v23  ;;  %v12214_v62 = vmul.f32 %v12211_v14, %v8525_v11  ;;  %v3242_v27 = vld [vmem:[#allocation2 + $0x54] sm:$0xff] }
 0x729   : > { %v3060_v1 = vadd.f32 %v3044_v60, %v3002_v56  ;;  %v3061_v55 = vadd.f32 %v3045_v39, %v3003_v19  ;;  %v5865_v49 = vmul.f32 %v11881_v20, %v5842_v34  ;;  %v5866_v48 = vmul.f32 %v11881_v20, %v5843_v2  ;;  %v12223_v39 = vld [vmem:[%s14852_s7 + $0xc] ss:$0 sm:$0xff]  ;;  %v6003_v19 = vld [vmem:[#allocation2 + $0x24e] sm:$0xff] }
 0x72a   : > { %15609 = vst [vmem:[#allocation93_spill] sm:$0xff] %v12214_v62  ;;  %v5826_v8 = vadd.f32 %v5810_v58, %v5771_v24  ;;  %v5827_v0 = vadd.f32 %v5811_v5, %v5772_v21  ;;  %v3212_v42 = vmul.f32 %v12223_v39, %v3188_v59  ;;  %v3213_v13 = vmul.f32 %v12223_v39, %v3189_v15  ;;  %v6002_v56 = vld [vmem:[#allocation2 + $0x246] sm:$0xff]  ;;  %v4447_v33 = vld [vmem:[#allocation2 + $0x1d0] sm:$0xff] }
 0x72b   : > { %v3116_v54 = vadd.f32 %v3100_v57, %v3060_v1  ;;  %v3117_v60 = vadd.f32 %v3101_v10, %v3061_v55  ;;  %v5912_v34 = vmul.f32 %v11907_v22, %v12151_v43  ;;  %v5913_v2 = vmul.f32 %v11907_v22, %v5895_v18  ;;  %v12235_v24 = vld [vmem:[%s14852_s7 + $0xd] ss:$0 sm:$0xff]  ;;  %v3295_v15 = vld [vmem:[#allocation2 + $0x84] sm:$0xff]  ;;  %v6058_v55 = vld [vmem:[#allocation2 + $0x250] sm:$0xff] }
 0x72c   : > { %v5881_v7 = vadd.f32 %v5865_v49, %v5826_v8  ;;  %v5882_v45 = vadd.f32 %v5866_v48, %v5827_v0  ;;  %v3260_v21 = vmul.f32 %v12235_v24, %v12173_v12  ;;  %v3261_v9 = vmul.f32 %v12235_v24, %v3242_v27  ;;  %v3296_v18 = vld [vmem:[#allocation2 + $0x8c] sm:$0xff] }
 0x72d   : > { %v3172_v57 = vadd.f32 %v12214_v62, %v3116_v54  ;;  %v3173_v10 = vadd.f32 %v12214_v62, %v3117_v60  ;;  %v5970_v5 = vmul.f32 %v11933_v50, %v5947_v40  ;;  %v5971_v59 = vmul.f32 %v11933_v50, %v12218_v25  ;;  %v6057_v1 = vld [vmem:[#allocation2 + $0x248] sm:$0xff]  ;;  %v15610_v48 = vld [vmem:[#allocation85_spill] sm:$0xff] }
 0x72e   : > { %v5928_v58 = vadd.f32 %v5912_v34, %v5881_v7  ;;  %v5929_v43 = vadd.f32 %v5913_v2, %v5882_v45  ;;  %v6025_v54 = vmul.f32 %v15610_v48, %v6002_v56  ;;  %v6026_v12 = vmul.f32 %v15610_v48, %v6003_v19  ;;  %v3351_v27 = vld [vmem:[#allocation2 + $0x86] sm:$0xff]  ;;  %v3352_v60 = vld [vmem:[#allocation2 + $0x8e] sm:$0xff]  ;;  %v15611_v56 = vld [vmem:[#allocation86_spill] sm:$0xff] }
 0x72f   : > { %v3228_v11 = vadd.f32 %v3212_v42, %v3172_v57  ;;  %v3229_v8 = vadd.f32 %v3213_v13, %v3173_v10  ;;  %v6112_v7 = vld [vmem:[#allocation2 + $0x24a] sm:$0xff]  ;;  %v6113_v45 = vld [vmem:[#allocation2 + $0x252] sm:$0xff]  ;;  %v6081_v19 = vmul.f32 %v15611_v56, %v6058_v55 }
 0x730   : > { %v5986_v0 = vadd.f32 %v5970_v5, %v5928_v58  ;;  %v5987_v49 = vadd.f32 %v5971_v59, %v5929_v43  ;;  %v12248_v2 = vld [vmem:[%s14852_s7 + $0xe] ss:$0 sm:$0xff]  ;;  %v6080_v58 = vmul.f32 %v15611_v56, %v6057_v1  ;;  %v6165_v43 = vld [vmem:[#allocation2 + $0x254] sm:$0xff] }
 0x731   : > { %v3276_v40 = vadd.f32 %v3260_v21, %v3228_v11  ;;  %v3277_v34 = vadd.f32 %v3261_v9, %v3229_v8  ;;  %v3319_v42 = vmul.f32 %v12248_v2, %v3295_v15  ;;  %v3320_v13 = vmul.f32 %v12248_v2, %v3296_v18  ;;  %v12257_v21 = vld [vmem:[%s14852_s7 + $0xf] ss:$0 sm:$0xff]  ;;  %v3464_v55 = vld [vmem:[#allocation2 + $0x92] sm:$0xff] }
 0x732   : > { %v6041_v57 = vadd.f32 %v6025_v54, %v5986_v0  ;;  %v6042_v10 = vadd.f32 %v6026_v12, %v5987_v49  ;;  %v3375_v9 = vmul.f32 %v12257_v21, %v3351_v27  ;;  %v3376_v15 = vmul.f32 %v12257_v21, %v3352_v60  ;;  %v15612_v0 = vld [vmem:[#allocation24_spill] sm:$0xff] }
 0x733   : > { %v3335_v5 = vadd.f32 %v3319_v42, %v3276_v40  ;;  %v3336_v59 = vadd.f32 %v3320_v13, %v3277_v34  ;;  %v6135_v49 = vmul.f32 %v15612_v0, %v6112_v7  ;;  %v6136_v1 = vmul.f32 %v15612_v0, %v6113_v45  ;;  %v3463_v54 = vld [vmem:[#allocation2 + $0x8a] sm:$0xff]  ;;  %v15613_v42 = vld [vmem:[#allocation62_spill] sm:$0xff]  ;;  %v15614_v13 = vld [vmem:[#allocation63_spill] sm:$0xff] }
 0x734   : > { %v6096_v11 = vadd.f32 %v6080_v58, %v6041_v57  ;;  %v6097_v8 = vadd.f32 %v6081_v19, %v6042_v10  ;;  %v12266_v34 = vld [vmem:[%s14852_s7 + $0x10] ss:$0 sm:$0xff]  ;;  %v3517_v57 = vld [vmem:[#allocation2 + $0x94] sm:$0xff] }
 0x735   : > { %v3391_v12 = vadd.f32 %v3375_v9, %v3335_v5  ;;  %v3392_v40 = vadd.f32 %v3376_v15, %v3336_v59  ;;  %v3431_v27 = vmul.f32 %v12266_v34, %v15613_v42  ;;  %v3432_v60 = vmul.f32 %v12266_v34, %v15614_v13  ;;  %v15615_v45 = vld [vmem:[#allocation29_spill] sm:$0xff]  ;;  %v3567_v5 = vld [vmem:[#allocation2 + $0xc4] sm:$0xff] }
 0x736   : > { %v6151_v10 = vadd.f32 %v6135_v49, %v6096_v11  ;;  %v6152_v7 = vadd.f32 %v6136_v1, %v6097_v8  ;;  %v6182_v58 = vmul.f32 %v15615_v45, %v12218_v25  ;;  %v6183_v19 = vmul.f32 %v15615_v45, %v6165_v43  ;;  %v3568_v59 = vld [vmem:[#allocation2 + $0xcc] sm:$0xff] }
 0x737   : > { %v3447_v9 = vadd.f32 %v3431_v27, %v3391_v12  ;;  %v3448_v15 = vadd.f32 %v3432_v60, %v3392_v40  ;;  %v3487_v42 = vmul.f32 %v12278_v38, %v3463_v54  ;;  %v3488_v13 = vmul.f32 %v12278_v38, %v3464_v55  ;;  %v3623_v11 = vld [vmem:[#allocation2 + $0xc6] sm:$0xff]  ;;  %v3624_v8 = vld [vmem:[#allocation2 + $0xce] sm:$0xff] }
 0x738   : > { %v4391_v49 = vld [vmem:[#allocation2 + $0x1c7] sm:$0xff]  ;;  %v12282_v1 = vadd.f32 %v6182_v58, %v6151_v10  ;;  %v12284_v25 = vadd.f32 %v6183_v19, %v6152_v7  ;;  %v12289_v43 = vld [vmem:[%s14852_s7 + $0x12] ss:$0 sm:$0xff]  ;;  %v3591_v55 = vmul.f32 %v11771_v32, %v3567_v5  ;;  %v3592_v63 = vmul.f32 %v11771_v32, %v3568_v59  ;;  %v12303_v5 = vld [vmem:[%s14852_s7 + $0x15] ss:$0 sm:$0xff] }
 0x739   : > { %v3535_v12 = vmul.f32 %v12289_v43, %v3296_v18  ;;  %v3536_v40 = vmul.f32 %v12289_v43, %v3517_v57  ;;  %v4392_v27 = vld [vmem:[#allocation2 + $0x1cf] sm:$0xff]  ;;  %v3503_v54 = vadd.f32 %v3487_v42, %v3447_v9  ;;  %v3504_v60 = vadd.f32 %v3488_v13, %v3448_v15 }
 0x73a   : > { %15616 = vst [vmem:[#allocation43_spill] sm:$0xff] %v12282_v1  ;;  %15617 = vst [vmem:[#allocation67_spill] sm:$0xff] %v12284_v25  ;;  %v3719_v10 = vld [vmem:[#allocation2 + $0xca] sm:$0xff]  ;;  %v8163_v7 = vpack.c.bf16 %v12284_v25, %v12282_v1  ;;  %v3647_v19 = vmul.f32 %v15590_v46, %v3623_v11  ;;  %v3648_v62 = vmul.f32 %v15590_v46, %v3624_v8  ;;  %v3720_v9 = vld [vmem:[#allocation2 + $0xd2] sm:$0xff] }
 0x73b   : > { %v4446_v58 = vld [vmem:[#allocation2 + $0x1c8] sm:$0xff]  ;;  %v4414_v18 = vmul.f32 %v12095_v6, %v4391_v49  ;;  %v3551_v57 = vadd.f32 %v3535_v12, %v3503_v54  ;;  %v3552_v30 = vadd.f32 %v3536_v40, %v3504_v60  ;;  %v3687_v32 = vmul.f32 %v12303_v5, %v12126_v17  ;;  %v4502_v49 = vld [vmem:[#allocation2 + $0x1d1] sm:$0xff] }
 0x73c   : > { %v4415_v15 = vmul.f32 %v12095_v6, %v4392_v27  ;;  %v4501_v42 = vld [vmem:[#allocation2 + $0x1c9] sm:$0xff]  ;;  %8164 = vmatprep.subr.bf16.mxu0 %v8163_v7  ;;  %v3688_v46 = vmul.f32 %v12303_v5, %v12128_v16  ;;  %v3743_v13 = vmul.f32 %v15592_v35, %v3719_v10  ;;  %v4469_v8 = vmul.f32 %v12111_v26, %v4446_v58  ;;  %v3773_v54 = vld [vmem:[#allocation2 + $0xd4] sm:$0xff] }
 0x73d   : > { %v4430_v11 = vadd.f32 %v12104_v52, %v4414_v18  ;;  %v3607_v12 = vadd.f32 %v3591_v55, %v3551_v57  ;;  %v3608_v40 = vadd.f32 %v3592_v63, %v3552_v30  ;;  %v3826_v60 = vld [vmem:[#allocation2 + $0x104] sm:$0xff]  ;;  %v4470_v27 = vmul.f32 %v12111_v26, %v4447_v33  ;;  %v3827_v16 = vld [vmem:[#allocation2 + $0x10c] sm:$0xff] }
 0x73e   : > { %v4431_v25 = vadd.f32 %v12104_v52, %v4415_v15  ;;  %v3744_v7 = vmul.f32 %v15592_v35, %v3720_v9  ;;  %v3791_v1 = vmul.f32 %v11814_v28, %v3568_v59  ;;  %v4524_v10 = vmul.f32 %v12120_v53, %v4501_v42  ;;  %v3882_v58 = vld [vmem:[#allocation2 + $0x106] sm:$0xff]  ;;  %v12324_v35 = vld [vmem:[%s14852_s7 + $0x3] ss:$0 sm:$0xff]  ;;  %v15618_v33 = vld [vmem:[#allocation65_spill] sm:$0xff] }
 0x73f   : > { %v4485_v37 = vadd.f32 %v4469_v8, %v4430_v11  ;;  %v3663_v44 = vadd.f32 %v3647_v19, %v3607_v12  ;;  %v3664_v18 = vadd.f32 %v3648_v62, %v3608_v40  ;;  %v4525_v63 = vmul.f32 %v12120_v53, %v4502_v49  ;;  %v3883_v9 = vld [vmem:[#allocation2 + $0x10e] sm:$0xff]  ;;  %v12337_v49 = vld [vmem:[%s14852_s7 + $0x4] ss:$0 sm:$0xff]  ;;  %v15622_v12 = vld [vmem:[#allocation66_spill] sm:$0xff] }
 0x740   : > { %v4486_v17 = vadd.f32 %v4470_v27, %v4431_v25  ;;  %v3792_v30 = vmul.f32 %v11814_v28, %v3773_v54  ;;  %v3850_v55 = vmul.f32 %v11829_v29, %v3826_v60  ;;  %v4579_v59 = vmul.f32 %v12324_v35, %v15618_v33  ;;  %v12328_v15 = vld [vmem:[#allocation2 + $0x108] sm:$0xff]  ;;  %15621 = vst [vmem:[#allocation96_spill] sm:$0xff] %v12337_v49  ;;  %v12341_v40 = vld [vmem:[#allocation2 + $0x110] sm:$0xff]  ;;  %v15623_v60 = vld [vmem:[#allocation82_spill] sm:$0xff] }
 0x741   : > { %v4540_v57 = vadd.f32 %v4524_v10, %v4485_v37  ;;  %v3703_v19 = vadd.f32 %v3687_v32, %v3663_v44  ;;  %v3704_v62 = vadd.f32 %v3688_v46, %v3664_v18  ;;  %15619 = vst [vmem:[#allocation58_spill] sm:$0xff] %v12328_v15  ;;  %v15620_v42 = vld [vmem:[#allocation80_spill] sm:$0xff]  ;;  %v3851_v11 = vmul.f32 %v11829_v29, %v3827_v16  ;;  %v12351_v18 = vld [vmem:[%s14852_s7 + $0x1a] ss:$0 sm:$0xff] }
 0x742   : > { %v4541_v25 = vadd.f32 %v4525_v63, %v4486_v17  ;;  %v4580_v28 = vmul.f32 %v12324_v35, %v15620_v42  ;;  %v3906_v37 = vmul.f32 %v15607_v36, %v3882_v58  ;;  %v4634_v44 = vmul.f32 %v12337_v49, %v15622_v12  ;;  %v3994_v17 = vld [vmem:[#allocation2 + $0x10a] sm:$0xff]  ;;  %v15624_v58 = vld [vmem:[#allocation27_spill] sm:$0xff] }
 0x743   : > { %v4595_v8 = vadd.f32 %v4579_v59, %v4540_v57  ;;  %v3759_v32 = vadd.f32 %v3743_v13, %v3703_v19  ;;  %v3760_v46 = vadd.f32 %v3744_v7, %v3704_v62  ;;  %v4635_v29 = vmul.f32 %v12337_v49, %v15623_v60  ;;  %v12345_v27 = vld [vmem:[#allocation2 + $0x207] sm:$0xff]  ;;  %v12357_v57 = vld [vmem:[#allocation2 + $0x20f] sm:$0xff] }
 0x744   : > { %v4596_v54 = vadd.f32 %v4580_v28, %v4541_v25  ;;  %v3907_v10 = vmul.f32 %v15607_v36, %v3883_v9  ;;  %v3962_v13 = vmul.f32 %v12351_v18, %v12328_v15  ;;  %v4689_v63 = vmul.f32 %v11889_v51, %v15624_v58  ;;  %v3995_v19 = vld [vmem:[#allocation2 + $0x112] sm:$0xff]  ;;  %v15625_v25 = vld [vmem:[#allocation19_spill] sm:$0xff] }
 0x745   : > { %v4650_v7 = vadd.f32 %v4634_v44, %v4595_v8  ;;  %v3807_v33 = vadd.f32 %v3791_v1, %v3759_v32  ;;  %v3808_v59 = vadd.f32 %v3792_v30, %v3760_v46  ;;  %v4690_v36 = vmul.f32 %v11889_v51, %v15625_v25  ;;  %v4048_v15 = vld [vmem:[#allocation2 + $0x114] sm:$0xff]  ;;  %v12368_v30 = vld [vmem:[#allocation2 + $0x209] sm:$0xff] }
 0x746   : > { %v4651_v62 = vadd.f32 %v4635_v29, %v4596_v54  ;;  %v3963_v9 = vmul.f32 %v12351_v18, %v12341_v40  ;;  %v4018_v42 = vmul.f32 %v11881_v20, %v3994_v17  ;;  %v4744_v8 = vmul.f32 %v11915_v4, %v12345_v27  ;;  %v12375_v17 = vld [vmem:[%s14852_s7 + $0x7] ss:$0 sm:$0xff]  ;;  %v15631_v25 = vld [vmem:[#allocation28_spill] sm:$0xff] }
 0x747   : > { %v4705_v28 = vadd.f32 %v4689_v63, %v4650_v7  ;;  %v3866_v44 = vadd.f32 %v3850_v55, %v3807_v33  ;;  %v3867_v58 = vadd.f32 %v3851_v11, %v3808_v59  ;;  %v4745_v1 = vmul.f32 %v11915_v4, %v12357_v57  ;;  %15626 = vst [vmem:[#allocation59_spill] sm:$0xff] %v12375_v17  ;;  %v12379_v11 = vld [vmem:[#allocation2 + $0x211] sm:$0xff]  ;;  %v15628_v63 = vld [vmem:[#allocation83_spill] sm:$0xff] }
 0x748   : > { %v4706_v49 = vadd.f32 %v4690_v36, %v4651_v62  ;;  %v4019_v51 = vmul.f32 %v11881_v20, %v3995_v19  ;;  %v4066_v32 = vmul.f32 %v11907_v22, %v3827_v16  ;;  %v4799_v55 = vmul.f32 %v12375_v17, %v12183_v47  ;;  %v12383_v20 = vld [vmem:[#allocation2 + $0x164] sm:$0xff]  ;;  %v12390_v47 = vld [vmem:[#allocation2 + $0x16c] sm:$0xff] }
 0x749   : > { %v4760_v46 = vadd.f32 %v4744_v8, %v4705_v28  ;;  %v3922_v54 = vadd.f32 %v3906_v37, %v3866_v44  ;;  %v3923_v29 = vadd.f32 %v3907_v10, %v3867_v58  ;;  %v4800_v7 = vmul.f32 %v12375_v17, %v12185_v23  ;;  %15627 = vst [vmem:[#allocation68_spill] sm:$0xff] %v12383_v20  ;;  %v12394_v23 = vld [vmem:[#allocation2 + $0x166] sm:$0xff]  ;;  %v12402_v44 = vld [vmem:[#allocation2 + $0x16e] sm:$0xff] }
 0x74a   : > { %v4761_v4 = vadd.f32 %v4745_v1, %v4706_v49  ;;  %v4067_v16 = vmul.f32 %v11907_v22, %v4048_v15  ;;  %v4125_v33 = vmul.f32 %v11933_v50, %v15628_v63  ;;  %v4854_v19 = vmul.f32 %v11965_v41, %v12368_v30  ;;  %15629 = vst [vmem:[#allocation97_spill] sm:$0xff] %v12390_v47  ;;  %v15632_v15 = vld [vmem:[#allocation22_spill] sm:$0xff]  ;;  %v12406_v1 = vld [vmem:[#allocation2 + $0x168] sm:$0xff] }
 0x74b   : > { %v4815_v59 = vadd.f32 %v4799_v55, %v4760_v46  ;;  %v3978_v62 = vadd.f32 %v3962_v13, %v3922_v54  ;;  %v3979_v37 = vadd.f32 %v3963_v9, %v3923_v29  ;;  %v4855_v49 = vmul.f32 %v11965_v41, %v12379_v11  ;;  %15630 = vst [vmem:[#allocation61_spill] sm:$0xff] %v12394_v23  ;;  %v15635_v46 = vld [vmem:[#allocation45_spill] sm:$0xff]  ;;  %v15636_v55 = vld [vmem:[#allocation87_spill] sm:$0xff] }
 0x74c   : > { %v4816_v10 = vadd.f32 %v4800_v7, %v4761_v4  ;;  %v4126_v22 = vmul.f32 %v11933_v50, %v15631_v25  ;;  %v4181_v36 = vmul.f32 %v15610_v48, %v15632_v15  ;;  %v4911_v8 = vmul.f32 %v12190_v61, %v12383_v20  ;;  %15633 = vst [vmem:[#allocation69_spill] sm:$0xff] %v12402_v44  ;;  %v12414_v7 = vld [vmem:[#allocation2 + $0x170] sm:$0xff]  ;;  %v12588_v20 = vld [vmem:[%s14852_s7 + $0x1c] ss:$0 sm:$0xff] }
 0x74d   : > { %v4870_v28 = vadd.f32 %v4854_v19, %v4815_v59  ;;  %v4034_v13 = vadd.f32 %v4018_v42, %v3978_v62  ;;  %v4035_v9 = vadd.f32 %v4019_v51, %v3979_v37  ;;  %v4912_v41 = vmul.f32 %v12190_v61, %v12390_v47  ;;  %15634 = vst [vmem:[#allocation71_spill] sm:$0xff] %v12406_v1  ;;  %v12418_v19 = vld [vmem:[#allocation2 + $0x16a] sm:$0xff]  ;;  %v15640_v37 = vld [vmem:[#allocation90_spill] sm:$0xff] }
 0x74e   : > { %v4871_v58 = vadd.f32 %v4855_v49, %v4816_v10  ;;  %v4182_v50 = vmul.f32 %v15610_v48, %v15635_v46  ;;  %v4237_v54 = vmul.f32 %v15611_v56, %v15636_v55  ;;  %v4966_v4 = vmul.f32 %v12200_v31, %v12394_v23  ;;  %15637 = vst [vmem:[#allocation73_spill] sm:$0xff] %v12414_v7  ;;  %v15639_v62 = vld [vmem:[#allocation25_spill] sm:$0xff]  ;;  %v12564_v23 = vld [vmem:[%s14852_s7 + $0x1b] ss:$0 sm:$0xff] }
 0x74f   : > { %v4927_v29 = vadd.f32 %v4911_v8, %v4870_v28  ;;  %v4082_v42 = vadd.f32 %v4066_v32, %v4034_v13  ;;  %v4083_v51 = vadd.f32 %v4067_v16, %v4035_v9  ;;  %v4967_v59 = vmul.f32 %v12200_v31, %v12402_v44  ;;  %15638 = vst [vmem:[#allocation76_spill] sm:$0xff] %v12418_v19  ;;  %v12426_v28 = vld [vmem:[#allocation2 + $0x172] sm:$0xff] }
 0x750   : > { %v4928_v63 = vadd.f32 %v4912_v41, %v4871_v58  ;;  %v4238_v48 = vmul.f32 %v15611_v56, %v15639_v62  ;;  %v4293_v10 = vmul.f32 %v15612_v0, %v15640_v37  ;;  %v5021_v15 = vmul.f32 %v12211_v14, %v12406_v1  ;;  %15641 = vst [vmem:[#allocation31_spill] sm:$0xff] %v12426_v28  ;;  %v12430_v9 = vld [vmem:[#allocation2 + $0x174] sm:$0xff]  ;;  %v15643_v58 = vld [vmem:[#allocation92_spill] sm:$0xff] }
 0x751   : > { %v4982_v49 = vadd.f32 %v4966_v4, %v4927_v29  ;;  %v4141_v32 = vadd.f32 %v4125_v33, %v4082_v42  ;;  %v4142_v16 = vadd.f32 %v4126_v22, %v4083_v51  ;;  %v5022_v13 = vmul.f32 %v12211_v14, %v12414_v7  ;;  %15642 = vst [vmem:[#allocation21_spill] sm:$0xff] %v12430_v9  ;;  %v5158_v29 = vld [vmem:[#allocation2 + $0x1a4] sm:$0xff]  ;;  %v5159_v14 = vld [vmem:[#allocation2 + $0x1ac] sm:$0xff] }
 0x752   : > { %v4983_v8 = vadd.f32 %v4967_v59, %v4928_v63  ;;  %v4294_v56 = vmul.f32 %v15612_v0, %v15643_v58  ;;  %v4341_v41 = vmul.f32 %v15615_v45, %v15631_v25  ;;  %v5076_v55 = vmul.f32 %v12223_v39, %v12418_v19  ;;  %v5213_v51 = vld [vmem:[#allocation2 + $0x1a6] sm:$0xff]  ;;  %v5214_v63 = vld [vmem:[#allocation2 + $0x1ae] sm:$0xff]  ;;  %15657 = vst [vmem:[#allocation16_spill] sm:$0xff] %v12564_v23 }
 0x753   : > { %v5037_v46 = vadd.f32 %v5021_v15, %v4982_v49  ;;  %v4197_v4 = vadd.f32 %v4181_v36, %v4141_v32  ;;  %v4198_v33 = vadd.f32 %v4182_v50, %v4142_v16  ;;  %v5077_v42 = vmul.f32 %v12223_v39, %v12426_v28  ;;  %v5323_v15 = vld [vmem:[#allocation2 + $0x1aa] sm:$0xff]  ;;  %v5324_v32 = vld [vmem:[#allocation2 + $0x1b2] sm:$0xff]  ;;  %15660 = vst [vmem:[#allocation94_spill] sm:$0xff] %v12588_v20 }
 0x754   : > { %v5038_v22 = vadd.f32 %v5022_v13, %v4983_v8  ;;  %v4342_v0 = vmul.f32 %v15615_v45, %v12040_v3  ;;  %v5123_v25 = vmul.f32 %v12235_v24, %v12390_v47  ;;  %v5124_v62 = vmul.f32 %v12235_v24, %v12430_v9 }
 0x755   : > { %v5092_v59 = vadd.f32 %v5076_v55, %v5037_v46  ;;  %v4253_v37 = vadd.f32 %v4237_v54, %v4197_v4  ;;  %v4254_v36 = vadd.f32 %v4238_v48, %v4198_v33  ;;  %v5181_v49 = vmul.f32 %v12248_v2, %v5158_v29  ;;  %v8539_v55 = vld [vmem:[#allocation2 + $0x1a8] sm:$0xff]  ;;  %v5375_v54 = vld [vmem:[#allocation2 + $0x1b4] sm:$0xff] }
 0x756   : > { %v5093_v50 = vadd.f32 %v5077_v42, %v5038_v22  ;;  %v5182_v8 = vmul.f32 %v12248_v2, %v5159_v14  ;;  %v5236_v13 = vmul.f32 %v12257_v21, %v5213_v51  ;;  %v5237_v3 = vmul.f32 %v12257_v21, %v5214_v63  ;;  %v5425_v48 = vld [vmem:[#allocation2 + $0x1e4] sm:$0xff]  ;;  %v5426_v4 = vld [vmem:[#allocation2 + $0x1ec] sm:$0xff] }
 0x757   : > { %v5139_v16 = vadd.f32 %v5123_v25, %v5092_v59  ;;  %v4309_v45 = vadd.f32 %v4293_v10, %v4253_v37  ;;  %v4310_v58 = vadd.f32 %v4294_v56, %v4254_v36  ;;  %v5291_v9 = vmul.f32 %v8539_v55, %v12266_v34  ;;  %v8540_v29 = vld [vmem:[#allocation2 + $0x1b0] sm:$0xff]  ;;  %v5480_v51 = vld [vmem:[#allocation2 + $0x1e6] sm:$0xff] }
 0x758   : > { %v5140_v46 = vadd.f32 %v5124_v62, %v5093_v50  ;;  %v5292_v22 = vmul.f32 %v8540_v29, %v12266_v34  ;;  %v5346_v42 = vmul.f32 %v12278_v38, %v5323_v15  ;;  %v5347_v59 = vmul.f32 %v12278_v38, %v5324_v32  ;;  %v5481_v25 = vld [vmem:[#allocation2 + $0x1ee] sm:$0xff] }
 0x759   : > { %v5197_v33 = vadd.f32 %v5181_v49, %v5139_v16  ;;  %v12454_v63 = vadd.f32 %v4341_v41, %v4309_v45  ;;  %v12456_v10 = vadd.f32 %v4342_v0, %v4310_v58  ;;  %v5393_v62 = vmul.f32 %v12289_v43, %v5159_v14  ;;  %v2511_v37 = vld [vmem:[#allocation2 + $0xc7] sm:$0xff]  ;;  %v2512_v36 = vld [vmem:[#allocation2 + $0xcf] sm:$0xff] }
 0x75a   : > { %v5198_v56 = vadd.f32 %v5182_v8, %v5140_v46  ;;  %v5394_v49 = vmul.f32 %v12289_v43, %v5375_v54  ;;  %v12463_v15 = vld [vmem:[%s14852_s7 + $0x13] ss:$0 sm:$0xff]  ;;  %v5574_v16 = vld [vmem:[#allocation2 + $0x1ea] sm:$0xff]  ;;  %v12472_v14 = vld [vmem:[%s14852_s7 + $0x14] ss:$0 sm:$0xff]  ;;  %v5542_v46 = vmul.f32 %v12303_v5, %v15622_v12  ;;  %v2534_v54 = vmul.f32 %v12095_v6, %v2511_v37 }
 0x75b   : > { %15644 = vst [vmem:[#allocation47_spill] sm:$0xff] %v12454_v63  ;;  %15645 = vst [vmem:[#allocation50_spill] sm:$0xff] %v12456_v10  ;;  %v5252_v50 = vadd.f32 %v5236_v13, %v5197_v33  ;;  %v5448_v32 = vmul.f32 %v12463_v15, %v5425_v48  ;;  %v5449_v41 = vmul.f32 %v12463_v15, %v5426_v4  ;;  %v5575_v55 = vld [vmem:[#allocation2 + $0x1f2] sm:$0xff]  ;;  %v2628_v33 = vld [vmem:[#allocation2 + $0xc9] sm:$0xff] }
 0x75c   : > { %v8165_v0 = vpack.c.bf16 %v12456_v10, %v12454_v63  ;;  %v5253_v8 = vadd.f32 %v5237_v3, %v5198_v56  ;;  %v5503_v13 = vmul.f32 %v12472_v14, %v5480_v51  ;;  %v5504_v45 = vmul.f32 %v12472_v14, %v5481_v25  ;;  %v12485_v51 = vld [vmem:[%s14852_s7 + $0x16] ss:$0 sm:$0xff]  ;;  %v15646_v25 = vld [vmem:[#allocation15_spill] sm:$0xff] }
 0x75d   : > { %v5307_v58 = vadd.f32 %v5291_v9, %v5252_v50  ;;  %v2535_v48 = vmul.f32 %v12095_v6, %v2512_v36  ;;  %v5543_v29 = vmul.f32 %v12303_v5, %v15623_v60  ;;  %v5597_v9 = vmul.f32 %v12485_v51, %v5574_v16  ;;  %v2629_v56 = vld [vmem:[#allocation2 + $0xd1] sm:$0xff]  ;;  %v5679_v6 = vld [vmem:[#allocation2 + $0x224] sm:$0xff] }
 0x75e   : > { %8166 = vmatpush3.bf16.msra.mxu0 %v8165_v0  ;;  %v5308_v3 = vadd.f32 %v5292_v22, %v5253_v8  ;;  %v2596_v12 = vmul.f32 %v12111_v26, %v15646_v25  ;;  %v5626_v50 = vld [vmem:[#allocation2 + $0x1f4] sm:$0xff]  ;;  %v2556_v36 = vadd.f32 %v12104_v52, %v2534_v54  ;;  %v15647_v0 = vld [vmem:[#allocation51_spill] sm:$0xff]  ;;  %v5598_v10 = vmul.f32 %v12485_v51, %v5575_v55  ;;  %v5680_v54 = vld [vmem:[#allocation2 + $0x22c] sm:$0xff] }
 0x75f   : > { %v5362_v37 = vadd.f32 %v5346_v42, %v5307_v58  ;;  %v2557_v22 = vadd.f32 %v12104_v52, %v2535_v48  ;;  %v2597_v60 = vmul.f32 %v12111_v26, %v15647_v0  ;;  %v12498_v16 = vld [vmem:[%s14852_s7 + $0x17] ss:$0 sm:$0xff]  ;;  %v2652_v42 = vmul.f32 %v12120_v53, %v2628_v33  ;;  %v5734_v63 = vld [vmem:[#allocation2 + $0x226] sm:$0xff]  ;;  %v12511_v0 = vld [vmem:[%s14852_s7 + $0x18] ss:$0 sm:$0xff] }
 0x760   : > { %v5363_v8 = vadd.f32 %v5347_v59, %v5308_v3  ;;  %v12501_v25 = vmul.f32 %v12498_v16, %v5426_v4  ;;  %v2612_v52 = vadd.f32 %v2596_v12, %v2556_v36  ;;  %v2653_v26 = vmul.f32 %v12120_v53, %v2629_v56  ;;  %v12505_v59 = vld [vmem:[#allocation2 + $0xe8] sm:$0xff]  ;;  %v12518_v12 = vld [vmem:[#allocation2 + $0xf0] sm:$0xff] }
 0x761   : > { %v5409_v58 = vadd.f32 %v5393_v62, %v5362_v37  ;;  %v2613_v48 = vadd.f32 %v2597_v60, %v2557_v22  ;;  %v5645_v3 = vmul.f32 %v12498_v16, %v5626_v50  ;;  %v12514_v4 = vmul.f32 %v12511_v0, %v5679_v6  ;;  %v15648_v62 = vld [vmem:[#allocation88_spill] sm:$0xff]  ;;  %v15650_v50 = vld [vmem:[#allocation57_spill] sm:$0xff]  ;;  %v12528_v6 = vld [vmem:[%s14852_s7 + $0x19] ss:$0 sm:$0xff] }
 0x762   : > { %v5410_v55 = vadd.f32 %v5394_v49, %v5363_v8  ;;  %v2708_v33 = vmul.f32 %v12324_v35, %v15648_v62  ;;  %v5735_v53 = vld [vmem:[#allocation2 + $0x22e] sm:$0xff]  ;;  %v2668_v49 = vadd.f32 %v2652_v42, %v2612_v52  ;;  %v2709_v22 = vmul.f32 %v12324_v35, %v15650_v50 }
 0x763   : > { %v5464_v37 = vadd.f32 %v5448_v32, %v5409_v58  ;;  %v12520_v56 = vld [vmem:[#allocation2 + $0x228] sm:$0xff]  ;;  %v2669_v36 = vadd.f32 %v2653_v26, %v2613_v48  ;;  %v5703_v8 = vmul.f32 %v12511_v0, %v5680_v54  ;;  %v12531_v62 = vmul.f32 %v12528_v6, %v5734_v63  ;;  %v12535_v42 = vld [vmem:[#allocation2 + $0x230] sm:$0xff] }
 0x764   : > { %15649 = vst [vmem:[#allocation18_spill] sm:$0xff] %v12520_v56  ;;  %v5465_v60 = vadd.f32 %v5449_v41, %v5410_v55  ;;  %v15651_v32 = vld [vmem:[#allocation96_spill] sm:$0xff]  ;;  %15652 = vst [vmem:[#allocation49_spill] sm:$0xff] %v12535_v42  ;;  %v2724_v48 = vadd.f32 %v2708_v33, %v2668_v49  ;;  %v5758_v19 = vmul.f32 %v12528_v6, %v5735_v53 }
 0x765   : > { %v2764_v58 = vmul.f32 %v15651_v32, %v12505_v59  ;;  %v5519_v28 = vadd.f32 %v5503_v13, %v5464_v37  ;;  %v5844_v52 = vld [vmem:[#allocation2 + $0x22a] sm:$0xff]  ;;  %v2725_v26 = vadd.f32 %v2709_v22, %v2669_v36  ;;  %v2765_v41 = vmul.f32 %v15651_v32, %v12518_v12  ;;  %v12549_v13 = vld [vmem:[%s14852_s7 + $0x5] ss:$0 sm:$0xff]  ;;  %v15654_v37 = vld [vmem:[#allocation26_spill] sm:$0xff] }
 0x766   : > { %v12539_v55 = vld [vmem:[#allocation2 + $0x107] sm:$0xff]  ;;  %v5520_v50 = vadd.f32 %v5504_v45, %v5465_v60  ;;  %v12544_v63 = vmul.f32 %v12351_v18, %v12520_v56  ;;  %v2820_v33 = vmul.f32 %v12549_v13, %v15654_v37  ;;  %v12553_v49 = vld [vmem:[#allocation2 + $0x10f] sm:$0xff]  ;;  %v15656_v60 = vld [vmem:[#allocation46_spill] sm:$0xff]  ;;  %v12559_v44 = vmul.f32 %v12351_v18, %v12535_v42 }
 0x767   : > { %15653 = vst [vmem:[#allocation81_spill] sm:$0xff] %v12539_v55  ;;  %15655 = vst [vmem:[#allocation89_spill] sm:$0xff] %v12553_v49  ;;  %v5558_v36 = vadd.f32 %v5542_v46, %v5519_v28  ;;  %v5845_v22 = vld [vmem:[#allocation2 + $0x232] sm:$0xff]  ;;  %v2780_v7 = vadd.f32 %v2764_v58, %v2724_v48  ;;  %v2781_v45 = vadd.f32 %v2765_v41, %v2725_v26  ;;  %v12572_v28 = vld [vmem:[%s14852_s7 + $0x6] ss:$0 sm:$0xff] }
 0x768   : > { %v2821_v53 = vmul.f32 %v12549_v13, %v15656_v60  ;;  %v5559_v1 = vadd.f32 %v5543_v29, %v5520_v50  ;;  %v12567_v37 = vmul.f32 %v12564_v23, %v5844_v52  ;;  %v2876_v46 = vmul.f32 %v12572_v28, %v12539_v55  ;;  %v12578_v41 = vld [vmem:[#allocation2 + $0x109] sm:$0xff]  ;;  %v12580_v50 = vld [vmem:[#allocation2 + $0x111] sm:$0xff] }
 0x769   : > { %v5613_v29 = vadd.f32 %v5597_v9, %v5558_v36  ;;  %v2836_v58 = vadd.f32 %v2820_v33, %v2780_v7  ;;  %v2877_v26 = vmul.f32 %v12572_v28, %v12553_v49  ;;  %15658 = vst [vmem:[#allocation91_spill] sm:$0xff] %v12578_v41  ;;  %15659 = vst [vmem:[#allocation84_spill] sm:$0xff] %v12580_v50  ;;  %v3022_v52 = vld [vmem:[#allocation2 + $0x64] sm:$0xff]  ;;  %v15661_v9 = vld [vmem:[#allocation58_spill] sm:$0xff] }
 0x76a   : > { %v2837_v48 = vadd.f32 %v2821_v53, %v2781_v45  ;;  %v5614_v60 = vadd.f32 %v5598_v10, %v5559_v1  ;;  %v12583_v47 = vmul.f32 %v12564_v23, %v5845_v22  ;;  %v12591_v7 = vmul.f32 %v12588_v20, %v5680_v54  ;;  %v12595_v36 = vld [vmem:[#allocation2 + $0x6c] sm:$0xff]  ;;  %v5896_v53 = vld [vmem:[#allocation2 + $0x234] sm:$0xff]  ;;  %v5949_v1 = vld [vmem:[#allocation2 + $0x264] sm:$0xff] }
 0x76b   : > { %v2932_v33 = vmul.f32 %v12375_v17, %v15661_v9  ;;  %v5660_v45 = vadd.f32 %v12501_v25, %v5613_v29  ;;  %v2892_v10 = vadd.f32 %v2876_v46, %v2836_v58  ;;  %v2933_v49 = vmul.f32 %v12375_v17, %v12341_v40  ;;  %v3078_v55 = vld [vmem:[#allocation2 + $0x66] sm:$0xff]  ;;  %v3079_v46 = vld [vmem:[#allocation2 + $0x6e] sm:$0xff] }
 0x76c   : > { %v2893_v22 = vadd.f32 %v2877_v26, %v2837_v48  ;;  %v5661_v42 = vadd.f32 %v5645_v3, %v5614_v60  ;;  %v12603_v54 = vld [vmem:[%s14852_s7 + $0x8] ss:$0 sm:$0xff]  ;;  %v3046_v29 = vmul.f32 %v12190_v61, %v3022_v52  ;;  %v5950_v48 = vld [vmem:[#allocation2 + $0x26c] sm:$0xff]  ;;  %v3047_v23 = vmul.f32 %v12190_v61, %v12595_v36 }
 0x76d   : > { %v2988_v9 = vmul.f32 %v12603_v54, %v12578_v41  ;;  %v2989_v25 = vmul.f32 %v12603_v54, %v12580_v50  ;;  %v5718_v58 = vadd.f32 %v12514_v4, %v5660_v45  ;;  %v6004_v40 = vld [vmem:[#allocation2 + $0x266] sm:$0xff]  ;;  %v6005_v26 = vld [vmem:[#allocation2 + $0x26e] sm:$0xff]  ;;  %v2948_v3 = vadd.f32 %v2932_v33, %v2892_v10  ;;  %v12617_v50 = vld [vmem:[%s14852_s7 + $0x1d] ss:$0 sm:$0xff] }
 0x76e   : > { %v2949_v60 = vadd.f32 %v2933_v49, %v2893_v22  ;;  %v5719_v17 = vadd.f32 %v5703_v8, %v5661_v42  ;;  %v5915_v56 = vmul.f32 %v12588_v20, %v5896_v53  ;;  %15662 = vst [vmem:[#allocation95_spill] sm:$0xff] %v12617_v50  ;;  %v5972_v52 = vmul.f32 %v12617_v50, %v5949_v1  ;;  %v6059_v41 = vld [vmem:[#allocation2 + $0x268] sm:$0xff]  ;;  %v6060_v33 = vld [vmem:[#allocation2 + $0x270] sm:$0xff]  ;;  %v12627_v20 = vld [vmem:[%s14852_s7 + $0x1e] ss:$0 sm:$0xff] }
 0x76f   : > { %v3102_v4 = vmul.f32 %v12200_v31, %v3078_v55  ;;  %v5773_v45 = vadd.f32 %v12531_v62, %v5718_v58  ;;  %v6114_v49 = vld [vmem:[#allocation2 + $0x26a] sm:$0xff]  ;;  %v3004_v10 = vadd.f32 %v2988_v9, %v2948_v3  ;;  %v3103_v61 = vmul.f32 %v12200_v31, %v3079_v46  ;;  %15663 = vst [vmem:[#allocation98_spill] sm:$0xff] %v12627_v20  ;;  %v3191_v62 = vld [vmem:[#allocation2 + $0x72] sm:$0xff]  ;;  %v12635_v31 = vld [vmem:[%s14852_s7 + $0x1f] ss:$0 sm:$0xff] }
 0x770   : > { %v3005_v22 = vadd.f32 %v2989_v25, %v2949_v60  ;;  %v3190_v8 = vld [vmem:[#allocation2 + $0x6a] sm:$0xff]  ;;  %v5774_v42 = vadd.f32 %v5758_v19, %v5719_v17  ;;  %v5973_v53 = vmul.f32 %v12617_v50, %v5950_v48  ;;  %v6027_v1 = vmul.f32 %v12627_v20, %v6004_v40  ;;  %15664 = vst [vmem:[#allocation99_spill] sm:$0xff] %v12635_v31  ;;  %v6115_v19 = vld [vmem:[#allocation2 + $0x272] sm:$0xff]  ;;  %v12643_v40 = vld [vmem:[%s14852_s7 + $0x20] ss:$0 sm:$0xff] }
 0x771   : > { %v6028_v55 = vmul.f32 %v12627_v20, %v6005_v26  ;;  %v5828_v58 = vadd.f32 %v12544_v63, %v5773_v45  ;;  %v6082_v17 = vmul.f32 %v12635_v31, %v6059_v41  ;;  %v3062_v9 = vadd.f32 %v3046_v29, %v3004_v10  ;;  %15665 = vst [vmem:[#allocation52_spill] sm:$0xff] %v12643_v40  ;;  %v3243_v60 = vld [vmem:[#allocation2 + $0x74] sm:$0xff]  ;;  %v3298_v10 = vld [vmem:[#allocation2 + $0xac] sm:$0xff] }
 0x772   : > { %v3063_v25 = vadd.f32 %v3047_v23, %v3005_v22  ;;  %v5829_v46 = vadd.f32 %v12559_v44, %v5774_v42  ;;  %v6083_v3 = vmul.f32 %v12635_v31, %v6060_v33  ;;  %v6137_v63 = vmul.f32 %v12643_v40, %v6114_v49  ;;  %v6166_v41 = vld [vmem:[#allocation2 + $0x274] sm:$0xff]  ;;  %v3297_v44 = vld [vmem:[#allocation2 + $0xa4] sm:$0xff]  ;;  %v12654_v49 = vld [vmem:[%s14852_s7 + $0x21] ss:$0 sm:$0xff] }
 0x773   : > { %v3214_v26 = vmul.f32 %v12223_v39, %v3190_v8  ;;  %v5883_v45 = vadd.f32 %v12567_v37, %v5828_v58  ;;  %v3118_v20 = vadd.f32 %v3102_v4, %v3062_v9  ;;  %v3215_v23 = vmul.f32 %v12223_v39, %v3191_v62  ;;  %v3353_v4 = vld [vmem:[#allocation2 + $0xa6] sm:$0xff]  ;;  %v15666_v39 = vld [vmem:[#allocation93_spill] sm:$0xff] }
 0x774   : > { %v3119_v29 = vadd.f32 %v3103_v61, %v3063_v25  ;;  %v5884_v33 = vadd.f32 %v12583_v47, %v5829_v46  ;;  %v6138_v22 = vmul.f32 %v12643_v40, %v6115_v19  ;;  %v6184_v8 = vmul.f32 %v12654_v49, %v5950_v48  ;;  %v3354_v58 = vld [vmem:[#allocation2 + $0xae] sm:$0xff] }
 0x775   : > { %v3262_v37 = vmul.f32 %v12235_v24, %v12595_v36  ;;  %v5930_v61 = vadd.f32 %v12591_v7, %v5883_v45  ;;  %v3174_v42 = vadd.f32 %v15666_v39, %v3118_v20  ;;  %v3263_v47 = vmul.f32 %v12235_v24, %v3243_v60  ;;  %v3465_v46 = vld [vmem:[#allocation2 + $0xaa] sm:$0xff]  ;;  %v3466_v45 = vld [vmem:[#allocation2 + $0xb2] sm:$0xff] }
 0x776   : > { %v3175_v62 = vadd.f32 %v15666_v39, %v3119_v29  ;;  %v5931_v19 = vadd.f32 %v5915_v56, %v5884_v33  ;;  %v6185_v9 = vmul.f32 %v12654_v49, %v6166_v41  ;;  %v3321_v25 = vmul.f32 %v12248_v2, %v3297_v44  ;;  %v3518_v20 = vld [vmem:[#allocation2 + $0xb4] sm:$0xff]  ;;  %v8557_v24 = vld [vmem:[#allocation2 + $0xa8] sm:$0xff] }
 0x777   : > { %v3322_v48 = vmul.f32 %v12248_v2, %v3298_v10  ;;  %v5988_v40 = vadd.f32 %v5972_v52, %v5930_v61  ;;  %v3230_v36 = vadd.f32 %v3214_v26, %v3174_v42  ;;  %v3377_v7 = vmul.f32 %v12257_v21, %v3353_v4  ;;  %v8558_v60 = vld [vmem:[#allocation2 + $0xb0] sm:$0xff]  ;;  %v3569_v44 = vld [vmem:[#allocation2 + $0xe4] sm:$0xff] }
 0x778   : > { %v3231_v31 = vadd.f32 %v3215_v23, %v3175_v62  ;;  %v5989_v50 = vadd.f32 %v5973_v53, %v5931_v19  ;;  %v3378_v29 = vmul.f32 %v12257_v21, %v3354_v58  ;;  %v3433_v56 = vmul.f32 %v8557_v24, %v12266_v34  ;;  %v3570_v26 = vld [vmem:[#allocation2 + $0xec] sm:$0xff] }
 0x779   : > { %v3434_v41 = vmul.f32 %v8558_v60, %v12266_v34  ;;  %v6043_v33 = vadd.f32 %v6027_v1, %v5988_v40  ;;  %v3278_v2 = vadd.f32 %v3262_v37, %v3230_v36  ;;  %v3489_v52 = vmul.f32 %v12278_v38, %v3465_v46  ;;  %v3625_v23 = vld [vmem:[#allocation2 + $0xe6] sm:$0xff]  ;;  %v3626_v4 = vld [vmem:[#allocation2 + $0xee] sm:$0xff] }
 0x77a   : > { %v3279_v39 = vadd.f32 %v3263_v47, %v3231_v31  ;;  %v6044_v61 = vadd.f32 %v6028_v55, %v5989_v50  ;;  %v3490_v53 = vmul.f32 %v12278_v38, %v3466_v45  ;;  %v3537_v21 = vmul.f32 %v12289_v43, %v3298_v10  ;;  %v4393_v62 = vld [vmem:[#allocation2 + $0x1e7] sm:$0xff]  ;;  %v4394_v40 = vld [vmem:[#allocation2 + $0x1ef] sm:$0xff] }
 0x77b   : > { %v3538_v42 = vmul.f32 %v12289_v43, %v3518_v20  ;;  %v6098_v58 = vadd.f32 %v6082_v17, %v6043_v33  ;;  %v3337_v19 = vadd.f32 %v3321_v25, %v3278_v2  ;;  %v3593_v1 = vmul.f32 %v12463_v15, %v3569_v44  ;;  %v4448_v31 = vld [vmem:[#allocation2 + $0x1e8] sm:$0xff]  ;;  %v12681_v43 = vld [vmem:[%s14852_s7] ss:$0 sm:$0xff]  ;;  %v4449_v25 = vld [vmem:[#allocation2 + $0x1f0] sm:$0xff] }
 0x77c   : > { %v3338_v34 = vadd.f32 %v3322_v48, %v3279_v39  ;;  %v6099_v37 = vadd.f32 %v6083_v3, %v6044_v61  ;;  %v3594_v47 = vmul.f32 %v12463_v15, %v3570_v26  ;;  %v3649_v46 = vmul.f32 %v12472_v14, %v3625_v23  ;;  %v4503_v45 = vld [vmem:[#allocation2 + $0x1e9] sm:$0xff]  ;;  %v4504_v33 = vld [vmem:[#allocation2 + $0x1f1] sm:$0xff] }
 0x77d   : > { %v3650_v50 = vmul.f32 %v12472_v14, %v3626_v4  ;;  %v6153_v38 = vadd.f32 %v6137_v63, %v6098_v58  ;;  %v3393_v55 = vadd.f32 %v3377_v7, %v3337_v19  ;;  %v4416_v17 = vmul.f32 %v12681_v43, %v4393_v62  ;;  %v12690_v63 = vld [vmem:[%s14852_s7 + $0x1] ss:$0 sm:$0xff]  ;;  %v3721_v60 = vld [vmem:[#allocation2 + $0xea] sm:$0xff]  ;;  %v3722_v4 = vld [vmem:[#allocation2 + $0xf2] sm:$0xff] }
 0x77e   : > { %v3394_v10 = vadd.f32 %v3378_v29, %v3338_v34  ;;  %v6154_v48 = vadd.f32 %v6138_v22, %v6099_v37  ;;  %v3689_v3 = vmul.f32 %v12303_v5, %v12505_v59  ;;  %v4417_v36 = vmul.f32 %v12681_v43, %v4394_v40  ;;  %v12698_v22 = vld [vmem:[%s14853_s8] ss:$0 sm:$0xff]  ;;  %v12710_v62 = vld [vmem:[%s14852_s7 + $0x2] ss:$0 sm:$0xff]  ;;  %v12717_v40 = vld [vmem:[#allocation2 + $0x208] sm:$0xff] }
 0x77f   : > { %v4471_v7 = vmul.f32 %v12690_v63, %v4448_v31  ;;  %v12693_v20 = vadd.f32 %v6184_v8, %v6153_v38  ;;  %v3449_v29 = vadd.f32 %v3433_v56, %v3393_v55  ;;  %v4432_v44 = vadd.f32 %v12698_v22, %v4416_v17  ;;  %v3774_v31 = vld [vmem:[#allocation2 + $0xf4] sm:$0xff]  ;;  %v3828_v37 = vld [vmem:[#allocation2 + $0x124] sm:$0xff] }
 0x780   : > { %v3450_v24 = vadd.f32 %v3434_v41, %v3394_v10  ;;  %v12701_v2 = vadd.f32 %v6185_v9, %v6154_v48  ;;  %v3690_v39 = vmul.f32 %v12303_v5, %v12518_v12  ;;  %v4433_v23 = vadd.f32 %v12698_v22, %v4417_v36  ;;  %v12721_v10 = vld [vmem:[#allocation2 + $0x210] sm:$0xff] }
 0x781   : > { %15667 = vst [vmem:[#allocation53_spill] sm:$0xff] %v12693_v20  ;;  %v4472_v8 = vmul.f32 %v12690_v63, %v4449_v25  ;;  %v3505_v56 = vadd.f32 %v3489_v52, %v3449_v29  ;;  %v4487_v61 = vadd.f32 %v4471_v7, %v4432_v44  ;;  %v4526_v58 = vmul.f32 %v12710_v62, %v4503_v45  ;;  %v3884_v45 = vld [vmem:[#allocation2 + $0x126] sm:$0xff] }
 0x782   : > { %15668 = vst [vmem:[#allocation33_spill] sm:$0xff] %v12701_v2  ;;  %v3506_v41 = vadd.f32 %v3490_v53, %v3450_v24  ;;  %v8167_v9 = vpack.c.bf16 %v12701_v2, %v12693_v20  ;;  %v3745_v5 = vmul.f32 %v12485_v51, %v3721_v60  ;;  %v4527_v34 = vmul.f32 %v12710_v62, %v4504_v33  ;;  %v12733_v33 = vld [vmem:[#allocation2 + $0x227] sm:$0xff] }
 0x783   : > { %v4488_v19 = vadd.f32 %v4472_v8, %v4433_v23  ;;  %v3553_v52 = vadd.f32 %v3537_v21, %v3505_v56  ;;  %v4542_v38 = vadd.f32 %v4526_v58, %v4487_v61  ;;  %v4581_v55 = vmul.f32 %v12324_v35, %v12345_v27  ;;  %15669 = vst [vmem:[#allocation42_spill] sm:$0xff] %v12733_v33  ;;  %v12739_v56 = vld [vmem:[#allocation2 + $0x22f] sm:$0xff]  ;;  %v15693_v2 = vld [vmem:[#allocation99_spill] sm:$0xff] }
 0x784   : > { %v3554_v53 = vadd.f32 %v3538_v42, %v3506_v41  ;;  %8168 = vmatprep.subr.bf16.mxu0 %v8167_v9  ;;  %v3746_v17 = vmul.f32 %v12485_v51, %v3722_v4  ;;  %v3793_v25 = vmul.f32 %v12498_v16, %v3570_v26  ;;  %v4582_v36 = vmul.f32 %v12324_v35, %v12357_v57  ;;  %v3829_v42 = vld [vmem:[#allocation2 + $0x12c] sm:$0xff] }
 0x785   : > { %v4543_v48 = vadd.f32 %v4527_v34, %v4488_v19  ;;  %v3609_v7 = vadd.f32 %v3593_v1, %v3553_v52  ;;  %v4597_v29 = vadd.f32 %v4581_v55, %v4542_v38  ;;  %v4636_v24 = vmul.f32 %v15651_v32, %v12717_v40  ;;  %v3885_v57 = vld [vmem:[#allocation2 + $0x12e] sm:$0xff]  ;;  %15670 = vst [vmem:[#allocation32_spill] sm:$0xff] %v12739_v56  ;;  %v15672_v55 = vld [vmem:[#allocation18_spill] sm:$0xff] }
 0x786   : > { %v3610_v21 = vadd.f32 %v3594_v47, %v3554_v53  ;;  %v3794_v27 = vmul.f32 %v12498_v16, %v3774_v31  ;;  %v3852_v60 = vmul.f32 %v12511_v0, %v3828_v37  ;;  %v4637_v26 = vmul.f32 %v15651_v32, %v12721_v10  ;;  %v12735_v1 = vld [vmem:[#allocation2 + $0x128] sm:$0xff] }
 0x787   : > { %v4598_v44 = vadd.f32 %v4582_v36, %v4543_v48  ;;  %v3665_v23 = vadd.f32 %v3649_v46, %v3609_v7  ;;  %v4652_v47 = vadd.f32 %v4636_v24, %v4597_v29  ;;  %v4691_v8 = vmul.f32 %v12549_v13, %v12368_v30  ;;  %v3996_v9 = vld [vmem:[#allocation2 + $0x12a] sm:$0xff]  ;;  %v15673_v48 = vld [vmem:[#allocation59_spill] sm:$0xff] }
 0x788   : > { %v3666_v35 = vadd.f32 %v3650_v50, %v3610_v21  ;;  %v3853_v41 = vmul.f32 %v12511_v0, %v3829_v42  ;;  %v3908_v4 = vmul.f32 %v12528_v6, %v3884_v45  ;;  %v4692_v32 = vmul.f32 %v12549_v13, %v12379_v11  ;;  %v12745_v50 = vld [vmem:[#allocation2 + $0x130] sm:$0xff]  ;;  %v15675_v45 = vld [vmem:[#allocation16_spill] sm:$0xff] }
 0x789   : > { %v4653_v61 = vadd.f32 %v4637_v26, %v4598_v44  ;;  %v3705_v58 = vadd.f32 %v3689_v3, %v3665_v23  ;;  %v4707_v19 = vadd.f32 %v4691_v8, %v4652_v47  ;;  %v4746_v34 = vmul.f32 %v12572_v28, %v12733_v33  ;;  %v12754_v37 = vld [vmem:[#allocation2 + $0x229] sm:$0xff]  ;;  %v12758_v7 = vld [vmem:[#allocation2 + $0x231] sm:$0xff] }
 0x78a   : > { %v3706_v46 = vadd.f32 %v3690_v39, %v3666_v35  ;;  %v3909_v30 = vmul.f32 %v12528_v6, %v3885_v57  ;;  %v3964_v52 = vmul.f32 %v12351_v18, %v12735_v1  ;;  %v4747_v31 = vmul.f32 %v12572_v28, %v12739_v56  ;;  %15671 = vst [vmem:[#allocation54_spill] sm:$0xff] %v12754_v37  ;;  %v3997_v39 = vld [vmem:[#allocation2 + $0x132] sm:$0xff]  ;;  %v12765_v23 = vld [vmem:[#allocation2 + $0x184] sm:$0xff] }
 0x78b   : > { %v4708_v53 = vadd.f32 %v4692_v32, %v4653_v61  ;;  %v3761_v11 = vadd.f32 %v3745_v5, %v3705_v58  ;;  %v4762_v38 = vadd.f32 %v4746_v34, %v4707_v19  ;;  %v4801_v36 = vmul.f32 %v15673_v48, %v15672_v55  ;;  %15674 = vst [vmem:[#allocation72_spill] sm:$0xff] %v12758_v7  ;;  %v15676_v44 = vld [vmem:[#allocation49_spill] sm:$0xff]  ;;  %v12780_v34 = vld [vmem:[%s14852_s7 + $0x9] ss:$0 sm:$0xff] }
 0x78c   : > { %v3762_v3 = vadd.f32 %v3746_v17, %v3706_v46  ;;  %v3965_v21 = vmul.f32 %v12351_v18, %v12745_v50  ;;  %v4020_v29 = vmul.f32 %v15675_v45, %v3996_v9  ;;  %v4802_v26 = vmul.f32 %v15673_v48, %v15676_v44  ;;  %15677 = vst [vmem:[#allocation55_spill] sm:$0xff] %v12765_v23  ;;  %v4049_v35 = vld [vmem:[#allocation2 + $0x134] sm:$0xff]  ;;  %v12769_v8 = vld [vmem:[#allocation2 + $0x18c] sm:$0xff] }
 0x78d   : > { %v4763_v24 = vadd.f32 %v4747_v31, %v4708_v53  ;;  %v3809_v5 = vadd.f32 %v3793_v25, %v3761_v11  ;;  %v4817_v57 = vadd.f32 %v4801_v36, %v4762_v38  ;;  %v4856_v47 = vmul.f32 %v12603_v54, %v12754_v37  ;;  %15678 = vst [vmem:[#allocation48_spill] sm:$0xff] %v12769_v8  ;;  %v15679_v18 = vld [vmem:[#allocation94_spill] sm:$0xff]  ;;  %v12775_v9 = vld [vmem:[#allocation2 + $0x186] sm:$0xff]  ;;  %v12784_v31 = vld [vmem:[#allocation2 + $0x18e] sm:$0xff] }
 0x78e   : > { %v3810_v17 = vadd.f32 %v3794_v27, %v3762_v3  ;;  %v4021_v61 = vmul.f32 %v15675_v45, %v3997_v39  ;;  %v4068_v32 = vmul.f32 %v15679_v18, %v3829_v42  ;;  %v4857_v46 = vmul.f32 %v12603_v54, %v12758_v7  ;;  %15680 = vst [vmem:[#allocation34_spill] sm:$0xff] %v12775_v9  ;;  %v15682_v11 = vld [vmem:[#allocation68_spill] sm:$0xff]  ;;  %v15683_v3 = vld [vmem:[#allocation95_spill] sm:$0xff]  ;;  %v8572_v33 = vld [vmem:[#allocation2 + $0x1d0] sm:$0xff] }
 0x78f   : > { %v4818_v58 = vadd.f32 %v4802_v26, %v4763_v24  ;;  %v3868_v19 = vadd.f32 %v3852_v60, %v3809_v5  ;;  %v4872_v27 = vadd.f32 %v4856_v47, %v4817_v57  ;;  %v4913_v53 = vmul.f32 %v12780_v34, %v12765_v23  ;;  %15681 = vst [vmem:[#allocation74_spill] sm:$0xff] %v12784_v31  ;;  %v12796_v24 = vld [vmem:[%s14852_s7 + $0xa] ss:$0 sm:$0xff]  ;;  %v12800_v26 = vld [vmem:[#allocation2 + $0x190] sm:$0xff]  ;;  %v15688_v57 = vld [vmem:[#allocation98_spill] sm:$0xff] }
 0x790   : > { %v3869_v25 = vadd.f32 %v3853_v41, %v3810_v17  ;;  %v4069_v42 = vmul.f32 %v15679_v18, %v4049_v35  ;;  %v4127_v39 = vmul.f32 %v15683_v3, %v15682_v11  ;;  %v4914_v60 = vmul.f32 %v12780_v34, %v12769_v8  ;;  %v12791_v41 = vld [vmem:[#allocation2 + $0x188] sm:$0xff]  ;;  %15685 = vst [vmem:[#allocation75_spill] sm:$0xff] %v12800_v26  ;;  %v15686_v5 = vld [vmem:[#allocation97_spill] sm:$0xff]  ;;  %v15698_v7 = vld [vmem:[#allocation31_spill] sm:$0xff] }
 0x791   : > { %v4873_v38 = vadd.f32 %v4857_v46, %v4818_v58  ;;  %15684 = vst [vmem:[#allocation78_spill] sm:$0xff] %v12791_v41  ;;  %v3924_v55 = vadd.f32 %v3908_v4, %v3868_v19  ;;  %v4929_v36 = vadd.f32 %v4913_v53, %v4872_v27  ;;  %v4968_v44 = vmul.f32 %v12796_v24, %v12775_v9  ;;  %v15687_v35 = vld [vmem:[#allocation61_spill] sm:$0xff]  ;;  %v12813_v27 = vld [vmem:[%s14852_s7 + $0xb] ss:$0 sm:$0xff] }
 0x792   : > { %v3925_v48 = vadd.f32 %v3909_v30, %v3869_v25  ;;  %v4128_v17 = vmul.f32 %v15683_v3, %v15686_v5  ;;  %v4183_v47 = vmul.f32 %v15688_v57, %v15687_v35  ;;  %v4969_v4 = vmul.f32 %v12796_v24, %v12784_v31  ;;  %v12808_v30 = vld [vmem:[#allocation2 + $0x18a] sm:$0xff]  ;;  %v12817_v11 = vld [vmem:[#allocation2 + $0x192] sm:$0xff] }
 0x793   : > { %v4930_v58 = vadd.f32 %v4914_v60, %v4873_v38  ;;  %15689 = vst [vmem:[#allocation40_spill] sm:$0xff] %v12808_v30  ;;  %v3980_v46 = vadd.f32 %v3964_v52, %v3924_v55  ;;  %v4984_v25 = vadd.f32 %v4968_v44, %v4929_v36  ;;  %v5023_v53 = vmul.f32 %v12813_v27, %v12791_v41  ;;  %v15691_v35 = vld [vmem:[#allocation69_spill] sm:$0xff]  ;;  %v15692_v60 = vld [vmem:[#allocation71_spill] sm:$0xff]  ;;  %v12828_v36 = vld [vmem:[%s14852_s7 + $0xc] ss:$0 sm:$0xff] }
 0x794   : > { %v3981_v19 = vadd.f32 %v3965_v21, %v3925_v48  ;;  %15690 = vst [vmem:[#allocation38_spill] sm:$0xff] %v12817_v11  ;;  %v4184_v38 = vmul.f32 %v15688_v57, %v15691_v35  ;;  %v4239_v20 = vmul.f32 %v15693_v2, %v15692_v60  ;;  %v5024_v52 = vmul.f32 %v12813_v27, %v12800_v26  ;;  %v12832_v41 = vld [vmem:[#allocation2 + $0x194] sm:$0xff]  ;;  %v5215_v23 = vld [vmem:[#allocation2 + $0x1c6] sm:$0xff] }
 0x795   : > { %v4985_v31 = vadd.f32 %v4969_v4, %v4930_v58  ;;  %v4036_v21 = vadd.f32 %v4020_v29, %v3980_v46  ;;  %v5039_v48 = vadd.f32 %v5023_v53, %v4984_v25  ;;  %v5078_v44 = vmul.f32 %v12828_v36, %v12808_v30  ;;  %15694 = vst [vmem:[#allocation39_spill] sm:$0xff] %v12832_v41  ;;  %v15695_v35 = vld [vmem:[#allocation73_spill] sm:$0xff]  ;;  %v15696_v58 = vld [vmem:[#allocation76_spill] sm:$0xff] }
 0x796   : > { %v4037_v55 = vadd.f32 %v4021_v61, %v3981_v19  ;;  %v4240_v60 = vmul.f32 %v15693_v2, %v15695_v35  ;;  %v15697_v4 = vld [vmem:[#allocation52_spill] sm:$0xff]  ;;  %v5079_v29 = vmul.f32 %v12828_v36, %v12817_v11 }
 0x797   : > { %v4295_v9 = vmul.f32 %v15697_v4, %v15696_v58  ;;  %v5040_v26 = vadd.f32 %v5024_v52, %v4985_v31  ;;  %v5160_v61 = vld [vmem:[#allocation2 + $0x1c4] sm:$0xff]  ;;  %v4084_v46 = vadd.f32 %v4068_v32, %v4036_v21  ;;  %v5094_v25 = vadd.f32 %v5078_v44, %v5039_v48  ;;  %v12843_v53 = vld [vmem:[%s14852_s7 + $0xd] ss:$0 sm:$0xff]  ;;  %v12856_v44 = vld [vmem:[%s14852_s7 + $0xe] ss:$0 sm:$0xff] }
 0x798   : > { %v4085_v19 = vadd.f32 %v4069_v42, %v4037_v55  ;;  %v5125_v30 = vmul.f32 %v12843_v53, %v12769_v8  ;;  %v5161_v35 = vld [vmem:[#allocation2 + $0x1cc] sm:$0xff]  ;;  %v4296_v31 = vmul.f32 %v15697_v4, %v15698_v7  ;;  %v4343_v52 = vmul.f32 %v12654_v49, %v15686_v5  ;;  %15699 = vst [vmem:[#allocation77_spill] sm:$0xff] %v12856_v44 }
 0x799   : > { %v5095_v58 = vadd.f32 %v5079_v29, %v5040_v26  ;;  %v5126_v32 = vmul.f32 %v12843_v53, %v12832_v41  ;;  %v5216_v42 = vld [vmem:[#allocation2 + $0x1ce] sm:$0xff]  ;;  %v4143_v21 = vadd.f32 %v4127_v39, %v4084_v46  ;;  %v5183_v11 = vmul.f32 %v12856_v44, %v5160_v61  ;;  %v5427_v41 = vld [vmem:[#allocation2 + $0x204] sm:$0xff] }
 0x79a   : > { %v4144_v55 = vadd.f32 %v4128_v17, %v4085_v19  ;;  %v5141_v48 = vadd.f32 %v5125_v30, %v5094_v25  ;;  %v5325_v8 = vld [vmem:[#allocation2 + $0x1ca] sm:$0xff]  ;;  %v5184_v26 = vmul.f32 %v12856_v44, %v5161_v35  ;;  %v5326_v30 = vld [vmem:[#allocation2 + $0x1d2] sm:$0xff]  ;;  %v5450_v44 = vmul.f32 %v12463_v15, %v5427_v41 }
 0x79b   : > { %v15700_v7 = vld [vmem:[#allocation21_spill] sm:$0xff]  ;;  %v5142_v5 = vadd.f32 %v5126_v32, %v5095_v58  ;;  %v12865_v39 = vld [vmem:[%s14852_s7 + $0xf] ss:$0 sm:$0xff]  ;;  %v4199_v29 = vadd.f32 %v4183_v47, %v4143_v21 }
 0x79c   : > { %v4344_v37 = vmul.f32 %v12654_v49, %v15700_v7  ;;  %15701 = vst [vmem:[#allocation64_spill] sm:$0xff] %v12865_v39  ;;  %v5238_v17 = vmul.f32 %v12865_v39, %v5215_v23  ;;  %v4200_v46 = vadd.f32 %v4184_v38, %v4144_v55  ;;  %v5199_v19 = vadd.f32 %v5183_v11, %v5141_v48  ;;  %v5376_v25 = vld [vmem:[#allocation2 + $0x1d4] sm:$0xff]  ;;  %v12872_v58 = vld [vmem:[%s14852_s7 + $0x10] ss:$0 sm:$0xff]  ;;  %v8571_v32 = vld [vmem:[#allocation2 + $0x1c8] sm:$0xff] }
 0x79d   : > { %v5239_v61 = vmul.f32 %v12865_v39, %v5216_v42  ;;  %v5200_v56 = vadd.f32 %v5184_v26, %v5142_v5  ;;  %15702 = vst [vmem:[#allocation41_spill] sm:$0xff] %v12872_v58  ;;  %v5293_v7 = vmul.f32 %v8571_v32, %v12872_v58  ;;  %v5294_v23 = vmul.f32 %v8572_v33, %v12872_v58  ;;  %v12879_v47 = vld [vmem:[%s14852_s7 + $0x11] ss:$0 sm:$0xff]  ;;  %v5482_v5 = vld [vmem:[#allocation2 + $0x206] sm:$0xff]  ;;  %v12888_v33 = vld [vmem:[%s14852_s7 + $0x12] ss:$0 sm:$0xff] }
 0x79e   : > { %15703 = vst [vmem:[#allocation17_spill] sm:$0xff] %v12879_v47  ;;  %v5348_v11 = vmul.f32 %v12879_v47, %v5325_v8  ;;  %v12882_v38 = vld [vmem:[#allocation2 + $0x20c] sm:$0xff]  ;;  %v4255_v42 = vadd.f32 %v4239_v20, %v4199_v29  ;;  %v4256_v21 = vadd.f32 %v4240_v60, %v4200_v46  ;;  %v5254_v55 = vadd.f32 %v5238_v17, %v5199_v19 }
 0x79f   : > { %v5349_v48 = vmul.f32 %v12879_v47, %v5326_v30  ;;  %v2513_v26 = vld [vmem:[#allocation2 + $0xe7] sm:$0xff]  ;;  %v2514_v32 = vld [vmem:[#allocation2 + $0xef] sm:$0xff]  ;;  %v5255_v39 = vadd.f32 %v5239_v61, %v5200_v56  ;;  %v5395_v58 = vmul.f32 %v12888_v33, %v5161_v35  ;;  %v5396_v8 = vmul.f32 %v12888_v33, %v5376_v25 }
 0x7a0   : > { %v4311_v20 = vadd.f32 %v4295_v9, %v4255_v42  ;;  %v4312_v60 = vadd.f32 %v4296_v31, %v4256_v21  ;;  %v5309_v17 = vadd.f32 %v5293_v7, %v5254_v55  ;;  %v5451_v30 = vmul.f32 %v12463_v15, %v12882_v38  ;;  %v5483_v46 = vld [vmem:[#allocation2 + $0x20e] sm:$0xff] }
 0x7a1   : > { %v5310_v29 = vadd.f32 %v5294_v23, %v5255_v39  ;;  %v5505_v56 = vmul.f32 %v12472_v14, %v5482_v5  ;;  %v2536_v19 = vmul.f32 %v12681_v43, %v2513_v26  ;;  %v2537_v61 = vmul.f32 %v12681_v43, %v2514_v32  ;;  %v2630_v47 = vld [vmem:[#allocation2 + $0xe9] sm:$0xff]  ;;  %v2631_v31 = vld [vmem:[#allocation2 + $0xf1] sm:$0xff] }
 0x7a2   : > { %v12898_v35 = vadd.f32 %v4343_v52, %v4311_v20  ;;  %v12900_v25 = vadd.f32 %v4344_v37, %v4312_v60  ;;  %v5364_v41 = vadd.f32 %v5348_v11, %v5309_v17  ;;  %v2598_v9 = vmul.f32 %v12690_v63, %v12505_v59  ;;  %v5576_v55 = vld [vmem:[#allocation2 + $0x20a] sm:$0xff]  ;;  %v5577_v59 = vld [vmem:[#allocation2 + $0x212] sm:$0xff] }
 0x7a3   : > { %v5365_v7 = vadd.f32 %v5349_v48, %v5310_v29  ;;  %v2558_v15 = vadd.f32 %v12698_v22, %v2536_v19  ;;  %v2559_v39 = vadd.f32 %v12698_v22, %v2537_v61  ;;  %v2599_v23 = vmul.f32 %v12690_v63, %v12518_v12  ;;  %v12913_v32 = vld [vmem:[#allocation2 + $0x108] sm:$0xff]  ;;  %v12918_v12 = vld [vmem:[%s14852_s7 + $0x15] ss:$0 sm:$0xff] }
 0x7a4   : > { %15704 = vst [vmem:[#allocation79_spill] sm:$0xff] %v12898_v35  ;;  %15705 = vst [vmem:[#allocation23_spill] sm:$0xff] %v12900_v25  ;;  %v8169_v42 = vpack.c.bf16 %v12900_v25, %v12898_v35  ;;  %v5411_v52 = vadd.f32 %v5395_v58, %v5364_v41  ;;  %v5506_v37 = vmul.f32 %v12472_v14, %v5483_v46  ;;  %v5627_v29 = vld [vmem:[#allocation2 + $0x214] sm:$0xff]  ;;  %v5951_v25 = vld [vmem:[#allocation2 + $0x284] sm:$0xff] }
 0x7a5   : > { %v2654_v11 = vmul.f32 %v12710_v62, %v2630_v47  ;;  %v5412_v21 = vadd.f32 %v5396_v8, %v5365_v7  ;;  %v2614_v5 = vadd.f32 %v2598_v9, %v2558_v15  ;;  %v2615_v48 = vadd.f32 %v2599_v23, %v2559_v39  ;;  %v12927_v47 = vld [vmem:[%s14852_s7 + $0x3] ss:$0 sm:$0xff]  ;;  %v15706_v8 = vld [vmem:[#allocation81_spill] sm:$0xff]  ;;  %v12940_v15 = vld [vmem:[%s14852_s7 + $0x4] ss:$0 sm:$0xff] }
 0x7a6   : > { %v2655_v26 = vmul.f32 %v12710_v62, %v2631_v31  ;;  %8170 = vmatpush3.bf16.msra.mxu0 %v8169_v42  ;;  %v5466_v20 = vadd.f32 %v5450_v44, %v5411_v52  ;;  %v5544_v14 = vmul.f32 %v12918_v12, %v12717_v40  ;;  %v5545_v58 = vmul.f32 %v12918_v12, %v12721_v10  ;;  %v12931_v44 = vld [vmem:[#allocation2 + $0x110] sm:$0xff]  ;;  %v5681_v23 = vld [vmem:[#allocation2 + $0x244] sm:$0xff] }
 0x7a7   : > { %v2710_v60 = vmul.f32 %v12927_v47, %v15706_v8  ;;  %v5467_v17 = vadd.f32 %v5451_v30, %v5412_v21  ;;  %v2670_v46 = vadd.f32 %v2654_v11, %v2614_v5  ;;  %v15707_v61 = vld [vmem:[#allocation89_spill] sm:$0xff]  ;;  %v5599_v31 = vmul.f32 %v12485_v51, %v5576_v55  ;;  %v12948_v21 = vld [vmem:[#allocation2 + $0x127] sm:$0xff] }
 0x7a8   : > { %v2671_v19 = vadd.f32 %v2655_v26, %v2615_v48  ;;  %v2711_v41 = vmul.f32 %v12927_v47, %v15707_v61  ;;  %v5521_v9 = vadd.f32 %v5505_v56, %v5466_v20  ;;  %v5600_v7 = vmul.f32 %v12485_v51, %v5577_v59  ;;  %v12944_v42 = vld [vmem:[#allocation2 + $0x24c] sm:$0xff]  ;;  %v15708_v5 = vld [vmem:[#allocation91_spill] sm:$0xff] }
 0x7a9   : > { %v2766_v39 = vmul.f32 %v12940_v15, %v12913_v32  ;;  %v5522_v30 = vadd.f32 %v5506_v37, %v5467_v17  ;;  %v2726_v52 = vadd.f32 %v2710_v60, %v2670_v46  ;;  %v2767_v56 = vmul.f32 %v12940_v15, %v12931_v44  ;;  %v12955_v37 = vld [vmem:[#allocation2 + $0x12f] sm:$0xff]  ;;  %v5736_v20 = vld [vmem:[#allocation2 + $0x246] sm:$0xff] }
 0x7aa   : > { %v2727_v11 = vadd.f32 %v2711_v41, %v2671_v19  ;;  %v5560_v51 = vadd.f32 %v5544_v14, %v5521_v9  ;;  %v5646_v55 = vmul.f32 %v12498_v16, %v12882_v38  ;;  %v5647_v59 = vmul.f32 %v12498_v16, %v5627_v29  ;;  %v5737_v8 = vld [vmem:[#allocation2 + $0x24e] sm:$0xff] }
 0x7ab   : > { %v2822_v48 = vmul.f32 %v12549_v13, %v15708_v5  ;;  %v5561_v26 = vadd.f32 %v5545_v58, %v5522_v30  ;;  %v2782_v60 = vadd.f32 %v2766_v39, %v2726_v52  ;;  %v15709_v46 = vld [vmem:[#allocation84_spill] sm:$0xff]  ;;  %v5704_v14 = vmul.f32 %v12511_v0, %v5681_v23  ;;  %v12966_v58 = vld [vmem:[#allocation2 + $0x250] sm:$0xff] }
 0x7ac   : > { %v2783_v17 = vadd.f32 %v2767_v56, %v2727_v11  ;;  %v2823_v19 = vmul.f32 %v12549_v13, %v15709_v46  ;;  %v5615_v61 = vadd.f32 %v5599_v31, %v5560_v51  ;;  %v5705_v38 = vmul.f32 %v12511_v0, %v12944_v42  ;;  %v12964_v41 = vld [vmem:[#allocation2 + $0x248] sm:$0xff]  ;;  %v12981_v11 = vld [vmem:[#allocation2 + $0x131] sm:$0xff] }
 0x7ad   : > { %v2878_v16 = vmul.f32 %v12572_v28, %v12948_v21  ;;  %v5616_v29 = vadd.f32 %v5600_v7, %v5561_v26  ;;  %v2838_v9 = vadd.f32 %v2822_v48, %v2782_v60  ;;  %v2879_v30 = vmul.f32 %v12572_v28, %v12955_v37  ;;  %v12970_v13 = vld [vmem:[#allocation2 + $0x129] sm:$0xff]  ;;  %v12977_v7 = vld [vmem:[%s14852_s7 + $0x7] ss:$0 sm:$0xff]  ;;  %v5847_v28 = vld [vmem:[#allocation2 + $0x252] sm:$0xff] }
 0x7ae   : > { %v2839_v39 = vadd.f32 %v2823_v19, %v2783_v17  ;;  %15710 = vst [vmem:[#allocation85_spill] sm:$0xff] %v12970_v13  ;;  %v5662_v31 = vadd.f32 %v5646_v55, %v5615_v61  ;;  %v5759_v23 = vmul.f32 %v12528_v6, %v5736_v20  ;;  %v5760_v0 = vmul.f32 %v12528_v6, %v5737_v8  ;;  %v5846_v51 = vld [vmem:[#allocation2 + $0x24a] sm:$0xff]  ;;  %v12988_v20 = vld [vmem:[%s14852_s7 + $0x1a] ss:$0 sm:$0xff] }
 0x7af   : > { %v2934_v52 = vmul.f32 %v12977_v7, %v12735_v1  ;;  %v5663_v56 = vadd.f32 %v5647_v59, %v5616_v29  ;;  %v2894_v5 = vadd.f32 %v2878_v16, %v2838_v9  ;;  %v2935_v55 = vmul.f32 %v12977_v7, %v12745_v50  ;;  %v3024_v26 = vld [vmem:[#allocation2 + $0x84] sm:$0xff]  ;;  %v3025_v60 = vld [vmem:[#allocation2 + $0x8c] sm:$0xff]  ;;  %v5897_v46 = vld [vmem:[#allocation2 + $0x254] sm:$0xff] }
 0x7b0   : > { %v2895_v48 = vadd.f32 %v2879_v30, %v2839_v39  ;;  %v5720_v6 = vadd.f32 %v5704_v14, %v5662_v31  ;;  %v5814_v1 = vmul.f32 %v12988_v20, %v12964_v41  ;;  %v5815_v59 = vmul.f32 %v12988_v20, %v12966_v58  ;;  %v3080_v14 = vld [vmem:[#allocation2 + $0x86] sm:$0xff]  ;;  %v3081_v30 = vld [vmem:[#allocation2 + $0x8e] sm:$0xff] }
 0x7b1   : > { %v2990_v8 = vmul.f32 %v12603_v54, %v12970_v13  ;;  %v5721_v17 = vadd.f32 %v5705_v38, %v5663_v56  ;;  %v2950_v50 = vadd.f32 %v2934_v52, %v2894_v5  ;;  %v2991_v61 = vmul.f32 %v12603_v54, %v12981_v11  ;;  %v5952_v35 = vld [vmem:[#allocation2 + $0x28c] sm:$0xff] }
 0x7b2   : > { %v2951_v19 = vadd.f32 %v2935_v55, %v2895_v48  ;;  %v5775_v16 = vadd.f32 %v5759_v23, %v5720_v6  ;;  %v5869_v29 = vmul.f32 %v15675_v45, %v5846_v51  ;;  %v5870_v9 = vmul.f32 %v15675_v45, %v5847_v28  ;;  %v3136_v56 = vld [vmem:[#allocation2 + $0x88] sm:$0xff]  ;;  %v3137_v45 = vld [vmem:[#allocation2 + $0x90] sm:$0xff] }
 0x7b3   : > { %v3048_v39 = vmul.f32 %v12780_v34, %v3024_v26  ;;  %v5776_v31 = vadd.f32 %v5760_v0, %v5721_v17  ;;  %v3006_v13 = vadd.f32 %v2990_v8, %v2950_v50  ;;  %v3049_v52 = vmul.f32 %v12780_v34, %v3025_v60  ;;  %v6006_v48 = vld [vmem:[#allocation2 + $0x286] sm:$0xff]  ;;  %v6007_v55 = vld [vmem:[#allocation2 + $0x28e] sm:$0xff] }
 0x7b4   : > { %v3007_v38 = vadd.f32 %v2991_v61, %v2951_v19  ;;  %v5830_v5 = vadd.f32 %v5814_v1, %v5775_v16  ;;  %v5916_v54 = vmul.f32 %v15679_v18, %v12944_v42  ;;  %v5917_v23 = vmul.f32 %v15679_v18, %v5897_v46  ;;  %v3192_v8 = vld [vmem:[#allocation2 + $0x8a] sm:$0xff]  ;;  %v3193_v19 = vld [vmem:[#allocation2 + $0x92] sm:$0xff] }
 0x7b5   : > { %v3104_v51 = vmul.f32 %v12796_v24, %v3080_v14  ;;  %v5831_v28 = vadd.f32 %v5815_v59, %v5776_v31  ;;  %v3064_v0 = vadd.f32 %v3048_v39, %v3006_v13  ;;  %v3105_v6 = vmul.f32 %v12796_v24, %v3081_v30  ;;  %v6116_v46 = vld [vmem:[#allocation2 + $0x28a] sm:$0xff]  ;;  %v3244_v30 = vld [vmem:[#allocation2 + $0x94] sm:$0xff] }
 0x7b6   : > { %v3065_v26 = vadd.f32 %v3049_v52, %v3007_v38  ;;  %v5885_v17 = vadd.f32 %v5869_v29, %v5830_v5  ;;  %v5974_v50 = vmul.f32 %v15683_v3, %v5951_v25  ;;  %v5975_v1 = vmul.f32 %v15683_v3, %v5952_v35  ;;  %v6117_v31 = vld [vmem:[#allocation2 + $0x292] sm:$0xff]  ;;  %v8580_v5 = vld [vmem:[#allocation2 + $0x160] sm:$0xff] }
 0x7b7   : > { %v3160_v42 = vmul.f32 %v12813_v27, %v3136_v56  ;;  %v5886_v18 = vadd.f32 %v5870_v9, %v5831_v28  ;;  %v3120_v61 = vadd.f32 %v3104_v51, %v3064_v0  ;;  %v3161_v59 = vmul.f32 %v12813_v27, %v3137_v45  ;;  %v3299_v9 = vld [vmem:[#allocation2 + $0xc4] sm:$0xff] }
 0x7b8   : > { %v3121_v14 = vadd.f32 %v3105_v6, %v3065_v26  ;;  %v5932_v16 = vadd.f32 %v5916_v54, %v5885_v17  ;;  %v6029_v13 = vmul.f32 %v15688_v57, %v6006_v48  ;;  %v6030_v39 = vmul.f32 %v15688_v57, %v6007_v55  ;;  %v3300_v57 = vld [vmem:[#allocation2 + $0xcc] sm:$0xff]  ;;  %v6167_v48 = vld [vmem:[#allocation2 + $0x294] sm:$0xff] }
 0x7b9   : > { %v3216_v29 = vmul.f32 %v12828_v36, %v3192_v8  ;;  %v5933_v25 = vadd.f32 %v5917_v23, %v5886_v18  ;;  %v3176_v3 = vadd.f32 %v3160_v42, %v3120_v61  ;;  %v3217_v52 = vmul.f32 %v12828_v36, %v3193_v19  ;;  %v3355_v26 = vld [vmem:[#allocation2 + $0xc6] sm:$0xff]  ;;  %v3356_v6 = vld [vmem:[#allocation2 + $0xce] sm:$0xff] }
 0x7ba   : > { %v3177_v38 = vadd.f32 %v3161_v59, %v3121_v14  ;;  %v5990_v56 = vadd.f32 %v5974_v50, %v5932_v16  ;;  %v13016_v51 = vmul.f32 %v8580_v5, %v15693_v2  ;;  %v6139_v54 = vmul.f32 %v15697_v4, %v6116_v46  ;;  %v15712_v2 = vld [vmem:[#allocation77_spill] sm:$0xff]  ;;  %v3411_v19 = vld [vmem:[#allocation2 + $0xc8] sm:$0xff] }
 0x7bb   : > { %v3264_v45 = vmul.f32 %v12843_v53, %v3025_v60  ;;  %v5991_v28 = vadd.f32 %v5975_v1, %v5933_v25  ;;  %v3232_v55 = vadd.f32 %v3216_v29, %v3176_v3  ;;  %v3265_v0 = vmul.f32 %v12843_v53, %v3244_v30  ;;  %v3412_v61 = vld [vmem:[#allocation2 + $0xd0] sm:$0xff] }
 0x7bc   : > { %15711 = vst [vmem:[#allocation86_spill] sm:$0xff] %v13016_v51  ;;  %v3233_v23 = vadd.f32 %v3217_v52, %v3177_v38  ;;  %v6045_v8 = vadd.f32 %v6029_v13, %v5990_v56  ;;  %v6140_v17 = vmul.f32 %v15697_v4, %v6117_v31  ;;  %v6186_v50 = vmul.f32 %v12654_v49, %v5952_v35  ;;  %v3467_v14 = vld [vmem:[#allocation2 + $0xca] sm:$0xff]  ;;  %v3468_v59 = vld [vmem:[#allocation2 + $0xd2] sm:$0xff] }
 0x7bd   : > { %v3323_v42 = vmul.f32 %v15712_v2, %v3299_v9  ;;  %v6046_v18 = vadd.f32 %v6030_v39, %v5991_v28  ;;  %v3280_v46 = vadd.f32 %v3264_v45, %v3232_v55  ;;  %v3324_v1 = vmul.f32 %v15712_v2, %v3300_v57  ;;  %v15713_v13 = vld [vmem:[#allocation64_spill] sm:$0xff]  ;;  %v15714_v39 = vld [vmem:[#allocation41_spill] sm:$0xff] }
 0x7be   : > { %v3281_v60 = vadd.f32 %v3265_v0, %v3233_v23  ;;  %v6100_v16 = vadd.f32 %v13016_v51, %v6045_v8  ;;  %v6187_v29 = vmul.f32 %v12654_v49, %v6167_v48  ;;  %v3379_v30 = vmul.f32 %v15713_v13, %v3355_v26  ;;  %v3519_v38 = vld [vmem:[#allocation2 + $0xd4] sm:$0xff]  ;;  %v3571_v52 = vld [vmem:[#allocation2 + $0x104] sm:$0xff]  ;;  %v3572_v9 = vld [vmem:[#allocation2 + $0x10c] sm:$0xff] }
 0x7bf   : > { %v3380_v4 = vmul.f32 %v15713_v13, %v3356_v6  ;;  %v6101_v35 = vadd.f32 %v13016_v51, %v6046_v18  ;;  %v3339_v25 = vadd.f32 %v3323_v42, %v3280_v46  ;;  %v3435_v3 = vmul.f32 %v15714_v39, %v3411_v19  ;;  %v15715_v45 = vld [vmem:[#allocation17_spill] sm:$0xff]  ;;  %v3627_v48 = vld [vmem:[#allocation2 + $0x106] sm:$0xff] }
 0x7c0   : > { %v3340_v31 = vadd.f32 %v3324_v1, %v3281_v60  ;;  %v6155_v56 = vadd.f32 %v6139_v54, %v6100_v16  ;;  %v3436_v5 = vmul.f32 %v15714_v39, %v3412_v61  ;;  %v3491_v28 = vmul.f32 %v15715_v45, %v3467_v14  ;;  %v3628_v6 = vld [vmem:[#allocation2 + $0x10e] sm:$0xff] }
 0x7c1   : > { %v3492_v49 = vmul.f32 %v15715_v45, %v3468_v59  ;;  %v6156_v55 = vadd.f32 %v6140_v17, %v6101_v35  ;;  %v3395_v23 = vadd.f32 %v3379_v30, %v3339_v25  ;;  %v3539_v26 = vmul.f32 %v12888_v33, %v3300_v57  ;;  %v4395_v8 = vld [vmem:[#allocation2 + $0x207] sm:$0xff]  ;;  %v4396_v42 = vld [vmem:[#allocation2 + $0x20f] sm:$0xff] }
 0x7c2   : > { %v3396_v0 = vadd.f32 %v3380_v4, %v3340_v31  ;;  %v13035_v19 = vadd.f32 %v6186_v50, %v6155_v56  ;;  %v3540_v18 = vmul.f32 %v12888_v33, %v3519_v38  ;;  %v13041_v54 = vld [vmem:[%s14852_s7 + $0x13] ss:$0 sm:$0xff]  ;;  %v13050_v50 = vld [vmem:[%s14852_s7 + $0x14] ss:$0 sm:$0xff]  ;;  %v3691_v59 = vmul.f32 %v12918_v12, %v12913_v32  ;;  %v3723_v16 = vld [vmem:[#allocation2 + $0x10a] sm:$0xff] }
 0x7c3   : > { %v3595_v46 = vmul.f32 %v13041_v54, %v3571_v52  ;;  %v3596_v17 = vmul.f32 %v13041_v54, %v3572_v9  ;;  %v13045_v60 = vadd.f32 %v6187_v29, %v6156_v55  ;;  %v3451_v1 = vadd.f32 %v3435_v3, %v3395_v23  ;;  %v3724_v30 = vld [vmem:[#allocation2 + $0x112] sm:$0xff]  ;;  %v4505_v38 = vld [vmem:[#allocation2 + $0x209] sm:$0xff] }
 0x7c4   : > { %15716 = vst [vmem:[#allocation24_spill] sm:$0xff] %v13035_v19  ;;  %v3452_v57 = vadd.f32 %v3436_v5, %v3396_v0  ;;  %v3651_v61 = vmul.f32 %v13050_v50, %v3627_v48  ;;  %v3652_v14 = vmul.f32 %v13050_v50, %v3628_v6  ;;  %v4418_v4 = vmul.f32 %v12681_v43, %v4395_v8  ;;  %v4506_v52 = vld [vmem:[#allocation2 + $0x211] sm:$0xff]  ;;  %v3830_v8 = vld [vmem:[#allocation2 + $0x144] sm:$0xff] }
 0x7c5   : > { %15717 = vst [vmem:[#allocation62_spill] sm:$0xff] %v13045_v60  ;;  %v4419_v29 = vmul.f32 %v12681_v43, %v4396_v42  ;;  %v8171_v35 = vpack.c.bf16 %v13045_v60, %v13035_v19  ;;  %v3507_v25 = vadd.f32 %v3491_v28, %v3451_v1  ;;  %v3692_v3 = vmul.f32 %v12918_v12, %v12931_v44  ;;  %v3775_v56 = vld [vmem:[#allocation2 + $0x114] sm:$0xff]  ;;  %v13137_v60 = vld [vmem:[%s14852_s7 + $0x6] ss:$0 sm:$0xff] }
 0x7c6   : > { %v3508_v31 = vadd.f32 %v3492_v49, %v3452_v57  ;;  %v4434_v5 = vadd.f32 %v12698_v22, %v4418_v4  ;;  %v4473_v55 = vmul.f32 %v12690_v63, %v12717_v40  ;;  %v4474_v43 = vmul.f32 %v12690_v63, %v12721_v10  ;;  %v13071_v49 = vld [vmem:[%s14852_s7 + $0x16] ss:$0 sm:$0xff] }
 0x7c7   : > { %v4435_v48 = vadd.f32 %v12698_v22, %v4419_v29  ;;  %8172 = vmatprep.subr.bf16.mxu0 %v8171_v35  ;;  %v3555_v23 = vadd.f32 %v3539_v26, %v3507_v25  ;;  %v3747_v0 = vmul.f32 %v13071_v49, %v3723_v16  ;;  %v3748_v6 = vmul.f32 %v13071_v49, %v3724_v30  ;;  %v13075_v22 = vld [vmem:[#allocation2 + $0x14c] sm:$0xff] }
 0x7c8   : > { %v3556_v28 = vadd.f32 %v3540_v18, %v3508_v31  ;;  %v4489_v42 = vadd.f32 %v4473_v55, %v4434_v5  ;;  %v4528_v1 = vmul.f32 %v12710_v62, %v4505_v38  ;;  %v4529_v63 = vmul.f32 %v12710_v62, %v4506_v52  ;;  %v13082_v18 = vld [vmem:[%s14852_s7 + $0x17] ss:$0 sm:$0xff]  ;;  %v13086_v30 = vld [vmem:[#allocation2 + $0x228] sm:$0xff]  ;;  %v15718_v62 = vld [vmem:[#allocation42_spill] sm:$0xff] }
 0x7c9   : > { %v4490_v40 = vadd.f32 %v4474_v43, %v4435_v48  ;;  %v3611_v10 = vadd.f32 %v3595_v46, %v3555_v23  ;;  %v3795_v57 = vmul.f32 %v13082_v18, %v3572_v9  ;;  %v3796_v16 = vmul.f32 %v13082_v18, %v3775_v56  ;;  %v13088_v4 = vld [vmem:[#allocation2 + $0x230] sm:$0xff]  ;;  %v3886_v29 = vld [vmem:[#allocation2 + $0x146] sm:$0xff]  ;;  %v13097_v9 = vld [vmem:[%s14852_s7 + $0x18] ss:$0 sm:$0xff] }
 0x7ca   : > { %v3612_v26 = vadd.f32 %v3596_v17, %v3556_v28  ;;  %v3887_v35 = vld [vmem:[#allocation2 + $0x14e] sm:$0xff]  ;;  %v4544_v25 = vadd.f32 %v4528_v1, %v4489_v42  ;;  %v4583_v46 = vmul.f32 %v12927_v47, %v15718_v62  ;;  %v3854_v56 = vmul.f32 %v13097_v9, %v3830_v8  ;;  %v13113_v8 = vld [vmem:[%s14852_s7 + $0x19] ss:$0 sm:$0xff] }
 0x7cb   : > { %v4545_v31 = vadd.f32 %v4529_v63, %v4490_v40  ;;  %v15719_v17 = vld [vmem:[#allocation32_spill] sm:$0xff]  ;;  %v3667_v52 = vadd.f32 %v3651_v61, %v3611_v10  ;;  %v3855_v48 = vmul.f32 %v13097_v9, %v13075_v22  ;;  %v13104_v43 = vld [vmem:[#allocation2 + $0x150] sm:$0xff]  ;;  %v4638_v61 = vmul.f32 %v12940_v15, %v13086_v30 }
 0x7cc   : > { %v4584_v38 = vmul.f32 %v12927_v47, %v15719_v17  ;;  %v3668_v5 = vadd.f32 %v3652_v14, %v3612_v26  ;;  %v13102_v55 = vld [vmem:[#allocation2 + $0x148] sm:$0xff]  ;;  %v4599_v23 = vadd.f32 %v4583_v46, %v4544_v25  ;;  %v4639_v14 = vmul.f32 %v12940_v15, %v13088_v4 }
 0x7cd   : > { %v3707_v42 = vadd.f32 %v3691_v59, %v3667_v52  ;;  %v3910_v1 = vmul.f32 %v13113_v8, %v3886_v29  ;;  %v3911_v63 = vmul.f32 %v13113_v8, %v3887_v35  ;;  %v13117_v10 = vld [vmem:[#allocation2 + $0x247] sm:$0xff]  ;;  %v13119_v26 = vld [vmem:[#allocation2 + $0x24f] sm:$0xff]  ;;  %v13124_v59 = vld [vmem:[%s14852_s7 + $0x5] ss:$0 sm:$0xff] }
 0x7ce   : > { %v4600_v28 = vadd.f32 %v4584_v38, %v4545_v31  ;;  %v3708_v40 = vadd.f32 %v3692_v3, %v3668_v5  ;;  %15720 = vst [vmem:[#allocation63_spill] sm:$0xff] %v13117_v10  ;;  %15721 = vst [vmem:[#allocation29_spill] sm:$0xff] %v13119_v26  ;;  %v3998_v25 = vld [vmem:[#allocation2 + $0x14a] sm:$0xff]  ;;  %v3999_v31 = vld [vmem:[#allocation2 + $0x152] sm:$0xff]  ;;  %v4654_v62 = vadd.f32 %v4638_v61, %v4599_v23 }
 0x7cf   : > { %v15722_v3 = vld [vmem:[#allocation54_spill] sm:$0xff]  ;;  %v15723_v38 = vld [vmem:[#allocation72_spill] sm:$0xff]  ;;  %v3763_v35 = vadd.f32 %v3747_v0, %v3707_v42  ;;  %v3966_v5 = vmul.f32 %v12988_v20, %v13102_v55  ;;  %v3967_v23 = vmul.f32 %v12988_v20, %v13104_v43  ;;  %v4749_v0 = vmul.f32 %v13137_v60, %v13119_v26 }
 0x7d0   : > { %v4655_v46 = vadd.f32 %v4639_v14, %v4600_v28  ;;  %v4693_v17 = vmul.f32 %v13124_v59, %v15722_v3  ;;  %v4694_v29 = vmul.f32 %v13124_v59, %v15723_v38  ;;  %v3764_v52 = vadd.f32 %v3748_v6, %v3708_v40  ;;  %v4050_v28 = vld [vmem:[#allocation2 + $0x154] sm:$0xff] }
 0x7d1   : > { %v4748_v3 = vmul.f32 %v13137_v60, %v13117_v10  ;;  %v3811_v6 = vadd.f32 %v3795_v57, %v3763_v35  ;;  %v13146_v40 = vld [vmem:[%s14852_s7 + $0x1b] ss:$0 sm:$0xff]  ;;  %v13152_v38 = vld [vmem:[#allocation2 + $0x251] sm:$0xff]  ;;  %v4803_v26 = vmul.f32 %v12977_v7, %v12964_v41  ;;  %v4804_v57 = vmul.f32 %v12977_v7, %v12966_v58  ;;  %v13173_v58 = vld [vmem:[%s14852_s7 + $0x8] ss:$0 sm:$0xff] }
 0x7d2   : > { %v4709_v61 = vadd.f32 %v4693_v17, %v4654_v62  ;;  %v4710_v14 = vadd.f32 %v4694_v29, %v4655_v46  ;;  %v3812_v42 = vadd.f32 %v3796_v16, %v3764_v52  ;;  %v4022_v62 = vmul.f32 %v13146_v40, %v3998_v25  ;;  %v13150_v17 = vld [vmem:[#allocation2 + $0x249] sm:$0xff]  ;;  %15725 = vst [vmem:[#allocation80_spill] sm:$0xff] %v13152_v38  ;;  %v13161_v25 = vld [vmem:[%s14852_s7 + $0x1c] ss:$0 sm:$0xff] }
 0x7d3   : > { %v4023_v46 = vmul.f32 %v13146_v40, %v3999_v31  ;;  %15724 = vst [vmem:[#allocation65_spill] sm:$0xff] %v13150_v17  ;;  %v3870_v16 = vadd.f32 %v3854_v56, %v3811_v6  ;;  %v4070_v31 = vmul.f32 %v13161_v25, %v13075_v22  ;;  %v4071_v52 = vmul.f32 %v13161_v25, %v4050_v28  ;;  %v13182_v28 = vld [vmem:[%s14852_s7 + $0x1d] ss:$0 sm:$0xff]  ;;  %v15730_v6 = vld [vmem:[#allocation48_spill] sm:$0xff] }
 0x7d4   : > { %v4764_v29 = vadd.f32 %v4748_v3, %v4709_v61  ;;  %v4765_v19 = vadd.f32 %v4749_v0, %v4710_v14  ;;  %v3871_v35 = vadd.f32 %v3855_v48, %v3812_v42  ;;  %v13166_v61 = vld [vmem:[#allocation2 + $0x1a4] sm:$0xff]  ;;  %v13168_v14 = vld [vmem:[#allocation2 + $0x1ac] sm:$0xff]  ;;  %v4858_v56 = vmul.f32 %v13173_v58, %v13150_v17  ;;  %15728 = vst [vmem:[#allocation27_spill] sm:$0xff] %v13182_v28 }
 0x7d5   : > { %15726 = vst [vmem:[#allocation66_spill] sm:$0xff] %v13166_v61  ;;  %15727 = vst [vmem:[#allocation82_spill] sm:$0xff] %v13168_v14  ;;  %v4859_v48 = vmul.f32 %v13173_v58, %v13152_v38  ;;  %v3926_v22 = vadd.f32 %v3910_v1, %v3870_v16  ;;  %v4130_v42 = vmul.f32 %v13182_v28, %v15730_v6  ;;  %v15734_v38 = vld [vmem:[#allocation34_spill] sm:$0xff] }
 0x7d6   : > { %v4819_v41 = vadd.f32 %v4803_v26, %v4764_v29  ;;  %v4820_v3 = vadd.f32 %v4804_v57, %v4765_v19  ;;  %v3927_v0 = vadd.f32 %v3911_v63, %v3871_v35  ;;  %v15729_v26 = vld [vmem:[#allocation55_spill] sm:$0xff]  ;;  %v13190_v57 = vld [vmem:[#allocation2 + $0x1ae] sm:$0xff]  ;;  %v4915_v1 = vmul.f32 %v12780_v34, %v13166_v61 }
 0x7d7   : > { %v4129_v19 = vmul.f32 %v13182_v28, %v15729_v26  ;;  %v13188_v29 = vld [vmem:[#allocation2 + $0x1a6] sm:$0xff]  ;;  %15732 = vst [vmem:[#allocation83_spill] sm:$0xff] %v13190_v57  ;;  %v4916_v63 = vmul.f32 %v12780_v34, %v13168_v14  ;;  %v3982_v16 = vadd.f32 %v3966_v5, %v3926_v22  ;;  %v13199_v26 = vld [vmem:[%s14852_s7 + $0x1e] ss:$0 sm:$0xff]  ;;  %v4971_v5 = vmul.f32 %v12796_v24, %v13190_v57  ;;  %v5328_v57 = vld [vmem:[#allocation2 + $0x1f2] sm:$0xff] }
 0x7d8   : > { %15731 = vst [vmem:[#allocation19_spill] sm:$0xff] %v13188_v29  ;;  %v4874_v17 = vadd.f32 %v4858_v56, %v4819_v41  ;;  %v4875_v10 = vadd.f32 %v4859_v48, %v4820_v3  ;;  %v3983_v35 = vadd.f32 %v3967_v23, %v3927_v0  ;;  %15733 = vst [vmem:[#allocation28_spill] sm:$0xff] %v13199_v26  ;;  %v15735_v28 = vld [vmem:[#allocation74_spill] sm:$0xff]  ;;  %v13205_v3 = vld [vmem:[#allocation2 + $0x1a8] sm:$0xff] }
 0x7d9   : > { %v4185_v51 = vmul.f32 %v13199_v26, %v15734_v38  ;;  %v4186_v41 = vmul.f32 %v13199_v26, %v15735_v28  ;;  %15736 = vst [vmem:[#allocation22_spill] sm:$0xff] %v13205_v3  ;;  %v13207_v56 = vld [vmem:[#allocation2 + $0x1b0] sm:$0xff]  ;;  %v4970_v34 = vmul.f32 %v12796_v24, %v13188_v29  ;;  %v4038_v23 = vadd.f32 %v4022_v62, %v3982_v16  ;;  %v13216_v38 = vld [vmem:[%s14852_s7 + $0x1f] ss:$0 sm:$0xff]  ;;  %v15740_v26 = vld [vmem:[#allocation75_spill] sm:$0xff] }
 0x7da   : > { %15737 = vst [vmem:[#allocation45_spill] sm:$0xff] %v13207_v56  ;;  %v4931_v48 = vadd.f32 %v4915_v1, %v4874_v17  ;;  %v4932_v61 = vadd.f32 %v4916_v63, %v4875_v10  ;;  %v4039_v22 = vadd.f32 %v4023_v46, %v3983_v35  ;;  %15738 = vst [vmem:[#allocation87_spill] sm:$0xff] %v13216_v38  ;;  %v15739_v0 = vld [vmem:[#allocation78_spill] sm:$0xff]  ;;  %v13222_v10 = vld [vmem:[#allocation2 + $0x1aa] sm:$0xff] }
 0x7db   : > { %v4241_v28 = vmul.f32 %v13216_v38, %v15739_v0  ;;  %v4242_v17 = vmul.f32 %v13216_v38, %v15740_v26  ;;  %15741 = vst [vmem:[#allocation25_spill] sm:$0xff] %v13222_v10  ;;  %v13224_v1 = vld [vmem:[#allocation2 + $0x1b2] sm:$0xff]  ;;  %v5025_v24 = vmul.f32 %v12813_v27, %v13205_v3  ;;  %v5026_v62 = vmul.f32 %v12813_v27, %v13207_v56  ;;  %v13233_v35 = vld [vmem:[%s14852_s7 + $0x20] ss:$0 sm:$0xff]  ;;  %v15744_v26 = vld [vmem:[#allocation40_spill] sm:$0xff] }
 0x7dc   : > { %15742 = vst [vmem:[#allocation90_spill] sm:$0xff] %v13224_v1  ;;  %v4986_v63 = vadd.f32 %v4970_v34, %v4931_v48  ;;  %v4987_v29 = vadd.f32 %v4971_v5, %v4932_v61  ;;  %v4086_v46 = vadd.f32 %v4070_v31, %v4038_v23  ;;  %v4087_v16 = vadd.f32 %v4071_v52, %v4039_v22  ;;  %v15745_v38 = vld [vmem:[#allocation38_spill] sm:$0xff]  ;;  %v5162_v52 = vld [vmem:[#allocation2 + $0x1e4] sm:$0xff]  ;;  %v5163_v23 = vld [vmem:[#allocation2 + $0x1ec] sm:$0xff] }
 0x7dd   : > { %15743 = vst [vmem:[#allocation92_spill] sm:$0xff] %v13233_v35  ;;  %v4297_v0 = vmul.f32 %v13233_v35, %v15744_v26  ;;  %v4298_v48 = vmul.f32 %v13233_v35, %v15745_v38  ;;  %v13239_v61 = vld [vmem:[#allocation2 + $0x1b4] sm:$0xff]  ;;  %v5080_v27 = vmul.f32 %v12828_v36, %v13222_v10  ;;  %v5081_v31 = vmul.f32 %v12828_v36, %v13224_v1  ;;  %v13248_v26 = vld [vmem:[%s14852_s7 + $0x21] ss:$0 sm:$0xff] }
 0x7de   : > { %15746 = vst [vmem:[#allocation15_spill] sm:$0xff] %v13239_v61  ;;  %v5041_v34 = vadd.f32 %v5025_v24, %v4986_v63  ;;  %v5042_v5 = vadd.f32 %v5026_v62, %v4987_v29  ;;  %v4145_v22 = vadd.f32 %v4129_v19, %v4086_v46  ;;  %v4146_v56 = vadd.f32 %v4130_v42, %v4087_v16  ;;  %v15748_v63 = vld [vmem:[#allocation39_spill] sm:$0xff]  ;;  %v5218_v62 = vld [vmem:[#allocation2 + $0x1ee] sm:$0xff] }
 0x7df   : > { %15747 = vst [vmem:[#allocation51_spill] sm:$0xff] %v13248_v26  ;;  %v4345_v38 = vmul.f32 %v13248_v26, %v15730_v6  ;;  %v4346_v29 = vmul.f32 %v13248_v26, %v15748_v63  ;;  %v5217_v24 = vld [vmem:[#allocation2 + $0x1e6] sm:$0xff]  ;;  %v5127_v36 = vmul.f32 %v12843_v53, %v13168_v14  ;;  %v5128_v19 = vmul.f32 %v12843_v53, %v13239_v61 }
 0x7e0   : > { %v5096_v10 = vadd.f32 %v5080_v27, %v5041_v34  ;;  %v5097_v3 = vadd.f32 %v5081_v31, %v5042_v5  ;;  %v4201_v42 = vadd.f32 %v4185_v51, %v4145_v22  ;;  %v4202_v46 = vadd.f32 %v4186_v41, %v4146_v56  ;;  %v5327_v6 = vld [vmem:[#allocation2 + $0x1ea] sm:$0xff]  ;;  %v5377_v5 = vld [vmem:[#allocation2 + $0x1f4] sm:$0xff] }
 0x7e1   : > { %v5185_v16 = vmul.f32 %v15712_v2, %v5162_v52  ;;  %v5186_v1 = vmul.f32 %v15712_v2, %v5163_v23  ;;  %v5240_v26 = vmul.f32 %v15713_v13, %v5217_v24  ;;  %v5241_v34 = vmul.f32 %v15713_v13, %v5218_v62  ;;  %v8597_v14 = vld [vmem:[#allocation2 + $0x1e8] sm:$0xff]  ;;  %v8598_v51 = vld [vmem:[#allocation2 + $0x1f0] sm:$0xff] }
 0x7e2   : > { %v5143_v35 = vadd.f32 %v5127_v36, %v5096_v10  ;;  %v5144_v63 = vadd.f32 %v5128_v19, %v5097_v3  ;;  %v4257_v27 = vadd.f32 %v4241_v28, %v4201_v42  ;;  %v4258_v31 = vadd.f32 %v4242_v17, %v4202_v46  ;;  %v5429_v56 = vld [vmem:[#allocation2 + $0x224] sm:$0xff]  ;;  %v5430_v52 = vld [vmem:[#allocation2 + $0x22c] sm:$0xff] }
 0x7e3   : > { %v5295_v53 = vmul.f32 %v8597_v14, %v15714_v39  ;;  %v5296_v41 = vmul.f32 %v8598_v51, %v15714_v39  ;;  %v5350_v10 = vmul.f32 %v15715_v45, %v5327_v6  ;;  %v5351_v3 = vmul.f32 %v15715_v45, %v5328_v57  ;;  %v2515_v24 = vld [vmem:[#allocation2 + $0x107] sm:$0xff]  ;;  %v2516_v36 = vld [vmem:[#allocation2 + $0x10f] sm:$0xff]  ;;  %v13277_v57 = vld [vmem:[%s14852_s7] ss:$0 sm:$0xff] }
 0x7e4   : > { %v5201_v2 = vadd.f32 %v5185_v16, %v5143_v35  ;;  %v5202_v22 = vadd.f32 %v5186_v1, %v5144_v63  ;;  %v4313_v13 = vadd.f32 %v4297_v0, %v4257_v27  ;;  %v4314_v62 = vadd.f32 %v4298_v48, %v4258_v31  ;;  %v5484_v14 = vld [vmem:[#allocation2 + $0x226] sm:$0xff]  ;;  %v5485_v45 = vld [vmem:[#allocation2 + $0x22e] sm:$0xff] }
 0x7e5   : > { %v5397_v28 = vmul.f32 %v12888_v33, %v5163_v23  ;;  %v5398_v17 = vmul.f32 %v12888_v33, %v5377_v5  ;;  %v5452_v39 = vmul.f32 %v13041_v54, %v5429_v56  ;;  %v5453_v35 = vmul.f32 %v13041_v54, %v5430_v52  ;;  %v2632_v16 = vld [vmem:[#allocation2 + $0x109] sm:$0xff]  ;;  %v2633_v6 = vld [vmem:[#allocation2 + $0x111] sm:$0xff]  ;;  %v13294_v5 = vld [vmem:[%s14853_s8] ss:$0 sm:$0xff] }
 0x7e6   : > { %v5256_v19 = vadd.f32 %v5240_v26, %v5201_v2  ;;  %v5257_v42 = vadd.f32 %v5241_v34, %v5202_v22  ;;  %v13270_v1 = vadd.f32 %v4345_v38, %v4313_v13  ;;  %v13272_v46 = vadd.f32 %v4346_v29, %v4314_v62  ;;  %v13285_v38 = vld [vmem:[%s14852_s7 + $0x1] ss:$0 sm:$0xff]  ;;  %v5578_v34 = vld [vmem:[#allocation2 + $0x22a] sm:$0xff]  ;;  %v5579_v2 = vld [vmem:[#allocation2 + $0x232] sm:$0xff] }
 0x7e7   : > { %v2538_v0 = vmul.f32 %v13277_v57, %v2515_v24  ;;  %v2539_v33 = vmul.f32 %v13277_v57, %v2516_v36  ;;  %v5507_v26 = vmul.f32 %v13050_v50, %v5484_v14  ;;  %v2600_v29 = vmul.f32 %v13285_v38, %v12913_v32  ;;  %v13306_v36 = vld [vmem:[%s14852_s7 + $0x2] ss:$0 sm:$0xff] }
 0x7e8   : > { %15749 = vst [vmem:[#allocation88_spill] sm:$0xff] %v13270_v1  ;;  %15750 = vst [vmem:[#allocation57_spill] sm:$0xff] %v13272_v46  ;;  %v5311_v48 = vadd.f32 %v5295_v53, %v5256_v19  ;;  %v5312_v23 = vadd.f32 %v5296_v41, %v5257_v42  ;;  %v8173_v63 = vpack.c.bf16 %v13272_v46, %v13270_v1  ;;  %v13313_v19 = vld [vmem:[#allocation2 + $0x128] sm:$0xff]  ;;  %v13315_v42 = vld [vmem:[#allocation2 + $0x130] sm:$0xff] }
 0x7e9   : > { %v2560_v27 = vadd.f32 %v13294_v5, %v2538_v0  ;;  %v2561_v31 = vadd.f32 %v13294_v5, %v2539_v33  ;;  %v2601_v53 = vmul.f32 %v13285_v38, %v12931_v44  ;;  %v5508_v41 = vmul.f32 %v13050_v50, %v5485_v45  ;;  %v5628_v45 = vld [vmem:[#allocation2 + $0x234] sm:$0xff]  ;;  %v5683_v0 = vld [vmem:[#allocation2 + $0x264] sm:$0xff] }
 0x7ea   : > { %v5366_v51 = vadd.f32 %v5350_v10, %v5311_v48  ;;  %v5367_v32 = vadd.f32 %v5351_v3, %v5312_v23  ;;  %v5546_v56 = vmul.f32 %v12918_v12, %v13086_v30  ;;  %8174 = vmatpush3.bf16.msra.mxu0 %v8173_v63  ;;  %v2656_v13 = vmul.f32 %v13306_v36, %v2632_v16  ;;  %v5738_v63 = vld [vmem:[#allocation2 + $0x266] sm:$0xff]  ;;  %v6119_v46 = vld [vmem:[#allocation2 + $0x2b2] sm:$0xff] }
 0x7eb   : > { %v2616_v22 = vadd.f32 %v2600_v29, %v2560_v27  ;;  %v2617_v24 = vadd.f32 %v2601_v53, %v2561_v31  ;;  %v2657_v44 = vmul.f32 %v13306_v36, %v2633_v6  ;;  %v5547_v62 = vmul.f32 %v12918_v12, %v13088_v4  ;;  %v5684_v6 = vld [vmem:[#allocation2 + $0x26c] sm:$0xff]  ;;  %v6168_v1 = vld [vmem:[#allocation2 + $0x2b4] sm:$0xff] }
 0x7ec   : > { %v5413_v10 = vadd.f32 %v5397_v28, %v5366_v51  ;;  %v5414_v3 = vadd.f32 %v5398_v17, %v5367_v32  ;;  %v5601_v14 = vmul.f32 %v13071_v49, %v5578_v34  ;;  %v2712_v23 = vmul.f32 %v12927_v47, %v12948_v21  ;;  %v13333_v32 = vld [vmem:[#allocation2 + $0x268] sm:$0xff] }
 0x7ed   : > { %v2672_v33 = vadd.f32 %v2656_v13, %v2616_v22  ;;  %v2673_v48 = vadd.f32 %v2657_v44, %v2617_v24  ;;  %v2713_v28 = vmul.f32 %v12927_v47, %v12955_v37  ;;  %v5602_v12 = vmul.f32 %v13071_v49, %v5579_v2  ;;  %v15753_v24 = vld [vmem:[#allocation85_spill] sm:$0xff] }
 0x7ee   : > { %v5468_v17 = vadd.f32 %v5452_v39, %v5413_v10  ;;  %v5469_v29 = vadd.f32 %v5453_v35, %v5414_v3  ;;  %v5648_v16 = vmul.f32 %v13082_v18, %v5430_v52  ;;  %v2768_v31 = vmul.f32 %v12940_v15, %v13313_v19  ;;  %v13329_v39 = vld [vmem:[#allocation2 + $0x147] sm:$0xff]  ;;  %v13331_v35 = vld [vmem:[#allocation2 + $0x14f] sm:$0xff] }
 0x7ef   : > { %v2728_v34 = vadd.f32 %v2712_v23, %v2672_v33  ;;  %v2729_v27 = vadd.f32 %v2713_v28, %v2673_v48  ;;  %v2769_v53 = vmul.f32 %v12940_v15, %v13315_v42  ;;  %v5649_v47 = vmul.f32 %v13082_v18, %v5628_v45  ;;  %15751 = vst [vmem:[#allocation96_spill] sm:$0xff] %v13329_v39  ;;  %v5739_v52 = vld [vmem:[#allocation2 + $0x26e] sm:$0xff] }
 0x7f0   : > { %v5523_v21 = vadd.f32 %v5507_v26, %v5468_v17  ;;  %v5524_v51 = vadd.f32 %v5508_v41, %v5469_v29  ;;  %v5706_v37 = vmul.f32 %v13097_v9, %v5683_v0  ;;  %15752 = vst [vmem:[#allocation26_spill] sm:$0xff] %v13331_v35  ;;  %v2824_v13 = vmul.f32 %v13124_v59, %v15753_v24  ;;  %v13341_v3 = vld [vmem:[#allocation2 + $0x270] sm:$0xff]  ;;  %v5953_v24 = vld [vmem:[#allocation2 + $0x2a4] sm:$0xff] }
 0x7f1   : > { %v2784_v2 = vadd.f32 %v2768_v31, %v2728_v34  ;;  %v2785_v22 = vadd.f32 %v2769_v53, %v2729_v27  ;;  %v2825_v15 = vmul.f32 %v13124_v59, %v12981_v11  ;;  %v5707_v44 = vmul.f32 %v13097_v9, %v5684_v6  ;;  %v5848_v45 = vld [vmem:[#allocation2 + $0x26a] sm:$0xff] }
 0x7f2   : > { %v5562_v26 = vadd.f32 %v5546_v56, %v5523_v21  ;;  %v5563_v41 = vadd.f32 %v5547_v62, %v5524_v51  ;;  %v5761_v10 = vmul.f32 %v13113_v8, %v5738_v63  ;;  %v2880_v48 = vmul.f32 %v13137_v60, %v13329_v39  ;;  %v13350_v62 = vld [vmem:[#allocation2 + $0x149] sm:$0xff]  ;;  %v13352_v29 = vld [vmem:[#allocation2 + $0x151] sm:$0xff] }
 0x7f3   : > { %v2840_v0 = vadd.f32 %v2824_v13, %v2784_v2  ;;  %v2841_v33 = vadd.f32 %v2825_v15, %v2785_v22  ;;  %v2881_v23 = vmul.f32 %v13137_v60, %v13331_v35  ;;  %v5762_v11 = vmul.f32 %v13113_v8, %v5739_v52  ;;  %15754 = vst [vmem:[#allocation46_spill] sm:$0xff] %v13350_v62  ;;  %v5849_v63 = vld [vmem:[#allocation2 + $0x272] sm:$0xff]  ;;  %v3026_v52 = vld [vmem:[#allocation2 + $0xa4] sm:$0xff] }
 0x7f4   : > { %v5617_v28 = vadd.f32 %v5601_v14, %v5562_v26  ;;  %v5618_v17 = vadd.f32 %v5602_v12, %v5563_v41  ;;  %v5816_v56 = vmul.f32 %v12988_v20, %v13333_v32  ;;  %15755 = vst [vmem:[#allocation58_spill] sm:$0xff] %v13352_v29  ;;  %v2936_v31 = vmul.f32 %v12977_v7, %v13102_v55  ;;  %v13361_v2 = vld [vmem:[#allocation2 + $0xac] sm:$0xff]  ;;  %v5898_v22 = vld [vmem:[#allocation2 + $0x274] sm:$0xff] }
 0x7f5   : > { %v2896_v34 = vadd.f32 %v2880_v48, %v2840_v0  ;;  %v2897_v27 = vadd.f32 %v2881_v23, %v2841_v33  ;;  %v2937_v53 = vmul.f32 %v12977_v7, %v13104_v43  ;;  %v5817_v21 = vmul.f32 %v12988_v20, %v13341_v3  ;;  %v3082_v26 = vld [vmem:[#allocation2 + $0xa6] sm:$0xff]  ;;  %v3083_v41 = vld [vmem:[#allocation2 + $0xae] sm:$0xff] }
 0x7f6   : > { %v5664_v14 = vadd.f32 %v5648_v16, %v5617_v28  ;;  %v5665_v12 = vadd.f32 %v5649_v47, %v5618_v17  ;;  %v5871_v51 = vmul.f32 %v13146_v40, %v5848_v45  ;;  %v2992_v55 = vmul.f32 %v13173_v58, %v13350_v62  ;;  %v5954_v45 = vld [vmem:[#allocation2 + $0x2ac] sm:$0xff]  ;;  %v13372_v23 = vld [vmem:[%s14852_s7 + $0x9] ss:$0 sm:$0xff] }
 0x7f7   : > { %v2952_v13 = vadd.f32 %v2936_v31, %v2896_v34  ;;  %v2953_v15 = vadd.f32 %v2937_v53, %v2897_v27  ;;  %v2993_v7 = vmul.f32 %v13173_v58, %v13352_v29  ;;  %v5872_v47 = vmul.f32 %v13146_v40, %v5849_v63  ;;  %v6008_v0 = vld [vmem:[#allocation2 + $0x2a6] sm:$0xff]  ;;  %v3139_v31 = vld [vmem:[#allocation2 + $0xb0] sm:$0xff] }
 0x7f8   : > { %v5722_v43 = vadd.f32 %v5706_v37, %v5664_v14  ;;  %v5723_v16 = vadd.f32 %v5707_v44, %v5665_v12  ;;  %v5918_v20 = vmul.f32 %v13161_v25, %v5684_v6  ;;  %v3050_v28 = vmul.f32 %v13372_v23, %v3026_v52  ;;  %v15756_v63 = vld [vmem:[#allocation27_spill] sm:$0xff]  ;;  %v3138_v27 = vld [vmem:[#allocation2 + $0xa8] sm:$0xff] }
 0x7f9   : > { %v3008_v33 = vadd.f32 %v2992_v55, %v2952_v13  ;;  %v3009_v48 = vadd.f32 %v2993_v7, %v2953_v15  ;;  %v3051_v37 = vmul.f32 %v13372_v23, %v13361_v2  ;;  %v5919_v6 = vmul.f32 %v13161_v25, %v5898_v22  ;;  %v6009_v53 = vld [vmem:[#allocation2 + $0x2ae] sm:$0xff]  ;;  %v13382_v15 = vld [vmem:[%s14852_s7 + $0xa] ss:$0 sm:$0xff] }
 0x7fa   : > { %v5777_v44 = vadd.f32 %v5761_v10, %v5722_v43  ;;  %v5778_v17 = vadd.f32 %v5762_v11, %v5723_v16  ;;  %v5976_v34 = vmul.f32 %v15756_v63, %v5953_v24  ;;  %v6118_v14 = vld [vmem:[#allocation2 + $0x2aa] sm:$0xff]  ;;  %v3106_v52 = vmul.f32 %v13382_v15, %v3082_v26  ;;  %v3195_v16 = vld [vmem:[#allocation2 + $0xb2] sm:$0xff] }
 0x7fb   : > { %v3066_v12 = vadd.f32 %v3050_v28, %v3008_v33  ;;  %v3067_v13 = vadd.f32 %v3051_v37, %v3009_v48  ;;  %v3107_v10 = vmul.f32 %v13382_v15, %v3083_v41  ;;  %v5977_v22 = vmul.f32 %v15756_v63, %v5954_v45  ;;  %v15757_v24 = vld [vmem:[#allocation28_spill] sm:$0xff] }
 0x7fc   : > { %v5832_v11 = vadd.f32 %v5816_v56, %v5777_v44  ;;  %v5833_v55 = vadd.f32 %v5817_v21, %v5778_v17  ;;  %v6031_v7 = vmul.f32 %v15757_v24, %v6008_v0  ;;  %v3194_v43 = vld [vmem:[#allocation2 + $0xaa] sm:$0xff]  ;;  %v6032_v37 = vmul.f32 %v15757_v24, %v6009_v53  ;;  %v3245_v17 = vld [vmem:[#allocation2 + $0xb4] sm:$0xff] }
 0x7fd   : > { %v3122_v33 = vadd.f32 %v3106_v52, %v3066_v12  ;;  %v3123_v48 = vadd.f32 %v3107_v10, %v3067_v13  ;;  %v13391_v28 = vld [vmem:[%s14852_s7 + $0xb] ss:$0 sm:$0xff]  ;;  %v13400_v13 = vld [vmem:[%s14852_s7 + $0xc] ss:$0 sm:$0xff]  ;;  %v15759_v10 = vld [vmem:[#allocation51_spill] sm:$0xff] }
 0x7fe   : > { %v3162_v26 = vmul.f32 %v13391_v28, %v3138_v27  ;;  %v3163_v41 = vmul.f32 %v13391_v28, %v3139_v31  ;;  %v5887_v56 = vadd.f32 %v5871_v51, %v5832_v11  ;;  %v5888_v21 = vadd.f32 %v5872_v47, %v5833_v55  ;;  %v15758_v44 = vld [vmem:[#allocation92_spill] sm:$0xff] }
 0x7ff   : > { %v6141_v0 = vmul.f32 %v15758_v44, %v6118_v14  ;;  %v3218_v52 = vmul.f32 %v13400_v13, %v3194_v43  ;;  %v3219_v27 = vmul.f32 %v13400_v13, %v3195_v16  ;;  %v3301_v31 = vld [vmem:[#allocation2 + $0xe4] sm:$0xff]  ;;  %v6142_v53 = vmul.f32 %v15758_v44, %v6119_v46  ;;  %v3302_v11 = vld [vmem:[#allocation2 + $0xec] sm:$0xff] }
 0x800   : > { %v3178_v29 = vadd.f32 %v3162_v26, %v3122_v33  ;;  %v3179_v12 = vadd.f32 %v3163_v41, %v3123_v48  ;;  %v5934_v51 = vadd.f32 %v5918_v20, %v5887_v56  ;;  %v5935_v47 = vadd.f32 %v5919_v6, %v5888_v21  ;;  %v3357_v55 = vld [vmem:[#allocation2 + $0xe6] sm:$0xff]  ;;  %v3358_v20 = vld [vmem:[#allocation2 + $0xee] sm:$0xff] }
 0x801   : > { %v6188_v14 = vmul.f32 %v15759_v10, %v5954_v45  ;;  %v13409_v26 = vld [vmem:[%s14852_s7 + $0xd] ss:$0 sm:$0xff]  ;;  %v6189_v45 = vmul.f32 %v15759_v10, %v6168_v1  ;;  %v3414_v21 = vld [vmem:[#allocation2 + $0xf0] sm:$0xff] }
 0x802   : > { %v3234_v33 = vadd.f32 %v3218_v52, %v3178_v29  ;;  %v3235_v48 = vadd.f32 %v3219_v27, %v3179_v12  ;;  %15760 = vst [vmem:[#allocation93_spill] sm:$0xff] %v13409_v26  ;;  %v3266_v43 = vmul.f32 %v13409_v26, %v13361_v2  ;;  %v3267_v16 = vmul.f32 %v13409_v26, %v3245_v17  ;;  %v3413_v6 = vld [vmem:[#allocation2 + $0xe8] sm:$0xff] }
 0x803   : > { %v5992_v41 = vadd.f32 %v5976_v34, %v5934_v51  ;;  %v5993_v46 = vadd.f32 %v5977_v22, %v5935_v47  ;;  %v13418_v29 = vld [vmem:[%s14852_s7 + $0xe] ss:$0 sm:$0xff]  ;;  %v13425_v34 = vld [vmem:[%s14852_s7 + $0xf] ss:$0 sm:$0xff]  ;;  %v3470_v22 = vld [vmem:[#allocation2 + $0xf2] sm:$0xff] }
 0x804   : > { %15761 = vst [vmem:[#allocation18_spill] sm:$0xff] %v13418_v29  ;;  %v3325_v56 = vmul.f32 %v13418_v29, %v3301_v31  ;;  %v3469_v12 = vld [vmem:[#allocation2 + $0xea] sm:$0xff]  ;;  %v3282_v52 = vadd.f32 %v3266_v43, %v3234_v33  ;;  %v3283_v27 = vadd.f32 %v3267_v16, %v3235_v48  ;;  %v3326_v2 = vmul.f32 %v13418_v29, %v3302_v11  ;;  %v3520_v48 = vld [vmem:[#allocation2 + $0xf4] sm:$0xff] }
 0x805   : > { %15762 = vst [vmem:[#allocation59_spill] sm:$0xff] %v13425_v34  ;;  %v3381_v1 = vmul.f32 %v13425_v34, %v3357_v55  ;;  %v6047_v17 = vadd.f32 %v6031_v7, %v5992_v41  ;;  %v6048_v51 = vadd.f32 %v6032_v37, %v5993_v46  ;;  %v3382_v47 = vmul.f32 %v13425_v34, %v3358_v20  ;;  %v13432_v31 = vld [vmem:[%s14852_s7 + $0x10] ss:$0 sm:$0xff]  ;;  %v3573_v43 = vld [vmem:[#allocation2 + $0x124] sm:$0xff]  ;;  %v13439_v7 = vld [vmem:[%s14852_s7 + $0x11] ss:$0 sm:$0xff] }
 0x806   : > { %15763 = vst [vmem:[#allocation16_spill] sm:$0xff] %v13432_v31  ;;  %v3437_v33 = vmul.f32 %v13432_v31, %v3413_v6  ;;  %v3341_v16 = vadd.f32 %v3325_v56, %v3282_v52  ;;  %v3342_v62 = vadd.f32 %v3326_v2, %v3283_v27  ;;  %v3438_v35 = vmul.f32 %v13432_v31, %v3414_v21  ;;  %v3574_v55 = vld [vmem:[#allocation2 + $0x12c] sm:$0xff]  ;;  %v15765_v41 = vld [vmem:[#allocation86_spill] sm:$0xff] }
 0x807   : > { %15764 = vst [vmem:[#allocation49_spill] sm:$0xff] %v13439_v7  ;;  %v3493_v37 = vmul.f32 %v13439_v7, %v3469_v12  ;;  %v3629_v20 = vld [vmem:[#allocation2 + $0x126] sm:$0xff]  ;;  %v6102_v46 = vadd.f32 %v15765_v41, %v6047_v17  ;;  %v6103_v39 = vadd.f32 %v15765_v41, %v6048_v51  ;;  %v3494_v6 = vmul.f32 %v13439_v7, %v3470_v22  ;;  %v13448_v56 = vld [vmem:[%s14852_s7 + $0x12] ss:$0 sm:$0xff] }
 0x808   : > { %v3541_v21 = vmul.f32 %v13448_v56, %v3302_v11  ;;  %v3630_v52 = vld [vmem:[#allocation2 + $0x12e] sm:$0xff]  ;;  %v3397_v2 = vadd.f32 %v3381_v1, %v3341_v16  ;;  %v3398_v31 = vadd.f32 %v3382_v47, %v3342_v62  ;;  %v3542_v12 = vmul.f32 %v13448_v56, %v3520_v48 }
 0x809   : > { %v4397_v27 = vld [vmem:[#allocation2 + $0x227] sm:$0xff]  ;;  %v3597_v34 = vmul.f32 %v13041_v54, %v3573_v43  ;;  %v4398_v17 = vld [vmem:[#allocation2 + $0x22f] sm:$0xff]  ;;  %v6157_v29 = vadd.f32 %v6141_v0, %v6102_v46  ;;  %v6158_v51 = vadd.f32 %v6142_v53, %v6103_v39  ;;  %v3598_v22 = vmul.f32 %v13041_v54, %v3574_v55 }
 0x80a   : > { %v3653_v41 = vmul.f32 %v13050_v50, %v3629_v20  ;;  %v3453_v7 = vadd.f32 %v3437_v33, %v3397_v2  ;;  %v3454_v61 = vadd.f32 %v3438_v35, %v3398_v31  ;;  %v3654_v10 = vmul.f32 %v13050_v50, %v3630_v52  ;;  %v13464_v1 = vld [vmem:[%s14852_s7 + $0x15] ss:$0 sm:$0xff]  ;;  %v4507_v0 = vld [vmem:[#allocation2 + $0x229] sm:$0xff] }
 0x80b   : > { %v4420_v11 = vmul.f32 %v13277_v57, %v4397_v27  ;;  %v13457_v26 = vadd.f32 %v6188_v14, %v6157_v29  ;;  %v13459_v62 = vadd.f32 %v6189_v45, %v6158_v51  ;;  %v3693_v54 = vmul.f32 %v13464_v1, %v13313_v19  ;;  %v3725_v50 = vld [vmem:[#allocation2 + $0x12a] sm:$0xff]  ;;  %v3726_v47 = vld [vmem:[#allocation2 + $0x132] sm:$0xff] }
 0x80c   : > { %v4421_v39 = vmul.f32 %v13277_v57, %v4398_v17  ;;  %v3509_v35 = vadd.f32 %v3493_v37, %v3453_v7  ;;  %v3510_v53 = vadd.f32 %v3494_v6, %v3454_v61  ;;  %v4475_v45 = vmul.f32 %v13285_v38, %v13086_v30  ;;  %v4508_v29 = vld [vmem:[#allocation2 + $0x231] sm:$0xff]  ;;  %v13483_v27 = vld [vmem:[#allocation2 + $0x248] sm:$0xff] }
 0x80d   : > { %15766 = vst [vmem:[#allocation94_spill] sm:$0xff] %v13457_v26  ;;  %15767 = vst [vmem:[#allocation68_spill] sm:$0xff] %v13459_v62  ;;  %v4436_v14 = vadd.f32 %v13294_v5, %v4420_v11  ;;  %v8175_v31 = vpack.c.bf16 %v13459_v62, %v13457_v26  ;;  %v3694_v33 = vmul.f32 %v13464_v1, %v13315_v42  ;;  %v3776_v7 = vld [vmem:[#allocation2 + $0x134] sm:$0xff]  ;;  %v3832_v51 = vld [vmem:[#allocation2 + $0x164] sm:$0xff] }
 0x80e   : > { %v4437_v48 = vadd.f32 %v13294_v5, %v4421_v39  ;;  %v4476_v43 = vmul.f32 %v13285_v38, %v13088_v4  ;;  %v3557_v61 = vadd.f32 %v3541_v21, %v3509_v35  ;;  %v3558_v16 = vadd.f32 %v3542_v12, %v3510_v53  ;;  %v3833_v4 = vld [vmem:[#allocation2 + $0x16c] sm:$0xff]  ;;  %v13488_v12 = vld [vmem:[%s14852_s7 + $0x3] ss:$0 sm:$0xff] }
 0x80f   : > { %v4491_v37 = vadd.f32 %v4475_v45, %v4436_v14  ;;  %v4530_v20 = vmul.f32 %v13306_v36, %v4507_v0  ;;  %8176 = vmatprep.subr.bf16.mxu0 %v8175_v31  ;;  %v3749_v30 = vmul.f32 %v13071_v49, %v3725_v50  ;;  %v3750_v46 = vmul.f32 %v13071_v49, %v3726_v47  ;;  %v15768_v11 = vld [vmem:[#allocation63_spill] sm:$0xff]  ;;  %v13492_v0 = vld [vmem:[#allocation2 + $0x250] sm:$0xff] }
 0x810   : > { %v4492_v6 = vadd.f32 %v4476_v43, %v4437_v48  ;;  %v4531_v52 = vmul.f32 %v13306_v36, %v4508_v29  ;;  %v3613_v2 = vadd.f32 %v3597_v34, %v3557_v61  ;;  %v3614_v17 = vadd.f32 %v3598_v22, %v3558_v16  ;;  %v15769_v34 = vld [vmem:[#allocation29_spill] sm:$0xff]  ;;  %v3888_v14 = vld [vmem:[#allocation2 + $0x166] sm:$0xff]  ;;  %v13501_v31 = vld [vmem:[%s14852_s7 + $0x4] ss:$0 sm:$0xff] }
 0x811   : > { %v4546_v21 = vadd.f32 %v4530_v20, %v4491_v37  ;;  %v4585_v39 = vmul.f32 %v13488_v12, %v15768_v11  ;;  %v3797_v49 = vmul.f32 %v13082_v18, %v3574_v55  ;;  %v3798_v35 = vmul.f32 %v13082_v18, %v3776_v7  ;;  %v3889_v45 = vld [vmem:[#allocation2 + $0x16e] sm:$0xff]  ;;  %v15792_v62 = vld [vmem:[#allocation51_spill] sm:$0xff] }
 0x812   : > { %v4547_v53 = vadd.f32 %v4531_v52, %v4492_v6  ;;  %v4586_v22 = vmul.f32 %v13488_v12, %v15769_v34  ;;  %v3669_v50 = vadd.f32 %v3653_v41, %v3613_v2  ;;  %v3670_v47 = vadd.f32 %v3654_v10, %v3614_v17  ;;  %v13509_v10 = vld [vmem:[#allocation2 + $0x267] sm:$0xff]  ;;  %v13513_v37 = vld [vmem:[#allocation2 + $0x170] sm:$0xff] }
 0x813   : > { %v4601_v29 = vadd.f32 %v4585_v39, %v4546_v21  ;;  %v4640_v48 = vmul.f32 %v13501_v31, %v13483_v27  ;;  %v3856_v55 = vmul.f32 %v13097_v9, %v3832_v51  ;;  %v3857_v18 = vmul.f32 %v13097_v9, %v3833_v4  ;;  %v13511_v7 = vld [vmem:[#allocation2 + $0x168] sm:$0xff]  ;;  %v15770_v6 = vld [vmem:[#allocation65_spill] sm:$0xff]  ;;  %v15793_v26 = vld [vmem:[#allocation15_spill] sm:$0xff] }
 0x814   : > { %v4602_v43 = vadd.f32 %v4586_v22, %v4547_v53  ;;  %v4641_v41 = vmul.f32 %v13501_v31, %v13492_v0  ;;  %v3709_v61 = vadd.f32 %v3693_v54, %v3669_v50  ;;  %v3710_v16 = vadd.f32 %v3694_v33, %v3670_v47  ;;  %v13517_v2 = vld [vmem:[#allocation2 + $0x26f] sm:$0xff]  ;;  %v13528_v50 = vld [vmem:[%s14852_s7 + $0x1a] ss:$0 sm:$0xff] }
 0x815   : > { %v4656_v20 = vadd.f32 %v4640_v48, %v4601_v29  ;;  %v4695_v52 = vmul.f32 %v13124_v59, %v15770_v6  ;;  %v3912_v9 = vmul.f32 %v13113_v8, %v3888_v14  ;;  %v3913_v17 = vmul.f32 %v13113_v8, %v3889_v45  ;;  %v15771_v21 = vld [vmem:[#allocation80_spill] sm:$0xff]  ;;  %v4001_v53 = vld [vmem:[#allocation2 + $0x172] sm:$0xff]  ;;  %15772 = vst [vmem:[#allocation95_spill] sm:$0xff] %v13528_v50 }
 0x816   : > { %v4657_v51 = vadd.f32 %v4641_v41, %v4602_v43  ;;  %v4696_v11 = vmul.f32 %v13124_v59, %v15771_v21  ;;  %v3765_v54 = vadd.f32 %v3749_v30, %v3709_v61  ;;  %v3766_v33 = vadd.f32 %v3750_v46, %v3710_v16  ;;  %v4000_v39 = vld [vmem:[#allocation2 + $0x16a] sm:$0xff]  ;;  %v4051_v29 = vld [vmem:[#allocation2 + $0x174] sm:$0xff]  ;;  %v13541_v43 = vld [vmem:[%s14852_s7 + $0x7] ss:$0 sm:$0xff] }
 0x817   : > { %v4711_v34 = vadd.f32 %v4695_v52, %v4656_v20  ;;  %v4750_v22 = vmul.f32 %v13137_v60, %v13509_v10  ;;  %v3968_v8 = vmul.f32 %v13528_v50, %v13511_v7  ;;  %v3969_v47 = vmul.f32 %v13528_v50, %v13513_v37  ;;  %v13536_v46 = vld [vmem:[#allocation2 + $0x269] sm:$0xff]  ;;  %v13545_v61 = vld [vmem:[#allocation2 + $0x271] sm:$0xff] }
 0x818   : > { %v4712_v59 = vadd.f32 %v4696_v11, %v4657_v51  ;;  %v4751_v30 = vmul.f32 %v13137_v60, %v13517_v2  ;;  %v3813_v14 = vadd.f32 %v3797_v49, %v3765_v54  ;;  %v3814_v45 = vadd.f32 %v3798_v35, %v3766_v33  ;;  %v13551_v35 = vld [vmem:[#allocation2 + $0x1c4] sm:$0xff]  ;;  %v13555_v11 = vld [vmem:[#allocation2 + $0x1cc] sm:$0xff] }
 0x819   : > { %v4766_v48 = vadd.f32 %v4750_v22, %v4711_v34  ;;  %v4805_v41 = vmul.f32 %v13541_v43, %v13333_v32  ;;  %v4024_v16 = vmul.f32 %v13146_v40, %v4000_v39  ;;  %v4025_v60 = vmul.f32 %v13146_v40, %v4001_v53  ;;  %15773 = vst [vmem:[#allocation97_spill] sm:$0xff] %v13551_v35  ;;  %v13561_v39 = vld [vmem:[#allocation2 + $0x1c6] sm:$0xff]  ;;  %v13565_v34 = vld [vmem:[#allocation2 + $0x1ce] sm:$0xff]  ;;  %v15777_v22 = vld [vmem:[#allocation66_spill] sm:$0xff] }
 0x81a   : > { %v4767_v20 = vadd.f32 %v4751_v30, %v4712_v59  ;;  %v4806_v49 = vmul.f32 %v13541_v43, %v13341_v3  ;;  %v3872_v6 = vadd.f32 %v3856_v55, %v3813_v14  ;;  %v3873_v52 = vadd.f32 %v3857_v18, %v3814_v45  ;;  %15774 = vst [vmem:[#allocation61_spill] sm:$0xff] %v13555_v11  ;;  %v13573_v14 = vld [vmem:[#allocation2 + $0x1c8] sm:$0xff] }
 0x81b   : > { %v4821_v51 = vadd.f32 %v4805_v41, %v4766_v48  ;;  %v4860_v21 = vmul.f32 %v13173_v58, %v13536_v46  ;;  %v4072_v32 = vmul.f32 %v13161_v25, %v3833_v4  ;;  %v4073_v54 = vmul.f32 %v13161_v25, %v4051_v29  ;;  %15775 = vst [vmem:[#allocation98_spill] sm:$0xff] %v13561_v39  ;;  %v15778_v4 = vld [vmem:[#allocation82_spill] sm:$0xff]  ;;  %v13577_v48 = vld [vmem:[#allocation2 + $0x1d0] sm:$0xff]  ;;  %v15781_v41 = vld [vmem:[#allocation19_spill] sm:$0xff] }
 0x81c   : > { %v4822_v33 = vadd.f32 %v4806_v49, %v4767_v20  ;;  %v4861_v40 = vmul.f32 %v13173_v58, %v13545_v61  ;;  %v3928_v3 = vadd.f32 %v3912_v9, %v3872_v6  ;;  %v3929_v53 = vadd.f32 %v3913_v17, %v3873_v52  ;;  %15776 = vst [vmem:[#allocation69_spill] sm:$0xff] %v13565_v34  ;;  %v15782_v49 = vld [vmem:[#allocation83_spill] sm:$0xff] }
 0x81d   : > { %v4876_v55 = vadd.f32 %v4860_v21, %v4821_v51  ;;  %v4917_v18 = vmul.f32 %v13372_v23, %v13551_v35  ;;  %v4131_v59 = vmul.f32 %v15756_v63, %v15777_v22  ;;  %v4132_v25 = vmul.f32 %v15756_v63, %v15778_v4  ;;  %15779 = vst [vmem:[#allocation71_spill] sm:$0xff] %v13573_v14  ;;  %v13585_v51 = vld [vmem:[#allocation2 + $0x1ca] sm:$0xff] }
 0x81e   : > { %v4877_v30 = vadd.f32 %v4861_v40, %v4822_v33  ;;  %v4918_v58 = vmul.f32 %v13372_v23, %v13555_v11  ;;  %v3984_v9 = vadd.f32 %v3968_v8, %v3928_v3  ;;  %v3985_v17 = vadd.f32 %v3969_v47, %v3929_v53  ;;  %15780 = vst [vmem:[#allocation99_spill] sm:$0xff] %v13577_v48  ;;  %v13589_v40 = vld [vmem:[#allocation2 + $0x1d2] sm:$0xff]  ;;  %v15786_v53 = vld [vmem:[#allocation87_spill] sm:$0xff] }
 0x81f   : > { %v4933_v45 = vadd.f32 %v4917_v18, %v4876_v55  ;;  %v4972_v29 = vmul.f32 %v13382_v15, %v13561_v39  ;;  %v4187_v20 = vmul.f32 %v15757_v24, %v15781_v41  ;;  %v4188_v63 = vmul.f32 %v15757_v24, %v15782_v49  ;;  %15783 = vst [vmem:[#allocation73_spill] sm:$0xff] %v13585_v51  ;;  %v15785_v3 = vld [vmem:[#allocation22_spill] sm:$0xff]  ;;  %v15787_v18 = vld [vmem:[#allocation45_spill] sm:$0xff] }
 0x820   : > { %v4934_v6 = vadd.f32 %v4918_v58, %v4877_v30  ;;  %v4973_v52 = vmul.f32 %v13382_v15, %v13565_v34  ;;  %v4040_v8 = vadd.f32 %v4024_v16, %v3984_v9  ;;  %v4041_v47 = vadd.f32 %v4025_v60, %v3985_v17  ;;  %15784 = vst [vmem:[#allocation76_spill] sm:$0xff] %v13589_v40  ;;  %v13599_v9 = vld [vmem:[#allocation2 + $0x1d4] sm:$0xff] }
 0x821   : > { %v4988_v21 = vadd.f32 %v4972_v29, %v4933_v45  ;;  %v5027_v33 = vmul.f32 %v13391_v28, %v13573_v14  ;;  %v4243_v55 = vmul.f32 %v15786_v53, %v15785_v3  ;;  %v4244_v24 = vmul.f32 %v15786_v53, %v15787_v18  ;;  %15788 = vst [vmem:[#allocation52_spill] sm:$0xff] %v13599_v9  ;;  %v15789_v17 = vld [vmem:[#allocation25_spill] sm:$0xff]  ;;  %v15790_v29 = vld [vmem:[#allocation90_spill] sm:$0xff] }
 0x822   : > { %v4989_v22 = vadd.f32 %v4973_v52, %v4934_v6  ;;  %v5028_v30 = vmul.f32 %v13391_v28, %v13577_v48  ;;  %v4088_v58 = vadd.f32 %v4072_v32, %v4040_v8  ;;  %v4089_v41 = vadd.f32 %v4073_v54, %v4041_v47  ;;  %v5164_v52 = vld [vmem:[#allocation2 + $0x204] sm:$0xff]  ;;  %v15791_v8 = vld [vmem:[#allocation93_spill] sm:$0xff] }
 0x823   : > { %v5043_v16 = vadd.f32 %v5027_v33, %v4988_v21  ;;  %v5082_v60 = vmul.f32 %v13400_v13, %v13585_v51  ;;  %v4299_v45 = vmul.f32 %v15758_v44, %v15789_v17  ;;  %v4300_v49 = vmul.f32 %v15758_v44, %v15790_v29  ;;  %v5165_v21 = vld [vmem:[#allocation2 + $0x20c] sm:$0xff] }
 0x824   : > { %v5044_v3 = vadd.f32 %v5028_v30, %v4989_v22  ;;  %v5083_v6 = vmul.f32 %v13400_v13, %v13589_v40  ;;  %v4147_v53 = vadd.f32 %v4131_v59, %v4088_v58  ;;  %v4148_v32 = vadd.f32 %v4132_v25, %v4089_v41  ;;  %v5219_v33 = vld [vmem:[#allocation2 + $0x206] sm:$0xff]  ;;  %v5220_v18 = vld [vmem:[#allocation2 + $0x20e] sm:$0xff]  ;;  %v15794_v41 = vld [vmem:[#allocation18_spill] sm:$0xff] }
 0x825   : > { %v5098_v54 = vadd.f32 %v5082_v60, %v5043_v16  ;;  %v5129_v47 = vmul.f32 %v15791_v8, %v13555_v11  ;;  %v4347_v17 = vmul.f32 %v15792_v62, %v15778_v4  ;;  %v4348_v44 = vmul.f32 %v15792_v62, %v15793_v26  ;;  %v5274_v29 = vld [vmem:[#allocation2 + $0x208] sm:$0xff]  ;;  %v5275_v60 = vld [vmem:[#allocation2 + $0x210] sm:$0xff]  ;;  %v15795_v4 = vld [vmem:[#allocation59_spill] sm:$0xff] }
 0x826   : > { %v5099_v22 = vadd.f32 %v5083_v6, %v5044_v3  ;;  %v5130_v30 = vmul.f32 %v15791_v8, %v13599_v9  ;;  %v4203_v59 = vadd.f32 %v4187_v20, %v4147_v53  ;;  %v4204_v25 = vadd.f32 %v4188_v63, %v4148_v32  ;;  %v5329_v40 = vld [vmem:[#allocation2 + $0x20a] sm:$0xff]  ;;  %v5330_v51 = vld [vmem:[#allocation2 + $0x212] sm:$0xff] }
 0x827   : > { %v5145_v58 = vadd.f32 %v5129_v47, %v5098_v54  ;;  %v5187_v16 = vmul.f32 %v15794_v41, %v5164_v52  ;;  %v5188_v14 = vmul.f32 %v15794_v41, %v5165_v21  ;;  %v5242_v34 = vmul.f32 %v15795_v4, %v5219_v33  ;;  %v15796_v9 = vld [vmem:[#allocation16_spill] sm:$0xff]  ;;  %v5378_v20 = vld [vmem:[#allocation2 + $0x214] sm:$0xff] }
 0x828   : > { %v5146_v48 = vadd.f32 %v5130_v30, %v5099_v22  ;;  %v5243_v26 = vmul.f32 %v15795_v4, %v5220_v18  ;;  %v4259_v62 = vadd.f32 %v4243_v55, %v4203_v59  ;;  %v4260_v3 = vadd.f32 %v4244_v24, %v4204_v25  ;;  %v5431_v63 = vld [vmem:[#allocation2 + $0x244] sm:$0xff]  ;;  %v5432_v53 = vld [vmem:[#allocation2 + $0x24c] sm:$0xff] }
 0x829   : > { %v5203_v6 = vadd.f32 %v5187_v16, %v5145_v58  ;;  %v5297_v39 = vmul.f32 %v15796_v9, %v5274_v29  ;;  %v5298_v52 = vmul.f32 %v15796_v9, %v5275_v60  ;;  %v15797_v54 = vld [vmem:[#allocation49_spill] sm:$0xff]  ;;  %v2517_v30 = vld [vmem:[#allocation2 + $0x127] sm:$0xff]  ;;  %v5399_v55 = vmul.f32 %v13448_v56, %v5165_v21 }
 0x82a   : > { %v5204_v32 = vadd.f32 %v5188_v14, %v5146_v48  ;;  %v5352_v47 = vmul.f32 %v15797_v54, %v5329_v40  ;;  %v5353_v22 = vmul.f32 %v15797_v54, %v5330_v51  ;;  %v4315_v11 = vadd.f32 %v4299_v45, %v4259_v62  ;;  %v5486_v24 = vld [vmem:[#allocation2 + $0x246] sm:$0xff]  ;;  %v5487_v18 = vld [vmem:[#allocation2 + $0x24e] sm:$0xff] }
 0x82b   : > { %v4316_v33 = vadd.f32 %v4300_v49, %v4260_v3  ;;  %v5258_v35 = vadd.f32 %v5242_v34, %v5203_v6  ;;  %v2518_v59 = vld [vmem:[#allocation2 + $0x12f] sm:$0xff]  ;;  %v5400_v25 = vmul.f32 %v13448_v56, %v5378_v20  ;;  %v2540_v49 = vmul.f32 %v13277_v57, %v2517_v30 }
 0x82c   : > { %v5259_v29 = vadd.f32 %v5243_v26, %v5204_v32  ;;  %v13628_v14 = vld [vmem:[%s14852_s7 + $0x13] ss:$0 sm:$0xff]  ;;  %v13632_v40 = vadd.f32 %v4347_v17, %v4315_v11  ;;  %v13640_v58 = vld [vmem:[%s14852_s7 + $0x14] ss:$0 sm:$0xff]  ;;  %v2541_v26 = vmul.f32 %v13277_v57, %v2518_v59  ;;  %v2634_v62 = vld [vmem:[#allocation2 + $0x129] sm:$0xff]  ;;  %v5548_v20 = vmul.f32 %v13464_v1, %v13483_v27 }
 0x82d   : > { %v5454_v48 = vmul.f32 %v13628_v14, %v5431_v63  ;;  %v5455_v51 = vmul.f32 %v13628_v14, %v5432_v53  ;;  %v13634_v34 = vadd.f32 %v4348_v44, %v4316_v33  ;;  %v5313_v45 = vadd.f32 %v5297_v39, %v5258_v35  ;;  %v5580_v35 = vld [vmem:[#allocation2 + $0x24a] sm:$0xff]  ;;  %v5581_v63 = vld [vmem:[#allocation2 + $0x252] sm:$0xff] }
 0x82e   : > { %15798 = vst [vmem:[#allocation31_spill] sm:$0xff] %v13632_v40  ;;  %v5314_v21 = vadd.f32 %v5298_v52, %v5259_v29  ;;  %v5509_v16 = vmul.f32 %v13640_v58, %v5486_v24  ;;  %v5510_v60 = vmul.f32 %v13640_v58, %v5487_v18  ;;  %v2562_v39 = vadd.f32 %v13294_v5, %v2540_v49  ;;  %v2635_v3 = vld [vmem:[#allocation2 + $0x131] sm:$0xff]  ;;  %v5685_v29 = vld [vmem:[#allocation2 + $0x284] sm:$0xff] }
 0x82f   : > { %15799 = vst [vmem:[#allocation21_spill] sm:$0xff] %v13634_v34  ;;  %v8177_v11 = vpack.c.bf16 %v13634_v34, %v13632_v40  ;;  %v5368_v17 = vadd.f32 %v5352_v47, %v5313_v45  ;;  %v2602_v44 = vmul.f32 %v13285_v38, %v13313_v19  ;;  %v2563_v32 = vadd.f32 %v13294_v5, %v2541_v26  ;;  %v5629_v5 = vld [vmem:[#allocation2 + $0x254] sm:$0xff]  ;;  %v15800_v49 = vld [vmem:[#allocation96_spill] sm:$0xff] }
 0x830   : > { %v5369_v6 = vadd.f32 %v5353_v22, %v5314_v21  ;;  %v2603_v57 = vmul.f32 %v13285_v38, %v13315_v42  ;;  %v5549_v47 = vmul.f32 %v13464_v1, %v13492_v0  ;;  %v2658_v33 = vmul.f32 %v13306_v36, %v2634_v62  ;;  %v13661_v22 = vld [vmem:[%s14852_s7 + $0x16] ss:$0 sm:$0xff]  ;;  %v13665_v42 = vld [vmem:[#allocation2 + $0x148] sm:$0xff]  ;;  %v13675_v62 = vld [vmem:[%s14852_s7 + $0x17] ss:$0 sm:$0xff] }
 0x831   : > { %8178 = vmatpush3.bf16.msra.mxu0 %v8177_v11  ;;  %v5415_v52 = vadd.f32 %v5399_v55, %v5368_v17  ;;  %v2618_v30 = vadd.f32 %v2602_v44, %v2562_v39  ;;  %v5603_v24 = vmul.f32 %v13661_v22, %v5580_v35  ;;  %v2659_v38 = vmul.f32 %v13306_v36, %v2635_v3  ;;  %v13670_v21 = vld [vmem:[#allocation2 + $0x150] sm:$0xff]  ;;  %v5740_v3 = vld [vmem:[#allocation2 + $0x286] sm:$0xff] }
 0x832   : > { %v5416_v19 = vadd.f32 %v5400_v25, %v5369_v6  ;;  %v2619_v18 = vadd.f32 %v2603_v57, %v2563_v32  ;;  %v5604_v59 = vmul.f32 %v13661_v22, %v5581_v63  ;;  %v2714_v25 = vmul.f32 %v13488_v12, %v15800_v49  ;;  %v5686_v11 = vld [vmem:[#allocation2 + $0x28c] sm:$0xff]  ;;  %v13686_v32 = vld [vmem:[%s14852_s7 + $0x18] ss:$0 sm:$0xff]  ;;  %v5955_v34 = vld [vmem:[#allocation2 + $0x2c4] sm:$0xff] }
 0x833   : > { %v5470_v55 = vadd.f32 %v5454_v48, %v5415_v52  ;;  %v2674_v45 = vadd.f32 %v2658_v33, %v2618_v30  ;;  %v5650_v36 = vmul.f32 %v13675_v62, %v5432_v53  ;;  %v15801_v48 = vld [vmem:[#allocation26_spill] sm:$0xff]  ;;  %v5651_v44 = vmul.f32 %v13675_v62, %v5629_v5  ;;  %v5741_v57 = vld [vmem:[#allocation2 + $0x28e] sm:$0xff] }
 0x834   : > { %v5471_v26 = vadd.f32 %v5455_v51, %v5416_v19  ;;  %v2675_v17 = vadd.f32 %v2659_v38, %v2619_v18  ;;  %v2715_v35 = vmul.f32 %v13488_v12, %v15801_v48  ;;  %v2770_v51 = vmul.f32 %v13501_v31, %v13665_v42  ;;  %v13691_v30 = vld [vmem:[#allocation2 + $0x167] sm:$0xff]  ;;  %v15803_v18 = vld [vmem:[#allocation46_spill] sm:$0xff] }
 0x835   : > { %v5525_v39 = vadd.f32 %v5509_v16, %v5470_v55  ;;  %v2730_v6 = vadd.f32 %v2714_v25, %v2674_v45  ;;  %v5708_v53 = vmul.f32 %v13686_v32, %v5685_v29  ;;  %v2771_v16 = vmul.f32 %v13501_v31, %v13670_v21  ;;  %15802 = vst [vmem:[#allocation81_spill] sm:$0xff] %v13691_v30  ;;  %v13701_v55 = vld [vmem:[#allocation2 + $0x16f] sm:$0xff]  ;;  %v13706_v45 = vld [vmem:[%s14852_s7 + $0x19] ss:$0 sm:$0xff] }
 0x836   : > { %v5526_v63 = vadd.f32 %v5510_v60, %v5471_v26  ;;  %v2731_v52 = vadd.f32 %v2715_v35, %v2675_v17  ;;  %v5709_v19 = vmul.f32 %v13686_v32, %v5686_v11  ;;  %v13697_v60 = vld [vmem:[%s14852_s7 + $0x5] ss:$0 sm:$0xff]  ;;  %15804 = vst [vmem:[#allocation89_spill] sm:$0xff] %v13701_v55  ;;  %v5850_v49 = vld [vmem:[#allocation2 + $0x28a] sm:$0xff]  ;;  %v15805_v26 = vld [vmem:[#allocation58_spill] sm:$0xff]  ;;  %v5764_v35 = vmul.f32 %v13706_v45, %v5741_v57 }
 0x837   : > { %v5564_v33 = vadd.f32 %v5548_v20, %v5525_v39  ;;  %v2786_v5 = vadd.f32 %v2770_v51, %v2730_v6  ;;  %v2826_v38 = vmul.f32 %v13697_v60, %v15803_v18  ;;  %v5763_v20 = vmul.f32 %v13706_v45, %v5740_v3  ;;  %v5851_v39 = vld [vmem:[#allocation2 + $0x292] sm:$0xff]  ;;  %v13719_v3 = vld [vmem:[#allocation2 + $0x160] sm:$0xff] }
 0x838   : > { %v5565_v29 = vadd.f32 %v5549_v47, %v5526_v63  ;;  %v2787_v25 = vadd.f32 %v2771_v16, %v2731_v52  ;;  %v2827_v17 = vmul.f32 %v13697_v60, %v15805_v26  ;;  %v13715_v47 = vld [vmem:[%s14852_s7 + $0x6] ss:$0 sm:$0xff]  ;;  %v13723_v52 = vmul.f32 %v13719_v3, %v13528_v50  ;;  %v13727_v16 = vld [vmem:[#allocation2 + $0x169] sm:$0xff]  ;;  %v5899_v18 = vld [vmem:[#allocation2 + $0x294] sm:$0xff] }
 0x839   : > { %v5619_v48 = vadd.f32 %v5603_v24, %v5564_v33  ;;  %v2842_v6 = vadd.f32 %v2826_v38, %v2786_v5  ;;  %v2882_v51 = vmul.f32 %v13715_v47, %v13691_v30  ;;  %v2883_v57 = vmul.f32 %v13715_v47, %v13701_v55  ;;  %15807 = vst [vmem:[#allocation84_spill] sm:$0xff] %v13727_v16  ;;  %v13732_v5 = vld [vmem:[%s14852_s7 + $0x1b] ss:$0 sm:$0xff]  ;;  %v13737_v26 = vld [vmem:[#allocation2 + $0x171] sm:$0xff]  ;;  %v13781_v50 = vld [vmem:[%s14852_s7 + $0x1f] ss:$0 sm:$0xff] }
 0x83a   : > { %v5620_v63 = vadd.f32 %v5604_v59, %v5565_v29  ;;  %15806 = vst [vmem:[#allocation91_spill] sm:$0xff] %v13723_v52  ;;  %v2843_v24 = vadd.f32 %v2827_v17, %v2787_v25  ;;  %15808 = vst [vmem:[#allocation77_spill] sm:$0xff] %v13732_v5  ;;  %v5873_v59 = vmul.f32 %v13732_v5, %v5850_v49  ;;  %v13745_v49 = vld [vmem:[%s14852_s7 + $0x1c] ss:$0 sm:$0xff] }
 0x83b   : > { %v5666_v33 = vadd.f32 %v5650_v36, %v5619_v48  ;;  %v2898_v38 = vadd.f32 %v2882_v51, %v2842_v6  ;;  %v2938_v29 = vmul.f32 %v13541_v43, %v13511_v7  ;;  %15809 = vst [vmem:[#allocation64_spill] sm:$0xff] %v13737_v26  ;;  %v5874_v17 = vmul.f32 %v13732_v5, %v5851_v39  ;;  %v3028_v48 = vld [vmem:[#allocation2 + $0xc4] sm:$0xff]  ;;  %v5956_v7 = vld [vmem:[#allocation2 + $0x2cc] sm:$0xff] }
 0x83c   : > { %v5667_v25 = vadd.f32 %v5651_v44, %v5620_v63  ;;  %v2899_v40 = vadd.f32 %v2883_v57, %v2843_v24  ;;  %v2939_v36 = vmul.f32 %v13541_v43, %v13513_v37  ;;  %15810 = vst [vmem:[#allocation41_spill] sm:$0xff] %v13745_v49  ;;  %v5920_v6 = vmul.f32 %v13745_v49, %v5686_v11  ;;  %v13751_v44 = vld [vmem:[%s14852_s7 + $0x8] ss:$0 sm:$0xff]  ;;  %v3029_v37 = vld [vmem:[#allocation2 + $0xcc] sm:$0xff] }
 0x83d   : > { %v5724_v55 = vadd.f32 %v5708_v53, %v5666_v33  ;;  %v2954_v51 = vadd.f32 %v2938_v29, %v2898_v38  ;;  %15811 = vst [vmem:[#allocation17_spill] sm:$0xff] %v13751_v44  ;;  %v2994_v39 = vmul.f32 %v13751_v44, %v13727_v16  ;;  %v5921_v53 = vmul.f32 %v13745_v49, %v5899_v18  ;;  %v6010_v24 = vld [vmem:[#allocation2 + $0x2c6] sm:$0xff]  ;;  %v13761_v38 = vld [vmem:[%s14852_s7 + $0x1d] ss:$0 sm:$0xff]  ;;  %v6011_v5 = vld [vmem:[#allocation2 + $0x2ce] sm:$0xff] }
 0x83e   : > { %v5725_v63 = vadd.f32 %v5709_v19, %v5667_v25  ;;  %v2955_v57 = vadd.f32 %v2939_v36, %v2899_v40  ;;  %v2995_v33 = vmul.f32 %v13751_v44, %v13737_v26  ;;  %v3084_v11 = vld [vmem:[#allocation2 + $0xc6] sm:$0xff]  ;;  %15812 = vst [vmem:[#allocation42_spill] sm:$0xff] %v13761_v38  ;;  %v5978_v29 = vmul.f32 %v13761_v38, %v5955_v34  ;;  %v3085_v25 = vld [vmem:[#allocation2 + $0xce] sm:$0xff] }
 0x83f   : > { %v5779_v30 = vadd.f32 %v5763_v20, %v5724_v55  ;;  %v3010_v16 = vadd.f32 %v2994_v39, %v2954_v51  ;;  %v3052_v19 = vmul.f32 %v13372_v23, %v3028_v48  ;;  %v5979_v40 = vmul.f32 %v13761_v38, %v5956_v7  ;;  %v3140_v49 = vld [vmem:[#allocation2 + $0xc8] sm:$0xff]  ;;  %v13771_v20 = vld [vmem:[%s14852_s7 + $0x1e] ss:$0 sm:$0xff]  ;;  %15813 = vst [vmem:[#allocation32_spill] sm:$0xff] %v13781_v50 }
 0x840   : > { %v5780_v18 = vadd.f32 %v5764_v35, %v5725_v63  ;;  %v3011_v36 = vadd.f32 %v2995_v33, %v2955_v57  ;;  %v3053_v26 = vmul.f32 %v13372_v23, %v3029_v37  ;;  %v6033_v34 = vmul.f32 %v13771_v20, %v6010_v24  ;;  %v6120_v51 = vld [vmem:[#allocation2 + $0x2ca] sm:$0xff]  ;;  %v6121_v23 = vld [vmem:[#allocation2 + $0x2d2] sm:$0xff] }
 0x841   : > { %v5834_v55 = vadd.f32 %v13723_v52, %v5779_v30  ;;  %v3068_v39 = vadd.f32 %v3052_v19, %v3010_v16  ;;  %v3108_v48 = vmul.f32 %v13382_v15, %v3084_v11  ;;  %v3141_v35 = vld [vmem:[#allocation2 + $0xd0] sm:$0xff]  ;;  %v6034_v57 = vmul.f32 %v13771_v20, %v6011_v5 }
 0x842   : > { %v5835_v63 = vadd.f32 %v13723_v52, %v5780_v18  ;;  %v3069_v33 = vadd.f32 %v3053_v26, %v3011_v36  ;;  %v3109_v30 = vmul.f32 %v13382_v15, %v3085_v25  ;;  %v3196_v38 = vld [vmem:[#allocation2 + $0xca] sm:$0xff]  ;;  %v13785_v16 = vmul.f32 %v13781_v50, %v13719_v3  ;;  %v3197_v19 = vld [vmem:[#allocation2 + $0xd2] sm:$0xff]  ;;  %v13791_v15 = vld [vmem:[%s14852_s7 + $0x20] ss:$0 sm:$0xff] }
 0x843   : > { %v5889_v44 = vadd.f32 %v5873_v59, %v5834_v55  ;;  %v3124_v24 = vadd.f32 %v3108_v48, %v3068_v39  ;;  %v3164_v11 = vmul.f32 %v13391_v28, %v3140_v49  ;;  %15815 = vst [vmem:[#allocation72_spill] sm:$0xff] %v13791_v15  ;;  %v6143_v59 = vmul.f32 %v13791_v15, %v6120_v51  ;;  %v6169_v26 = vld [vmem:[#allocation2 + $0x2d4] sm:$0xff]  ;;  %v3303_v48 = vld [vmem:[#allocation2 + $0x104] sm:$0xff] }
 0x844   : > { %15814 = vst [vmem:[#allocation54_spill] sm:$0xff] %v13785_v16  ;;  %v5890_v5 = vadd.f32 %v5874_v17, %v5835_v63  ;;  %v3125_v25 = vadd.f32 %v3109_v30, %v3069_v33  ;;  %v3165_v18 = vmul.f32 %v13391_v28, %v3141_v35  ;;  %v6144_v55 = vmul.f32 %v13791_v15, %v6121_v23  ;;  %v3246_v49 = vld [vmem:[#allocation2 + $0xd4] sm:$0xff]  ;;  %v13800_v63 = vld [vmem:[%s14852_s7 + $0x21] ss:$0 sm:$0xff]  ;;  %v3304_v28 = vld [vmem:[#allocation2 + $0x10c] sm:$0xff] }
 0x845   : > { %v5936_v36 = vadd.f32 %v5920_v6, %v5889_v44  ;;  %v3180_v52 = vadd.f32 %v3164_v11, %v3124_v24  ;;  %v3220_v39 = vmul.f32 %v13400_v13, %v3196_v38  ;;  %15816 = vst [vmem:[#allocation55_spill] sm:$0xff] %v13800_v63  ;;  %v6190_v51 = vmul.f32 %v13800_v63, %v5956_v7  ;;  %v3359_v6 = vld [vmem:[#allocation2 + $0x106] sm:$0xff]  ;;  %v3360_v30 = vld [vmem:[#allocation2 + $0x10e] sm:$0xff] }
 0x846   : > { %v5937_v17 = vadd.f32 %v5921_v53, %v5890_v5  ;;  %v3181_v50 = vadd.f32 %v3165_v18, %v3125_v25  ;;  %v3221_v33 = vmul.f32 %v13400_v13, %v3197_v19  ;;  %v6191_v35 = vmul.f32 %v13800_v63, %v6169_v26  ;;  %v3415_v53 = vld [vmem:[#allocation2 + $0x108] sm:$0xff]  ;;  %v3416_v7 = vld [vmem:[#allocation2 + $0x110] sm:$0xff] }
 0x847   : > { %v5994_v44 = vadd.f32 %v5978_v29, %v5936_v36  ;;  %v3236_v23 = vadd.f32 %v3220_v39, %v3180_v52  ;;  %v3268_v38 = vmul.f32 %v15791_v8, %v3029_v37  ;;  %v3269_v5 = vmul.f32 %v15791_v8, %v3246_v49  ;;  %v3471_v25 = vld [vmem:[#allocation2 + $0x10a] sm:$0xff]  ;;  %v3472_v26 = vld [vmem:[#allocation2 + $0x112] sm:$0xff] }
 0x848   : > { %v5995_v24 = vadd.f32 %v5979_v40, %v5937_v17  ;;  %v3237_v11 = vadd.f32 %v3221_v33, %v3181_v50  ;;  %v3327_v15 = vmul.f32 %v15794_v41, %v3303_v48  ;;  %v3328_v19 = vmul.f32 %v15794_v41, %v3304_v28  ;;  %v3521_v50 = vld [vmem:[#allocation2 + $0x114] sm:$0xff]  ;;  %v3575_v39 = vld [vmem:[#allocation2 + $0x144] sm:$0xff]  ;;  %v3576_v17 = vld [vmem:[#allocation2 + $0x14c] sm:$0xff] }
 0x849   : > { %v6049_v18 = vadd.f32 %v6033_v34, %v5994_v44  ;;  %v3284_v13 = vadd.f32 %v3268_v38, %v3236_v23  ;;  %v3383_v29 = vmul.f32 %v15795_v4, %v3359_v6  ;;  %v3384_v37 = vmul.f32 %v15795_v4, %v3360_v30  ;;  %v3631_v41 = vld [vmem:[#allocation2 + $0x146] sm:$0xff]  ;;  %v3632_v44 = vld [vmem:[#allocation2 + $0x14e] sm:$0xff] }
 0x84a   : > { %v6050_v52 = vadd.f32 %v6034_v57, %v5995_v24  ;;  %v3285_v36 = vadd.f32 %v3269_v5, %v3237_v11  ;;  %v3439_v40 = vmul.f32 %v15796_v9, %v3415_v53  ;;  %v3440_v48 = vmul.f32 %v15796_v9, %v3416_v7  ;;  %v4399_v23 = vld [vmem:[#allocation2 + $0x247] sm:$0xff]  ;;  %v4400_v9 = vld [vmem:[#allocation2 + $0x24f] sm:$0xff] }
 0x84b   : > { %v6104_v8 = vadd.f32 %v13785_v16, %v6049_v18  ;;  %v3343_v49 = vadd.f32 %v3327_v15, %v3284_v13  ;;  %v3495_v34 = vmul.f32 %v15797_v54, %v3471_v25  ;;  %v3496_v57 = vmul.f32 %v15797_v54, %v3472_v26 }
 0x84c   : > { %v6105_v33 = vadd.f32 %v13785_v16, %v6050_v52  ;;  %v3344_v6 = vadd.f32 %v3328_v19, %v3285_v36  ;;  %v3543_v4 = vmul.f32 %v13448_v56, %v3304_v28  ;;  %v3544_v53 = vmul.f32 %v13448_v56, %v3521_v50  ;;  %v3727_v19 = vld [vmem:[#allocation2 + $0x14a] sm:$0xff]  ;;  %v3728_v36 = vld [vmem:[#allocation2 + $0x152] sm:$0xff] }
 0x84d   : > { %v6159_v38 = vadd.f32 %v6143_v59, %v6104_v8  ;;  %v3399_v30 = vadd.f32 %v3383_v29, %v3343_v49  ;;  %v3599_v15 = vmul.f32 %v13628_v14, %v3575_v39  ;;  %v3600_v5 = vmul.f32 %v13628_v14, %v3576_v17  ;;  %v13828_v59 = vld [vmem:[%s14852_s7] ss:$0 sm:$0xff]  ;;  %v4509_v29 = vld [vmem:[#allocation2 + $0x249] sm:$0xff]  ;;  %v4510_v39 = vld [vmem:[#allocation2 + $0x251] sm:$0xff] }
 0x84e   : > { %v6160_v24 = vadd.f32 %v6144_v55, %v6105_v33  ;;  %v3400_v11 = vadd.f32 %v3384_v37, %v3344_v6  ;;  %v3655_v7 = vmul.f32 %v13640_v58, %v3631_v41  ;;  %v3656_v28 = vmul.f32 %v13640_v58, %v3632_v44  ;;  %v13841_v37 = vld [vmem:[%s14853_s8] ss:$0 sm:$0xff]  ;;  %v3777_v33 = vld [vmem:[#allocation2 + $0x154] sm:$0xff]  ;;  %v13860_v44 = vld [vmem:[%s14852_s7 + $0x2] ss:$0 sm:$0xff] }
 0x84f   : > { %v13822_v25 = vadd.f32 %v6190_v51, %v6159_v38  ;;  %v3455_v54 = vadd.f32 %v3439_v40, %v3399_v30  ;;  %v4422_v56 = vmul.f32 %v13828_v59, %v4399_v23  ;;  %v3695_v13 = vmul.f32 %v13464_v1, %v13665_v42  ;;  %v13847_v40 = vld [vmem:[%s14852_s7 + $0x1] ss:$0 sm:$0xff]  ;;  %v3834_v38 = vld [vmem:[#allocation2 + $0x184] sm:$0xff] }
 0x850   : > { %v13831_v18 = vadd.f32 %v6191_v35, %v6160_v24  ;;  %v3456_v55 = vadd.f32 %v3440_v48, %v3400_v11  ;;  %v4423_v51 = vmul.f32 %v13828_v59, %v4400_v9  ;;  %v3696_v52 = vmul.f32 %v13464_v1, %v13670_v21  ;;  %v3835_v11 = vld [vmem:[#allocation2 + $0x18c] sm:$0xff] }
 0x851   : > { %15817 = vst [vmem:[#allocation48_spill] sm:$0xff] %v13822_v25  ;;  %v3511_v26 = vadd.f32 %v3495_v34, %v3455_v54  ;;  %v4438_v35 = vadd.f32 %v13841_v37, %v4422_v56  ;;  %v4477_v50 = vmul.f32 %v13847_v40, %v13483_v27  ;;  %v4478_v48 = vmul.f32 %v13847_v40, %v13492_v0 }
 0x852   : > { %15818 = vst [vmem:[#allocation34_spill] sm:$0xff] %v13831_v18  ;;  %v8179_v1 = vpack.c.bf16 %v13831_v18, %v13822_v25  ;;  %v3512_v8 = vadd.f32 %v3496_v57, %v3456_v55  ;;  %v4439_v49 = vadd.f32 %v13841_v37, %v4423_v51  ;;  %v3751_v41 = vmul.f32 %v13661_v22, %v3727_v19  ;;  %v13870_v55 = vld [vmem:[#allocation2 + $0x270] sm:$0xff]  ;;  %v15843_v25 = vld [vmem:[#allocation52_spill] sm:$0xff] }
 0x853   : > { %v3559_v34 = vadd.f32 %v3543_v4, %v3511_v26  ;;  %v4493_v6 = vadd.f32 %v4477_v50, %v4438_v35  ;;  %v4532_v27 = vmul.f32 %v13860_v44, %v4509_v29  ;;  %v3752_v57 = vmul.f32 %v13661_v22, %v3728_v36  ;;  %v13865_v4 = vld [vmem:[#allocation2 + $0x268] sm:$0xff] }
 0x854   : > { %8180 = vmatprep.subr.bf16.mxu0 %v8179_v1  ;;  %v3560_v23 = vadd.f32 %v3544_v53, %v3512_v8  ;;  %v4494_v30 = vadd.f32 %v4478_v48, %v4439_v49  ;;  %v4533_v0 = vmul.f32 %v13860_v44, %v4510_v39  ;;  %v3799_v24 = vmul.f32 %v13675_v62, %v3576_v17  ;;  %v4729_v26 = vld [vmem:[#allocation2 + $0x287] sm:$0xff]  ;;  %v4730_v50 = vld [vmem:[#allocation2 + $0x28f] sm:$0xff] }
 0x855   : > { %v3615_v9 = vadd.f32 %v3599_v15, %v3559_v34  ;;  %v4548_v54 = vadd.f32 %v4532_v27, %v4493_v6  ;;  %v4587_v56 = vmul.f32 %v13488_v12, %v13509_v10  ;;  %v3800_v53 = vmul.f32 %v13675_v62, %v3777_v33  ;;  %v3890_v1 = vld [vmem:[#allocation2 + $0x186] sm:$0xff]  ;;  %v3891_v48 = vld [vmem:[#allocation2 + $0x18e] sm:$0xff] }
 0x856   : > { %v3616_v19 = vadd.f32 %v3600_v5, %v3560_v23  ;;  %v4549_v51 = vadd.f32 %v4533_v0, %v4494_v30  ;;  %v4588_v29 = vmul.f32 %v13488_v12, %v13517_v2  ;;  %v3858_v15 = vmul.f32 %v13686_v32, %v3834_v38  ;;  %v13881_v12 = vld [vmem:[#allocation2 + $0x188] sm:$0xff]  ;;  %v13886_v6 = vld [vmem:[#allocation2 + $0x190] sm:$0xff] }
 0x857   : > { %v3671_v36 = vadd.f32 %v3655_v7, %v3615_v9  ;;  %v4603_v35 = vadd.f32 %v4587_v56, %v4548_v54  ;;  %v4642_v17 = vmul.f32 %v13501_v31, %v13865_v4  ;;  %v3859_v10 = vmul.f32 %v13686_v32, %v3835_v11  ;;  %v4002_v30 = vld [vmem:[#allocation2 + $0x18a] sm:$0xff]  ;;  %v15819_v56 = vld [vmem:[#allocation95_spill] sm:$0xff] }
 0x858   : > { %v3672_v39 = vadd.f32 %v3656_v28, %v3616_v19  ;;  %v4604_v5 = vadd.f32 %v4588_v29, %v4549_v51  ;;  %v4643_v8 = vmul.f32 %v13501_v31, %v13870_v55  ;;  %v4697_v7 = vmul.f32 %v13697_v60, %v13536_v46  ;;  %v4839_v31 = vld [vmem:[#allocation2 + $0x289] sm:$0xff]  ;;  %v4840_v9 = vld [vmem:[#allocation2 + $0x291] sm:$0xff] }
 0x859   : > { %v3711_v49 = vadd.f32 %v3695_v13, %v3671_v36  ;;  %v4658_v2 = vadd.f32 %v4642_v17, %v4603_v35  ;;  %v4752_v34 = vmul.f32 %v13715_v47, %v4729_v26  ;;  %v4698_v27 = vmul.f32 %v13697_v60, %v13545_v61  ;;  %v4003_v51 = vld [vmem:[#allocation2 + $0x192] sm:$0xff] }
 0x85a   : > { %v3712_v33 = vadd.f32 %v3696_v52, %v3672_v39  ;;  %v4659_v28 = vadd.f32 %v4643_v8, %v4604_v5  ;;  %v4753_v23 = vmul.f32 %v13715_v47, %v4730_v50  ;;  %v3914_v38 = vmul.f32 %v13706_v45, %v3890_v1  ;;  %v4052_v26 = vld [vmem:[#allocation2 + $0x194] sm:$0xff]  ;;  %v13902_v1 = vld [vmem:[#allocation2 + $0x1e4] sm:$0xff] }
 0x85b   : > { %v3767_v13 = vadd.f32 %v3751_v41, %v3711_v49  ;;  %v4713_v0 = vadd.f32 %v4697_v7, %v4658_v2  ;;  %v4807_v46 = vmul.f32 %v13719_v3, %v13541_v43  ;;  %v3915_v52 = vmul.f32 %v13706_v45, %v3891_v48  ;;  %v15820_v35 = vld [vmem:[#allocation17_spill] sm:$0xff]  ;;  %15822 = vst [vmem:[#allocation74_spill] sm:$0xff] %v13902_v1 }
 0x85c   : > { %v3768_v54 = vadd.f32 %v3752_v57, %v3712_v33  ;;  %v3970_v19 = vmul.f32 %v15819_v56, %v13881_v12  ;;  %v4714_v61 = vadd.f32 %v4698_v27, %v4659_v28  ;;  %v3971_v41 = vmul.f32 %v15819_v56, %v13886_v6  ;;  %v15821_v39 = vld [vmem:[#allocation77_spill] sm:$0xff] }
 0x85d   : > { %v3815_v29 = vadd.f32 %v3799_v24, %v3767_v13  ;;  %v4768_v36 = vadd.f32 %v4752_v34, %v4713_v0  ;;  %v4862_v17 = vmul.f32 %v15820_v35, %v4839_v31  ;;  %v4026_v43 = vmul.f32 %v15821_v39, %v4002_v30  ;;  %v15823_v49 = vld [vmem:[#allocation41_spill] sm:$0xff] }
 0x85e   : > { %v3816_v50 = vadd.f32 %v3800_v53, %v3768_v54  ;;  %v4769_v3 = vadd.f32 %v4753_v23, %v4714_v61  ;;  %v4863_v57 = vmul.f32 %v15820_v35, %v4840_v9  ;;  %v4027_v8 = vmul.f32 %v15821_v39, %v4003_v51  ;;  %v13906_v2 = vld [vmem:[#allocation2 + $0x1ec] sm:$0xff]  ;;  %v15826_v53 = vld [vmem:[#allocation42_spill] sm:$0xff] }
 0x85f   : > { %v3874_v5 = vadd.f32 %v3858_v15, %v3815_v29  ;;  %v4074_v24 = vmul.f32 %v15823_v49, %v3835_v11  ;;  %v4823_v48 = vadd.f32 %v4807_v46, %v4768_v36  ;;  %15824 = vst [vmem:[#allocation78_spill] sm:$0xff] %v13906_v2  ;;  %v4075_v34 = vmul.f32 %v15823_v49, %v4052_v26  ;;  %v15825_v33 = vld [vmem:[#allocation97_spill] sm:$0xff]  ;;  %v13911_v23 = vld [vmem:[#allocation2 + $0x1e6] sm:$0xff]  ;;  %v15830_v54 = vld [vmem:[#allocation98_spill] sm:$0xff] }
 0x860   : > { %v3875_v7 = vadd.f32 %v3859_v10, %v3816_v50  ;;  %v4133_v28 = vmul.f32 %v15826_v53, %v15825_v33  ;;  %v4824_v27 = vadd.f32 %v4807_v46, %v4769_v3  ;;  %15827 = vst [vmem:[#allocation75_spill] sm:$0xff] %v13911_v23  ;;  %v15828_v13 = vld [vmem:[#allocation61_spill] sm:$0xff]  ;;  %v13918_v11 = vld [vmem:[%s14852_s7 + $0x9] ss:$0 sm:$0xff]  ;;  %v4189_v46 = vmul.f32 %v13771_v20, %v15830_v54  ;;  %v13952_v54 = vld [vmem:[%s14852_s7 + $0xb] ss:$0 sm:$0xff] }
 0x861   : > { %v3930_v31 = vadd.f32 %v3914_v38, %v3874_v5  ;;  %v4134_v15 = vmul.f32 %v15826_v53, %v15828_v13  ;;  %v4878_v30 = vadd.f32 %v4862_v17, %v4823_v48  ;;  %v4919_v10 = vmul.f32 %v13918_v11, %v13902_v1  ;;  %v13922_v0 = vld [vmem:[#allocation2 + $0x1ee] sm:$0xff]  ;;  %v13935_v17 = vld [vmem:[%s14852_s7 + $0xa] ss:$0 sm:$0xff] }
 0x862   : > { %15829 = vst [vmem:[#allocation40_spill] sm:$0xff] %v13922_v0  ;;  %v3931_v9 = vadd.f32 %v3915_v52, %v3875_v7  ;;  %v4879_v56 = vadd.f32 %v4863_v57, %v4824_v27  ;;  %v4920_v38 = vmul.f32 %v13918_v11, %v13906_v2  ;;  %v13928_v51 = vld [vmem:[#allocation2 + $0x1e8] sm:$0xff]  ;;  %v15832_v29 = vld [vmem:[#allocation69_spill] sm:$0xff]  ;;  %v4974_v52 = vmul.f32 %v13935_v17, %v13911_v23  ;;  %v15834_v57 = vld [vmem:[#allocation71_spill] sm:$0xff] }
 0x863   : > { %15831 = vst [vmem:[#allocation38_spill] sm:$0xff] %v13928_v51  ;;  %v3986_v61 = vadd.f32 %v3970_v19, %v3930_v31  ;;  %v4190_v26 = vmul.f32 %v13771_v20, %v15832_v29  ;;  %v4935_v36 = vadd.f32 %v4919_v10, %v4878_v30  ;;  %v13939_v50 = vld [vmem:[#allocation2 + $0x1f0] sm:$0xff]  ;;  %v15835_v5 = vld [vmem:[#allocation32_spill] sm:$0xff]  ;;  %v4975_v19 = vmul.f32 %v13935_v17, %v13922_v0  ;;  %v15837_v31 = vld [vmem:[#allocation99_spill] sm:$0xff] }
 0x864   : > { %15833 = vst [vmem:[#allocation39_spill] sm:$0xff] %v13939_v50  ;;  %v3987_v3 = vadd.f32 %v3971_v41, %v3931_v9  ;;  %v4245_v48 = vmul.f32 %v15835_v5, %v15834_v57  ;;  %v4936_v7 = vadd.f32 %v4920_v38, %v4879_v56  ;;  %v13945_v33 = vld [vmem:[#allocation2 + $0x1ea] sm:$0xff]  ;;  %v4246_v30 = vmul.f32 %v15835_v5, %v15837_v31  ;;  %v13956_v9 = vld [vmem:[#allocation2 + $0x1f2] sm:$0xff] }
 0x865   : > { %15836 = vst [vmem:[#allocation85_spill] sm:$0xff] %v13945_v33  ;;  %v4042_v27 = vadd.f32 %v4026_v43, %v3986_v61  ;;  %v4990_v10 = vadd.f32 %v4974_v52, %v4935_v36  ;;  %v5029_v41 = vmul.f32 %v13952_v54, %v13928_v51  ;;  %15838 = vst [vmem:[#allocation27_spill] sm:$0xff] %v13956_v9  ;;  %v15839_v38 = vld [vmem:[#allocation73_spill] sm:$0xff]  ;;  %v15840_v29 = vld [vmem:[#allocation72_spill] sm:$0xff] }
 0x866   : > { %v4043_v56 = vadd.f32 %v4027_v8, %v3987_v3  ;;  %v4301_v57 = vmul.f32 %v15840_v29, %v15839_v38  ;;  %v4991_v18 = vadd.f32 %v4975_v19, %v4936_v7  ;;  %v5030_v43 = vmul.f32 %v13952_v54, %v13939_v50  ;;  %v15841_v36 = vld [vmem:[#allocation76_spill] sm:$0xff]  ;;  %v13971_v3 = vld [vmem:[#allocation2 + $0x1f4] sm:$0xff] }
 0x867   : > { %v4090_v61 = vadd.f32 %v4074_v24, %v4042_v27  ;;  %v4302_v52 = vmul.f32 %v15840_v29, %v15841_v36  ;;  %v5045_v5 = vadd.f32 %v5029_v41, %v4990_v10  ;;  %v13967_v31 = vld [vmem:[%s14852_s7 + $0xc] ss:$0 sm:$0xff]  ;;  %15842 = vst [vmem:[#allocation28_spill] sm:$0xff] %v13971_v3  ;;  %v5166_v38 = vld [vmem:[#allocation2 + $0x224] sm:$0xff]  ;;  %v4349_v19 = vmul.f32 %v13800_v63, %v15828_v13  ;;  %v5222_v13 = vld [vmem:[#allocation2 + $0x22e] sm:$0xff] }
 0x868   : > { %v5084_v8 = vmul.f32 %v13967_v31, %v13945_v33  ;;  %v4091_v7 = vadd.f32 %v4075_v34, %v4043_v56  ;;  %v5046_v24 = vadd.f32 %v5030_v43, %v4991_v18  ;;  %v5085_v27 = vmul.f32 %v13967_v31, %v13956_v9  ;;  %v5167_v10 = vld [vmem:[#allocation2 + $0x22c] sm:$0xff] }
 0x869   : > { %v5221_v41 = vld [vmem:[#allocation2 + $0x226] sm:$0xff]  ;;  %v4149_v36 = vadd.f32 %v4133_v28, %v4090_v61  ;;  %v4350_v50 = vmul.f32 %v13800_v63, %v15843_v25  ;;  %v13991_v25 = vld [vmem:[%s14852_s7 + $0xe] ss:$0 sm:$0xff]  ;;  %v5277_v61 = vld [vmem:[#allocation2 + $0x230] sm:$0xff] }
 0x86a   : > { %v5100_v51 = vadd.f32 %v5084_v8, %v5045_v5  ;;  %v13982_v33 = vld [vmem:[%s14852_s7 + $0xd] ss:$0 sm:$0xff]  ;;  %v4150_v56 = vadd.f32 %v4134_v15, %v4091_v7  ;;  %v5101_v43 = vadd.f32 %v5085_v27, %v5046_v24  ;;  %v5189_v28 = vmul.f32 %v13991_v25, %v5166_v38  ;;  %v13998_v15 = vld [vmem:[%s14852_s7 + $0xf] ss:$0 sm:$0xff]  ;;  %v5332_v24 = vld [vmem:[#allocation2 + $0x232] sm:$0xff] }
 0x86b   : > { %v5131_v34 = vmul.f32 %v13982_v33, %v13906_v2  ;;  %v5276_v18 = vld [vmem:[#allocation2 + $0x228] sm:$0xff]  ;;  %v5132_v9 = vmul.f32 %v13982_v33, %v13971_v3  ;;  %v4205_v8 = vadd.f32 %v4189_v46, %v4149_v36  ;;  %v5190_v23 = vmul.f32 %v13991_v25, %v5167_v10  ;;  %15844 = vst [vmem:[#allocation92_spill] sm:$0xff] %v13998_v15  ;;  %v14005_v38 = vld [vmem:[%s14852_s7 + $0x10] ss:$0 sm:$0xff] }
 0x86c   : > { %v5331_v5 = vld [vmem:[#allocation2 + $0x22a] sm:$0xff]  ;;  %v5244_v7 = vmul.f32 %v13998_v15, %v5221_v41  ;;  %v4206_v27 = vadd.f32 %v4190_v26, %v4150_v56  ;;  %v5245_v2 = vmul.f32 %v13998_v15, %v5222_v13  ;;  %15845 = vst [vmem:[#allocation86_spill] sm:$0xff] %v14005_v38  ;;  %v5299_v46 = vmul.f32 %v14005_v38, %v5276_v18 }
 0x86d   : > { %v5147_v0 = vadd.f32 %v5131_v34, %v5100_v51  ;;  %v5148_v3 = vadd.f32 %v5132_v9, %v5101_v43  ;;  %v5379_v51 = vld [vmem:[#allocation2 + $0x234] sm:$0xff]  ;;  %v2519_v36 = vld [vmem:[#allocation2 + $0x147] sm:$0xff]  ;;  %v4261_v34 = vadd.f32 %v4245_v48, %v4205_v8  ;;  %v5300_v63 = vmul.f32 %v14005_v38, %v5277_v61  ;;  %v14012_v26 = vld [vmem:[%s14852_s7 + $0x11] ss:$0 sm:$0xff] }
 0x86e   : > { %15846 = vst [vmem:[#allocation63_spill] sm:$0xff] %v14012_v26  ;;  %v5354_v9 = vmul.f32 %v14012_v26, %v5331_v5  ;;  %v5433_v41 = vld [vmem:[#allocation2 + $0x264] sm:$0xff]  ;;  %v2520_v13 = vld [vmem:[#allocation2 + $0x14f] sm:$0xff]  ;;  %v4262_v56 = vadd.f32 %v4246_v30, %v4206_v27  ;;  %v5355_v16 = vmul.f32 %v14012_v26, %v5332_v24  ;;  %v2542_v8 = vmul.f32 %v13828_v59, %v2519_v36 }
 0x86f   : > { %v5205_v1 = vadd.f32 %v5189_v28, %v5147_v0  ;;  %v5206_v43 = vadd.f32 %v5190_v23, %v5148_v3  ;;  %v14019_v48 = vld [vmem:[%s14852_s7 + $0x12] ss:$0 sm:$0xff]  ;;  %v4317_v18 = vadd.f32 %v4301_v57, %v4261_v34  ;;  %v5456_v23 = vmul.f32 %v13628_v14, %v5433_v41  ;;  %v2636_v3 = vld [vmem:[#allocation2 + $0x149] sm:$0xff] }
 0x870   : > { %v5401_v0 = vmul.f32 %v14019_v48, %v5167_v10  ;;  %v5402_v61 = vmul.f32 %v14019_v48, %v5379_v51  ;;  %v4318_v5 = vadd.f32 %v4302_v52, %v4262_v56  ;;  %v5434_v15 = vld [vmem:[#allocation2 + $0x26c] sm:$0xff]  ;;  %v2543_v30 = vmul.f32 %v13828_v59, %v2520_v13 }
 0x871   : > { %v5260_v28 = vadd.f32 %v5244_v7, %v5205_v1  ;;  %v5261_v38 = vadd.f32 %v5245_v2, %v5206_v43  ;;  %v14026_v24 = vadd.f32 %v4349_v19, %v4317_v18  ;;  %v2564_v26 = vadd.f32 %v13841_v37, %v2542_v8  ;;  %v2637_v57 = vld [vmem:[#allocation2 + $0x151] sm:$0xff]  ;;  %v5488_v52 = vld [vmem:[#allocation2 + $0x266] sm:$0xff] }
 0x872   : > { %v2604_v1 = vmul.f32 %v13847_v40, %v13665_v42  ;;  %v14031_v10 = vadd.f32 %v4350_v50, %v4318_v5  ;;  %v2565_v2 = vadd.f32 %v13841_v37, %v2543_v30  ;;  %v2605_v51 = vmul.f32 %v13847_v40, %v13670_v21  ;;  %v5489_v36 = vld [vmem:[#allocation2 + $0x26e] sm:$0xff] }
 0x873   : > { %v5315_v27 = vadd.f32 %v5299_v46, %v5260_v28  ;;  %v5316_v7 = vadd.f32 %v5300_v63, %v5261_v38  ;;  %v5457_v19 = vmul.f32 %v13628_v14, %v5434_v15  ;;  %v2660_v34 = vmul.f32 %v13860_v44, %v2636_v3  ;;  %v14041_v38 = vld [vmem:[#allocation2 + $0x168] sm:$0xff]  ;;  %v8649_v14 = vld [vmem:[%s14852_s7 + $0x3] ss:$0 sm:$0xff]  ;;  %v15847_v40 = vld [vmem:[#allocation81_spill] sm:$0xff] }
 0x874   : > { %v2620_v46 = vadd.f32 %v2604_v1, %v2564_v26  ;;  %v8181_v42 = vpack.c.bf16 %v14031_v10, %v14026_v24  ;;  %v2621_v50 = vadd.f32 %v2605_v51, %v2565_v2  ;;  %v2661_v63 = vmul.f32 %v13860_v44, %v2637_v57  ;;  %v5582_v43 = vld [vmem:[#allocation2 + $0x26a] sm:$0xff]  ;;  %v14055_v8 = vld [vmem:[%s14852_s7 + $0x15] ss:$0 sm:$0xff] }
 0x875   : > { %v5370_v59 = vadd.f32 %v5354_v9, %v5315_v27  ;;  %v5371_v41 = vadd.f32 %v5355_v16, %v5316_v7  ;;  %v5511_v13 = vmul.f32 %v13640_v58, %v5488_v52  ;;  %v2716_v26 = vmul.f32 %v8649_v14, %v15847_v40  ;;  %v14048_v9 = vld [vmem:[#allocation2 + $0x170] sm:$0xff]  ;;  %v2860_v7 = vld [vmem:[#allocation2 + $0x187] sm:$0xff] }
 0x876   : > { %v2676_v21 = vadd.f32 %v2660_v34, %v2620_v46  ;;  %8182 = vmatpush3.bf16.msra.mxu0 %v8181_v42  ;;  %v5512_v16 = vmul.f32 %v13640_v58, %v5489_v36  ;;  %v2677_v44 = vadd.f32 %v2661_v63, %v2621_v50  ;;  %v15848_v18 = vld [vmem:[#allocation89_spill] sm:$0xff]  ;;  %v5550_v5 = vmul.f32 %v14055_v8, %v13865_v4  ;;  %v15850_v50 = vld [vmem:[#allocation64_spill] sm:$0xff] }
 0x877   : > { %v5417_v37 = vadd.f32 %v5401_v0, %v5370_v59  ;;  %v5418_v56 = vadd.f32 %v5402_v61, %v5371_v41  ;;  %v2717_v28 = vmul.f32 %v8649_v14, %v15848_v18  ;;  %v5583_v30 = vld [vmem:[#allocation2 + $0x272] sm:$0xff]  ;;  %v8651_v61 = vld [vmem:[%s14852_s7 + $0x4] ss:$0 sm:$0xff]  ;;  %v5605_v2 = vmul.f32 %v13661_v22, %v5582_v43  ;;  %v15849_v59 = vld [vmem:[#allocation84_spill] sm:$0xff] }
 0x878   : > { %v2732_v3 = vadd.f32 %v2716_v26, %v2676_v21  ;;  %v2772_v58 = vmul.f32 %v8651_v61, %v14041_v38  ;;  %v2773_v57 = vmul.f32 %v8651_v61, %v14048_v9  ;;  %v5630_v4 = vld [vmem:[#allocation2 + $0x274] sm:$0xff]  ;;  %v2828_v36 = vmul.f32 %v13697_v60, %v15849_v59 }
 0x879   : > { %v5472_v0 = vadd.f32 %v5456_v23, %v5417_v37  ;;  %v5473_v27 = vadd.f32 %v5457_v19, %v5418_v56  ;;  %v5551_v23 = vmul.f32 %v14055_v8, %v13870_v55  ;;  %v2733_v1 = vadd.f32 %v2717_v28, %v2677_v44  ;;  %v2861_v46 = vld [vmem:[#allocation2 + $0x18f] sm:$0xff]  ;;  %v5687_v19 = vld [vmem:[#allocation2 + $0x2a4] sm:$0xff] }
 0x87a   : > { %v2788_v51 = vadd.f32 %v2772_v58, %v2732_v3  ;;  %v5606_v42 = vmul.f32 %v13661_v22, %v5583_v30  ;;  %v2829_v55 = vmul.f32 %v13697_v60, %v15850_v50  ;;  %v5652_v37 = vmul.f32 %v13675_v62, %v5434_v15  ;;  %v5742_v56 = vld [vmem:[#allocation2 + $0x2a6] sm:$0xff]  ;;  %v5743_v28 = vld [vmem:[#allocation2 + $0x2ae] sm:$0xff] }
 0x87b   : > { %v5527_v52 = vadd.f32 %v5511_v13, %v5472_v0  ;;  %v5528_v34 = vadd.f32 %v5512_v16, %v5473_v27  ;;  %v2789_v41 = vadd.f32 %v2773_v57, %v2733_v1  ;;  %v5688_v13 = vld [vmem:[#allocation2 + $0x2ac] sm:$0xff]  ;;  %v2884_v14 = vmul.f32 %v13715_v47, %v2860_v7  ;;  %v8652_v15 = vld [vmem:[%s14852_s7 + $0x7] ss:$0 sm:$0xff] }
 0x87c   : > { %v2844_v21 = vadd.f32 %v2828_v36, %v2788_v51  ;;  %v5653_v26 = vmul.f32 %v13675_v62, %v5630_v4  ;;  %v2885_v16 = vmul.f32 %v13715_v47, %v2861_v46  ;;  %v2972_v22 = vld [vmem:[#allocation2 + $0x189] sm:$0xff]  ;;  %v5710_v18 = vmul.f32 %v13686_v32, %v5687_v19  ;;  %v5853_v59 = vld [vmem:[#allocation2 + $0x2b2] sm:$0xff] }
 0x87d   : > { %v5566_v63 = vadd.f32 %v5550_v5, %v5527_v52  ;;  %v5567_v40 = vadd.f32 %v5551_v23, %v5528_v34  ;;  %v2845_v43 = vadd.f32 %v2829_v55, %v2789_v41  ;;  %v2940_v0 = vmul.f32 %v8652_v15, %v13881_v12  ;;  %v2973_v5 = vld [vmem:[#allocation2 + $0x191] sm:$0xff]  ;;  %v3030_v47 = vld [vmem:[#allocation2 + $0xe4] sm:$0xff] }
 0x87e   : > { %v2900_v60 = vadd.f32 %v2884_v14, %v2844_v21  ;;  %v5711_v62 = vmul.f32 %v13686_v32, %v5688_v13  ;;  %v2941_v61 = vmul.f32 %v8652_v15, %v13886_v6  ;;  %v5765_v27 = vmul.f32 %v13706_v45, %v5742_v56  ;;  %v3031_v57 = vld [vmem:[#allocation2 + $0xec] sm:$0xff] }
 0x87f   : > { %v5621_v44 = vadd.f32 %v5605_v2, %v5566_v63  ;;  %v5622_v30 = vadd.f32 %v5606_v42, %v5567_v40  ;;  %v2901_v3 = vadd.f32 %v2885_v16, %v2845_v43  ;;  %v2996_v1 = vmul.f32 %v15820_v35, %v2972_v22  ;;  %v5852_v2 = vld [vmem:[#allocation2 + $0x2aa] sm:$0xff]  ;;  %v15851_v16 = vld [vmem:[#allocation91_spill] sm:$0xff] }
 0x880   : > { %v2956_v23 = vadd.f32 %v2940_v0, %v2900_v60  ;;  %v5766_v52 = vmul.f32 %v13706_v45, %v5743_v28  ;;  %v2997_v4 = vmul.f32 %v15820_v35, %v2973_v5  ;;  %v3086_v51 = vld [vmem:[#allocation2 + $0xe6] sm:$0xff]  ;;  %v3054_v6 = vmul.f32 %v13918_v11, %v3030_v47  ;;  %v3087_v46 = vld [vmem:[#allocation2 + $0xee] sm:$0xff] }
 0x881   : > { %v5668_v58 = vadd.f32 %v5652_v37, %v5621_v44  ;;  %v5669_v7 = vadd.f32 %v5653_v26, %v5622_v30  ;;  %v2957_v12 = vadd.f32 %v2941_v61, %v2901_v3  ;;  %v3055_v19 = vmul.f32 %v13918_v11, %v3031_v57  ;;  %v3142_v41 = vld [vmem:[#allocation2 + $0xe8] sm:$0xff]  ;;  %v5900_v45 = vld [vmem:[#allocation2 + $0x2b4] sm:$0xff] }
 0x882   : > { %v3012_v36 = vadd.f32 %v2996_v1, %v2956_v23  ;;  %v5875_v55 = vmul.f32 %v15821_v39, %v5852_v2  ;;  %v3110_v37 = vmul.f32 %v13935_v17, %v3086_v51  ;;  %v3143_v35 = vld [vmem:[#allocation2 + $0xf0] sm:$0xff]  ;;  %v5876_v14 = vmul.f32 %v15821_v39, %v5853_v59  ;;  %v5957_v40 = vld [vmem:[#allocation2 + $0x2e4] sm:$0xff] }
 0x883   : > { %v5726_v32 = vadd.f32 %v5710_v18, %v5668_v58  ;;  %v5727_v34 = vadd.f32 %v5711_v62, %v5669_v7  ;;  %v3013_v42 = vadd.f32 %v2997_v4, %v2957_v12  ;;  %v3111_v56 = vmul.f32 %v13935_v17, %v3087_v46  ;;  %v3198_v43 = vld [vmem:[#allocation2 + $0xea] sm:$0xff]  ;;  %v3199_v60 = vld [vmem:[#allocation2 + $0xf2] sm:$0xff] }
 0x884   : > { %v3070_v63 = vadd.f32 %v3054_v6, %v3012_v36  ;;  %v5922_v11 = vmul.f32 %v15823_v49, %v5688_v13  ;;  %v5958_v44 = vld [vmem:[#allocation2 + $0x2ec] sm:$0xff]  ;;  %v3166_v28 = vmul.f32 %v13952_v54, %v3142_v41  ;;  %v5923_v0 = vmul.f32 %v15823_v49, %v5900_v45  ;;  %v3247_v47 = vld [vmem:[#allocation2 + $0xf4] sm:$0xff]  ;;  %v3305_v7 = vld [vmem:[#allocation2 + $0x124] sm:$0xff] }
 0x885   : > { %v5781_v50 = vadd.f32 %v5765_v27, %v5726_v32  ;;  %v5782_v21 = vadd.f32 %v5766_v52, %v5727_v34  ;;  %v3071_v26 = vadd.f32 %v3055_v19, %v3013_v42  ;;  %v6012_v5 = vld [vmem:[#allocation2 + $0x2e6] sm:$0xff]  ;;  %v3167_v30 = vmul.f32 %v13952_v54, %v3143_v35  ;;  %v6013_v3 = vld [vmem:[#allocation2 + $0x2ee] sm:$0xff] }
 0x886   : > { %v3126_v18 = vadd.f32 %v3110_v37, %v3070_v63  ;;  %v5980_v17 = vmul.f32 %v15826_v53, %v5957_v40  ;;  %v3222_v13 = vmul.f32 %v13967_v31, %v3198_v43  ;;  %v5981_v27 = vmul.f32 %v15826_v53, %v5958_v44  ;;  %v3306_v12 = vld [vmem:[#allocation2 + $0x12c] sm:$0xff]  ;;  %v15853_v43 = vld [vmem:[#allocation54_spill] sm:$0xff] }
 0x887   : > { %v5836_v22 = vadd.f32 %v15851_v16, %v5781_v50  ;;  %v5837_v15 = vadd.f32 %v15851_v16, %v5782_v21  ;;  %v3127_v39 = vadd.f32 %v3111_v56, %v3071_v26  ;;  %v3223_v1 = vmul.f32 %v13967_v31, %v3199_v60  ;;  %v6122_v32 = vld [vmem:[#allocation2 + $0x2ea] sm:$0xff]  ;;  %v6123_v46 = vld [vmem:[#allocation2 + $0x2f2] sm:$0xff] }
 0x888   : > { %v3182_v61 = vadd.f32 %v3166_v28, %v3126_v18  ;;  %v6035_v52 = vmul.f32 %v13771_v20, %v6012_v5  ;;  %v3270_v54 = vmul.f32 %v13982_v33, %v3031_v57  ;;  %v6036_v51 = vmul.f32 %v13771_v20, %v6013_v3  ;;  %v3361_v6 = vld [vmem:[#allocation2 + $0x126] sm:$0xff]  ;;  %v3362_v42 = vld [vmem:[#allocation2 + $0x12e] sm:$0xff]  ;;  %v15855_v18 = vld [vmem:[#allocation86_spill] sm:$0xff] }
 0x889   : > { %v5891_v62 = vadd.f32 %v5875_v55, %v5836_v22  ;;  %v5892_v58 = vadd.f32 %v5876_v14, %v5837_v15  ;;  %v3183_v23 = vadd.f32 %v3167_v30, %v3127_v39  ;;  %v3271_v36 = vmul.f32 %v13982_v33, %v3247_v47  ;;  %v3417_v57 = vld [vmem:[#allocation2 + $0x128] sm:$0xff]  ;;  %v6170_v20 = vld [vmem:[#allocation2 + $0x2f4] sm:$0xff]  ;;  %v15854_v22 = vld [vmem:[#allocation55_spill] sm:$0xff] }
 0x88a   : > { %v3238_v2 = vadd.f32 %v3222_v13, %v3182_v61  ;;  %v3329_v31 = vmul.f32 %v13991_v25, %v3305_v7  ;;  %v3330_v50 = vmul.f32 %v13991_v25, %v3306_v12  ;;  %v6145_v45 = vmul.f32 %v15840_v29, %v6122_v32  ;;  %v15852_v37 = vld [vmem:[#allocation92_spill] sm:$0xff]  ;;  %v3418_v33 = vld [vmem:[#allocation2 + $0x130] sm:$0xff] }
 0x88b   : > { %v5938_v49 = vadd.f32 %v5922_v11, %v5891_v62  ;;  %v5939_v4 = vadd.f32 %v5923_v0, %v5892_v58  ;;  %v3239_v59 = vadd.f32 %v3223_v1, %v3183_v23  ;;  %v3385_v35 = vmul.f32 %v15852_v37, %v3361_v6  ;;  %v3473_v56 = vld [vmem:[#allocation2 + $0x12a] sm:$0xff]  ;;  %v3474_v60 = vld [vmem:[#allocation2 + $0x132] sm:$0xff] }
 0x88c   : > { %v3286_v34 = vadd.f32 %v3270_v54, %v3238_v2  ;;  %v6146_v14 = vmul.f32 %v15840_v29, %v6123_v46  ;;  %v3386_v26 = vmul.f32 %v15852_v37, %v3362_v42  ;;  %v6192_v25 = vmul.f32 %v15854_v22, %v5958_v44  ;;  %v6258_v29 = vld [vmem:[%s14856_s11] sm:$0xff]  ;;  %v6259_v30 = vld [vmem:[%s14856_s11 + $0x8] sm:$0xff]  ;;  %v3522_v61 = vld [vmem:[#allocation2 + $0x134] sm:$0xff] }
 0x88d   : > { %v5996_v53 = vadd.f32 %v5980_v17, %v5938_v49  ;;  %v5997_v19 = vadd.f32 %v5981_v27, %v5939_v4  ;;  %v3287_v41 = vadd.f32 %v3271_v36, %v3239_v59  ;;  %v3441_v28 = vmul.f32 %v15855_v18, %v3417_v57  ;;  %v15856_v17 = vld [vmem:[#allocation63_spill] sm:$0xff]  ;;  %v6260_v23 = vld [vmem:[%s14856_s11 + $0x10] sm:$0xff]  ;;  %v6261_v1 = vld [vmem:[%s14856_s11 + $0x18] sm:$0xff] }
 0x88e   : > { %v3345_v63 = vadd.f32 %v3329_v31, %v3286_v34  ;;  %v6193_v0 = vmul.f32 %v15854_v22, %v6170_v20  ;;  %v3442_v39 = vmul.f32 %v15855_v18, %v3418_v33  ;;  %v3497_v3 = vmul.f32 %v15856_v17, %v3473_v56  ;;  %v3577_v27 = vld [vmem:[#allocation2 + $0x164] sm:$0xff]  ;;  %v3578_v2 = vld [vmem:[#allocation2 + $0x16c] sm:$0xff]  ;;  %v8654_v57 = vld [vmem:[%s14852_s7 + $0x14] ss:$0 sm:$0xff] }
 0x88f   : > { %v6051_v55 = vadd.f32 %v6035_v52, %v5996_v53  ;;  %v6052_v21 = vadd.f32 %v6036_v51, %v5997_v19  ;;  %v3346_v40 = vadd.f32 %v3330_v50, %v3287_v41  ;;  %v3498_v58 = vmul.f32 %v15856_v17, %v3474_v60  ;;  %v3633_v59 = vld [vmem:[#allocation2 + $0x166] sm:$0xff]  ;;  %v8653_v6 = vld [vmem:[%s14852_s7 + $0x13] ss:$0 sm:$0xff]  ;;  %v6265_v56 = vld [vmem:[%s14856_s11 + $0x38] sm:$0xff] }
 0x890   : > { %v3401_v11 = vadd.f32 %v3385_v35, %v3345_v63  ;;  %v3545_v52 = vmul.f32 %v14019_v48, %v3306_v12  ;;  %v14136_v54 = vpack.c.bf16 %v6259_v30, %v6258_v29  ;;  %v3546_v32 = vmul.f32 %v14019_v48, %v3522_v61  ;;  %v3634_v46 = vld [vmem:[#allocation2 + $0x16e] sm:$0xff]  ;;  %v6262_v48 = vld [vmem:[%s14856_s11 + $0x20] sm:$0xff]  ;;  %v8656_v18 = vld [vmem:[%s14852_s7 + $0x17] ss:$0 sm:$0xff] }
 0x891   : > { %v6106_v16 = vadd.f32 %v15853_v43, %v6051_v55  ;;  %v6107_v15 = vadd.f32 %v15853_v43, %v6052_v21  ;;  %v3402_v5 = vadd.f32 %v3386_v26, %v3346_v40  ;;  %v3601_v53 = vmul.f32 %v8653_v6, %v3577_v27  ;;  %v6263_v41 = vld [vmem:[%s14856_s11 + $0x28] sm:$0xff]  ;;  %v3730_v33 = vld [vmem:[#allocation2 + $0x172] sm:$0xff]  ;;  %v6266_v29 = vld [vmem:[%s14856_s11 + $0x40] sm:$0xff] }
 0x892   : > { %v3457_v62 = vadd.f32 %v3441_v28, %v3401_v11  ;;  %8189 = vmatpush3.bf16.msra.mxu1 %v14136_v54  ;;  %v14145_v34 = vpack.c.bf16 %v6261_v1, %v6260_v23  ;;  %v3602_v42 = vmul.f32 %v8653_v6, %v3578_v2  ;;  %v15857_v19 = vmov 0.0|0.0   ;;  %v3729_v63 = vld [vmem:[#allocation2 + $0x16a] sm:$0xff]  ;;  %v8655_v43 = vld [vmem:[%s14852_s7 + $0x16] ss:$0 sm:$0xff]  ;;  %v8658_v27 = vld [vmem:[%s14852_s7 + $0x19] ss:$0 sm:$0xff] }
 0x893   : > { %v6161_v44 = vadd.f32 %v6145_v45, %v6106_v16  ;;  %v6162_v13 = vadd.f32 %v6146_v14, %v6107_v15  ;;  %v3458_v47 = vadd.f32 %v3442_v39, %v3402_v5  ;;  %8190 = vmatprep.subr.bf16.mxu1 %v15857_v19  ;;  %v3657_v55 = vmul.f32 %v8654_v57, %v3633_v59  ;;  %v6264_v26 = vld [vmem:[%s14856_s11 + $0x30] sm:$0xff]  ;;  %v3892_v39 = vld [vmem:[#allocation2 + $0x1a6] sm:$0xff]  ;;  %v6269_v59 = vld [vmem:[%s14856_s11 + $0x58] sm:$0xff] }
 0x894   : > { %v3513_v49 = vadd.f32 %v3497_v3, %v3457_v62  ;;  %v3658_v20 = vmul.f32 %v8654_v57, %v3634_v46  ;;  %v3697_v35 = vmul.f32 %v14055_v8, %v14041_v38  ;;  %v14162_v21 = vpack.c.bf16 %v6263_v41, %v6262_v48  ;;  %v3778_v22 = vld [vmem:[#allocation2 + $0x174] sm:$0xff]  ;;  %v3837_v60 = vld [vmem:[#allocation2 + $0x1ac] sm:$0xff] }
 0x895   : > { %v14133_v7 = vadd.f32 %v6192_v25, %v6161_v44  ;;  %v14138_v4 = vadd.f32 %v6193_v0, %v6162_v13  ;;  %v3514_v51 = vadd.f32 %v3498_v58, %v3458_v47  ;;  %v3698_v40 = vmul.f32 %v14055_v8, %v14048_v9  ;;  %v3836_v9 = vld [vmem:[#allocation2 + $0x1a4] sm:$0xff]  ;;  %v8657_v62 = vld [vmem:[%s14852_s7 + $0x18] ss:$0 sm:$0xff]  ;;  %v3893_v3 = vld [vmem:[#allocation2 + $0x1ae] sm:$0xff] }
 0x896   : > { %v3561_v36 = vadd.f32 %v3545_v52, %v3513_v49  ;;  %8192 = vmatpush3.bf16.msra.mxu1 %v14145_v34  ;;  %v3753_v16 = vmul.f32 %v8655_v43, %v3729_v63  ;;  %v3754_v11 = vmul.f32 %v8655_v43, %v3730_v33  ;;  %v3801_v28 = vmul.f32 %v8656_v18, %v3578_v2  ;;  %v6267_v30 = vld [vmem:[%s14856_s11 + $0x48] sm:$0xff]  ;;  %v3949_v1 = vld [vmem:[#allocation2 + $0x1b0] sm:$0xff]  ;;  %v8659_v6 = vld [vmem:[%s14852_s7 + $0x1a] ss:$0 sm:$0xff] }
 0x897   : > { %v8183_v12 = vpack.c.bf16 %v14138_v4, %v14133_v7  ;;  %v3562_v31 = vadd.f32 %v3546_v32, %v3514_v51  ;;  %8193 = vmatprep.subr.bf16.mxu1 %v15857_v19  ;;  %v14180_v15 = vpack.c.bf16 %v6265_v56, %v6264_v26  ;;  %v3802_v5 = vmul.f32 %v8656_v18, %v3778_v22  ;;  %v3948_v47 = vld [vmem:[#allocation2 + $0x1a8] sm:$0xff]  ;;  %v6268_v32 = vld [vmem:[%s14856_s11 + $0x50] sm:$0xff]  ;;  %v8660_v48 = vld [vmem:[%s14852_s7 + $0x1b] ss:$0 sm:$0xff] }
 0x898   : > { %v3617_v50 = vadd.f32 %v3601_v53, %v3561_v36  ;;  %v3860_v17 = vmul.f32 %v8657_v62, %v3836_v9  ;;  %v3861_v13 = vmul.f32 %v8657_v62, %v3837_v60  ;;  %v3916_v23 = vmul.f32 %v8658_v27, %v3892_v39  ;;  %v4004_v51 = vld [vmem:[#allocation2 + $0x1aa] sm:$0xff]  ;;  %v4005_v46 = vld [vmem:[#allocation2 + $0x1b2] sm:$0xff]  ;;  %v8662_v56 = vld [vmem:[%s14852_s7 + $0x1d] ss:$0 sm:$0xff] }
 0x899   : > { %8184 = vmatprep.subr.bf16.mxu0 %v8183_v12  ;;  %v3618_v45 = vadd.f32 %v3602_v42, %v3562_v31  ;;  %v14196_v49 = vpack.c.bf16 %v6267_v30, %v6266_v29  ;;  %v3917_v2 = vmul.f32 %v8658_v27, %v3893_v3  ;;  %v3972_v53 = vmul.f32 %v8659_v6, %v3948_v47  ;;  %v6271_v63 = vld [vmem:[%s14856_s11 + $0x68] sm:$0xff]  ;;  %v15860_v18 = vld [vmem:[#allocation75_spill] sm:$0xff]  ;;  %v8664_v29 = vld [vmem:[%s14852_s7 + $0x1f] ss:$0 sm:$0xff] }
 0x89a   : > { %v3673_v37 = vadd.f32 %v3657_v55, %v3617_v50  ;;  %8195 = vmatpush3.bf16.msra.mxu1 %v14162_v21  ;;  %v3973_v31 = vmul.f32 %v8659_v6, %v3949_v1  ;;  %v4028_v41 = vmul.f32 %v8660_v48, %v4004_v51  ;;  %v4053_v50 = vld [vmem:[#allocation2 + $0x1b4] sm:$0xff]  ;;  %v8203_v57 = vpack.c.bf16 %v6269_v59, %v6268_v32  ;;  %v15866_v59 = vld [vmem:[#allocation28_spill] sm:$0xff] }
 0x89b   : > { %v3674_v14 = vadd.f32 %v3658_v20, %v3618_v45  ;;  %8196 = vmatprep.subr.bf16.mxu1 %v15857_v19  ;;  %v4029_v45 = vmul.f32 %v8660_v48, %v4005_v46  ;;  %v6270_v20 = vld [vmem:[%s14856_s11 + $0x60] sm:$0xff]  ;;  %v15862_v30 = vld [vmem:[#allocation38_spill] sm:$0xff]  ;;  %v15864_v47 = vld [vmem:[#allocation85_spill] sm:$0xff] }
 0x89c   : > { %v3713_v38 = vadd.f32 %v3697_v35, %v3673_v37  ;;  %v8661_v35 = vld [vmem:[%s14852_s7 + $0x1c] ss:$0 sm:$0xff] }
 0x89d   : > { %v3714_v25 = vadd.f32 %v3698_v40, %v3674_v14  ;;  %v4076_v33 = vmul.f32 %v8661_v35, %v3837_v60  ;;  %v4077_v40 = vmul.f32 %v8661_v35, %v4053_v50  ;;  %v15869_v35 = vld [vmem:[#allocation35_spill] sm:$0xff] }
 0x89e   : > { %v3769_v8 = vadd.f32 %v3753_v16, %v3713_v38  ;;  %8198 = vmatpush3.bf16.msra.mxu1 %v14180_v15  ;;  %v15858_v38 = vld [vmem:[#allocation74_spill] sm:$0xff]  ;;  %v8206_v16 = vpack.c.bf16 %v6271_v63, %v6270_v20 }
 0x89f   : > { %v3770_v0 = vadd.f32 %v3754_v11, %v3714_v25  ;;  %8199 = vmatprep.subr.bf16.mxu1 %v15857_v19  ;;  %v4135_v43 = vmul.f32 %v8662_v56, %v15858_v38  ;;  %v15859_v25 = vld [vmem:[#allocation78_spill] sm:$0xff]  ;;  %v15872_v38 = vld [vmem:[#allocation37_spill] sm:$0xff] }
 0x8a0   : > { %v3817_v44 = vadd.f32 %v3801_v28, %v3769_v8  ;;  %v4136_v11 = vmul.f32 %v8662_v56, %v15859_v25  ;;  %v8663_v8 = vld [vmem:[%s14852_s7 + $0x1e] ss:$0 sm:$0xff] }
 0x8a1   : > { %v3818_v61 = vadd.f32 %v3802_v5, %v3770_v0  ;;  %v4191_v28 = vmul.f32 %v8663_v8, %v15860_v18  ;;  %v15861_v0 = vld [vmem:[#allocation40_spill] sm:$0xff]  ;;  %v15868_v20 = vld [vmem:[#allocation30_spill] sm:$0xff] }
 0x8a2   : > { %v3876_v58 = vadd.f32 %v3860_v17, %v3817_v44  ;;  %8201 = vmatpush3.bf16.msra.mxu1 %v14196_v49  ;;  %v4192_v5 = vmul.f32 %v8663_v8, %v15861_v0  ;;  %v4247_v44 = vmul.f32 %v8664_v29, %v15862_v30  ;;  %v15863_v17 = vld [vmem:[#allocation39_spill] sm:$0xff]  ;;  %v15876_v18 = vld [vmem:[#allocation56_spill] sm:$0xff] }
 0x8a3   : > { %v3877_v52 = vadd.f32 %v3861_v13, %v3818_v61  ;;  %8202 = vmatprep.subr.bf16.mxu1 %v15857_v19  ;;  %v4248_v3 = vmul.f32 %v8664_v29, %v15863_v17  ;;  %v8665_v13 = vld [vmem:[%s14852_s7 + $0x20] ss:$0 sm:$0xff] }
 0x8a4   : > { %v3932_v36 = vadd.f32 %v3916_v23, %v3876_v58  ;;  %v4303_v58 = vmul.f32 %v8665_v13, %v15864_v47  ;;  %v15865_v23 = vld [vmem:[#allocation27_spill] sm:$0xff] }
 0x8a5   : > { %v3933_v12 = vadd.f32 %v3917_v2, %v3877_v52  ;;  %v4304_v1 = vmul.f32 %v8665_v13, %v15865_v23  ;;  %v8666_v2 = vld [vmem:[%s14852_s7 + $0x21] ss:$0 sm:$0xff] }
 0x8a6   : > { %v3988_v42 = vadd.f32 %v3972_v53, %v3932_v36  ;;  %8204 = vmatpush3.bf16.msra.mxu1 %v8203_v57  ;;  %v4351_v51 = vmul.f32 %v8666_v2, %v15859_v25  ;;  %v4352_v36 = vmul.f32 %v8666_v2, %v15866_v59  ;;  %v15874_v25 = vld [vmem:[#allocation44_spill] sm:$0xff]  ;;  %v15878_v13 = vld [vmem:[#allocation67_spill] sm:$0xff]  ;;  %v15881_v59 = vld [vmem:[#allocation53_spill] sm:$0xff] }
 0x8a7   : > { %v3989_v55 = vadd.f32 %v3973_v31, %v3933_v12  ;;  %8205 = vmatprep.subr.bf16.mxu1 %v15857_v19  ;;  %v15867_v12 = vmov 1.0   ;;  %v14258_v31 = vld [vmem:[#allocation2 + $0x160] sm:$0xff] }
 0x8a8   : > { %v4044_v37 = vadd.f32 %v4028_v41, %v3988_v42  ;;  %v15879_v23 = vld [vmem:[#allocation47_spill] sm:$0xff] }
 0x8a9   : > { %v4045_v14 = vadd.f32 %v4029_v45, %v3989_v55 }
 0x8aa   : > { %v4092_v26 = vadd.f32 %v4076_v33, %v4044_v37  ;;  %8207 = vmatpush3.bf16.msra.mxu1 %v8206_v16 }
 0x8ab   : > { %v4093_v22 = vadd.f32 %v4077_v40, %v4045_v14  ;;  %8208 = vmatprep.subr.bf16.mxu1 %v15857_v19  ;;  %v15870_v14 = vld [vmem:[#allocation60_spill] sm:$0xff] }
 0x8ac   : > { %v4151_v9 = vadd.f32 %v4135_v43, %v4092_v26  ;;  %v15871_v26 = vld [vmem:[#allocation36_spill] sm:$0xff] }
 0x8ad   : > { %v4152_v60 = vadd.f32 %v4136_v11, %v4093_v22 }
 0x8ae   : > { %v4207_v39 = vadd.f32 %v4191_v28, %v4151_v9  ;;  %v15875_v9 = vld [vmem:[#allocation70_spill] sm:$0xff] }
 0x8af   : > { %v4208_v62 = vadd.f32 %v4192_v5, %v4152_v60 }
 0x8b0   : > { %v4263_v61 = vadd.f32 %v4247_v44, %v4207_v39 }
 0x8b1   : > { %v4264_v27 = vadd.f32 %v4248_v3, %v4208_v62  ;;  %v15877_v3 = vld [vmem:[#allocation43_spill] sm:$0xff] }
 0x8b2   : > { %v4319_v52 = vadd.f32 %v4303_v58, %v4263_v61 }
 0x8b3   : > { %v4320_v32 = vadd.f32 %v4304_v1, %v4264_v27 }
 0x8b4   : > { %v14249_v6 = vadd.f32 %v4351_v51, %v4319_v52  ;;  %v15880_v52 = vld [vmem:[#allocation50_spill] sm:$0xff] }
 0x8b5   : > { %v14251_v53 = vadd.f32 %v4352_v36, %v4320_v32 }
 0x8b7   : > { %v8185_v46 = vpack.c.bf16 %v14251_v53, %v14249_v6 }
 0x8b9   : > { %8186 = vmatpush3.bf16.msra.mxu0 %v8185_v46  ;;  %v15882_v46 = vld [vmem:[#allocation33_spill] sm:$0xff] }
 0x8ba   : > { %8246 = vmatprep.subr.bf16.mxu0 %v15857_v19 }
 0x8bc   : > { %6343 = vmatmul.mubr.f32.vlgmr.msra.gmra.mrb[2].mxu0 %v15867_v12 }
 0x8bd   : > { %8248 = vmatpush3.bf16.msra.mxu0 %v14136_v54  ;;  %7973 = vmatprep.mubr.msk.f32.mxu0 %vm8772_vm0, %v14258_v31  ;;  %v6272_v54 = vld [vmem:[%s14856_s11 + $0x70] sm:$0xff] }
 0x8be   : > { %8249 = vmatprep.subr.bf16.mxu0 %v15857_v19 }
 0x8c1   : > { %8251 = vmatpush3.bf16.msra.mxu0 %v14145_v34  ;;  %v6273_v34 = vld [vmem:[%s14856_s11 + $0x78] sm:$0xff] }
 0x8c2   : > { %8252 = vmatprep.subr.bf16.mxu0 %v15857_v19 }
 0x8c5   : > { %8254 = vmatpush3.bf16.msra.mxu0 %v14162_v21  ;;  %v8209_v21 = vpack.c.bf16 %v6273_v34, %v6272_v54 }
 0x8c6   : > { %8255 = vmatprep.subr.bf16.mxu0 %v15857_v19 }
 0x8c7   : > { %8210 = vmatpush3.bf16.msra.mxu1 %v8209_v21 }
 0x8c8   : > { %8211 = vmatprep.subr.bf16.mxu1 %v15857_v19 }
 0x8c9   : > { %8257 = vmatpush3.bf16.msra.mxu0 %v14180_v15  ;;  %v6274_v15 = vld [vmem:[%s14857_s12] sm:$0xff] }
 0x8ca   : > { %8258 = vmatprep.subr.bf16.mxu0 %v15857_v19 }
 0x8cd   : > { %8260 = vmatpush3.bf16.msra.mxu0 %v14196_v49  ;;  %v6275_v49 = vld [vmem:[%s14857_s12 + $0x8] sm:$0xff] }
 0x8ce   : > { %8261 = vmatprep.subr.bf16.mxu0 %v15857_v19  ;;  %v14286_v41 = vpack.c.bf16 %v6275_v49, %v6274_v15  ;;  %v15883_v15 = vld [vmem:[#allocation79_spill] sm:$0xff] }
 0x8d1   : > { %8263 = vmatpush3.bf16.msra.mxu0 %v8203_v57 }
 0x8d2   : > { %8264 = vmatprep.subr.bf16.mxu0 %v15857_v19 }
 0x8d5   : > { %8266 = vmatpush3.bf16.msra.mxu0 %v8206_v16  ;;  %v15873_v16 = vld [vmem:[#allocation20_spill] sm:$0xff] }
 0x8d6   : > { %8267 = vmatprep.subr.bf16.mxu0 %v15857_v19 }
 0x8d9   : > { %8269 = vmatpush3.bf16.msra.mxu0 %v8209_v21 }
 0x98f   : > { %v7705_v42 = vpop.f32.mrb[2].mxu0 }
 0x990   : > { %v7706_v48 = vpop.f32.mrb[3].mxu0 }
 0x991   : > { %v7707_v50 = vadd.f32 %v7706_v48, %v7705_v42  ;;  %v15884_v42 = vld [vmem:[#allocation23_spill] sm:$0xff] }
 0x993   : > { %7932 = vmatmul.mubr.f32.vlgmr.msra.gmra.mrb[10].mxu1 %v7707_v50 }
 0x994   : > { %8213 = vmatpush3.bf16.msra.mxu1 %v14286_v41  ;;  %7938 = vmatprep.mubr.msk.f32.mxu1 %vm8772_vm0, %v14258_v31 }
 0xa66   : > { %v6414_v57 = vpop.f32.mrb[10].mxu1 }
 0xa67   : > { %v7933_v55 = vpop.f32.mrb[11].mxu1  ;;  %7939 = vmatmul.mubr.msk.f32.vlgmr.msra.gmra.mrb[12].mxu1 %vm6418_vm2, %v6414_v57 }
 0xa68   : > { %6624 = vmatprep.mubr.f32.mxu1 %v15867_v12 }
 0xb3a   : > { %v6488_v45 = vpop.f32.mrb[12].mxu1 }
 0xb3b   : > { %v14294_v63 = vrot.slane %v6488_v45, %v15868_v20  ;;  %v7940_v37 = vpop.f32.mrb[13].mxu1 }
 0xb3c   : > { %v15885_v37 = vld [vmem:[#allocation24_spill] sm:$0xff] }
 0xb3d   : > { %v14298_v33 = vsub.f32 %v15869_v35, %v14294_v63  ;;  %v14302_v40 = vsub.f32 %v15870_v14, %v14294_v63  ;;  %v14306_v56 = vsub.f32 %v15871_v26, %v14294_v63  ;;  %v14310_v43 = vsub.f32 %v15872_v38, %v14294_v63  ;;  %v15886_v14 = vld [vmem:[#allocation62_spill] sm:$0xff] }
 0xb3e   : > { %v14314_v22 = vsub.f32 %v15873_v16, %v14294_v63  ;;  %v14318_v11 = vsub.f32 %v15874_v25, %v14294_v63  ;;  %v14322_v8 = vsub.f32 %v15875_v9, %v14294_v63  ;;  %v14326_v28 = vsub.f32 %v15876_v18, %v14294_v63  ;;  %v15887_v9 = vld [vmem:[#allocation88_spill] sm:$0xff] }
 0xb3f   : > { %v6544_v60 = vmul.f32 %v14298_v33, %v14298_v33  ;;  %v6545_v0 = vmul.f32 %v14302_v40, %v14302_v40  ;;  %v6528_v5 = vmul.f32 %v14306_v56, %v14306_v56  ;;  %v6529_v39 = vmul.f32 %v14310_v43, %v14310_v43 }
 0xb40   : > { %v6546_v29 = vmul.f32 %v14314_v22, %v14314_v22  ;;  %v6547_v30 = vmul.f32 %v14318_v11, %v14318_v11  ;;  %v6530_v44 = vmul.f32 %v14322_v8, %v14322_v8  ;;  %v14344_v61 = vsub.f32 %v15877_v3, %v14294_v63 }
 0xb41   : > { %v8214_v62 = vpack.c.bf16 %v6545_v0, %v6544_v60  ;;  %v8216_v17 = vpack.c.bf16 %v6529_v39, %v6528_v5  ;;  %v14348_v47 = vsub.f32 %v15878_v13, %v14294_v63  ;;  %v6531_v27 = vmul.f32 %v14326_v28, %v14326_v28  ;;  %v15888_v60 = vld [vmem:[#allocation57_spill] sm:$0xff]  ;;  %v15889_v5 = vld [vmem:[#allocation94_spill] sm:$0xff]  ;;  %v15891_v13 = vld [vmem:[#allocation31_spill] sm:$0xff] }
 0xb42   : > { %v8218_v58 = vpack.c.bf16 %v6547_v30, %v6546_v29  ;;  %v14354_v1 = vsub.f32 %v15879_v23, %v14294_v63  ;;  %v14358_v2 = vsub.f32 %v15880_v52, %v14294_v63  ;;  %v6548_v51 = vmul.f32 %v14344_v61, %v14344_v61  ;;  %v15890_v29 = vld [vmem:[#allocation68_spill] sm:$0xff] }
 0xb43   : > { %8215 = vmatprep.subr.bf16.mxu1 %v8214_v62  ;;  %v6549_v32 = vmul.f32 %v14348_v47, %v14348_v47  ;;  %v14366_v36 = vsub.f32 %v15881_v59, %v14294_v63  ;;  %v14370_v54 = vsub.f32 %v15882_v46, %v14294_v63  ;;  %v14378_v49 = vsub.f32 %v15883_v15, %v14294_v63  ;;  %v15894_v15 = vld [vmem:[#allocation34_spill] sm:$0xff] }
 0xb44   : > { %8217 = vmatpush3.bf16.msra.mxu1 %v8216_v17  ;;  %v6532_v34 = vmul.f32 %v14354_v1, %v14354_v1  ;;  %v6533_v21 = vmul.f32 %v14358_v2, %v14358_v2  ;;  %v14382_v48 = vsub.f32 %v15884_v42, %v14294_v63  ;;  %v8220_v50 = vpack.c.bf16 %v6531_v27, %v6530_v44  ;;  %v15892_v27 = vld [vmem:[#allocation21_spill] sm:$0xff] }
 0xb45   : > { %8219 = vmatprep.subr.bf16.mxu1 %v8218_v58  ;;  %v8222_v57 = vpack.c.bf16 %v6549_v32, %v6548_v51  ;;  %v6550_v55 = vmul.f32 %v14366_v36, %v14366_v36  ;;  %v6551_v45 = vmul.f32 %v14370_v54, %v14370_v54  ;;  %v14390_v35 = vsub.f32 %v15885_v37, %v14294_v63 }
 0xb46   : > { %v14394_v26 = vsub.f32 %v15886_v14, %v14294_v63  ;;  %v8224_v38 = vpack.c.bf16 %v6533_v21, %v6532_v34  ;;  %v6534_v16 = vmul.f32 %v14378_v49, %v14378_v49  ;;  %v6535_v25 = vmul.f32 %v14382_v48, %v14382_v48  ;;  %v15893_v34 = vld [vmem:[#allocation48_spill] sm:$0xff] }
 0xb47   : > { %v14402_v18 = vsub.f32 %v15887_v9, %v14294_v63  ;;  %v14406_v0 = vsub.f32 %v15888_v60, %v14294_v63  ;;  %v14410_v39 = vsub.f32 %v15889_v5, %v14294_v63  ;;  %v14414_v30 = vsub.f32 %v15890_v29, %v14294_v63 }
 0xb48   : > { %8221 = vmatpush3.bf16.msra.mxu1 %v8220_v50  ;;  %v8226_v44 = vpack.c.bf16 %v6551_v45, %v6550_v55  ;;  %v6552_v62 = vmul.f32 %v14390_v35, %v14390_v35  ;;  %v6553_v17 = vmul.f32 %v14394_v26, %v14394_v26  ;;  %v8228_v3 = vpack.c.bf16 %v6535_v25, %v6534_v16 }
 0xb49   : > { %8223 = vmatprep.subr.bf16.mxu1 %v8222_v57  ;;  %v14422_v58 = vsub.f32 %v15891_v13, %v14294_v63  ;;  %v14426_v23 = vsub.f32 %v15892_v27, %v14294_v63  ;;  %v6536_v52 = vmul.f32 %v14402_v18, %v14402_v18  ;;  %v6537_v51 = vmul.f32 %v14406_v0, %v14406_v0 }
 0xb4a   : > { %v6554_v32 = vmul.f32 %v14410_v39, %v14410_v39  ;;  %v6555_v59 = vmul.f32 %v14414_v30, %v14414_v30  ;;  %v8230_v46 = vpack.c.bf16 %v6553_v17, %v6552_v62  ;;  %v14438_v21 = vsub.f32 %v15893_v34, %v14294_v63  ;;  %v8332_v34 = vld [vmem:[%s14858_s13 + $0x28] sm:$0xff]  }
 0xb4b   : > { %v14442_v42 = vsub.f32 %v15894_v15, %v14294_v63  ;;  %v6538_v50 = vmul.f32 %v14422_v58, %v14422_v58  ;;  %v6539_v57 = vmul.f32 %v14426_v23, %v14426_v23  ;;  %v8232_v55 = vpack.c.bf16 %v6537_v51, %v6536_v52  ;;  %v8327_v52 = vld [vmem:[%s14858_s13] sm:$0xff]   ;;  %v8333_v15 = vld [vmem:[%s14858_s13 + $0x30] sm:$0xff]  }
 0xb4c   : > { %8225 = vmatpush3.bf16.msra.mxu1 %v8224_v38  ;;  %v8234_v45 = vpack.c.bf16 %v6555_v59, %v6554_v32  ;;  %v14450_v37 = vsub.f32 %v14026_v24, %v14294_v63  ;;  %v14454_v14 = vsub.f32 %v14031_v10, %v14294_v63  ;;  %v6556_v38 = vmul.f32 %v14438_v21, %v14438_v21  ;;  %v8330_v59 = vld [vmem:[%s14858_s13 + $0x18] sm:$0xff]  }
 0xb4d   : > { %8227 = vmatprep.subr.bf16.mxu1 %v8226_v44  ;;  %v6557_v16 = vmul.f32 %v14442_v42, %v14442_v42  ;;  %v14462_v25 = vsub.f32 %v14133_v7, %v14294_v63  ;;  %v14466_v9 = vsub.f32 %v14138_v4, %v14294_v63  ;;  %v8236_v24 = vpack.c.bf16 %v6539_v57, %v6538_v50  ;;  %v8334_v50 = vld [vmem:[%s14858_s13 + $0x38] sm:$0xff]   ;;  %v6276_v57 = vld [vmem:[%s14854_s9] sm:$0x1] }
 0xb4e   : > { %v6540_v10 = vmul.f32 %v14450_v37, %v14450_v37  ;;  %v6541_v60 = vmul.f32 %v14454_v14, %v14454_v14  ;;  %v14474_v5 = vsub.f32 %v14249_v6, %v14294_v63  ;;  %v14478_v7 = vsub.f32 %v14251_v53, %v14294_v63  ;;  %7983 = vmatprep.subr.bf16.mxu0 %v8327_v52 }
 0xb4f   : > { %v8238_v29 = vpack.c.bf16 %v6557_v16, %v6556_v38  ;;  %v6558_v4 = vmul.f32 %v14462_v25, %v14462_v25  ;;  %v6559_v44 = vmul.f32 %v14466_v9, %v14466_v9 }
 0xb50   : > { %8229 = vmatpush3.bf16.msra.mxu1 %v8228_v3  ;;  %v8240_v62 = vpack.c.bf16 %v6541_v60, %v6540_v10  ;;  %v6542_v17 = vmul.f32 %v14474_v5, %v14474_v5  ;;  %v6543_v6 = vmul.f32 %v14478_v7, %v14478_v7  ;;  %v14531_v60 = vld [vmem:[%s14855_s10] ss:$0 sm:$0xff] }
 0xb51   : > { %8231 = vmatprep.subr.bf16.mxu1 %v8230_v46  ;;  %v8242_v3 = vpack.c.bf16 %v6559_v44, %v6558_v4  ;;  %v8331_v46 = vld [vmem:[%s14858_s13 + $0x20] sm:$0xff]  }
 0xb52   : > { %v8244_v53 = vpack.c.bf16 %v6543_v6, %v6542_v17 }
 0xb54   : > { %8233 = vmatpush3.bf16.msra.mxu1 %v8232_v55 }
 0xb55   : > { %8235 = vmatprep.subr.bf16.mxu1 %v8234_v45 }
 0xb58   : > { %8237 = vmatpush3.bf16.msra.mxu1 %v8236_v24 }
 0xb59   : > { %8239 = vmatprep.subr.bf16.mxu1 %v8238_v29 }
 0xb5c   : > { %8241 = vmatpush3.bf16.msra.mxu1 %v8240_v62 }
 0xb5d   : > { %8243 = vmatprep.subr.bf16.mxu1 %v8242_v3 }
 0xb60   : > { %8245 = vmatpush3.bf16.msra.mxu1 %v8244_v53 }
 0xb61   : > { %8270 = vmatprep.subr.bf16.mxu1 %v15857_v19 }
 0xb63   : > { %6625 = vmatmul.mubr.f32.vlgmr.msra.gmra.mrb[14].mxu1 %v15867_v12 }
 0xb64   : > { %8272 = vmatpush3.bf16.msra.mxu1 %v14286_v41  ;;  %7980 = vmatprep.mubr.msk.f32.mxu1 %vm8772_vm0, %v14258_v31  ;;  %v8328_v31 = vld [vmem:[%s14858_s13 + $0x8] sm:$0xff]   ;;  %v8329_v41 = vld [vmem:[%s14858_s13 + $0x10] sm:$0xff]  }
 0xc36   : > { %v7760_v63 = vpop.f32.mrb[14].mxu1 }
 0xc37   : > { %v7761_v13 = vpop.f32.mrb[15].mxu1 }
 0xc38   : > { %v7762_v27 = vadd.f32 %v7761_v13, %v7760_v63 }
 0xc3a   : > { %7974 = vmatmul.mubr.f32.vlgmr.msra.gmra.mrb[4].mxu0 %v7762_v27 }
 0xc3b   : > { %7984 = vmatpush3.bf16.msra.mxu0 %v8327_v52 }
 0xc3c   : > { %7985 = vmatprep.subr.bf16.mxu0 %v8328_v31 }
 0xc3f   : > { %7986 = vmatpush3.bf16.msra.mxu0 %v8328_v31 }
 0xc40   : > { %7987 = vmatprep.subr.bf16.mxu0 %v8329_v41 }
 0xc43   : > { %7988 = vmatpush3.bf16.msra.mxu0 %v8329_v41 }
 0xc44   : > { %7989 = vmatprep.subr.bf16.mxu0 %v8330_v59 }
 0xc47   : > { %7990 = vmatpush3.bf16.msra.mxu0 %v8330_v59 }
 0xc48   : > { %7991 = vmatprep.subr.bf16.mxu0 %v8331_v46 }
 0xc4b   : > { %7992 = vmatpush3.bf16.msra.mxu0 %v8331_v46 }
 0xc4c   : > { %7993 = vmatprep.subr.bf16.mxu0 %v8332_v34 }
 0xc4f   : > { %7994 = vmatpush3.bf16.msra.mxu0 %v8332_v34 }
 0xc50   : > { %7995 = vmatprep.subr.bf16.mxu0 %v8333_v15 }
 0xc53   : > { %7996 = vmatpush3.bf16.msra.mxu0 %v8333_v15 }
 0xc54   : > { %7997 = vmatprep.subr.bf16.mxu0 %v8334_v50 }
 0xc57   : > { %7998 = vmatpush3.bf16.msra.mxu0 %v8334_v50 }
 0xd0d   : > { %v6696_v51 = vpop.f32.mrb[4].mxu0 }
 0xd0e   : > { %v6697_v32 = vadd.f32 1e-05, %v6696_v51  ;;  %v7975_v19 = vpop.f32.mrb[5].mxu0 }
 0xd10   : > { %8401 = vrsqrt.f32 %v6697_v32 }
 0xd1a   : > { %v8402_v12 = vpop.eup %8401 }
 0xd1b   : > { %7981 = vmatmul.mubr.msk.f32.vlgmr.msra.gmra.mrb[16].mxu1 %vm6418_vm2, %v8402_v12 }
 0xdee   : > { %v6770_v55 = vpop.f32.mrb[16].mxu1 }
 0xdef   : > { %v6774_v45 = vmul.f32 %v6770_v55, %v6276_v57  ;;  %v7982_v38 = vpop.f32.mrb[17].mxu1 }
 0xdf1   : > { %v14522_v16 = vrot.slane %v6774_v45, %v15868_v20 }
 0xdf3   : > { %v6781_v24 = vmul.f32 %v14522_v16, %v14322_v8  ;;  %v6782_v10 = vmul.f32 %v14522_v16, %v14326_v28  ;;  %v6779_v29 = vmul.f32 %v14522_v16, %v14306_v56  ;;  %v6780_v4 = vmul.f32 %v14522_v16, %v14310_v43 }
 0xdf4   : > { %v6783_v8 = vmul.f32 %v14522_v16, %v14354_v1  ;;  %v6784_v28 = vmul.f32 %v14522_v16, %v14358_v2  ;;  %v6785_v56 = vmul.f32 %v14522_v16, %v14378_v49  ;;  %v6786_v43 = vmul.f32 %v14522_v16, %v14382_v48 }
 0xdf5   : > { %v6819_v20 = vadd.f32 %v14531_v60, %v6781_v24  ;;  %v6820_v44 = vadd.f32 %v14531_v60, %v6782_v10  ;;  %v6817_v62 = vadd.f32 %v14531_v60, %v6779_v29  ;;  %v6818_v17 = vadd.f32 %v14531_v60, %v6780_v4 }
 0xdf6   : > { %v6821_v53 = vadd.f32 %v14531_v60, %v6783_v8  ;;  %v6822_v1 = vadd.f32 %v14531_v60, %v6784_v28  ;;  %v6823_v13 = vadd.f32 %v14531_v60, %v6785_v56  ;;  %v6824_v27 = vadd.f32 %v14531_v60, %v6786_v43 }
 0xdf7   : > { %v14549_v6 = vmul.f32 0.5, %v6819_v20  ;;  %v14551_v3 = vmul.f32 0.5, %v6820_v44  ;;  %v6849_v63 = vmul.f32 0.5, %v6817_v62  ;;  %v6850_v2 = vmul.f32 0.5, %v6818_v17 }
 0xdf8   : > { %v14558_v49 = vmul.f32 0.5, %v6821_v53  ;;  %v14560_v52 = vmul.f32 0.5, %v6822_v1  ;;  %v6787_v48 = vmul.f32 %v14522_v16, %v14402_v18  ;;  %v14564_v51 = vmul.f32 0.5, %v6823_v13 }
 0xdf9   : > { %8403 = vtanh.f32 %v14549_v6  ;;  %v14566_v32 = vmul.f32 0.5, %v6824_v27  ;;  %v6788_v19 = vmul.f32 %v14522_v16, %v14406_v0  ;;  %v6789_v31 = vmul.f32 %v14522_v16, %v14422_v58 }
 0xdfa   : > { %8405 = vtanh.f32 %v6849_v63  ;;  %v6825_v12 = vadd.f32 %v14531_v60, %v6787_v48  ;;  %v6790_v41 = vmul.f32 %v14522_v16, %v14426_v23  ;;  %v6791_v59 = vmul.f32 %v14522_v16, %v14450_v37 }
 0xdfb   : > { %8407 = vtanh.f32 %v6850_v2  ;;  %v6826_v18 = vadd.f32 %v14531_v60, %v6788_v19  ;;  %v6792_v46 = vmul.f32 %v14522_v16, %v14454_v14  ;;  %v6827_v34 = vadd.f32 %v14531_v60, %v6789_v31 }
 0xdfc   : > { %8409 = vtanh.f32 %v14551_v3  ;;  %v14582_v0 = vmul.f32 0.5, %v6825_v12  ;;  %v6828_v58 = vadd.f32 %v14531_v60, %v6790_v41  ;;  %v6829_v15 = vadd.f32 %v14531_v60, %v6791_v59 }
 0xdfd   : > { %8411 = vtanh.f32 %v14558_v49  ;;  %v14587_v23 = vmul.f32 0.5, %v6826_v18  ;;  %v6830_v37 = vadd.f32 %v14531_v60, %v6792_v46  ;;  %v14593_v14 = vmul.f32 0.5, %v6827_v34 }
 0xdfe   : > { %8413 = vtanh.f32 %v14560_v52  ;;  %v6793_v50 = vmul.f32 %v14522_v16, %v14474_v5  ;;  %v14598_v57 = vmul.f32 0.5, %v6828_v58  ;;  %v6794_v55 = vmul.f32 %v14522_v16, %v14478_v7 }
 0xdff   : > { %8415 = vtanh.f32 %v14564_v51  ;;  %v6795_v45 = vmul.f32 %v14522_v16, %v14298_v33  ;;  %v6796_v38 = vmul.f32 %v14522_v16, %v14302_v40  ;;  %v14607_v24 = vmul.f32 0.5, %v6829_v15 }
 0xe00   : > { %8417 = vtanh.f32 %v14566_v32  ;;  %v14609_v29 = vmul.f32 0.5, %v6830_v37  ;;  %v6797_v4 = vmul.f32 %v14522_v16, %v14314_v22  ;;  %v6831_v7 = vadd.f32 %v14531_v60, %v6793_v50 }
 0xe01   : > { %8419 = vtanh.f32 %v14582_v0  ;;  %v6798_v40 = vmul.f32 %v14522_v16, %v14318_v11  ;;  %v6832_v8 = vadd.f32 %v14531_v60, %v6794_v55  ;;  %v6833_v22 = vadd.f32 %v14531_v60, %v6795_v45 }
 0xe02   : > { %8421 = vtanh.f32 %v14587_v23  ;;  %v6834_v17 = vadd.f32 %v14531_v60, %v6796_v38  ;;  %v6799_v13 = vmul.f32 %v14522_v16, %v14344_v61  ;;  %v14626_v19 = vmul.f32 0.5, %v6831_v7 }
 0xe03   : > { %v8404_v10 = vpop.eup %8403  ;;  %8423 = vtanh.f32 %v14593_v14  ;;  %v6800_v31 = vmul.f32 %v14522_v16, %v14348_v47  ;;  %v14631_v18 = vmul.f32 0.5, %v6832_v8  ;;  %v14634_v34 = vmul.f32 0.5, %v6833_v22 }
 0xe04   : > { %v8406_v5 = vpop.eup %8405  ;;  %v6915_v20 = vadd.f32 1.0, %v8404_v10  ;;  %8425 = vtanh.f32 %v14598_v57  ;;  %v14636_v61 = vmul.f32 0.5, %v6834_v17  ;;  %v6835_v55 = vadd.f32 %v14531_v60, %v6797_v4 }
 0xe05   : > { %v8408_v33 = vpop.eup %8407  ;;  %v6913_v44 = vadd.f32 1.0, %v8406_v5  ;;  %8427 = vtanh.f32 %v14607_v24  ;;  %v6836_v38 = vadd.f32 %v14531_v60, %v6798_v40  ;;  %v6837_v5 = vadd.f32 %v14531_v60, %v6799_v13 }
 0xe06   : > { %v8410_v28 = vpop.eup %8409  ;;  %v6914_v62 = vadd.f32 1.0, %v8408_v33  ;;  %v6947_v1 = vmul.f32 %v6915_v20, %v14549_v6  ;;  %8429 = vtanh.f32 %v14609_v29  ;;  %v6838_v33 = vadd.f32 %v14531_v60, %v6800_v31 }
 0xe07   : > { %v8412_v56 = vpop.eup %8411  ;;  %v6945_v43 = vmul.f32 %v6913_v44, %v6849_v63  ;;  %v6916_v53 = vadd.f32 1.0, %v8410_v28  ;;  %8431 = vtanh.f32 %v14626_v19  ;;  %v14657_v22 = vmul.f32 0.5, %v6836_v38 }
 0xe08   : > { %v8414_v11 = vpop.eup %8413  ;;  %v6946_v27 = vmul.f32 %v6914_v62, %v6850_v2  ;;  %v6917_v48 = vadd.f32 1.0, %v8412_v56  ;;  %8433 = vtanh.f32 %v14631_v18  ;;  %v6802_v62 = vmul.f32 %v14522_v16, %v14370_v54 }
 0xe09   : > { %v8416_v12 = vpop.eup %8415  ;;  %v6948_v41 = vmul.f32 %v6916_v53, %v14551_v3  ;;  %v6918_v63 = vadd.f32 1.0, %v8414_v11  ;;  %8435 = vtanh.f32 %v14634_v34  ;;  %v14663_v17 = vmul.f32 0.5, %v6837_v5 }
 0xe0a   : > { %v8418_v6 = vpop.eup %8417  ;;  %v6977_v59 = vpack.c.bf16 %v6946_v27, %v6945_v43  ;;  %v6949_v46 = vmul.f32 %v6917_v48, %v14558_v49  ;;  %v6919_v37 = vadd.f32 1.0, %v8416_v12  ;;  %8437 = vtanh.f32 %v14636_v61 }
 0xe0b   : > { %v8420_v2 = vpop.eup %8419  ;;  %v6978_v58 = vpack.c.bf16 %v6948_v41, %v6947_v1  ;;  %v6950_v15 = vmul.f32 %v6918_v63, %v14560_v52  ;;  %v6920_v50 = vadd.f32 1.0, %v8418_v6  ;;  %v6801_v52 = vmul.f32 %v14522_v16, %v14366_v36 }
 0xe0c   : > { %v8422_v47 = vpop.eup %8421  ;;  %7999 = vmatprep.mubr.bf16.mxu0 %v6977_v59  ;;  %v6921_v3 = vadd.f32 1.0, %v8420_v2  ;;  %v6951_v7 = vmul.f32 %v6919_v37, %v14564_v51  ;;  %v14653_v36 = vmul.f32 0.5, %v6835_v55  ;;  %v6803_v51 = vmul.f32 %v14522_v16, %v14390_v35 }
 0xe0d   : > { %8000 = vmatmul.mubr.bf16.vlgmr.msra.gmra.mrb[8].mxu0 %v6978_v58  ;;  %v6979_v45 = vpack.c.bf16 %v6950_v15, %v6949_v46  ;;  %v6922_v49 = vadd.f32 1.0, %v8422_v47  ;;  %v8424_v10 = vpop.eup %8423  ;;  %v6952_v4 = vmul.f32 %v6920_v50, %v14566_v32  ;;  %v6804_v32 = vmul.f32 %v14522_v16, %v14394_v26 }
 0xe0e   : > { %v8426_v20 = vpop.eup %8425  ;;  %v6953_v40 = vmul.f32 %v6921_v3, %v14582_v0  ;;  %v6839_v0 = vadd.f32 %v14531_v60, %v6801_v52  ;;  %v14666_v53 = vmul.f32 0.5, %v6838_v33  ;;  %8439 = vtanh.f32 %v14653_v36 }
 0xe0f   : > { %8003 = vmatprep.mubr.bf16.mxu0 %v6979_v45  ;;  %v8428_v44 = vpop.eup %8427  ;;  %v6954_v8 = vmul.f32 %v6922_v49, %v14587_v23  ;;  %v6980_v56 = vpack.c.bf16 %v6952_v4, %v6951_v7  ;;  %v6923_v23 = vadd.f32 1.0, %v8424_v10  ;;  %v6924_v43 = vadd.f32 1.0, %v8426_v20 }
 0xe10   : > { %v8430_v28 = vpop.eup %8429  ;;  %v6925_v11 = vadd.f32 1.0, %v8428_v44  ;;  %8441 = vtanh.f32 %v14657_v22  ;;  %v6840_v35 = vadd.f32 %v14531_v60, %v6802_v62  ;;  %v14672_v13 = vmul.f32 0.5, %v6839_v0 }
 0xe11   : > { %v6981_v1 = vpack.c.bf16 %v6954_v8, %v6953_v40  ;;  %v6926_v54 = vadd.f32 1.0, %v8430_v28  ;;  %v8432_v26 = vpop.eup %8431  ;;  %8443 = vtanh.f32 %v14663_v17  ;;  %v6841_v27 = vadd.f32 %v14531_v60, %v6803_v51 }
 0xe12   : > { %v8434_v48 = vpop.eup %8433  ;;  %v6955_v12 = vmul.f32 %v6923_v23, %v14593_v14  ;;  %v6956_v31 = vmul.f32 %v6924_v43, %v14598_v57  ;;  %8445 = vtanh.f32 %v14666_v53  ;;  %v6842_v41 = vadd.f32 %v14531_v60, %v6804_v32 }
 0xe13   : > { %v8436_v63 = vpop.eup %8435  ;;  %v6805_v6 = vmul.f32 %v14522_v16, %v14410_v39  ;;  %v6957_v59 = vmul.f32 %v6925_v11, %v14607_v24  ;;  %v6958_v46 = vmul.f32 %v6926_v54, %v14609_v29  ;;  %v6806_v58 = vmul.f32 %v14522_v16, %v14414_v30 }
 0xe14   : > { %v8438_v2 = vpop.eup %8437  ;;  %v14685_v15 = vmul.f32 0.5, %v6840_v35  ;;  %v6807_v14 = vmul.f32 %v14522_v16, %v14438_v21  ;;  %v6808_v57 = vmul.f32 %v14522_v16, %v14442_v42  ;;  %8447 = vtanh.f32 %v14672_v13 }
 0xe15   : > { %8004 = vmatmul.mubr.bf16.gmra.mrb[12].mxu0 %v6980_v56  ;;  %v14692_v37 = vmul.f32 0.5, %v6841_v27  ;;  %v6982_v39 = vpack.c.bf16 %v6956_v31, %v6955_v12  ;;  %v6927_v24 = vadd.f32 1.0, %v8432_v26  ;;  %v6928_v50 = vadd.f32 1.0, %v8434_v48 }
 0xe16   : > { %8007 = vmatprep.mubr.bf16.mxu0 %v6981_v1  ;;  %v14694_v29 = vmul.f32 0.5, %v6842_v41  ;;  %v6983_v47 = vpack.c.bf16 %v6958_v46, %v6957_v59  ;;  %v6929_v3 = vadd.f32 1.0, %v8436_v63  ;;  %v6930_v30 = vadd.f32 1.0, %v8438_v2 }
 0xe17   : > { %v6843_v55 = vadd.f32 %v14531_v60, %v6805_v6  ;;  %8449 = vtanh.f32 %v14685_v15  ;;  %v6844_v21 = vadd.f32 %v14531_v60, %v6806_v58  ;;  %v6845_v45 = vadd.f32 %v14531_v60, %v6807_v14 }
 0xe18   : > { %v8440_v42 = vpop.eup %8439  ;;  %8451 = vtanh.f32 %v14692_v37  ;;  %v6959_v38 = vmul.f32 %v6927_v24, %v14626_v19  ;;  %v6960_v10 = vmul.f32 %v6928_v50, %v14631_v18  ;;  %v6846_v52 = vadd.f32 %v14531_v60, %v6808_v57 }
 0xe19   : > { %8453 = vtanh.f32 %v14694_v29  ;;  %v6961_v20 = vmul.f32 %v6929_v3, %v14634_v34  ;;  %v6962_v7 = vmul.f32 %v6930_v30, %v14636_v61  ;;  %v6875_v4 = vmul.f32 0.5, %v6843_v55 }
 0xe1a   : > { %v8442_v49 = vpop.eup %8441  ;;  %v6809_v44 = vmul.f32 %v14522_v16, %v14462_v25  ;;  %v6876_v40 = vmul.f32 0.5, %v6844_v21  ;;  %v6810_v19 = vmul.f32 %v14522_v16, %v14466_v9  ;;  %v6877_v8 = vmul.f32 0.5, %v6845_v45 }
 0xe1b   : > { %v8444_v5 = vpop.eup %8443  ;;  %v6984_v18 = vpack.c.bf16 %v6960_v10, %v6959_v38  ;;  %v6931_v28 = vadd.f32 1.0, %v8440_v42  ;;  %v6932_v62 = vadd.f32 1.0, %v8442_v49  ;;  %v6878_v51 = vmul.f32 0.5, %v6846_v52  ;;  %v14724_v38 = vld [vmem:[%s14859_s14] ss:$0 sm:$0xff] }
 0xe1c   : > { %v8446_v33 = vpop.eup %8445  ;;  %v6985_v0 = vpack.c.bf16 %v6962_v7, %v6961_v20  ;;  %v6933_v56 = vadd.f32 1.0, %v8444_v5  ;;  %8455 = vtanh.f32 %v6875_v4  ;;  %v6847_v61 = vadd.f32 %v14531_v60, %v6809_v44 }
 0xe1d   : > { %8008 = vmatmul.mubr.bf16.gmra.mrb[16].mxu0 %v6982_v39  ;;  %v6934_v34 = vadd.f32 1.0, %v8446_v33  ;;  %8457 = vtanh.f32 %v6876_v40  ;;  %v6848_v25 = vadd.f32 %v14531_v60, %v6810_v19  ;;  %v6963_v9 = vmul.f32 %v6931_v28, %v14653_v36 }
 0xe1e   : > { %8011 = vmatprep.mubr.bf16.mxu0 %v6983_v47  ;;  %v8448_v32 = vpop.eup %8447  ;;  %8459 = vtanh.f32 %v6877_v8  ;;  %v6964_v16 = vmul.f32 %v6932_v62, %v14657_v22  ;;  %v6965_v1 = vmul.f32 %v6933_v56, %v14663_v17  ;;  %v6879_v35 = vmul.f32 0.5, %v6847_v61 }
 0xe1f   : > { %8461 = vtanh.f32 %v6878_v51  ;;  %v6966_v11 = vmul.f32 %v6934_v34, %v14666_v53  ;;  %v6880_v26 = vmul.f32 0.5, %v6848_v25  ;;  %v6935_v48 = vadd.f32 1.0, %v8448_v32 }
 0xe20   : > { %v6986_v27 = vpack.c.bf16 %v6964_v16, %v6963_v9  ;;  %8463 = vtanh.f32 %v6879_v35 }
 0xe21   : > { %v8450_v23 = vpop.eup %8449  ;;  %v6987_v31 = vpack.c.bf16 %v6966_v11, %v6965_v1  ;;  %8465 = vtanh.f32 %v6880_v26  ;;  %v6967_v63 = vmul.f32 %v6935_v48, %v14672_v13 }
 0xe22   : > { %v8452_v43 = vpop.eup %8451  ;;  %v6936_v12 = vadd.f32 1.0, %v8450_v23 }
 0xe23   : > { %v8454_v54 = vpop.eup %8453  ;;  %v6937_v41 = vadd.f32 1.0, %v8452_v43 }
 0xe24   : > { %v6938_v60 = vadd.f32 1.0, %v8454_v54  ;;  %v6968_v17 = vmul.f32 %v6936_v12, %v14685_v15 }
 0xe25   : > { %8012 = vmatmul.mubr.bf16.gmra.mrb[20].mxu0 %v6984_v18  ;;  %v6969_v6 = vmul.f32 %v6937_v41, %v14692_v37 }
 0xe26   : > { %8015 = vmatprep.mubr.bf16.mxu0 %v6985_v0  ;;  %v8456_v36 = vpop.eup %8455  ;;  %v6970_v59 = vmul.f32 %v6938_v60, %v14694_v29  ;;  %v6988_v2 = vpack.c.bf16 %v6968_v17, %v6967_v63 }
 0xe27   : > { %v8458_v22 = vpop.eup %8457  ;;  %v6939_v58 = vadd.f32 1.0, %v8456_v36 }
 0xe28   : > { %v8460_v53 = vpop.eup %8459  ;;  %v6940_v14 = vadd.f32 1.0, %v8458_v22  ;;  %v6989_v57 = vpack.c.bf16 %v6970_v59, %v6969_v6 }
 0xe29   : > { %v8462_v46 = vpop.eup %8461  ;;  %v6941_v39 = vadd.f32 1.0, %v8460_v53  ;;  %v6971_v47 = vmul.f32 %v6939_v58, %v6875_v4 }
 0xe2a   : > { %v6942_v24 = vadd.f32 1.0, %v8462_v46  ;;  %v8464_v50 = vpop.eup %8463  ;;  %v6972_v3 = vmul.f32 %v6940_v14, %v6876_v40 }
 0xe2b   : > { %v8466_v13 = vpop.eup %8465  ;;  %v6973_v30 = vmul.f32 %v6941_v39, %v6877_v8  ;;  %v6943_v37 = vadd.f32 1.0, %v8464_v50 }
 0xe2c   : > { %v6974_v15 = vmul.f32 %v6942_v24, %v6878_v51  ;;  %v6990_v55 = vpack.c.bf16 %v6972_v3, %v6971_v47  ;;  %v6944_v21 = vadd.f32 1.0, %v8466_v13 }
 0xe2d   : > { %8016 = vmatmul.mubr.bf16.gmra.mrb[24].mxu0 %v6986_v27  ;;  %v6975_v42 = vmul.f32 %v6943_v37, %v6879_v35 }
 0xe2e   : > { %8019 = vmatprep.mubr.bf16.mxu0 %v6987_v31  ;;  %v6991_v29 = vpack.c.bf16 %v6974_v15, %v6973_v30  ;;  %v6976_v45 = vmul.f32 %v6944_v21, %v6880_v26 }
 0xe30   : > { %v6992_v49 = vpack.c.bf16 %v6976_v45, %v6975_v42 }
 0xe35   : > { %8020 = vmatmul.mubr.bf16.gmra.mrb[28].mxu0 %v6988_v2 }
 0xe36   : > { %8023 = vmatprep.mubr.bf16.mxu0 %v6989_v57 }
 0xe3d   : > { %8024 = vmatmul.mubr.bf16.gmra.mrb[32].mxu0 %v6990_v55 }
 0xe3e   : > { %8027 = vmatprep.mubr.bf16.mxu0 %v6991_v29 }
 0xe45   : > { %8028 = vmatmul.mubr.bf16.gmra.mrb[36].mxu0 %v6992_v49 }
 0xee0   : > { %v8001_v10 = vpop.f32.mrb[8].mxu0 }
 0xee1   : > { %v7107_v52 = vadd.f32 %v8001_v10, %v14724_v38  ;;  %v7098_v5 = vpop.f32.mrb[9].mxu0 }
 0xee2   : > { %v7099_v20 = vadd.f32 %v14724_v38, %v7098_v5  ;;  %v8002_v7 = vpop.f32.mrb[10].mxu0 }
 0xee3   : > { %7227 = vst [vmem:[%s14730_s25 + $0x10] sm:$0xff] %v7107_v52  ;;  %v7110_v4 = vadd.f32 %v8002_v7, %v14724_v38  ;;  %v7101_v33 = vpop.f32.mrb[11].mxu0 }
 0xee4   : > { %7225 = vst [vmem:[%s14730_s25] sm:$0xff] %v7099_v20  ;;  %v7102_v44 = vadd.f32 %v14724_v38, %v7101_v33 }
 0xee5   : > { %7228 = vst [vmem:[%s14730_s25 + $0x18] sm:$0xff] %v7110_v4 }
 0xee6   : > { %7226 = vst [vmem:[%s14730_s25 + $0x8] sm:$0xff] %v7102_v44 }
 0xee8   : > { %v8005_v40 = vpop.f32.mrb[12].mxu0 }
 0xee9   : > { %v7123_v19 = vadd.f32 %v8005_v40, %v14724_v38  ;;  %v7114_v8 = vpop.f32.mrb[13].mxu0 }
 0xeea   : > { %v7115_v18 = vadd.f32 %v14724_v38, %v7114_v8  ;;  %v8006_v28 = vpop.f32.mrb[14].mxu0 }
 0xeeb   : > { %7231 = vst [vmem:[%s14730_s25 + $0x30] sm:$0xff] %v7123_v19  ;;  %v7126_v62 = vadd.f32 %v8006_v28, %v14724_v38  ;;  %v7117_v51 = vpop.f32.mrb[15].mxu0 }
 0xeec   : > { %7229 = vst [vmem:[%s14730_s25 + $0x20] sm:$0xff] %v7115_v18  ;;  %v7118_v32 = vadd.f32 %v14724_v38, %v7117_v51 }
 0xeed   : > { %7232 = vst [vmem:[%s14730_s25 + $0x38] sm:$0xff] %v7126_v62 }
 0xeee   : > { %7230 = vst [vmem:[%s14730_s25 + $0x28] sm:$0xff] %v7118_v32 }
 0xef0   : > { %v8009_v0 = vpop.f32.mrb[16].mxu0 }
 0xef1   : > { %v7139_v56 = vadd.f32 %v8009_v0, %v14724_v38  ;;  %v7130_v34 = vpop.f32.mrb[17].mxu0 }
 0xef2   : > { %v7131_v61 = vadd.f32 %v14724_v38, %v7130_v34  ;;  %v8010_v25 = vpop.f32.mrb[18].mxu0 }
 0xef3   : > { %7235 = vst [vmem:[%s14730_s25 + $0x50] sm:$0xff] %v7139_v56  ;;  %v7142_v23 = vadd.f32 %v8010_v25, %v14724_v38  ;;  %v7133_v9 = vpop.f32.mrb[19].mxu0 }
 0xef4   : > { %7233 = vst [vmem:[%s14730_s25 + $0x40] sm:$0xff] %v7131_v61  ;;  %v7134_v16 = vadd.f32 %v14724_v38, %v7133_v9 }
 0xef5   : > { %7236 = vst [vmem:[%s14730_s25 + $0x58] sm:$0xff] %v7142_v23 }
 0xef6   : > { %7234 = vst [vmem:[%s14730_s25 + $0x48] sm:$0xff] %v7134_v16 }
 0xef8   : > { %v8013_v43 = vpop.f32.mrb[20].mxu0 }
 0xef9   : > { %v7155_v1 = vadd.f32 %v8013_v43, %v14724_v38  ;;  %v7146_v11 = vpop.f32.mrb[21].mxu0 }
 0xefa   : > { %v7147_v54 = vadd.f32 %v14724_v38, %v7146_v11  ;;  %v8014_v35 = vpop.f32.mrb[22].mxu0 }
 0xefb   : > { %7239 = vst [vmem:[%s14730_s25 + $0x70] sm:$0xff] %v7155_v1  ;;  %v7158_v26 = vadd.f32 %v8014_v35, %v14724_v38  ;;  %v7149_v27 = vpop.f32.mrb[23].mxu0 }
 0xefc   : > { %7237 = vst [vmem:[%s14730_s25 + $0x60] sm:$0xff] %v7147_v54  ;;  %v7150_v48 = vadd.f32 %v14724_v38, %v7149_v27 }
 0xefd   : > { %7240 = vst [vmem:[%s14730_s25 + $0x78] sm:$0xff] %v7158_v26 }
 0xefe   : > { %7238 = vst [vmem:[%s14730_s25 + $0x68] sm:$0xff] %v7150_v48 }
 0xf00   : > { %v8017_v12 = vpop.f32.mrb[24].mxu0 }
 0xf01   : > { %v7171_v31 = vadd.f32 %v8017_v12, %v14724_v38  ;;  %v7162_v41 = vpop.f32.mrb[25].mxu0 }
 0xf02   : > { %v7163_v60 = vadd.f32 %v14724_v38, %v7162_v41  ;;  %v8018_v36 = vpop.f32.mrb[26].mxu0 }
 0xf03   : > { %7243 = vst [vmem:[%s14730_s25 + $0x90] sm:$0xff] %v7171_v31  ;;  %v7174_v22 = vadd.f32 %v8018_v36, %v14724_v38  ;;  %v7165_v63 = vpop.f32.mrb[27].mxu0 }
 0xf04   : > { %7241 = vst [vmem:[%s14730_s25 + $0x80] sm:$0xff] %v7163_v60  ;;  %v7166_v17 = vadd.f32 %v14724_v38, %v7165_v63 }
 0xf05   : > { %7244 = vst [vmem:[%s14730_s25 + $0x98] sm:$0xff] %v7174_v22 }
 0xf06   : > { %7242 = vst [vmem:[%s14730_s25 + $0x88] sm:$0xff] %v7166_v17 }
 0xf08   : > { %v8021_v53 = vpop.f32.mrb[28].mxu0 }
 0xf09   : > { %v7187_v6 = vadd.f32 %v8021_v53, %v14724_v38  ;;  %v7178_v59 = vpop.f32.mrb[29].mxu0 }
 0xf0a   : > { %v7179_v46 = vadd.f32 %v14724_v38, %v7178_v59  ;;  %v8022_v2 = vpop.f32.mrb[30].mxu0 }
 0xf0b   : > { %7247 = vst [vmem:[%s14730_s25 + $0xb0] sm:$0xff] %v7187_v6  ;;  %v7190_v58 = vadd.f32 %v8022_v2, %v14724_v38  ;;  %v7181_v14 = vpop.f32.mrb[31].mxu0 }
 0xf0c   : > { %7245 = vst [vmem:[%s14730_s25 + $0xa0] sm:$0xff] %v7179_v46  ;;  %v7182_v57 = vadd.f32 %v14724_v38, %v7181_v14 }
 0xf0d   : > { %7248 = vst [vmem:[%s14730_s25 + $0xb8] sm:$0xff] %v7190_v58 }
 0xf0e   : > { %7246 = vst [vmem:[%s14730_s25 + $0xa8] sm:$0xff] %v7182_v57 }
 0xf10   : > { %v8025_v39 = vpop.f32.mrb[32].mxu0 }
 0xf11   : > { %v7203_v24 = vadd.f32 %v8025_v39, %v14724_v38  ;;  %v7194_v50 = vpop.f32.mrb[33].mxu0 }
 0xf12   : > { %v7195_v47 = vadd.f32 %v14724_v38, %v7194_v50  ;;  %v8026_v3 = vpop.f32.mrb[34].mxu0 }
 0xf13   : > { %7251 = vst [vmem:[%s14730_s25 + $0xd0] sm:$0xff] %v7203_v24  ;;  %v7206_v13 = vadd.f32 %v8026_v3, %v14724_v38  ;;  %v7197_v30 = vpop.f32.mrb[35].mxu0 }
 0xf14   : > { %7249 = vst [vmem:[%s14730_s25 + $0xc0] sm:$0xff] %v7195_v47  ;;  %v7198_v15 = vadd.f32 %v14724_v38, %v7197_v30 }
 0xf15   : > { %7252 = vst [vmem:[%s14730_s25 + $0xd8] sm:$0xff] %v7206_v13 }
 0xf16   : > { %7250 = vst [vmem:[%s14730_s25 + $0xc8] sm:$0xff] %v7198_v15 }
 0xf18   : > { %v8029_v55 = vpop.f32.mrb[36].mxu0 }
 0xf19   : > { %v7219_v37 = vadd.f32 %v8029_v55, %v14724_v38  ;;  %v7210_v21 = vpop.f32.mrb[37].mxu0 }
 0xf1a   : > { %v7211_v29 = vadd.f32 %v14724_v38, %v7210_v21  ;;  %v8030_v42 = vpop.f32.mrb[38].mxu0 }
 0xf1b   : > { %7255 = vst [vmem:[%s14730_s25 + $0xf0] sm:$0xff] %v7219_v37  ;;  %v7222_v45 = vadd.f32 %v8030_v42, %v14724_v38  ;;  %v7213_v49 = vpop.f32.mrb[39].mxu0 }
 0xf1c   : > { %7253 = vst [vmem:[%s14730_s25 + $0xe0] sm:$0xff] %v7211_v29  ;;  %v7214_v10 = vadd.f32 %v14724_v38, %v7213_v49 }
 0xf1d   : > { %7256 = vst [vmem:[%s14730_s25 + $0xf8] sm:$0xff] %v7222_v45 }
 0xf1e   : > { %7254 = vst [vmem:[%s14730_s25 + $0xe8] sm:$0xff] %v7214_v10 }
 0xf1f   : > { %8711 = shalt.err (!%p8708_p2)
}
 0xf20   : > { %s8712_s25 = scalar_lea.hbm %s14795_s30, 4096  ;;  %s8716_s24 = scalar_lea.hbm %s15897_s29, 8192 }
 0xf21   : > { %p8713_p4 = scmp.ne.s32.totalorder %s14795_s30, %s8712_s25  ;;  %p8717_p9 = scmp.lt.u32.totalorder %s14795_s30, %s15897_s29 }
 0xf22   : > { %p8718_p1 = scmp.lt.u32.totalorder %s8716_s24, %s8712_s25  ;;  %p8720_p6 = scmp.lt.u32.totalorder %s8712_s25, %s14795_s30 }
 0xf23   : > { %p8714_p5 = pnand %p8713_p4, %p15898_p11 }
 0xf24   : > { %p8719_p3 = por %p8718_p1, %p8717_p9 }
 0xf25   : > { %p8715_p7 = pneg %p8714_p5 }
 0xf26   : > { %p8721_p12 = por %p8720_p6, %p8719_p3 }
 0xf28   : > { %p8722_p13 = pnand %p8721_p12, %p8715_p7 }
 0xf2a   : > { %8725 = shalt.err (!%p8722_p13)
}
 0xf2b   : > { %s8774_s26 = smov 128   ;;  %s8775_s17 = smov 8  }
 0xf2c   : > { %s15899_s0 = scalar_lea.sflag [#allocation6], %s8960_s23 }
 0xf2d   : > { %8275 = dma.vmem_to_hbm [thread:$0]  (%p15898_p11), %s14797_s27, 4096, %s14795_s30, %s15899_s0, %s8774_s26, %s8774_s26, %s8775_s17  }
 0xf2e PF: > { %s15900_s28 = sld [smem:[#allocation10_spill]]  ;;  %p15901_p8 = scmp.ne.s32.totalorder %s15259_s16, 0 }
 0xf2f   : > { %p15902_p10 = scmp.ge.s32.totalorder %s8764_s21, 2 }
 0xf31   : > { %p8282_p0 = pnand %p15902_p10, %p15901_p8 }
 0xf34   : > { %s7286_s22 = sand.u32 1, %s15900_s28  }
 0xf35   : > { %s7287_s25 = scalar_lea.sflag [#allocation6], %s7286_s22 }
 0xf36   : > { %8747 = dma.done.wait (!%p8282_p0), %s7287_s25, 4096  }
 0xf37   : > { %8749 = vsyncadd (!%p8282_p0), %s7287_s25, 4294963200  ;;  %s15903_s21 = sld [smem:[#allocation12_spill]]  ;;  %s15904_s20 = sld [smem:[#allocation11_spill]] }
 0xf38   : > { %s15905_s24 = sld [smem:[#allocation13_spill]]  ;;  %s15906_s18 = smov %s8756_s19 }
 0xf3d   : > { %p28_p2 = scmp.ge.s32.totalorder %s15903_s21, 4   ;;  %s15907_s19 = smov %s15904_s20 }
 0xf3e   : > { %s15908_s20 = smov %s15905_s24 }
 0xf3f   :  { %30 = sbr.rel (!%p28_p2) target bundleno = 8 (0x8), region = 184 }
 0xf46   :  { %7292 = vsyncpa [#allocation5], 1 }
 0xf47   :  { %7294 = vsyncpa [#allocation5 + $0x1], 1 }
 0xf48   :  { %7295 = vsyncpa [#allocation6], 1 }
 0xf49   :  { %7297 = vsyncpa [#allocation6 + $0x1], 1 }

</bundles_post_ra>
